<compile_context>
chip_gen: v5e
topology: v5e:2x2
jax: 0.10.0
libtpu: 0.0.40
codegen_flags: <defaults>
</compile_context>

<pallas_src>
import functools

import jax
import jax.numpy as jnp
from jax import lax
from jax.experimental import pallas as pl
from jax.experimental.pallas import tpu as pltpu

# --- Static shapes implied by the module -------------------------------------
CIN, COUT = 6, 12
KH, KW = 8, 4
PH, PW = 3, 2
H, W = 19, 8                       # Bomberman board -> 1944 = 12 * 18 * 9
OH = H + 2 * PH - KH + 1           # 18
OW = W + 2 * PW - KW + 1           # 9
NPOS = OH * OW                     # 162 output positions per image
PATCH = CIN * KH * KW              # 192
FEAT = COUT * NPOS                 # 1944
H1, H2, H3 = 512, 256, 1


# --- Fused Pallas kernel ------------------------------------------------------
def _bombnet_kernel(pT_ref, wc_ref, bc_ref, w1_hbm, b1_ref, w2_ref, b2_ref,
                    w3_ref, b3_ref, o_ref, w1_vmem, w1_sem, *, nb):
    """sigmoid(conv) -> view(-1,1944) -> sigmoid(lin1) -> sigmoid(lin2) -> lin3."""
    # Kick off the W1 stream (dominant HBM transfer) so it overlaps the conv.
    w1_copy = pltpu.make_async_copy(w1_hbm, w1_vmem, w1_sem)
    w1_copy.start()

    # Conv2d as one lane-dense matmul: (12, 192) @ (192, nb*162) -> (12, nb*162).
    z = jnp.dot(wc_ref[...], pT_ref[...], preferred_element_type=jnp.float32)
    s = jax.nn.sigmoid(z + bc_ref[...])                      # f32 (12, nb*162)

    w1_copy.wait()

    # lin1: torch's channel-major view(-1, 1944) is folded into W1's
    # (12, 162, 512) block layout, so the 1944-long contraction becomes 12
    # per-channel K-blocks and no in-kernel transpose/reshape is needed.
    h1 = jnp.broadcast_to(b1_ref[...], (nb, H1))             # f32 (nb, 512)
    for c in range(COUT):
        w1_c = w1_vmem[c].astype(jnp.float32)                # (162, 512)
        rows = jnp.concatenate(
            [s[c:c + 1, b * NPOS:(b + 1) * NPOS] for b in range(nb)], axis=0)
        h1 = h1 + jnp.dot(rows, w1_c, preferred_element_type=jnp.float32)
    a1 = jax.nn.sigmoid(h1)                                  # (nb, 512)

    h2 = jnp.dot(a1, w2_ref[...].astype(jnp.float32),
                 preferred_element_type=jnp.float32) + b2_ref[...]
    a2 = jax.nn.sigmoid(h2)                                  # (nb, 256)

    o_ref[...] = jnp.dot(a2, w3_ref[...],
                         preferred_element_type=jnp.float32) + b3_ref[...]


def _vmem_spec():
    return pl.BlockSpec(memory_space=pltpu.MemorySpace.VMEM)


# --- JAX glue -----------------------------------------------------------------
def _im2col_T(x):
    """(B, 6, 19, 8) -> (192, B*162); row k = (ci, kh, kw), col = b*162 + oh*9 + ow."""
    # TODO(synk): patch extraction stays as XLA gather glue; rebuilding the 32
    # shifted slices inside the kernel is possible but not worth the lowering
    # risk for a ~7 KB input.
    B = x.shape[0]
    xp = jnp.pad(x, ((0, 0), (0, 0), (PH, PH), (PW, PW)))
    ih = jnp.arange(OH)[:, None] + jnp.arange(KH)[None, :]          # (18, 8)
    iw = jnp.arange(OW)[:, None] + jnp.arange(KW)[None, :]          # (9, 4)
    hh = ih[:, None, :, None]                                        # (18,1,8,1)
    ww = iw[None, :, None, :]                                        # (1,9,1,4)
    p6 = xp[:, :, hh, ww]                                            # (B,6,18,9,8,4)
    return p6.transpose(1, 4, 5, 0, 2, 3).reshape(PATCH, B * NPOS)   # (192, B*162)


@jax.jit
def bombnet_forward(x, prepped):
    wc_mat, bc2, w1r, b1r, w2b, b2r, w3, b3r = prepped
    B = x.shape[0]
    pT = _im2col_T(x)
    return pl.pallas_call(
        functools.partial(_bombnet_kernel, nb=B),
        out_shape=jax.ShapeDtypeStruct((B, H3), jnp.float32),
        in_specs=[
            _vmem_spec(),                        # patches^T (192, B*162)
            _vmem_spec(),                        # conv weight (12, 192)
            _vmem_spec(),                        # conv bias   (12, 1)
            pl.BlockSpec(memory_space=pl.ANY),   # W1 stays in HBM, streamed manually
            _vmem_spec(),                        # b1 (1, 512)
            _vmem_spec(),                        # W2 (512, 256) bf16
            _vmem_spec(),                        # b2 (1, 256)
            _vmem_spec(),                        # W3 (256, 1)
            _vmem_spec(),                        # b3 (1, 1)
        ],
        out_specs=_vmem_spec(),
        scratch_shapes=[
            pltpu.VMEM((COUT, NPOS, H1), jnp.bfloat16),  # W1 landing buffer (~2 MB)
            pltpu.SemaphoreType.DMA,                     # its completion semaphore
        ],
    )(pT, wc_mat, bc2, w1r, b1r, w2b, b2r, w3, b3r)


# --- Deterministic parameter init (PyTorch-style uniform fan-in bounds) -------
def init_params(key):
    ks = jax.random.split(key, 8)

    def u(k, shape, fan_in):
        bound = 1.0 / jnp.sqrt(jnp.float32(fan_in))
        return jax.random.uniform(k, shape, jnp.float32, -bound, bound)

    wc = u(ks[0], (COUT, CIN, KH, KW), PATCH)
    bc = u(ks[1], (COUT,), PATCH)
    w1 = u(ks[2], (FEAT, H1), FEAT)
    b1 = u(ks[3], (H1,), FEAT)
    w2 = u(ks[4], (H1, H2), H1)
    b2 = u(ks[5], (H2,), H1)
    w3 = u(ks[6], (H2, H3), H2)
    b3 = u(ks[7], (H3,), H2)
    return (wc, bc, w1, b1, w2, b2, w3, b3)


def prep_params(params):
    """One-time repack: fold the view(-1,1944) permutation into W1's block layout
    and store the two large weights in bf16 (halves dominant HBM traffic)."""
    wc, bc, w1, b1, w2, b2, w3, b3 = params
    return (
        wc.reshape(COUT, PATCH),                           # (12, 192)     f32
        bc.reshape(COUT, 1),                               # (12, 1)       f32
        w1.reshape(COUT, NPOS, H1).astype(jnp.bfloat16),   # (12, 162, 512) bf16
        b1.reshape(1, H1),                                 # (1, 512)      f32
        w2.astype(jnp.bfloat16),                           # (512, 256)    bf16
        b2.reshape(1, H2),                                 # (1, 256)      f32
        w3,                                                # (256, 1)      f32
        b3.reshape(1, H3),                                 # (1, 1)        f32
    )


# --- Pure-JAX reference (same bf16-stored weights) for correctness check ------
def reference_forward(x, prepped):
    wc_mat, bc2, w1r, b1r, w2b, b2r, w3, b3r = prepped
    wc = wc_mat.reshape(COUT, CIN, KH, KW)
    conv = lax.conv_general_dilated(
        x, wc, window_strides=(1, 1), padding=((PH, PH), (PW, PW)),
        dimension_numbers=("NCHW", "OIHW", "NCHW"))
    conv = jax.nn.sigmoid(conv + bc2.reshape(1, COUT, 1, 1))
    f = conv.reshape(x.shape[0], FEAT)                     # channel-major flatten
    w1 = w1r.astype(jnp.float32).reshape(FEAT, H1)
    h = jax.nn.sigmoid(f @ w1 + b1r)
    h = jax.nn.sigmoid(h @ w2b.astype(jnp.float32) + b2r)
    return h @ w3 + b3r


if __name__ == "__main__":
    key = jax.random.PRNGKey(0)
    kx, kp = jax.random.split(key)
    B = 2
    x = jax.random.normal(kx, (B, CIN, H, W), jnp.float32)
    params = prep_params(init_params(kp))

    out = jax.block_until_ready(bombnet_forward(x, params))
    ref = reference_forward(x, params)

    assert out.shape == (B, H3), out.shape
    # Tolerance relaxed from 1e-4 because W1/W2 are stored in bf16 (review-sanctioned);
    # kernel and reference use identical bf16-rounded weights, so agreement is tight.
    assert jnp.allclose(out, ref, atol=1e-3, rtol=1e-3), (out, ref)
    print("KERNEL_OK")
</pallas_src>

<mosaic_0001>
module attributes {stable_mosaic.version = 11 : i64} {
  func.func @_bombnet_kernel(%arg0: memref<192x324xf32, #tpu.memory_space<vmem>>, %arg1: memref<12x192xf32, #tpu.memory_space<vmem>>, %arg2: memref<12x1xf32, #tpu.memory_space<vmem>>, %arg3: memref<12x162x512xbf16, #tpu.memory_space<any>>, %arg4: memref<1x512xf32, #tpu.memory_space<vmem>>, %arg5: memref<512x256xbf16, #tpu.memory_space<vmem>>, %arg6: memref<1x256xf32, #tpu.memory_space<vmem>>, %arg7: memref<256x1xf32, #tpu.memory_space<vmem>>, %arg8: memref<1x1xf32, #tpu.memory_space<vmem>>, %arg9: memref<2x1xf32, #tpu.memory_space<vmem>>, %arg10: memref<12x162x512xbf16, #tpu.memory_space<vmem>>, %arg11: memref<!tpu.dma_semaphore, #tpu.memory_space<semaphore_mem>>) attributes {dimension_semantics = [], scalar_prefetch = 0 : i64, scratch_operands = 2 : i64, tpu.core_type = #tpu.core_type<tc>} {
    tpu.enqueue_dma source(%arg3 : memref<12x162x512xbf16, #tpu.memory_space<any>>) target(%arg10 : memref<12x162x512xbf16, #tpu.memory_space<vmem>>) target_semaphore(%arg11 : memref<!tpu.dma_semaphore, #tpu.memory_space<semaphore_mem>>)
    %c0 = arith.constant 0 : index
    %c0_0 = arith.constant 0 : index
    %0 = vector.load %arg1[%c0, %c0_0] : memref<12x192xf32, #tpu.memory_space<vmem>>, vector<12x192xf32>
    %c0_1 = arith.constant 0 : index
    %c0_2 = arith.constant 0 : index
    %1 = vector.load %arg0[%c0_1, %c0_2] : memref<192x324xf32, #tpu.memory_space<vmem>>, vector<192x324xf32>
    %cst = arith.constant dense<0.000000e+00> : vector<12x324xf32>
    %2 = tpu.matmul %0, %1, %cst {dimension_numbers = #tpu.dot_dimension_numbers<[1], [0], [0], [1], [0, 0, 1, 1], [], []>} : vector<12x192xf32>, vector<192x324xf32>, vector<12x324xf32> -> vector<12x324xf32>
    %c0_3 = arith.constant 0 : index
    %c0_4 = arith.constant 0 : index
    %3 = vector.load %arg2[%c0_3, %c0_4] : memref<12x1xf32, #tpu.memory_space<vmem>>, vector<12x1xf32>
    %4 = vector.broadcast %3 : vector<12x1xf32> to vector<12x324xf32>
    %5 = arith.addf %2, %4 : vector<12x324xf32>
    %6 = arith.negf %5 : vector<12x324xf32>
    %7 = math.exp %6 : vector<12x324xf32>
    %cst_5 = arith.constant 1.000000e+00 : f32
    %8 = vector.broadcast %cst_5 : f32 to vector<12x324xf32>
    %9 = arith.addf %8, %7 : vector<12x324xf32>
    %10 = arith.divf %8, %9 : vector<12x324xf32>
    tpu.wait_dma2 semaphore(%arg11 : memref<!tpu.dma_semaphore, #tpu.memory_space<semaphore_mem>>) src(%arg3 : memref<12x162x512xbf16, #tpu.memory_space<any>>) dst(%arg10 : memref<12x162x512xbf16, #tpu.memory_space<vmem>>)
    %c0_6 = arith.constant 0 : index
    %c0_7 = arith.constant 0 : index
    %11 = vector.load %arg4[%c0_6, %c0_7] : memref<1x512xf32, #tpu.memory_space<vmem>>, vector<1x512xf32>
    %12 = vector.shape_cast %11 : vector<1x512xf32> to vector<1x512xf32>
    %13 = vector.broadcast %12 : vector<1x512xf32> to vector<2x512xf32>
    %c0_8 = arith.constant 0 : index
    %c0_9 = arith.constant 0 : index
    %c0_10 = arith.constant 0 : index
    %14 = vector.load %arg10[%c0_8, %c0_9, %c0_10] : memref<12x162x512xbf16, #tpu.memory_space<vmem>>, vector<1x162x512xbf16>
    %15 = vector.shape_cast %14 : vector<1x162x512xbf16> to vector<162x512xbf16>
    %16 = arith.extf %15 : vector<162x512xbf16> to vector<162x512xf32>
    %17 = vector.extract_strided_slice %10 {offsets = [0, 0], sizes = [1, 162], strides = [1, 1]} : vector<12x324xf32> to vector<1x162xf32>
    %18 = vector.extract_strided_slice %10 {offsets = [0, 162], sizes = [1, 162], strides = [1, 1]} : vector<12x324xf32> to vector<1x162xf32>
    %19 = tpu.concatenate %17, %18 in 0 : vector<1x162xf32>, vector<1x162xf32> -> vector<2x162xf32>
    %cst_11 = arith.constant dense<0.000000e+00> : vector<2x512xf32>
    %20 = tpu.matmul %19, %16, %cst_11 {dimension_numbers = #tpu.dot_dimension_numbers<[1], [0], [0], [1], [0, 0, 1, 1], [], []>} : vector<2x162xf32>, vector<162x512xf32>, vector<2x512xf32> -> vector<2x512xf32>
    %21 = arith.addf %13, %20 : vector<2x512xf32>
    %c1 = arith.constant 1 : index
    %c0_12 = arith.constant 0 : index
    %c0_13 = arith.constant 0 : index
    %22 = vector.load %arg10[%c1, %c0_12, %c0_13] : memref<12x162x512xbf16, #tpu.memory_space<vmem>>, vector<1x162x512xbf16>
    %23 = vector.shape_cast %22 : vector<1x162x512xbf16> to vector<162x512xbf16>
    %24 = arith.extf %23 : vector<162x512xbf16> to vector<162x512xf32>
    %25 = vector.extract_strided_slice %10 {offsets = [1, 0], sizes = [1, 162], strides = [1, 1]} : vector<12x324xf32> to vector<1x162xf32>
    %26 = vector.extract_strided_slice %10 {offsets = [1, 162], sizes = [1, 162], strides = [1, 1]} : vector<12x324xf32> to vector<1x162xf32>
    %27 = tpu.concatenate %25, %26 in 0 : vector<1x162xf32>, vector<1x162xf32> -> vector<2x162xf32>
    %cst_14 = arith.constant dense<0.000000e+00> : vector<2x512xf32>
    %28 = tpu.matmul %27, %24, %cst_14 {dimension_numbers = #tpu.dot_dimension_numbers<[1], [0], [0], [1], [0, 0, 1, 1], [], []>} : vector<2x162xf32>, vector<162x512xf32>, vector<2x512xf32> -> vector<2x512xf32>
    %29 = arith.addf %21, %28 : vector<2x512xf32>
    %c2 = arith.constant 2 : index
    %c0_15 = arith.constant 0 : index
    %c0_16 = arith.constant 0 : index
    %30 = vector.load %arg10[%c2, %c0_15, %c0_16] : memref<12x162x512xbf16, #tpu.memory_space<vmem>>, vector<1x162x512xbf16>
    %31 = vector.shape_cast %30 : vector<1x162x512xbf16> to vector<162x512xbf16>
    %32 = arith.extf %31 : vector<162x512xbf16> to vector<162x512xf32>
    %33 = vector.extract_strided_slice %10 {offsets = [2, 0], sizes = [1, 162], strides = [1, 1]} : vector<12x324xf32> to vector<1x162xf32>
    %34 = vector.extract_strided_slice %10 {offsets = [2, 162], sizes = [1, 162], strides = [1, 1]} : vector<12x324xf32> to vector<1x162xf32>
    %35 = tpu.concatenate %33, %34 in 0 : vector<1x162xf32>, vector<1x162xf32> -> vector<2x162xf32>
    %cst_17 = arith.constant dense<0.000000e+00> : vector<2x512xf32>
    %36 = tpu.matmul %35, %32, %cst_17 {dimension_numbers = #tpu.dot_dimension_numbers<[1], [0], [0], [1], [0, 0, 1, 1], [], []>} : vector<2x162xf32>, vector<162x512xf32>, vector<2x512xf32> -> vector<2x512xf32>
    %37 = arith.addf %29, %36 : vector<2x512xf32>
    %c3 = arith.constant 3 : index
    %c0_18 = arith.constant 0 : index
    %c0_19 = arith.constant 0 : index
    %38 = vector.load %arg10[%c3, %c0_18, %c0_19] : memref<12x162x512xbf16, #tpu.memory_space<vmem>>, vector<1x162x512xbf16>
    %39 = vector.shape_cast %38 : vector<1x162x512xbf16> to vector<162x512xbf16>
    %40 = arith.extf %39 : vector<162x512xbf16> to vector<162x512xf32>
    %41 = vector.extract_strided_slice %10 {offsets = [3, 0], sizes = [1, 162], strides = [1, 1]} : vector<12x324xf32> to vector<1x162xf32>
    %42 = vector.extract_strided_slice %10 {offsets = [3, 162], sizes = [1, 162], strides = [1, 1]} : vector<12x324xf32> to vector<1x162xf32>
    %43 = tpu.concatenate %41, %42 in 0 : vector<1x162xf32>, vector<1x162xf32> -> vector<2x162xf32>
    %cst_20 = arith.constant dense<0.000000e+00> : vector<2x512xf32>
    %44 = tpu.matmul %43, %40, %cst_20 {dimension_numbers = #tpu.dot_dimension_numbers<[1], [0], [0], [1], [0, 0, 1, 1], [], []>} : vector<2x162xf32>, vector<162x512xf32>, vector<2x512xf32> -> vector<2x512xf32>
    %45 = arith.addf %37, %44 : vector<2x512xf32>
    %c4 = arith.constant 4 : index
    %c0_21 = arith.constant 0 : index
    %c0_22 = arith.constant 0 : index
    %46 = vector.load %arg10[%c4, %c0_21, %c0_22] : memref<12x162x512xbf16, #tpu.memory_space<vmem>>, vector<1x162x512xbf16>
    %47 = vector.shape_cast %46 : vector<1x162x512xbf16> to vector<162x512xbf16>
    %48 = arith.extf %47 : vector<162x512xbf16> to vector<162x512xf32>
    %49 = vector.extract_strided_slice %10 {offsets = [4, 0], sizes = [1, 162], strides = [1, 1]} : vector<12x324xf32> to vector<1x162xf32>
    %50 = vector.extract_strided_slice %10 {offsets = [4, 162], sizes = [1, 162], strides = [1, 1]} : vector<12x324xf32> to vector<1x162xf32>
    %51 = tpu.concatenate %49, %50 in 0 : vector<1x162xf32>, vector<1x162xf32> -> vector<2x162xf32>
    %cst_23 = arith.constant dense<0.000000e+00> : vector<2x512xf32>
    %52 = tpu.matmul %51, %48, %cst_23 {dimension_numbers = #tpu.dot_dimension_numbers<[1], [0], [0], [1], [0, 0, 1, 1], [], []>} : vector<2x162xf32>, vector<162x512xf32>, vector<2x512xf32> -> vector<2x512xf32>
    %53 = arith.addf %45, %52 : vector<2x512xf32>
    %c5 = arith.constant 5 : index
    %c0_24 = arith.constant 0 : index
    %c0_25 = arith.constant 0 : index
    %54 = vector.load %arg10[%c5, %c0_24, %c0_25] : memref<12x162x512xbf16, #tpu.memory_space<vmem>>, vector<1x162x512xbf16>
    %55 = vector.shape_cast %54 : vector<1x162x512xbf16> to vector<162x512xbf16>
    %56 = arith.extf %55 : vector<162x512xbf16> to vector<162x512xf32>
    %57 = vector.extract_strided_slice %10 {offsets = [5, 0], sizes = [1, 162], strides = [1, 1]} : vector<12x324xf32> to vector<1x162xf32>
    %58 = vector.extract_strided_slice %10 {offsets = [5, 162], sizes = [1, 162], strides = [1, 1]} : vector<12x324xf32> to vector<1x162xf32>
    %59 = tpu.concatenate %57, %58 in 0 : vector<1x162xf32>, vector<1x162xf32> -> vector<2x162xf32>
    %cst_26 = arith.constant dense<0.000000e+00> : vector<2x512xf32>
    %60 = tpu.matmul %59, %56, %cst_26 {dimension_numbers = #tpu.dot_dimension_numbers<[1], [0], [0], [1], [0, 0, 1, 1], [], []>} : vector<2x162xf32>, vector<162x512xf32>, vector<2x512xf32> -> vector<2x512xf32>
    %61 = arith.addf %53, %60 : vector<2x512xf32>
    %c6 = arith.constant 6 : index
    %c0_27 = arith.constant 0 : index
    %c0_28 = arith.constant 0 : index
    %62 = vector.load %arg10[%c6, %c0_27, %c0_28] : memref<12x162x512xbf16, #tpu.memory_space<vmem>>, vector<1x162x512xbf16>
    %63 = vector.shape_cast %62 : vector<1x162x512xbf16> to vector<162x512xbf16>
    %64 = arith.extf %63 : vector<162x512xbf16> to vector<162x512xf32>
    %65 = vector.extract_strided_slice %10 {offsets = [6, 0], sizes = [1, 162], strides = [1, 1]} : vector<12x324xf32> to vector<1x162xf32>
    %66 = vector.extract_strided_slice %10 {offsets = [6, 162], sizes = [1, 162], strides = [1, 1]} : vector<12x324xf32> to vector<1x162xf32>
    %67 = tpu.concatenate %65, %66 in 0 : vector<1x162xf32>, vector<1x162xf32> -> vector<2x162xf32>
    %cst_29 = arith.constant dense<0.000000e+00> : vector<2x512xf32>
    %68 = tpu.matmul %67, %64, %cst_29 {dimension_numbers = #tpu.dot_dimension_numbers<[1], [0], [0], [1], [0, 0, 1, 1], [], []>} : vector<2x162xf32>, vector<162x512xf32>, vector<2x512xf32> -> vector<2x512xf32>
    %69 = arith.addf %61, %68 : vector<2x512xf32>
    %c7 = arith.constant 7 : index
    %c0_30 = arith.constant 0 : index
    %c0_31 = arith.constant 0 : index
    %70 = vector.load %arg10[%c7, %c0_30, %c0_31] : memref<12x162x512xbf16, #tpu.memory_space<vmem>>, vector<1x162x512xbf16>
    %71 = vector.shape_cast %70 : vector<1x162x512xbf16> to vector<162x512xbf16>
    %72 = arith.extf %71 : vector<162x512xbf16> to vector<162x512xf32>
    %73 = vector.extract_strided_slice %10 {offsets = [7, 0], sizes = [1, 162], strides = [1, 1]} : vector<12x324xf32> to vector<1x162xf32>
    %74 = vector.extract_strided_slice %10 {offsets = [7, 162], sizes = [1, 162], strides = [1, 1]} : vector<12x324xf32> to vector<1x162xf32>
    %75 = tpu.concatenate %73, %74 in 0 : vector<1x162xf32>, vector<1x162xf32> -> vector<2x162xf32>
    %cst_32 = arith.constant dense<0.000000e+00> : vector<2x512xf32>
    %76 = tpu.matmul %75, %72, %cst_32 {dimension_numbers = #tpu.dot_dimension_numbers<[1], [0], [0], [1], [0, 0, 1, 1], [], []>} : vector<2x162xf32>, vector<162x512xf32>, vector<2x512xf32> -> vector<2x512xf32>
    %77 = arith.addf %69, %76 : vector<2x512xf32>
    %c8 = arith.constant 8 : index
    %c0_33 = arith.constant 0 : index
    %c0_34 = arith.constant 0 : index
    %78 = vector.load %arg10[%c8, %c0_33, %c0_34] : memref<12x162x512xbf16, #tpu.memory_space<vmem>>, vector<1x162x512xbf16>
    %79 = vector.shape_cast %78 : vector<1x162x512xbf16> to vector<162x512xbf16>
    %80 = arith.extf %79 : vector<162x512xbf16> to vector<162x512xf32>
    %81 = vector.extract_strided_slice %10 {offsets = [8, 0], sizes = [1, 162], strides = [1, 1]} : vector<12x324xf32> to vector<1x162xf32>
    %82 = vector.extract_strided_slice %10 {offsets = [8, 162], sizes = [1, 162], strides = [1, 1]} : vector<12x324xf32> to vector<1x162xf32>
    %83 = tpu.concatenate %81, %82 in 0 : vector<1x162xf32>, vector<1x162xf32> -> vector<2x162xf32>
    %cst_35 = arith.constant dense<0.000000e+00> : vector<2x512xf32>
    %84 = tpu.matmul %83, %80, %cst_35 {dimension_numbers = #tpu.dot_dimension_numbers<[1], [0], [0], [1], [0, 0, 1, 1], [], []>} : vector<2x162xf32>, vector<162x512xf32>, vector<2x512xf32> -> vector<2x512xf32>
    %85 = arith.addf %77, %84 : vector<2x512xf32>
    %c9 = arith.constant 9 : index
    %c0_36 = arith.constant 0 : index
    %c0_37 = arith.constant 0 : index
    %86 = vector.load %arg10[%c9, %c0_36, %c0_37] : memref<12x162x512xbf16, #tpu.memory_space<vmem>>, vector<1x162x512xbf16>
    %87 = vector.shape_cast %86 : vector<1x162x512xbf16> to vector<162x512xbf16>
    %88 = arith.extf %87 : vector<162x512xbf16> to vector<162x512xf32>
    %89 = vector.extract_strided_slice %10 {offsets = [9, 0], sizes = [1, 162], strides = [1, 1]} : vector<12x324xf32> to vector<1x162xf32>
    %90 = vector.extract_strided_slice %10 {offsets = [9, 162], sizes = [1, 162], strides = [1, 1]} : vector<12x324xf32> to vector<1x162xf32>
    %91 = tpu.concatenate %89, %90 in 0 : vector<1x162xf32>, vector<1x162xf32> -> vector<2x162xf32>
    %cst_38 = arith.constant dense<0.000000e+00> : vector<2x512xf32>
    %92 = tpu.matmul %91, %88, %cst_38 {dimension_numbers = #tpu.dot_dimension_numbers<[1], [0], [0], [1], [0, 0, 1, 1], [], []>} : vector<2x162xf32>, vector<162x512xf32>, vector<2x512xf32> -> vector<2x512xf32>
    %93 = arith.addf %85, %92 : vector<2x512xf32>
    %c10 = arith.constant 10 : index
    %c0_39 = arith.constant 0 : index
    %c0_40 = arith.constant 0 : index
    %94 = vector.load %arg10[%c10, %c0_39, %c0_40] : memref<12x162x512xbf16, #tpu.memory_space<vmem>>, vector<1x162x512xbf16>
    %95 = vector.shape_cast %94 : vector<1x162x512xbf16> to vector<162x512xbf16>
    %96 = arith.extf %95 : vector<162x512xbf16> to vector<162x512xf32>
    %97 = vector.extract_strided_slice %10 {offsets = [10, 0], sizes = [1, 162], strides = [1, 1]} : vector<12x324xf32> to vector<1x162xf32>
    %98 = vector.extract_strided_slice %10 {offsets = [10, 162], sizes = [1, 162], strides = [1, 1]} : vector<12x324xf32> to vector<1x162xf32>
    %99 = tpu.concatenate %97, %98 in 0 : vector<1x162xf32>, vector<1x162xf32> -> vector<2x162xf32>
    %cst_41 = arith.constant dense<0.000000e+00> : vector<2x512xf32>
    %100 = tpu.matmul %99, %96, %cst_41 {dimension_numbers = #tpu.dot_dimension_numbers<[1], [0], [0], [1], [0, 0, 1, 1], [], []>} : vector<2x162xf32>, vector<162x512xf32>, vector<2x512xf32> -> vector<2x512xf32>
    %101 = arith.addf %93, %100 : vector<2x512xf32>
    %c11 = arith.constant 11 : index
    %c0_42 = arith.constant 0 : index
    %c0_43 = arith.constant 0 : index
    %102 = vector.load %arg10[%c11, %c0_42, %c0_43] : memref<12x162x512xbf16, #tpu.memory_space<vmem>>, vector<1x162x512xbf16>
    %103 = vector.shape_cast %102 : vector<1x162x512xbf16> to vector<162x512xbf16>
    %104 = arith.extf %103 : vector<162x512xbf16> to vector<162x512xf32>
    %105 = vector.extract_strided_slice %10 {offsets = [11, 0], sizes = [1, 162], strides = [1, 1]} : vector<12x324xf32> to vector<1x162xf32>
    %106 = vector.extract_strided_slice %10 {offsets = [11, 162], sizes = [1, 162], strides = [1, 1]} : vector<12x324xf32> to vector<1x162xf32>
    %107 = tpu.concatenate %105, %106 in 0 : vector<1x162xf32>, vector<1x162xf32> -> vector<2x162xf32>
    %cst_44 = arith.constant dense<0.000000e+00> : vector<2x512xf32>
    %108 = tpu.matmul %107, %104, %cst_44 {dimension_numbers = #tpu.dot_dimension_numbers<[1], [0], [0], [1], [0, 0, 1, 1], [], []>} : vector<2x162xf32>, vector<162x512xf32>, vector<2x512xf32> -> vector<2x512xf32>
    %109 = arith.addf %101, %108 : vector<2x512xf32>
    %110 = arith.negf %109 : vector<2x512xf32>
    %111 = math.exp %110 : vector<2x512xf32>
    %cst_45 = arith.constant 1.000000e+00 : f32
    %112 = vector.broadcast %cst_45 : f32 to vector<2x512xf32>
    %113 = arith.addf %112, %111 : vector<2x512xf32>
    %114 = arith.divf %112, %113 : vector<2x512xf32>
    %c0_46 = arith.constant 0 : index
    %c0_47 = arith.constant 0 : index
    %115 = vector.load %arg5[%c0_46, %c0_47] : memref<512x256xbf16, #tpu.memory_space<vmem>>, vector<512x256xbf16>
    %116 = arith.extf %115 : vector<512x256xbf16> to vector<512x256xf32>
    %cst_48 = arith.constant dense<0.000000e+00> : vector<2x256xf32>
    %117 = tpu.matmul %114, %116, %cst_48 {dimension_numbers = #tpu.dot_dimension_numbers<[1], [0], [0], [1], [0, 0, 1, 1], [], []>} : vector<2x512xf32>, vector<512x256xf32>, vector<2x256xf32> -> vector<2x256xf32>
    %c0_49 = arith.constant 0 : index
    %c0_50 = arith.constant 0 : index
    %118 = vector.load %arg6[%c0_49, %c0_50] : memref<1x256xf32, #tpu.memory_space<vmem>>, vector<1x256xf32>
    %119 = vector.broadcast %118 : vector<1x256xf32> to vector<2x256xf32>
    %120 = arith.addf %117, %119 : vector<2x256xf32>
    %121 = arith.negf %120 : vector<2x256xf32>
    %122 = math.exp %121 : vector<2x256xf32>
    %cst_51 = arith.constant 1.000000e+00 : f32
    %123 = vector.broadcast %cst_51 : f32 to vector<2x256xf32>
    %124 = arith.addf %123, %122 : vector<2x256xf32>
    %125 = arith.divf %123, %124 : vector<2x256xf32>
    %c0_52 = arith.constant 0 : index
    %c0_53 = arith.constant 0 : index
    %126 = vector.load %arg7[%c0_52, %c0_53] : memref<256x1xf32, #tpu.memory_space<vmem>>, vector<256x1xf32>
    %cst_54 = arith.constant dense<0.000000e+00> : vector<2x1xf32>
    %127 = tpu.matmul %125, %126, %cst_54 {dimension_numbers = #tpu.dot_dimension_numbers<[1], [0], [0], [1], [0, 0, 1, 1], [], []>} : vector<2x256xf32>, vector<256x1xf32>, vector<2x1xf32> -> vector<2x1xf32>
    %c0_55 = arith.constant 0 : index
    %c0_56 = arith.constant 0 : index
    %128 = vector.load %arg8[%c0_55, %c0_56] : memref<1x1xf32, #tpu.memory_space<vmem>>, vector<1x1xf32>
    %129 = vector.broadcast %128 : vector<1x1xf32> to vector<2x1xf32>
    %130 = arith.addf %127, %129 : vector<2x1xf32>
    %c0_57 = arith.constant 0 : index
    %c0_58 = arith.constant 0 : index
    %131 = vector.load %arg9[%c0_57, %c0_58] : memref<2x1xf32, #tpu.memory_space<vmem>>, vector<2x1xf32>
    tpu.vector_store %arg9[%c0_57, %c0_58], %130 {strides = array<i32>} : memref<2x1xf32, #tpu.memory_space<vmem>>, vector<2x1xf32>,
    return
  }
}

</mosaic_0001>

<bundles_post_ra>
// kernel: bombnet_forward.1
= control target key start
LH: loop header
LB: loop body
LE: loop exit
PB: predicated region body
PF: predicated region fallthrough
CT: control target
= control target key end

     0   :  { %s10914_s0 = inlined_call_operand.vmem [shape: f32[192,324], index: 0, kind: input, shape index: {}]   ;;  %s10915_s1 = inlined_call_operand.vmem [shape: f32[12,192], index: 1, kind: input, shape index: {}]   ;;  %s10916_s2 = inlined_call_operand.vmem [shape: f32[12,1], index: 2, kind: input, shape index: {}]   ;;  %s10917_s4 = inlined_call_operand.vmem [shape: f32[1,512], index: 4, kind: input, shape index: {}]   ;;  %s10918_s5 = inlined_call_operand.vmem [shape: bf16[512,256], index: 5, kind: input, shape index: {}]   ;;  %s10919_s6 = inlined_call_operand.vmem [shape: f32[1,256], index: 6, kind: input, shape index: {}]   ;;  %s10920_s7 = inlined_call_operand.vmem [shape: f32[256,1], index: 7, kind: input, shape index: {}]   ;;  %s10921_s8 = inlined_call_operand.<no memory space> [shape: f32[1,1], index: 8, kind: input, shape index: {}]   ;;  %s10922_s9 = inlined_call_operand.vmem [shape: f32[2,1], index: 9, kind: output, shape index: {}]   ;;  %s10923_s3 = inlined_call_operand.vmem [shape: bf16[12,162,512], index: 3, kind: input, shape index: {}]  }
   0x1   :  { %v14_v0 = vstv %s10921_s8  ;;  %v42_v1 = vld [vmem:[%s10923_s3] sm:$0xff]  ;;  %v44_v2 = vld [vmem:[%s10923_s3 + $0x8] sm:$0xff]  ;;  %v46_v3 = vld [vmem:[%s10923_s3 + $0x10] sm:$0xff] }
   0x2   :  { %15 = vst [vmem:[#allocation4] sm:$0x1] %v14_v0  ;;  %v48_v4 = vld [vmem:[%s10923_s3 + $0x18] sm:$0xff]  ;;  %v50_v5 = vld [vmem:[%s10923_s3 + $0x20] sm:$0xff]  ;;  %v52_v6 = vld [vmem:[%s10923_s3 + $0x28] sm:$0xff] }
   0x3   :  { %43 = vst [vmem:[#allocation2 + $0xab0] sm:$0xff] %v42_v1  ;;  %v54_v7 = vld [vmem:[%s10923_s3 + $0x30] sm:$0xff]  ;;  %v56_v8 = vld [vmem:[%s10923_s3 + $0x38] sm:$0xff]  ;;  %v58_v9 = vld [vmem:[%s10923_s3 + $0x40] sm:$0xff] }
   0x4   :  { %45 = vst [vmem:[#allocation2 + $0xbb0] sm:$0xff] %v44_v2  ;;  %v60_v10 = vld [vmem:[%s10923_s3 + $0x48] sm:$0xff]  ;;  %v62_v11 = vld [vmem:[%s10923_s3 + $0x50] sm:$0xff]  ;;  %v64_v12 = vld [vmem:[%s10923_s3 + $0x58] sm:$0xff] }
   0x5   :  { %47 = vst [vmem:[#allocation2 + $0x4d8] sm:$0xff] %v46_v3  ;;  %v66_v13 = vld [vmem:[%s10923_s3 + $0x60] sm:$0xff]  ;;  %v68_v14 = vld [vmem:[%s10923_s3 + $0x68] sm:$0xff]  ;;  %v70_v15 = vld [vmem:[%s10923_s3 + $0x70] sm:$0xff] }
   0x6   :  { %49 = vst [vmem:[#allocation2 + $0x818] sm:$0xff] %v48_v4  ;;  %v72_v16 = vld [vmem:[%s10923_s3 + $0x78] sm:$0xff]  ;;  %v74_v17 = vld [vmem:[%s10923_s3 + $0x80] sm:$0xff]  ;;  %v76_v18 = vld [vmem:[%s10923_s3 + $0x88] sm:$0xff] }
   0x7   :  { %51 = vst [vmem:[#allocation2 + $0xc50] sm:$0xff] %v50_v5  ;;  %v78_v19 = vld [vmem:[%s10923_s3 + $0x90] sm:$0xff]  ;;  %v80_v20 = vld [vmem:[%s10923_s3 + $0x98] sm:$0xff]  ;;  %v82_v21 = vld [vmem:[%s10923_s3 + $0xa0] sm:$0xff] }
   0x8   :  { %53 = vst [vmem:[#allocation2 + $0x810] sm:$0xff] %v52_v6  ;;  %v84_v22 = vld [vmem:[%s10923_s3 + $0xa8] sm:$0xff]  ;;  %v86_v23 = vld [vmem:[%s10923_s3 + $0xb0] sm:$0xff]  ;;  %v88_v24 = vld [vmem:[%s10923_s3 + $0xb8] sm:$0xff] }
   0x9   :  { %55 = vst [vmem:[#allocation2 + $0x770] sm:$0xff] %v54_v7  ;;  %v90_v25 = vld [vmem:[%s10923_s3 + $0xc0] sm:$0xff]  ;;  %v92_v26 = vld [vmem:[%s10923_s3 + $0xc8] sm:$0xff]  ;;  %v94_v27 = vld [vmem:[%s10923_s3 + $0xd0] sm:$0xff] }
   0xa   :  { %57 = vst [vmem:[#allocation2 + $0x338] sm:$0xff] %v56_v8  ;;  %v96_v28 = vld [vmem:[%s10923_s3 + $0xd8] sm:$0xff]  ;;  %v98_v29 = vld [vmem:[%s10923_s3 + $0xe0] sm:$0xff]  ;;  %v100_v30 = vld [vmem:[%s10923_s3 + $0xe8] sm:$0xff] }
   0xb   :  { %59 = vst [vmem:[#allocation2 + $0x450] sm:$0xff] %v58_v9  ;;  %v102_v31 = vld [vmem:[%s10923_s3 + $0xf0] sm:$0xff]  ;;  %v104_v32 = vld [vmem:[%s10923_s3 + $0xf8] sm:$0xff]  ;;  %v106_v33 = vld [vmem:[%s10923_s3 + $0x100] sm:$0xff] }
   0xc   :  { %61 = vst [vmem:[#allocation2 + $0xb88] sm:$0xff] %v60_v10  ;;  %v108_v34 = vld [vmem:[%s10923_s3 + $0x108] sm:$0xff]  ;;  %v110_v35 = vld [vmem:[%s10923_s3 + $0x110] sm:$0xff]  ;;  %v112_v36 = vld [vmem:[%s10923_s3 + $0x118] sm:$0xff] }
   0xd   :  { %63 = vst [vmem:[#allocation2 + $0x918] sm:$0xff] %v62_v11  ;;  %v114_v37 = vld [vmem:[%s10923_s3 + $0x120] sm:$0xff]  ;;  %v116_v38 = vld [vmem:[%s10923_s3 + $0x128] sm:$0xff]  ;;  %v118_v39 = vld [vmem:[%s10923_s3 + $0x130] sm:$0xff] }
   0xe   :  { %65 = vst [vmem:[#allocation2 + $0xd20] sm:$0xff] %v64_v12  ;;  %v120_v40 = vld [vmem:[%s10923_s3 + $0x138] sm:$0xff]  ;;  %v122_v41 = vld [vmem:[%s10923_s3 + $0x140] sm:$0xff]  ;;  %v124_v42 = vld [vmem:[%s10923_s3 + $0x148] sm:$0xff] }
   0xf   :  { %67 = vst [vmem:[#allocation2 + $0xca0] sm:$0xff] %v66_v13  ;;  %v126_v43 = vld [vmem:[%s10923_s3 + $0x150] sm:$0xff]  ;;  %v128_v44 = vld [vmem:[%s10923_s3 + $0x158] sm:$0xff]  ;;  %v130_v45 = vld [vmem:[%s10923_s3 + $0x160] sm:$0xff] }
  0x10   :  { %69 = vst [vmem:[#allocation2 + $0xb28] sm:$0xff] %v68_v14  ;;  %v132_v46 = vld [vmem:[%s10923_s3 + $0x168] sm:$0xff]  ;;  %v134_v47 = vld [vmem:[%s10923_s3 + $0x170] sm:$0xff]  ;;  %v136_v48 = vld [vmem:[%s10923_s3 + $0x178] sm:$0xff] }
  0x11   :  { %71 = vst [vmem:[#allocation2 + $0xd58] sm:$0xff] %v70_v15  ;;  %v138_v49 = vld [vmem:[%s10923_s3 + $0x180] sm:$0xff]  ;;  %v140_v50 = vld [vmem:[%s10923_s3 + $0x188] sm:$0xff]  ;;  %v142_v51 = vld [vmem:[%s10923_s3 + $0x190] sm:$0xff] }
  0x12   :  { %73 = vst [vmem:[#allocation2 + $0x510] sm:$0xff] %v72_v16  ;;  %v144_v52 = vld [vmem:[%s10923_s3 + $0x198] sm:$0xff]  ;;  %v146_v53 = vld [vmem:[%s10923_s3 + $0x1a0] sm:$0xff]  ;;  %v148_v54 = vld [vmem:[%s10923_s3 + $0x1a8] sm:$0xff] }
  0x13   :  { %75 = vst [vmem:[#allocation2 + $0x728] sm:$0xff] %v74_v17  ;;  %v150_v55 = vld [vmem:[%s10923_s3 + $0x1b0] sm:$0xff]  ;;  %v152_v56 = vld [vmem:[%s10923_s3 + $0x1b8] sm:$0xff]  ;;  %v154_v57 = vld [vmem:[%s10923_s3 + $0x1c0] sm:$0xff] }
  0x14   :  { %77 = vst [vmem:[#allocation2 + $0x6e8] sm:$0xff] %v76_v18  ;;  %v156_v58 = vld [vmem:[%s10923_s3 + $0x1c8] sm:$0xff]  ;;  %v158_v59 = vld [vmem:[%s10923_s3 + $0x1d0] sm:$0xff]  ;;  %v160_v60 = vld [vmem:[%s10923_s3 + $0x1d8] sm:$0xff] }
  0x15   :  { %79 = vst [vmem:[#allocation2 + $0x790] sm:$0xff] %v78_v19  ;;  %v162_v61 = vld [vmem:[%s10923_s3 + $0x1e0] sm:$0xff]  ;;  %v164_v62 = vld [vmem:[%s10923_s3 + $0x1e8] sm:$0xff]  ;;  %v166_v63 = vld [vmem:[%s10923_s3 + $0x1f0] sm:$0xff] }
  0x16   :  { %81 = vst [vmem:[#allocation2 + $0x340] sm:$0xff] %v80_v20  ;;  %v168_v0 = vld [vmem:[%s10923_s3 + $0x1f8] sm:$0xff]  ;;  %v170_v1 = vld [vmem:[%s10923_s3 + $0x200] sm:$0xff]  ;;  %v172_v2 = vld [vmem:[%s10923_s3 + $0x208] sm:$0xff] }
  0x17   :  { %83 = vst [vmem:[#allocation2 + $0x748] sm:$0xff] %v82_v21  ;;  %v174_v3 = vld [vmem:[%s10923_s3 + $0x210] sm:$0xff]  ;;  %v176_v4 = vld [vmem:[%s10923_s3 + $0x218] sm:$0xff]  ;;  %v178_v5 = vld [vmem:[%s10923_s3 + $0x220] sm:$0xff] }
  0x18   :  { %85 = vst [vmem:[#allocation2 + $0x830] sm:$0xff] %v84_v22  ;;  %v180_v6 = vld [vmem:[%s10923_s3 + $0x228] sm:$0xff]  ;;  %v182_v7 = vld [vmem:[%s10923_s3 + $0x230] sm:$0xff]  ;;  %v184_v8 = vld [vmem:[%s10923_s3 + $0x238] sm:$0xff] }
  0x19   :  { %87 = vst [vmem:[#allocation2 + $0xaf0] sm:$0xff] %v86_v23  ;;  %v186_v9 = vld [vmem:[%s10923_s3 + $0x240] sm:$0xff]  ;;  %v188_v10 = vld [vmem:[%s10923_s3 + $0x248] sm:$0xff]  ;;  %v190_v11 = vld [vmem:[%s10923_s3 + $0x250] sm:$0xff] }
  0x1a   :  { %89 = vst [vmem:[#allocation2 + $0x5b8] sm:$0xff] %v88_v24  ;;  %v192_v12 = vld [vmem:[%s10923_s3 + $0x258] sm:$0xff]  ;;  %v194_v13 = vld [vmem:[%s10923_s3 + $0x260] sm:$0xff]  ;;  %v196_v14 = vld [vmem:[%s10923_s3 + $0x268] sm:$0xff] }
  0x1b   :  { %91 = vst [vmem:[#allocation2 + $0x5c8] sm:$0xff] %v90_v25  ;;  %v198_v15 = vld [vmem:[%s10923_s3 + $0x270] sm:$0xff]  ;;  %v200_v16 = vld [vmem:[%s10923_s3 + $0x278] sm:$0xff]  ;;  %v202_v17 = vld [vmem:[%s10923_s3 + $0x280] sm:$0xff] }
  0x1c   :  { %93 = vst [vmem:[#allocation2 + $0xd78] sm:$0xff] %v92_v26  ;;  %v204_v18 = vld [vmem:[%s10923_s3 + $0x288] sm:$0xff]  ;;  %v206_v19 = vld [vmem:[%s10923_s3 + $0x290] sm:$0xff]  ;;  %v208_v20 = vld [vmem:[%s10923_s3 + $0x298] sm:$0xff] }
  0x1d   :  { %95 = vst [vmem:[#allocation2 + $0x3f8] sm:$0xff] %v94_v27  ;;  %v210_v21 = vld [vmem:[%s10923_s3 + $0x2a0] sm:$0xff]  ;;  %v212_v22 = vld [vmem:[%s10923_s3 + $0x2a8] sm:$0xff]  ;;  %v214_v23 = vld [vmem:[%s10923_s3 + $0x2b0] sm:$0xff] }
  0x1e   :  { %97 = vst [vmem:[#allocation2 + $0xf08] sm:$0xff] %v96_v28  ;;  %v216_v24 = vld [vmem:[%s10923_s3 + $0x2b8] sm:$0xff]  ;;  %v218_v25 = vld [vmem:[%s10923_s3 + $0x2c0] sm:$0xff]  ;;  %v220_v26 = vld [vmem:[%s10923_s3 + $0x2c8] sm:$0xff] }
  0x1f   :  { %99 = vst [vmem:[#allocation2 + $0xea0] sm:$0xff] %v98_v29  ;;  %v222_v27 = vld [vmem:[%s10923_s3 + $0x2d0] sm:$0xff]  ;;  %v224_v28 = vld [vmem:[%s10923_s3 + $0x2d8] sm:$0xff]  ;;  %v226_v29 = vld [vmem:[%s10923_s3 + $0x2e0] sm:$0xff] }
  0x20   :  { %101 = vst [vmem:[#allocation2 + $0xb78] sm:$0xff] %v100_v30  ;;  %v228_v30 = vld [vmem:[%s10923_s3 + $0x2e8] sm:$0xff] }
  0x21   :  { %103 = vst [vmem:[#allocation2 + $0x948] sm:$0xff] %v102_v31  ;;  %v230_v31 = vld [vmem:[%s10923_s3 + $0x2f0] sm:$0xff] }
  0x22   :  { %105 = vst [vmem:[#allocation2 + $0xbf8] sm:$0xff] %v104_v32  ;;  %v232_v32 = vld [vmem:[%s10923_s3 + $0x2f8] sm:$0xff] }
  0x23   :  { %107 = vst [vmem:[#allocation2 + $0x9d0] sm:$0xff] %v106_v33  ;;  %v234_v33 = vld [vmem:[%s10923_s3 + $0x300] sm:$0xff] }
  0x24   :  { %109 = vst [vmem:[#allocation2 + $0xa90] sm:$0xff] %v108_v34  ;;  %v236_v34 = vld [vmem:[%s10923_s3 + $0x308] sm:$0xff] }
  0x25   :  { %111 = vst [vmem:[#allocation2 + $0x910] sm:$0xff] %v110_v35  ;;  %v238_v35 = vld [vmem:[%s10923_s3 + $0x310] sm:$0xff] }
  0x26   :  { %113 = vst [vmem:[#allocation2 + $0xbd0] sm:$0xff] %v112_v36  ;;  %v240_v36 = vld [vmem:[%s10923_s3 + $0x318] sm:$0xff] }
  0x27   :  { %115 = vst [vmem:[#allocation2 + $0xd68] sm:$0xff] %v114_v37  ;;  %v242_v37 = vld [vmem:[%s10923_s3 + $0x320] sm:$0xff] }
  0x28   :  { %117 = vst [vmem:[#allocation2 + $0xbf0] sm:$0xff] %v116_v38  ;;  %v244_v38 = vld [vmem:[%s10923_s3 + $0x328] sm:$0xff] }
  0x29   :  { %119 = vst [vmem:[#allocation2 + $0x868] sm:$0xff] %v118_v39  ;;  %v246_v39 = vld [vmem:[%s10923_s3 + $0x330] sm:$0xff] }
  0x2a   :  { %121 = vst [vmem:[#allocation2 + $0xe30] sm:$0xff] %v120_v40  ;;  %v248_v40 = vld [vmem:[%s10923_s3 + $0x338] sm:$0xff] }
  0x2b   :  { %123 = vst [vmem:[#allocation2 + $0xcd8] sm:$0xff] %v122_v41  ;;  %v250_v41 = vld [vmem:[%s10923_s3 + $0x340] sm:$0xff] }
  0x2c   :  { %125 = vst [vmem:[#allocation2 + $0x18] sm:$0xff] %v124_v42  ;;  %v252_v42 = vld [vmem:[%s10923_s3 + $0x348] sm:$0xff] }
  0x2d   :  { %127 = vst [vmem:[#allocation2 + $0x528] sm:$0xff] %v126_v43  ;;  %v254_v43 = vld [vmem:[%s10923_s3 + $0x350] sm:$0xff] }
  0x2e   :  { %129 = vst [vmem:[#allocation2 + $0x418] sm:$0xff] %v128_v44  ;;  %v256_v44 = vld [vmem:[%s10923_s3 + $0x358] sm:$0xff] }
  0x2f   :  { %131 = vst [vmem:[#allocation2 + $0x938] sm:$0xff] %v130_v45  ;;  %v258_v45 = vld [vmem:[%s10923_s3 + $0x360] sm:$0xff] }
  0x30   :  { %133 = vst [vmem:[#allocation2 + $0xec8] sm:$0xff] %v132_v46  ;;  %v260_v46 = vld [vmem:[%s10923_s3 + $0x368] sm:$0xff] }
  0x31   :  { %135 = vst [vmem:[#allocation2 + $0x158] sm:$0xff] %v134_v47  ;;  %v262_v47 = vld [vmem:[%s10923_s3 + $0x370] sm:$0xff] }
  0x32   :  { %137 = vst [vmem:[#allocation2 + $0x8e0] sm:$0xff] %v136_v48  ;;  %v264_v48 = vld [vmem:[%s10923_s3 + $0x378] sm:$0xff] }
  0x33   :  { %139 = vst [vmem:[#allocation2 + $0x8a8] sm:$0xff] %v138_v49  ;;  %v266_v49 = vld [vmem:[%s10923_s3 + $0x380] sm:$0xff] }
  0x34   :  { %141 = vst [vmem:[#allocation2 + $0x318] sm:$0xff] %v140_v50  ;;  %v268_v50 = vld [vmem:[%s10923_s3 + $0x388] sm:$0xff] }
  0x35   :  { %143 = vst [vmem:[#allocation2 + $0x6f8] sm:$0xff] %v142_v51  ;;  %v270_v51 = vld [vmem:[%s10923_s3 + $0x390] sm:$0xff] }
  0x36   :  { %145 = vst [vmem:[#allocation2 + $0x5f0] sm:$0xff] %v144_v52  ;;  %v272_v52 = vld [vmem:[%s10923_s3 + $0x398] sm:$0xff] }
  0x37   :  { %147 = vst [vmem:[#allocation2 + $0x618] sm:$0xff] %v146_v53  ;;  %v274_v53 = vld [vmem:[%s10923_s3 + $0x3a0] sm:$0xff] }
  0x38   :  { %149 = vst [vmem:[#allocation2 + $0x628] sm:$0xff] %v148_v54  ;;  %v276_v54 = vld [vmem:[%s10923_s3 + $0x3a8] sm:$0xff] }
  0x39   :  { %151 = vst [vmem:[#allocation2 + $0x7a0] sm:$0xff] %v150_v55  ;;  %v278_v55 = vld [vmem:[%s10923_s3 + $0x3b0] sm:$0xff] }
  0x3a   :  { %153 = vst [vmem:[#allocation2 + $0xd50] sm:$0xff] %v152_v56  ;;  %v280_v56 = vld [vmem:[%s10923_s3 + $0x3b8] sm:$0xff] }
  0x3b   :  { %155 = vst [vmem:[#allocation2 + $0x670] sm:$0xff] %v154_v57  ;;  %v282_v57 = vld [vmem:[%s10923_s3 + $0x3c0] sm:$0xff] }
  0x3c   :  { %157 = vst [vmem:[#allocation2 + $0xa80] sm:$0xff] %v156_v58  ;;  %v284_v58 = vld [vmem:[%s10923_s3 + $0x3c8] sm:$0xff] }
  0x3d   :  { %159 = vst [vmem:[#allocation2 + $0xe8] sm:$0xff] %v158_v59  ;;  %v286_v59 = vld [vmem:[%s10923_s3 + $0x3d0] sm:$0xff] }
  0x3e   :  { %161 = vst [vmem:[#allocation2 + $0x20] sm:$0xff] %v160_v60  ;;  %v288_v60 = vld [vmem:[%s10923_s3 + $0x3d8] sm:$0xff] }
  0x3f   :  { %163 = vst [vmem:[#allocation2 + $0x8d0] sm:$0xff] %v162_v61  ;;  %v290_v61 = vld [vmem:[%s10923_s3 + $0x3e0] sm:$0xff] }
  0x40   :  { %165 = vst [vmem:[#allocation2 + $0x100] sm:$0xff] %v164_v62  ;;  %v292_v62 = vld [vmem:[%s10923_s3 + $0x3e8] sm:$0xff] }
  0x41   :  { %167 = vst [vmem:[#allocation2 + $0x7f8] sm:$0xff] %v166_v63  ;;  %v294_v63 = vld [vmem:[%s10923_s3 + $0x3f0] sm:$0xff] }
  0x42   :  { %169 = vst [vmem:[#allocation2 + $0xe60] sm:$0xff] %v168_v0  ;;  %v296_v0 = vld [vmem:[%s10923_s3 + $0x3f8] sm:$0xff] }
  0x43   :  { %171 = vst [vmem:[#allocation2 + $0x88] sm:$0xff] %v170_v1  ;;  %v298_v1 = vld [vmem:[%s10923_s3 + $0x400] sm:$0xff] }
  0x44   :  { %173 = vst [vmem:[#allocation2 + $0xbe0] sm:$0xff] %v172_v2  ;;  %v300_v2 = vld [vmem:[%s10923_s3 + $0x408] sm:$0xff] }
  0x45   :  { %175 = vst [vmem:[#allocation2 + $0xd28] sm:$0xff] %v174_v3  ;;  %v302_v3 = vld [vmem:[%s10923_s3 + $0x410] sm:$0xff] }
  0x46   :  { %177 = vst [vmem:[#allocation2 + $0x350] sm:$0xff] %v176_v4  ;;  %v304_v4 = vld [vmem:[%s10923_s3 + $0x418] sm:$0xff] }
  0x47   :  { %179 = vst [vmem:[#allocation2 + $0x488] sm:$0xff] %v178_v5  ;;  %v306_v5 = vld [vmem:[%s10923_s3 + $0x420] sm:$0xff] }
  0x48   :  { %181 = vst [vmem:[#allocation2 + $0x480] sm:$0xff] %v180_v6  ;;  %v308_v6 = vld [vmem:[%s10923_s3 + $0x428] sm:$0xff] }
  0x49   :  { %183 = vst [vmem:[#allocation2 + $0x70] sm:$0xff] %v182_v7  ;;  %v310_v7 = vld [vmem:[%s10923_s3 + $0x430] sm:$0xff] }
  0x4a   :  { %185 = vst [vmem:[#allocation2 + $0x118] sm:$0xff] %v184_v8  ;;  %v312_v8 = vld [vmem:[%s10923_s3 + $0x438] sm:$0xff] }
  0x4b   :  { %187 = vst [vmem:[#allocation2 + $0x578] sm:$0xff] %v186_v9  ;;  %v314_v9 = vld [vmem:[%s10923_s3 + $0x440] sm:$0xff] }
  0x4c   :  { %189 = vst [vmem:[#allocation2 + $0x200] sm:$0xff] %v188_v10  ;;  %v316_v10 = vld [vmem:[%s10923_s3 + $0x448] sm:$0xff] }
  0x4d   :  { %191 = vst [vmem:[#allocation2 + $0xeb8] sm:$0xff] %v190_v11  ;;  %v318_v11 = vld [vmem:[%s10923_s3 + $0x450] sm:$0xff] }
  0x4e   :  { %193 = vst [vmem:[#allocation2 + $0xda0] sm:$0xff] %v192_v12  ;;  %v320_v12 = vld [vmem:[%s10923_s3 + $0x458] sm:$0xff] }
  0x4f   :  { %195 = vst [vmem:[#allocation2 + $0x650] sm:$0xff] %v194_v13  ;;  %v322_v13 = vld [vmem:[%s10923_s3 + $0x460] sm:$0xff] }
  0x50   :  { %197 = vst [vmem:[#allocation2 + $0x6c8] sm:$0xff] %v196_v14  ;;  %v324_v14 = vld [vmem:[%s10923_s3 + $0x468] sm:$0xff] }
  0x51   :  { %199 = vst [vmem:[#allocation2 + $0xbb8] sm:$0xff] %v198_v15  ;;  %v326_v15 = vld [vmem:[%s10923_s3 + $0x470] sm:$0xff] }
  0x52   :  { %201 = vst [vmem:[#allocation2 + $0xf28] sm:$0xff] %v200_v16  ;;  %v328_v16 = vld [vmem:[%s10923_s3 + $0x478] sm:$0xff] }
  0x53   :  { %203 = vst [vmem:[#allocation2 + $0x330] sm:$0xff] %v202_v17  ;;  %v330_v17 = vld [vmem:[%s10923_s3 + $0x480] sm:$0xff] }
  0x54   :  { %205 = vst [vmem:[#allocation2 + $0xa38] sm:$0xff] %v204_v18  ;;  %v332_v18 = vld [vmem:[%s10923_s3 + $0x488] sm:$0xff] }
  0x55   :  { %207 = vst [vmem:[#allocation2 + $0x798] sm:$0xff] %v206_v19  ;;  %v334_v19 = vld [vmem:[%s10923_s3 + $0x490] sm:$0xff] }
  0x56   :  { %209 = vst [vmem:[#allocation2 + $0x8a0] sm:$0xff] %v208_v20  ;;  %v336_v20 = vld [vmem:[%s10923_s3 + $0x498] sm:$0xff] }
  0x57   :  { %211 = vst [vmem:[#allocation2 + $0x640] sm:$0xff] %v210_v21  ;;  %v338_v21 = vld [vmem:[%s10923_s3 + $0x4a0] sm:$0xff] }
  0x58   :  { %213 = vst [vmem:[#allocation2 + $0x780] sm:$0xff] %v212_v22  ;;  %v340_v22 = vld [vmem:[%s10923_s3 + $0x4a8] sm:$0xff] }
  0x59   :  { %215 = vst [vmem:[#allocation2 + $0xde0] sm:$0xff] %v214_v23  ;;  %v342_v23 = vld [vmem:[%s10923_s3 + $0x4b0] sm:$0xff] }
  0x5a   :  { %217 = vst [vmem:[#allocation2 + $0x9a0] sm:$0xff] %v216_v24  ;;  %v344_v24 = vld [vmem:[%s10923_s3 + $0x4b8] sm:$0xff] }
  0x5b   :  { %219 = vst [vmem:[#allocation2 + $0x8d8] sm:$0xff] %v218_v25  ;;  %v346_v25 = vld [vmem:[%s10923_s3 + $0x4c0] sm:$0xff] }
  0x5c   :  { %221 = vst [vmem:[#allocation2 + $0x278] sm:$0xff] %v220_v26  ;;  %v348_v26 = vld [vmem:[%s10923_s3 + $0x4c8] sm:$0xff] }
  0x5d   :  { %223 = vst [vmem:[#allocation2 + $0x1e0] sm:$0xff] %v222_v27  ;;  %v350_v27 = vld [vmem:[%s10923_s3 + $0x4d0] sm:$0xff] }
  0x5e   :  { %225 = vst [vmem:[#allocation2 + $0x128] sm:$0xff] %v224_v28  ;;  %v352_v28 = vld [vmem:[%s10923_s3 + $0x4d8] sm:$0xff] }
  0x5f   :  { %227 = vst [vmem:[#allocation2 + $0x478] sm:$0xff] %v226_v29  ;;  %v354_v29 = vld [vmem:[%s10923_s3 + $0x4e0] sm:$0xff] }
  0x60   :  { %229 = vst [vmem:[#allocation2 + $0x2d0] sm:$0xff] %v228_v30  ;;  %v356_v30 = vld [vmem:[%s10923_s3 + $0x4e8] sm:$0xff] }
  0x61   :  { %231 = vst [vmem:[#allocation2 + $0x190] sm:$0xff] %v230_v31  ;;  %v358_v31 = vld [vmem:[%s10923_s3 + $0x4f0] sm:$0xff] }
  0x62   :  { %233 = vst [vmem:[#allocation2 + $0x170] sm:$0xff] %v232_v32  ;;  %v360_v32 = vld [vmem:[%s10923_s3 + $0x4f8] sm:$0xff] }
  0x63   :  { %235 = vst [vmem:[#allocation2 + $0xe38] sm:$0xff] %v234_v33  ;;  %v362_v33 = vld [vmem:[%s10923_s3 + $0x500] sm:$0xff] }
  0x64   :  { %237 = vst [vmem:[#allocation2 + $0xe70] sm:$0xff] %v236_v34  ;;  %v364_v34 = vld [vmem:[%s10923_s3 + $0x508] sm:$0xff] }
  0x65   :  { %239 = vst [vmem:[#allocation2 + $0x6e0] sm:$0xff] %v238_v35  ;;  %v366_v35 = vld [vmem:[%s10923_s3 + $0x510] sm:$0xff] }
  0x66   :  { %241 = vst [vmem:[#allocation2 + $0x370] sm:$0xff] %v240_v36  ;;  %v368_v36 = vld [vmem:[%s10923_s3 + $0x518] sm:$0xff] }
  0x67   :  { %243 = vst [vmem:[#allocation2 + $0xa48] sm:$0xff] %v242_v37  ;;  %v370_v37 = vld [vmem:[%s10923_s3 + $0x520] sm:$0xff] }
  0x68   :  { %245 = vst [vmem:[#allocation2 + $0xad0] sm:$0xff] %v244_v38  ;;  %v372_v38 = vld [vmem:[%s10923_s3 + $0x528] sm:$0xff] }
  0x69   :  { %247 = vst [vmem:[#allocation2 + $0xe98] sm:$0xff] %v246_v39  ;;  %v374_v39 = vld [vmem:[%s10923_s3 + $0x530] sm:$0xff] }
  0x6a   :  { %249 = vst [vmem:[#allocation2 + $0x9b0] sm:$0xff] %v248_v40  ;;  %v376_v40 = vld [vmem:[%s10923_s3 + $0x538] sm:$0xff] }
  0x6b   :  { %251 = vst [vmem:[#allocation2 + $0x408] sm:$0xff] %v250_v41  ;;  %v378_v41 = vld [vmem:[%s10923_s3 + $0x540] sm:$0xff] }
  0x6c   :  { %253 = vst [vmem:[#allocation2 + $0x400] sm:$0xff] %v252_v42  ;;  %v380_v42 = vld [vmem:[%s10923_s3 + $0x548] sm:$0xff] }
  0x6d   :  { %255 = vst [vmem:[#allocation2 + $0x750] sm:$0xff] %v254_v43  ;;  %v382_v43 = vld [vmem:[%s10923_s3 + $0x550] sm:$0xff] }
  0x6e   :  { %257 = vst [vmem:[#allocation2 + $0x1e8] sm:$0xff] %v256_v44  ;;  %v384_v44 = vld [vmem:[%s10923_s3 + $0x558] sm:$0xff] }
  0x6f   :  { %259 = vst [vmem:[#allocation2 + $0x9c0] sm:$0xff] %v258_v45  ;;  %v386_v45 = vld [vmem:[%s10923_s3 + $0x560] sm:$0xff] }
  0x70   :  { %261 = vst [vmem:[#allocation2 + $0x500] sm:$0xff] %v260_v46  ;;  %v388_v46 = vld [vmem:[%s10923_s3 + $0x568] sm:$0xff] }
  0x71   :  { %263 = vst [vmem:[#allocation2 + $0xeb0] sm:$0xff] %v262_v47  ;;  %v390_v47 = vld [vmem:[%s10923_s3 + $0x570] sm:$0xff] }
  0x72   :  { %265 = vst [vmem:[#allocation2 + $0x428] sm:$0xff] %v264_v48  ;;  %v392_v48 = vld [vmem:[%s10923_s3 + $0x578] sm:$0xff] }
  0x73   :  { %267 = vst [vmem:[#allocation2 + $0xc98] sm:$0xff] %v266_v49  ;;  %v394_v49 = vld [vmem:[%s10923_s3 + $0x580] sm:$0xff] }
  0x74   :  { %269 = vst [vmem:[#allocation2 + $0xae8] sm:$0xff] %v268_v50  ;;  %v396_v50 = vld [vmem:[%s10923_s3 + $0x588] sm:$0xff] }
  0x75   :  { %271 = vst [vmem:[#allocation2 + $0xa18] sm:$0xff] %v270_v51  ;;  %v398_v51 = vld [vmem:[%s10923_s3 + $0x590] sm:$0xff] }
  0x76   :  { %273 = vst [vmem:[#allocation2 + $0xa10] sm:$0xff] %v272_v52  ;;  %v400_v52 = vld [vmem:[%s10923_s3 + $0x598] sm:$0xff] }
  0x77   :  { %275 = vst [vmem:[#allocation2 + $0xd40] sm:$0xff] %v274_v53  ;;  %v402_v53 = vld [vmem:[%s10923_s3 + $0x5a0] sm:$0xff] }
  0x78   :  { %277 = vst [vmem:[#allocation2 + $0xba8] sm:$0xff] %v276_v54  ;;  %v404_v54 = vld [vmem:[%s10923_s3 + $0x5a8] sm:$0xff] }
  0x79   :  { %279 = vst [vmem:[#allocation2 + $0x3c8] sm:$0xff] %v278_v55  ;;  %v406_v55 = vld [vmem:[%s10923_s3 + $0x5b0] sm:$0xff] }
  0x7a   :  { %281 = vst [vmem:[#allocation2 + $0x5d0] sm:$0xff] %v280_v56  ;;  %v408_v56 = vld [vmem:[%s10923_s3 + $0x5b8] sm:$0xff] }
  0x7b   :  { %283 = vst [vmem:[#allocation2 + $0x970] sm:$0xff] %v282_v57  ;;  %v410_v57 = vld [vmem:[%s10923_s3 + $0x5c0] sm:$0xff] }
  0x7c   :  { %285 = vst [vmem:[#allocation2 + $0x980] sm:$0xff] %v284_v58  ;;  %v412_v58 = vld [vmem:[%s10923_s3 + $0x5c8] sm:$0xff] }
  0x7d   :  { %287 = vst [vmem:[#allocation2 + $0xb00] sm:$0xff] %v286_v59  ;;  %v414_v59 = vld [vmem:[%s10923_s3 + $0x5d0] sm:$0xff] }
  0x7e   :  { %289 = vst [vmem:[#allocation2 + $0x950] sm:$0xff] %v288_v60  ;;  %v416_v60 = vld [vmem:[%s10923_s3 + $0x5d8] sm:$0xff] }
  0x7f   :  { %291 = vst [vmem:[#allocation2 + $0x300] sm:$0xff] %v290_v61  ;;  %v418_v61 = vld [vmem:[%s10923_s3 + $0x5e0] sm:$0xff] }
  0x80   :  { %293 = vst [vmem:[#allocation2 + $0xef8] sm:$0xff] %v292_v62  ;;  %v420_v62 = vld [vmem:[%s10923_s3 + $0x5e8] sm:$0xff] }
  0x81   :  { %295 = vst [vmem:[#allocation2 + $0xd48] sm:$0xff] %v294_v63  ;;  %v422_v63 = vld [vmem:[%s10923_s3 + $0x5f0] sm:$0xff] }
  0x82   :  { %297 = vst [vmem:[#allocation2 + $0xab8] sm:$0xff] %v296_v0  ;;  %v424_v0 = vld [vmem:[%s10923_s3 + $0x5f8] sm:$0xff] }
  0x83   :  { %299 = vst [vmem:[#allocation2 + $0x28] sm:$0xff] %v298_v1  ;;  %v426_v1 = vld [vmem:[%s10923_s3 + $0x600] sm:$0xff] }
  0x84   :  { %301 = vst [vmem:[#allocation2 + $0x8b8] sm:$0xff] %v300_v2  ;;  %v428_v2 = vld [vmem:[%s10923_s3 + $0x608] sm:$0xff] }
  0x85   :  { %303 = vst [vmem:[#allocation2 + $0xe10] sm:$0xff] %v302_v3  ;;  %v430_v3 = vld [vmem:[%s10923_s3 + $0x610] sm:$0xff] }
  0x86   :  { %305 = vst [vmem:[#allocation2 + $0xb50] sm:$0xff] %v304_v4  ;;  %v432_v4 = vld [vmem:[%s10923_s3 + $0x618] sm:$0xff] }
  0x87   :  { %307 = vst [vmem:[#allocation2 + $0x168] sm:$0xff] %v306_v5  ;;  %v434_v5 = vld [vmem:[%s10923_s3 + $0x620] sm:$0xff] }
  0x88   :  { %309 = vst [vmem:[#allocation2 + $0xc70] sm:$0xff] %v308_v6  ;;  %v436_v6 = vld [vmem:[%s10923_s3 + $0x628] sm:$0xff] }
  0x89   :  { %311 = vst [vmem:[#allocation2 + $0x940] sm:$0xff] %v310_v7  ;;  %v438_v7 = vld [vmem:[%s10923_s3 + $0x630] sm:$0xff] }
  0x8a   :  { %313 = vst [vmem:[#allocation2 + $0x688] sm:$0xff] %v312_v8  ;;  %v440_v8 = vld [vmem:[%s10923_s3 + $0x638] sm:$0xff] }
  0x8b   :  { %315 = vst [vmem:[#allocation2 + $0x2c0] sm:$0xff] %v314_v9  ;;  %v442_v9 = vld [vmem:[%s10923_s3 + $0x640] sm:$0xff] }
  0x8c   :  { %317 = vst [vmem:[#allocation2 + $0xd8] sm:$0xff] %v316_v10  ;;  %v444_v10 = vld [vmem:[%s10923_s3 + $0x648] sm:$0xff] }
  0x8d   :  { %319 = vst [vmem:[#allocation2 + $0xb80] sm:$0xff] %v318_v11  ;;  %v446_v11 = vld [vmem:[%s10923_s3 + $0x650] sm:$0xff] }
  0x8e   :  { %321 = vst [vmem:[#allocation2 + $0x448] sm:$0xff] %v320_v12  ;;  %v448_v12 = vld [vmem:[%s10923_s3 + $0x658] sm:$0xff] }
  0x8f   :  { %323 = vst [vmem:[#allocation2 + $0xf10] sm:$0xff] %v322_v13  ;;  %v450_v13 = vld [vmem:[%s10923_s3 + $0x660] sm:$0xff] }
  0x90   :  { %325 = vst [vmem:[#allocation2 + $0xba0] sm:$0xff] %v324_v14  ;;  %v452_v14 = vld [vmem:[%s10923_s3 + $0x668] sm:$0xff] }
  0x91   :  { %327 = vst [vmem:[#allocation2 + $0xc30] sm:$0xff] %v326_v15  ;;  %v454_v15 = vld [vmem:[%s10923_s3 + $0x670] sm:$0xff] }
  0x92   :  { %329 = vst [vmem:[#allocation2 + $0xd38] sm:$0xff] %v328_v16  ;;  %v456_v16 = vld [vmem:[%s10923_s3 + $0x678] sm:$0xff] }
  0x93   :  { %331 = vst [vmem:[#allocation2 + $0x7a8] sm:$0xff] %v330_v17  ;;  %v458_v17 = vld [vmem:[%s10923_s3 + $0x680] sm:$0xff] }
  0x94   :  { %333 = vst [vmem:[#allocation2 + $0x6a0] sm:$0xff] %v332_v18  ;;  %v460_v18 = vld [vmem:[%s10923_s3 + $0x688] sm:$0xff] }
  0x95   :  { %335 = vst [vmem:[#allocation2 + $0x3c0] sm:$0xff] %v334_v19  ;;  %v462_v19 = vld [vmem:[%s10923_s3 + $0x690] sm:$0xff] }
  0x96   :  { %337 = vst [vmem:[#allocation2 + $0x228] sm:$0xff] %v336_v20  ;;  %v464_v20 = vld [vmem:[%s10923_s3 + $0x698] sm:$0xff] }
  0x97   :  { %339 = vst [vmem:[#allocation2 + $0xcf0] sm:$0xff] %v338_v21  ;;  %v466_v21 = vld [vmem:[%s10923_s3 + $0x6a0] sm:$0xff] }
  0x98   :  { %341 = vst [vmem:[#allocation2 + $0x220] sm:$0xff] %v340_v22  ;;  %v468_v22 = vld [vmem:[%s10923_s3 + $0x6a8] sm:$0xff] }
  0x99   :  { %343 = vst [vmem:[#allocation2 + $0x678] sm:$0xff] %v342_v23  ;;  %v470_v23 = vld [vmem:[%s10923_s3 + $0x6b0] sm:$0xff] }
  0x9a   :  { %345 = vst [vmem:[#allocation2 + $0x5b0] sm:$0xff] %v344_v24  ;;  %v472_v24 = vld [vmem:[%s10923_s3 + $0x6b8] sm:$0xff] }
  0x9b   :  { %347 = vst [vmem:[#allocation2 + $0x848] sm:$0xff] %v346_v25  ;;  %v474_v25 = vld [vmem:[%s10923_s3 + $0x6c0] sm:$0xff] }
  0x9c   :  { %349 = vst [vmem:[#allocation2 + $0x468] sm:$0xff] %v348_v26  ;;  %v476_v26 = vld [vmem:[%s10923_s3 + $0x6c8] sm:$0xff] }
  0x9d   :  { %351 = vst [vmem:[#allocation2 + $0x248] sm:$0xff] %v350_v27  ;;  %v478_v27 = vld [vmem:[%s10923_s3 + $0x6d0] sm:$0xff] }
  0x9e   :  { %353 = vst [vmem:[#allocation2 + $0xc60] sm:$0xff] %v352_v28  ;;  %v480_v28 = vld [vmem:[%s10923_s3 + $0x6d8] sm:$0xff] }
  0x9f   :  { %355 = vst [vmem:[#allocation2 + $0x30] sm:$0xff] %v354_v29  ;;  %v482_v29 = vld [vmem:[%s10923_s3 + $0x6e0] sm:$0xff] }
  0xa0   :  { %357 = vst [vmem:[#allocation2 + $0x7f0] sm:$0xff] %v356_v30  ;;  %v484_v30 = vld [vmem:[%s10923_s3 + $0x6e8] sm:$0xff] }
  0xa1   :  { %359 = vst [vmem:[#allocation2 + $0x8] sm:$0xff] %v358_v31  ;;  %v486_v31 = vld [vmem:[%s10923_s3 + $0x6f0] sm:$0xff] }
  0xa2   :  { %361 = vst [vmem:[#allocation2 + $0x778] sm:$0xff] %v360_v32  ;;  %v488_v32 = vld [vmem:[%s10923_s3 + $0x6f8] sm:$0xff] }
  0xa3   :  { %363 = vst [vmem:[#allocation2 + $0x4a8] sm:$0xff] %v362_v33  ;;  %v490_v33 = vld [vmem:[%s10923_s3 + $0x700] sm:$0xff] }
  0xa4   :  { %365 = vst [vmem:[#allocation2 + $0x4b8] sm:$0xff] %v364_v34  ;;  %v492_v34 = vld [vmem:[%s10923_s3 + $0x708] sm:$0xff] }
  0xa5   :  { %367 = vst [vmem:[#allocation2 + $0x328] sm:$0xff] %v366_v35  ;;  %v494_v35 = vld [vmem:[%s10923_s3 + $0x710] sm:$0xff] }
  0xa6   :  { %369 = vst [vmem:[#allocation2 + $0x3a0] sm:$0xff] %v368_v36  ;;  %v496_v36 = vld [vmem:[%s10923_s3 + $0x718] sm:$0xff] }
  0xa7   :  { %371 = vst [vmem:[#allocation2 + $0x7b8] sm:$0xff] %v370_v37  ;;  %v498_v37 = vld [vmem:[%s10923_s3 + $0x720] sm:$0xff] }
  0xa8   :  { %373 = vst [vmem:[#allocation2 + $0xd80] sm:$0xff] %v372_v38  ;;  %v500_v38 = vld [vmem:[%s10923_s3 + $0x728] sm:$0xff] }
  0xa9   :  { %375 = vst [vmem:[#allocation2 + $0xb98] sm:$0xff] %v374_v39  ;;  %v502_v39 = vld [vmem:[%s10923_s3 + $0x730] sm:$0xff] }
  0xaa   :  { %377 = vst [vmem:[#allocation2 + $0x9b8] sm:$0xff] %v376_v40  ;;  %v504_v40 = vld [vmem:[%s10923_s3 + $0x738] sm:$0xff] }
  0xab   :  { %379 = vst [vmem:[#allocation2 + $0x2e0] sm:$0xff] %v378_v41  ;;  %v506_v41 = vld [vmem:[%s10923_s3 + $0x740] sm:$0xff] }
  0xac   :  { %381 = vst [vmem:[#allocation2 + $0x5c0] sm:$0xff] %v380_v42  ;;  %v508_v42 = vld [vmem:[%s10923_s3 + $0x748] sm:$0xff] }
  0xad   :  { %383 = vst [vmem:[#allocation2 + $0x40] sm:$0xff] %v382_v43  ;;  %v510_v43 = vld [vmem:[%s10923_s3 + $0x750] sm:$0xff] }
  0xae   :  { %385 = vst [vmem:[#allocation2 + $0x828] sm:$0xff] %v384_v44  ;;  %v512_v44 = vld [vmem:[%s10923_s3 + $0x758] sm:$0xff] }
  0xaf   :  { %387 = vst [vmem:[#allocation2 + $0x218] sm:$0xff] %v386_v45  ;;  %v514_v45 = vld [vmem:[%s10923_s3 + $0x760] sm:$0xff] }
  0xb0   :  { %389 = vst [vmem:[#allocation2 + $0x550] sm:$0xff] %v388_v46  ;;  %v516_v46 = vld [vmem:[%s10923_s3 + $0x768] sm:$0xff] }
  0xb1   :  { %391 = vst [vmem:[#allocation2 + $0xb18] sm:$0xff] %v390_v47  ;;  %v518_v47 = vld [vmem:[%s10923_s3 + $0x770] sm:$0xff] }
  0xb2   :  { %393 = vst [vmem:[#allocation2 + $0x9e0] sm:$0xff] %v392_v48  ;;  %v520_v48 = vld [vmem:[%s10923_s3 + $0x778] sm:$0xff] }
  0xb3   :  { %395 = vst [vmem:[#allocation2 + $0xe18] sm:$0xff] %v394_v49  ;;  %v522_v49 = vld [vmem:[%s10923_s3 + $0x780] sm:$0xff] }
  0xb4   :  { %397 = vst [vmem:[#allocation2 + $0xee8] sm:$0xff] %v396_v50  ;;  %v524_v50 = vld [vmem:[%s10923_s3 + $0x788] sm:$0xff] }
  0xb5   :  { %399 = vst [vmem:[#allocation2 + $0x4a0] sm:$0xff] %v398_v51  ;;  %v526_v51 = vld [vmem:[%s10923_s3 + $0x790] sm:$0xff] }
  0xb6   :  { %401 = vst [vmem:[#allocation2 + $0xde8] sm:$0xff] %v400_v52  ;;  %v528_v52 = vld [vmem:[%s10923_s3 + $0x798] sm:$0xff] }
  0xb7   :  { %403 = vst [vmem:[#allocation2 + $0xc10] sm:$0xff] %v402_v53  ;;  %v530_v53 = vld [vmem:[%s10923_s3 + $0x7a0] sm:$0xff] }
  0xb8   :  { %405 = vst [vmem:[#allocation2 + $0x268] sm:$0xff] %v404_v54  ;;  %v532_v54 = vld [vmem:[%s10923_s3 + $0x7a8] sm:$0xff] }
  0xb9   :  { %407 = vst [vmem:[#allocation2 + $0x958] sm:$0xff] %v406_v55  ;;  %v534_v55 = vld [vmem:[%s10923_s3 + $0x7b0] sm:$0xff] }
  0xba   :  { %409 = vst [vmem:[#allocation2 + $0x610] sm:$0xff] %v408_v56  ;;  %v536_v56 = vld [vmem:[%s10923_s3 + $0x7b8] sm:$0xff] }
  0xbb   :  { %411 = vst [vmem:[#allocation2 + $0xb38] sm:$0xff] %v410_v57  ;;  %v538_v57 = vld [vmem:[%s10923_s3 + $0x7c0] sm:$0xff] }
  0xbc   :  { %413 = vst [vmem:[#allocation2 + $0x908] sm:$0xff] %v412_v58  ;;  %v540_v58 = vld [vmem:[%s10923_s3 + $0x7c8] sm:$0xff] }
  0xbd   :  { %415 = vst [vmem:[#allocation2 + $0xee0] sm:$0xff] %v414_v59  ;;  %v542_v59 = vld [vmem:[%s10923_s3 + $0x7d0] sm:$0xff] }
  0xbe   :  { %417 = vst [vmem:[#allocation2 + $0x538] sm:$0xff] %v416_v60  ;;  %v544_v60 = vld [vmem:[%s10923_s3 + $0x7d8] sm:$0xff] }
  0xbf   :  { %419 = vst [vmem:[#allocation2 + $0xbe8] sm:$0xff] %v418_v61  ;;  %v546_v61 = vld [vmem:[%s10923_s3 + $0x7e0] sm:$0xff] }
  0xc0   :  { %421 = vst [vmem:[#allocation2 + $0xae0] sm:$0xff] %v420_v62  ;;  %v548_v62 = vld [vmem:[%s10923_s3 + $0x7e8] sm:$0xff] }
  0xc1   :  { %423 = vst [vmem:[#allocation2 + $0xe88] sm:$0xff] %v422_v63  ;;  %v550_v63 = vld [vmem:[%s10923_s3 + $0x7f0] sm:$0xff] }
  0xc2   :  { %425 = vst [vmem:[#allocation2 + $0xc40] sm:$0xff] %v424_v0  ;;  %v552_v0 = vld [vmem:[%s10923_s3 + $0x7f8] sm:$0xff] }
  0xc3   :  { %427 = vst [vmem:[#allocation2 + $0xf78] sm:$0xff] %v426_v1  ;;  %v554_v1 = vld [vmem:[%s10923_s3 + $0x800] sm:$0xff] }
  0xc4   :  { %429 = vst [vmem:[#allocation2 + $0x648] sm:$0xff] %v428_v2  ;;  %v556_v2 = vld [vmem:[%s10923_s3 + $0x808] sm:$0xff] }
  0xc5   :  { %431 = vst [vmem:[#allocation2 + $0x178] sm:$0xff] %v430_v3  ;;  %v558_v3 = vld [vmem:[%s10923_s3 + $0x810] sm:$0xff] }
  0xc6   :  { %433 = vst [vmem:[#allocation2 + $0x580] sm:$0xff] %v432_v4  ;;  %v560_v4 = vld [vmem:[%s10923_s3 + $0x818] sm:$0xff] }
  0xc7   :  { %435 = vst [vmem:[#allocation2 + $0x738] sm:$0xff] %v434_v5  ;;  %v562_v5 = vld [vmem:[%s10923_s3 + $0x820] sm:$0xff] }
  0xc8   :  { %437 = vst [vmem:[#allocation2 + $0xb0] sm:$0xff] %v436_v6  ;;  %v564_v6 = vld [vmem:[%s10923_s3 + $0x828] sm:$0xff] }
  0xc9   :  { %439 = vst [vmem:[#allocation2 + $0xdd0] sm:$0xff] %v438_v7  ;;  %v566_v7 = vld [vmem:[%s10923_s3 + $0x830] sm:$0xff] }
  0xca   :  { %441 = vst [vmem:[#allocation2 + $0xb48] sm:$0xff] %v440_v8  ;;  %v568_v8 = vld [vmem:[%s10923_s3 + $0x838] sm:$0xff] }
  0xcb   :  { %443 = vst [vmem:[#allocation2 + $0x990] sm:$0xff] %v442_v9  ;;  %v570_v9 = vld [vmem:[%s10923_s3 + $0x840] sm:$0xff] }
  0xcc   :  { %445 = vst [vmem:[#allocation2 + $0xe80] sm:$0xff] %v444_v10  ;;  %v572_v10 = vld [vmem:[%s10923_s3 + $0x848] sm:$0xff] }
  0xcd   :  { %447 = vst [vmem:[#allocation2 + $0xd98] sm:$0xff] %v446_v11  ;;  %v574_v11 = vld [vmem:[%s10923_s3 + $0x850] sm:$0xff] }
  0xce   :  { %449 = vst [vmem:[#allocation2 + $0x5f8] sm:$0xff] %v448_v12  ;;  %v576_v12 = vld [vmem:[%s10923_s3 + $0x858] sm:$0xff] }
  0xcf   :  { %451 = vst [vmem:[#allocation2 + $0x900] sm:$0xff] %v450_v13  ;;  %v578_v13 = vld [vmem:[%s10923_s3 + $0x860] sm:$0xff] }
  0xd0   :  { %453 = vst [vmem:[#allocation2 + $0x6b8] sm:$0xff] %v452_v14  ;;  %v580_v14 = vld [vmem:[%s10923_s3 + $0x868] sm:$0xff] }
  0xd1   :  { %455 = vst [vmem:[#allocation2 + $0x320] sm:$0xff] %v454_v15  ;;  %v582_v15 = vld [vmem:[%s10923_s3 + $0x870] sm:$0xff] }
  0xd2   :  { %457 = vst [vmem:[#allocation2 + $0x458] sm:$0xff] %v456_v16  ;;  %v584_v16 = vld [vmem:[%s10923_s3 + $0x878] sm:$0xff] }
  0xd3   :  { %459 = vst [vmem:[#allocation2 + $0x110] sm:$0xff] %v458_v17  ;;  %v586_v17 = vld [vmem:[%s10923_s3 + $0x880] sm:$0xff] }
  0xd4   :  { %461 = vst [vmem:[#allocation2 + $0x888] sm:$0xff] %v460_v18  ;;  %v588_v18 = vld [vmem:[%s10923_s3 + $0x888] sm:$0xff] }
  0xd5   :  { %463 = vst [vmem:[#allocation2 + $0x308] sm:$0xff] %v462_v19  ;;  %v590_v19 = vld [vmem:[%s10923_s3 + $0x890] sm:$0xff] }
  0xd6   :  { %465 = vst [vmem:[#allocation2 + $0x2f8] sm:$0xff] %v464_v20  ;;  %v592_v20 = vld [vmem:[%s10923_s3 + $0x898] sm:$0xff] }
  0xd7   :  { %467 = vst [vmem:[#allocation2 + $0x690] sm:$0xff] %v466_v21  ;;  %v594_v21 = vld [vmem:[%s10923_s3 + $0x8a0] sm:$0xff] }
  0xd8   :  { %469 = vst [vmem:[#allocation2 + $0x3e0] sm:$0xff] %v468_v22  ;;  %v596_v22 = vld [vmem:[%s10923_s3 + $0x8a8] sm:$0xff] }
  0xd9   :  { %471 = vst [vmem:[#allocation2 + $0x498] sm:$0xff] %v470_v23  ;;  %v598_v23 = vld [vmem:[%s10923_s3 + $0x8b0] sm:$0xff] }
  0xda   :  { %473 = vst [vmem:[#allocation2 + $0xe78] sm:$0xff] %v472_v24  ;;  %v600_v24 = vld [vmem:[%s10923_s3 + $0x8b8] sm:$0xff] }
  0xdb   :  { %475 = vst [vmem:[#allocation2 + $0xc20] sm:$0xff] %v474_v25  ;;  %v602_v25 = vld [vmem:[%s10923_s3 + $0x8c0] sm:$0xff] }
  0xdc   :  { %477 = vst [vmem:[#allocation2 + $0x5a0] sm:$0xff] %v476_v26  ;;  %v604_v26 = vld [vmem:[%s10923_s3 + $0x8c8] sm:$0xff] }
  0xdd   :  { %479 = vst [vmem:[#allocation2 + $0x470] sm:$0xff] %v478_v27  ;;  %v606_v27 = vld [vmem:[%s10923_s3 + $0x8d0] sm:$0xff] }
  0xde   :  { %481 = vst [vmem:[#allocation2 + $0xb08] sm:$0xff] %v480_v28  ;;  %v608_v28 = vld [vmem:[%s10923_s3 + $0x8d8] sm:$0xff] }
  0xdf   :  { %483 = vst [vmem:[#allocation2 + $0x758] sm:$0xff] %v482_v29  ;;  %v610_v29 = vld [vmem:[%s10923_s3 + $0x8e0] sm:$0xff] }
  0xe0   :  { %485 = vst [vmem:[#allocation2 + $0xd60] sm:$0xff] %v484_v30  ;;  %v612_v30 = vld [vmem:[%s10923_s3 + $0x8e8] sm:$0xff] }
  0xe1   :  { %487 = vst [vmem:[#allocation2 + $0x4f8] sm:$0xff] %v486_v31  ;;  %v614_v31 = vld [vmem:[%s10923_s3 + $0x8f0] sm:$0xff] }
  0xe2   :  { %489 = vst [vmem:[#allocation2 + $0x898] sm:$0xff] %v488_v32  ;;  %v616_v32 = vld [vmem:[%s10923_s3 + $0x8f8] sm:$0xff] }
  0xe3   :  { %491 = vst [vmem:[#allocation2 + $0xf60] sm:$0xff] %v490_v33  ;;  %v618_v33 = vld [vmem:[%s10923_s3 + $0x900] sm:$0xff] }
  0xe4   :  { %493 = vst [vmem:[#allocation2 + $0x238] sm:$0xff] %v492_v34  ;;  %v620_v34 = vld [vmem:[%s10923_s3 + $0x908] sm:$0xff] }
  0xe5   :  { %495 = vst [vmem:[#allocation2 + $0x3b0] sm:$0xff] %v494_v35  ;;  %v622_v35 = vld [vmem:[%s10923_s3 + $0x910] sm:$0xff] }
  0xe6   :  { %497 = vst [vmem:[#allocation2 + $0x378] sm:$0xff] %v496_v36  ;;  %v624_v36 = vld [vmem:[%s10923_s3 + $0x918] sm:$0xff] }
  0xe7   :  { %499 = vst [vmem:[#allocation2 + $0xaa0] sm:$0xff] %v498_v37  ;;  %v626_v37 = vld [vmem:[%s10923_s3 + $0x920] sm:$0xff] }
  0xe8   :  { %501 = vst [vmem:[#allocation2 + $0x590] sm:$0xff] %v500_v38  ;;  %v628_v38 = vld [vmem:[%s10923_s3 + $0x928] sm:$0xff] }
  0xe9   :  { %503 = vst [vmem:[#allocation2 + $0x260] sm:$0xff] %v502_v39  ;;  %v630_v39 = vld [vmem:[%s10923_s3 + $0x930] sm:$0xff] }
  0xea   :  { %505 = vst [vmem:[#allocation2 + $0x3d0] sm:$0xff] %v504_v40  ;;  %v632_v40 = vld [vmem:[%s10923_s3 + $0x938] sm:$0xff] }
  0xeb   :  { %507 = vst [vmem:[#allocation2 + $0xf00] sm:$0xff] %v506_v41  ;;  %v634_v41 = vld [vmem:[%s10923_s3 + $0x940] sm:$0xff] }
  0xec   :  { %509 = vst [vmem:[#allocation2 + $0x560] sm:$0xff] %v508_v42  ;;  %v636_v42 = vld [vmem:[%s10923_s3 + $0x948] sm:$0xff] }
  0xed   :  { %511 = vst [vmem:[#allocation2 + $0x5e8] sm:$0xff] %v510_v43  ;;  %v638_v43 = vld [vmem:[%s10923_s3 + $0x950] sm:$0xff] }
  0xee   :  { %513 = vst [vmem:[#allocation2 + $0x558] sm:$0xff] %v512_v44  ;;  %v640_v44 = vld [vmem:[%s10923_s3 + $0x958] sm:$0xff] }
  0xef   :  { %515 = vst [vmem:[#allocation2 + $0x68] sm:$0xff] %v514_v45  ;;  %v642_v45 = vld [vmem:[%s10923_s3 + $0x960] sm:$0xff] }
  0xf0   :  { %517 = vst [vmem:[#allocation2 + $0x250] sm:$0xff] %v516_v46  ;;  %v644_v46 = vld [vmem:[%s10923_s3 + $0x968] sm:$0xff] }
  0xf1   :  { %519 = vst [vmem:[#allocation2 + $0x820] sm:$0xff] %v518_v47  ;;  %v646_v47 = vld [vmem:[%s10923_s3 + $0x970] sm:$0xff] }
  0xf2   :  { %521 = vst [vmem:[#allocation2 + $0x60] sm:$0xff] %v520_v48  ;;  %v648_v48 = vld [vmem:[%s10923_s3 + $0x978] sm:$0xff] }
  0xf3   :  { %523 = vst [vmem:[#allocation2 + $0x410] sm:$0xff] %v522_v49  ;;  %v650_v49 = vld [vmem:[%s10923_s3 + $0x980] sm:$0xff] }
  0xf4   :  { %525 = vst [vmem:[#allocation2 + $0x3a8] sm:$0xff] %v524_v50  ;;  %v652_v50 = vld [vmem:[%s10923_s3 + $0x988] sm:$0xff] }
  0xf5   :  { %527 = vst [vmem:[#allocation2 + $0xe48] sm:$0xff] %v526_v51  ;;  %v654_v51 = vld [vmem:[%s10923_s3 + $0x990] sm:$0xff] }
  0xf6   :  { %529 = vst [vmem:[#allocation2 + $0x180] sm:$0xff] %v528_v52  ;;  %v656_v52 = vld [vmem:[%s10923_s3 + $0x998] sm:$0xff] }
  0xf7   :  { %531 = vst [vmem:[#allocation2 + $0xdf0] sm:$0xff] %v530_v53  ;;  %v658_v53 = vld [vmem:[%s10923_s3 + $0x9a0] sm:$0xff] }
  0xf8   :  { %533 = vst [vmem:[#allocation2 + $0xb40] sm:$0xff] %v532_v54  ;;  %v660_v54 = vld [vmem:[%s10923_s3 + $0x9a8] sm:$0xff] }
  0xf9   :  { %535 = vst [vmem:[#allocation2 + $0x600] sm:$0xff] %v534_v55  ;;  %v662_v55 = vld [vmem:[%s10923_s3 + $0x9b0] sm:$0xff] }
  0xfa   :  { %537 = vst [vmem:[#allocation2 + $0xe50] sm:$0xff] %v536_v56  ;;  %v664_v56 = vld [vmem:[%s10923_s3 + $0x9b8] sm:$0xff] }
  0xfb   :  { %539 = vst [vmem:[#allocation2 + $0x598] sm:$0xff] %v538_v57  ;;  %v666_v57 = vld [vmem:[%s10923_s3 + $0x9c0] sm:$0xff] }
  0xfc   :  { %541 = vst [vmem:[#allocation2 + $0x430] sm:$0xff] %v540_v58  ;;  %v668_v58 = vld [vmem:[%s10923_s3 + $0x9c8] sm:$0xff] }
  0xfd   :  { %543 = vst [vmem:[#allocation2 + $0xcc8] sm:$0xff] %v542_v59  ;;  %v670_v59 = vld [vmem:[%s10923_s3 + $0x9d0] sm:$0xff] }
  0xfe   :  { %545 = vst [vmem:[#allocation2 + $0x960] sm:$0xff] %v544_v60  ;;  %v672_v60 = vld [vmem:[%s10923_s3 + $0x9d8] sm:$0xff] }
  0xff   :  { %547 = vst [vmem:[#allocation2 + $0x6c0] sm:$0xff] %v546_v61  ;;  %v674_v61 = vld [vmem:[%s10923_s3 + $0x9e0] sm:$0xff] }
 0x100   :  { %549 = vst [vmem:[#allocation2 + $0x530] sm:$0xff] %v548_v62  ;;  %v676_v62 = vld [vmem:[%s10923_s3 + $0x9e8] sm:$0xff] }
 0x101   :  { %551 = vst [vmem:[#allocation2 + $0x740] sm:$0xff] %v550_v63  ;;  %v678_v63 = vld [vmem:[%s10923_s3 + $0x9f0] sm:$0xff] }
 0x102   :  { %553 = vst [vmem:[#allocation2 + $0x120] sm:$0xff] %v552_v0  ;;  %v680_v0 = vld [vmem:[%s10923_s3 + $0x9f8] sm:$0xff] }
 0x103   :  { %555 = vst [vmem:[#allocation2 + $0x920] sm:$0xff] %v554_v1  ;;  %v682_v1 = vld [vmem:[%s10923_s3 + $0xa00] sm:$0xff] }
 0x104   :  { %557 = vst [vmem:[#allocation2 + $0x3e8] sm:$0xff] %v556_v2  ;;  %v684_v2 = vld [vmem:[%s10923_s3 + $0xa08] sm:$0xff] }
 0x105   :  { %559 = vst [vmem:[#allocation2 + $0xc58] sm:$0xff] %v558_v3  ;;  %v686_v3 = vld [vmem:[%s10923_s3 + $0xa10] sm:$0xff] }
 0x106   :  { %561 = vst [vmem:[#allocation2 + $0x1a8] sm:$0xff] %v560_v4  ;;  %v688_v4 = vld [vmem:[%s10923_s3 + $0xa18] sm:$0xff] }
 0x107   :  { %563 = vst [vmem:[#allocation2 + $0xdd8] sm:$0xff] %v562_v5  ;;  %v690_v5 = vld [vmem:[%s10923_s3 + $0xa20] sm:$0xff] }
 0x108   :  { %565 = vst [vmem:[#allocation2 + $0xbc8] sm:$0xff] %v564_v6  ;;  %v692_v6 = vld [vmem:[%s10923_s3 + $0xa28] sm:$0xff] }
 0x109   :  { %567 = vst [vmem:[#allocation2 + $0xf18] sm:$0xff] %v566_v7  ;;  %v694_v7 = vld [vmem:[%s10923_s3 + $0xa30] sm:$0xff] }
 0x10a   :  { %569 = vst [vmem:[#allocation2 + $0x6b0] sm:$0xff] %v568_v8  ;;  %v696_v8 = vld [vmem:[%s10923_s3 + $0xa38] sm:$0xff] }
 0x10b   :  { %571 = vst [vmem:[#allocation2 + $0xea8] sm:$0xff] %v570_v9  ;;  %v698_v9 = vld [vmem:[%s10923_s3 + $0xa40] sm:$0xff] }
 0x10c   :  { %573 = vst [vmem:[#allocation2 + $0x858] sm:$0xff] %v572_v10  ;;  %v700_v10 = vld [vmem:[%s10923_s3 + $0xa48] sm:$0xff] }
 0x10d   :  { %575 = vst [vmem:[#allocation2 + $0xcc0] sm:$0xff] %v574_v11  ;;  %v702_v11 = vld [vmem:[%s10923_s3 + $0xa50] sm:$0xff] }
 0x10e   :  { %577 = vst [vmem:[#allocation2 + $0x4b0] sm:$0xff] %v576_v12  ;;  %v704_v12 = vld [vmem:[%s10923_s3 + $0xa58] sm:$0xff] }
 0x10f   :  { %579 = vst [vmem:[#allocation2 + $0x9e8] sm:$0xff] %v578_v13  ;;  %v706_v13 = vld [vmem:[%s10923_s3 + $0xa60] sm:$0xff] }
 0x110   :  { %581 = vst [vmem:[#allocation2 + $0x148] sm:$0xff] %v580_v14  ;;  %v708_v14 = vld [vmem:[%s10923_s3 + $0xa68] sm:$0xff] }
 0x111   :  { %583 = vst [vmem:[#allocation2 + $0x638] sm:$0xff] %v582_v15  ;;  %v710_v15 = vld [vmem:[%s10923_s3 + $0xa70] sm:$0xff] }
 0x112   :  { %585 = vst [vmem:[#allocation2 + $0xed8] sm:$0xff] %v584_v16  ;;  %v712_v16 = vld [vmem:[%s10923_s3 + $0xa78] sm:$0xff] }
 0x113   :  { %587 = vst [vmem:[#allocation2 + $0xe0] sm:$0xff] %v586_v17  ;;  %v714_v17 = vld [vmem:[%s10923_s3 + $0xa80] sm:$0xff] }
 0x114   :  { %589 = vst [vmem:[#allocation2 + $0xe68] sm:$0xff] %v588_v18  ;;  %v716_v18 = vld [vmem:[%s10923_s3 + $0xa88] sm:$0xff] }
 0x115   :  { %591 = vst [vmem:[#allocation2 + $0xaf8] sm:$0xff] %v590_v19  ;;  %v718_v19 = vld [vmem:[%s10923_s3 + $0xa90] sm:$0xff] }
 0x116   :  { %593 = vst [vmem:[#allocation2 + $0xef0] sm:$0xff] %v592_v20  ;;  %v720_v20 = vld [vmem:[%s10923_s3 + $0xa98] sm:$0xff] }
 0x117   :  { %595 = vst [vmem:[#allocation2 + $0x7e0] sm:$0xff] %v594_v21  ;;  %v722_v21 = vld [vmem:[%s10923_s3 + $0xaa0] sm:$0xff] }
 0x118   :  { %597 = vst [vmem:[#allocation2 + $0x630] sm:$0xff] %v596_v22  ;;  %v724_v22 = vld [vmem:[%s10923_s3 + $0xaa8] sm:$0xff] }
 0x119   :  { %599 = vst [vmem:[#allocation2 + $0x1b8] sm:$0xff] %v598_v23  ;;  %v726_v23 = vld [vmem:[%s10923_s3 + $0xab0] sm:$0xff] }
 0x11a   :  { %601 = vst [vmem:[#allocation2 + $0xa40] sm:$0xff] %v600_v24  ;;  %v728_v24 = vld [vmem:[%s10923_s3 + $0xab8] sm:$0xff] }
 0x11b   :  { %603 = vst [vmem:[#allocation2 + $0x700] sm:$0xff] %v602_v25  ;;  %v730_v25 = vld [vmem:[%s10923_s3 + $0xac0] sm:$0xff] }
 0x11c   :  { %605 = vst [vmem:[#allocation2 + $0x3d8] sm:$0xff] %v604_v26  ;;  %v732_v26 = vld [vmem:[%s10923_s3 + $0xac8] sm:$0xff] }
 0x11d   :  { %607 = vst [vmem:[#allocation2 + $0x48] sm:$0xff] %v606_v27  ;;  %v734_v27 = vld [vmem:[%s10923_s3 + $0xad0] sm:$0xff] }
 0x11e   :  { %609 = vst [vmem:[#allocation2 + $0x8c8] sm:$0xff] %v608_v28  ;;  %v736_v28 = vld [vmem:[%s10923_s3 + $0xad8] sm:$0xff] }
 0x11f   :  { %611 = vst [vmem:[#allocation2 + $0xc08] sm:$0xff] %v610_v29  ;;  %v738_v29 = vld [vmem:[%s10923_s3 + $0xae0] sm:$0xff] }
 0x120   :  { %613 = vst [vmem:[#allocation2 + $0xa98] sm:$0xff] %v612_v30  ;;  %v740_v30 = vld [vmem:[%s10923_s3 + $0xae8] sm:$0xff] }
 0x121   :  { %615 = vst [vmem:[#allocation2 + $0xb60] sm:$0xff] %v614_v31  ;;  %v742_v31 = vld [vmem:[%s10923_s3 + $0xaf0] sm:$0xff] }
 0x122   :  { %617 = vst [vmem:[#allocation2 + $0xfb8] sm:$0xff] %v616_v32  ;;  %v744_v32 = vld [vmem:[%s10923_s3 + $0xaf8] sm:$0xff] }
 0x123   :  { %619 = vst [vmem:[#allocation2 + $0xd0] sm:$0xff] %v618_v33  ;;  %v746_v33 = vld [vmem:[%s10923_s3 + $0xb00] sm:$0xff] }
 0x124   :  { %621 = vst [vmem:[#allocation2 + $0xa0] sm:$0xff] %v620_v34  ;;  %v748_v34 = vld [vmem:[%s10923_s3 + $0xb08] sm:$0xff] }
 0x125   :  { %623 = vst [vmem:[#allocation2 + $0x978] sm:$0xff] %v622_v35  ;;  %v750_v35 = vld [vmem:[%s10923_s3 + $0xb10] sm:$0xff] }
 0x126   :  { %625 = vst [vmem:[#allocation2 + $0xd88] sm:$0xff] %v624_v36  ;;  %v752_v36 = vld [vmem:[%s10923_s3 + $0xb18] sm:$0xff] }
 0x127   :  { %627 = vst [vmem:[#allocation2 + $0xc38] sm:$0xff] %v626_v37  ;;  %v754_v37 = vld [vmem:[%s10923_s3 + $0xb20] sm:$0xff] }
 0x128   :  { %629 = vst [vmem:[#allocation2 + $0x150] sm:$0xff] %v628_v38  ;;  %v756_v38 = vld [vmem:[%s10923_s3 + $0xb28] sm:$0xff] }
 0x129   :  { %631 = vst [vmem:[#allocation2 + $0xf70] sm:$0xff] %v630_v39  ;;  %v758_v39 = vld [vmem:[%s10923_s3 + $0xb30] sm:$0xff] }
 0x12a   :  { %633 = vst [vmem:[#allocation2 + $0x6d0] sm:$0xff] %v632_v40  ;;  %v760_v40 = vld [vmem:[%s10923_s3 + $0xb38] sm:$0xff] }
 0x12b   :  { %635 = vst [vmem:[#allocation2 + $0xf50] sm:$0xff] %v634_v41  ;;  %v762_v41 = vld [vmem:[%s10923_s3 + $0xb40] sm:$0xff] }
 0x12c   :  { %637 = vst [vmem:[#allocation2 + $0x280] sm:$0xff] %v636_v42  ;;  %v764_v42 = vld [vmem:[%s10923_s3 + $0xb48] sm:$0xff] }
 0x12d   :  { %639 = vst [vmem:[#allocation2 + $0xc28] sm:$0xff] %v638_v43  ;;  %v766_v43 = vld [vmem:[%s10923_s3 + $0xb50] sm:$0xff] }
 0x12e   :  { %641 = vst [vmem:[#allocation2 + $0x1f8] sm:$0xff] %v640_v44  ;;  %v768_v44 = vld [vmem:[%s10923_s3 + $0xb58] sm:$0xff] }
 0x12f   :  { %643 = vst [vmem:[#allocation2 + $0xac0] sm:$0xff] %v642_v45  ;;  %v770_v45 = vld [vmem:[%s10923_s3 + $0xb60] sm:$0xff] }
 0x130   :  { %645 = vst [vmem:[#allocation2 + $0x768] sm:$0xff] %v644_v46  ;;  %v772_v46 = vld [vmem:[%s10923_s3 + $0xb68] sm:$0xff] }
 0x131   :  { %647 = vst [vmem:[#allocation2 + $0xc18] sm:$0xff] %v646_v47  ;;  %v774_v47 = vld [vmem:[%s10923_s3 + $0xb70] sm:$0xff] }
 0x132   :  { %649 = vst [vmem:[#allocation2 + $0xce0] sm:$0xff] %v648_v48  ;;  %v776_v48 = vld [vmem:[%s10923_s3 + $0xb78] sm:$0xff] }
 0x133   :  { %651 = vst [vmem:[#allocation2 + $0x390] sm:$0xff] %v650_v49  ;;  %v778_v49 = vld [vmem:[%s10923_s3 + $0xb80] sm:$0xff] }
 0x134   :  { %653 = vst [vmem:[#allocation2 + $0xb10] sm:$0xff] %v652_v50  ;;  %v780_v50 = vld [vmem:[%s10923_s3 + $0xb88] sm:$0xff] }
 0x135   :  { %655 = vst [vmem:[#allocation2 + $0x4d0] sm:$0xff] %v654_v51  ;;  %v782_v51 = vld [vmem:[%s10923_s3 + $0xb90] sm:$0xff] }
 0x136   :  { %657 = vst [vmem:[#allocation2 + $0xd90] sm:$0xff] %v656_v52  ;;  %v784_v52 = vld [vmem:[%s10923_s3 + $0xb98] sm:$0xff] }
 0x137   :  { %659 = vst [vmem:[#allocation2 + $0x210] sm:$0xff] %v658_v53  ;;  %v786_v53 = vld [vmem:[%s10923_s3 + $0xba0] sm:$0xff] }
 0x138   :  { %661 = vst [vmem:[#allocation2 + $0x7b0] sm:$0xff] %v660_v54  ;;  %v788_v54 = vld [vmem:[%s10923_s3 + $0xba8] sm:$0xff] }
 0x139   :  { %663 = vst [vmem:[#allocation2 + $0x8b0] sm:$0xff] %v662_v55  ;;  %v790_v55 = vld [vmem:[%s10923_s3 + $0xbb0] sm:$0xff] }
 0x13a   :  { %665 = vst [vmem:[#allocation2 + $0x850] sm:$0xff] %v664_v56  ;;  %v792_v56 = vld [vmem:[%s10923_s3 + $0xbb8] sm:$0xff] }
 0x13b   :  { %667 = vst [vmem:[#allocation2 + $0xfa8] sm:$0xff] %v666_v57  ;;  %v794_v57 = vld [vmem:[%s10923_s3 + $0xbc0] sm:$0xff] }
 0x13c   :  { %669 = vst [vmem:[#allocation2 + $0x2c8] sm:$0xff] %v668_v58  ;;  %v796_v58 = vld [vmem:[%s10923_s3 + $0xbc8] sm:$0xff] }
 0x13d   :  { %671 = vst [vmem:[#allocation2 + $0xdc0] sm:$0xff] %v670_v59  ;;  %v798_v59 = vld [vmem:[%s10923_s3 + $0xbd0] sm:$0xff] }
 0x13e   :  { %673 = vst [vmem:[#allocation2 + $0xe20] sm:$0xff] %v672_v60  ;;  %v800_v60 = vld [vmem:[%s10923_s3 + $0xbd8] sm:$0xff] }
 0x13f   :  { %675 = vst [vmem:[#allocation2 + $0x508] sm:$0xff] %v674_v61  ;;  %v802_v61 = vld [vmem:[%s10923_s3 + $0xbe0] sm:$0xff] }
 0x140   :  { %677 = vst [vmem:[#allocation2 + $0x130] sm:$0xff] %v676_v62  ;;  %v804_v62 = vld [vmem:[%s10923_s3 + $0xbe8] sm:$0xff] }
 0x141   :  { %679 = vst [vmem:[#allocation2 + $0x8c0] sm:$0xff] %v678_v63  ;;  %v806_v63 = vld [vmem:[%s10923_s3 + $0xbf0] sm:$0xff] }
 0x142   :  { %681 = vst [vmem:[#allocation2 + $0xf30] sm:$0xff] %v680_v0  ;;  %v808_v0 = vld [vmem:[%s10923_s3 + $0xbf8] sm:$0xff] }
 0x143   :  { %683 = vst [vmem:[#allocation2 + $0x2a8] sm:$0xff] %v682_v1  ;;  %v810_v1 = vld [vmem:[%s10923_s3 + $0xc00] sm:$0xff] }
 0x144   :  { %685 = vst [vmem:[#allocation2 + $0x258] sm:$0xff] %v684_v2  ;;  %v812_v2 = vld [vmem:[%s10923_s3 + $0xc08] sm:$0xff] }
 0x145   :  { %687 = vst [vmem:[#allocation2 + $0xf90] sm:$0xff] %v686_v3  ;;  %v814_v3 = vld [vmem:[%s10923_s3 + $0xc10] sm:$0xff] }
 0x146   :  { %689 = vst [vmem:[#allocation2 + $0x730] sm:$0xff] %v688_v4  ;;  %v816_v4 = vld [vmem:[%s10923_s3 + $0xc18] sm:$0xff] }
 0x147   :  { %691 = vst [vmem:[#allocation2 + $0x3f0] sm:$0xff] %v690_v5  ;;  %v818_v5 = vld [vmem:[%s10923_s3 + $0xc20] sm:$0xff] }
 0x148   :  { %693 = vst [vmem:[#allocation2 + $0x10] sm:$0xff] %v692_v6  ;;  %v820_v6 = vld [vmem:[%s10923_s3 + $0xc28] sm:$0xff] }
 0x149   :  { %695 = vst [vmem:[#allocation2 + $0xa58] sm:$0xff] %v694_v7  ;;  %v822_v7 = vld [vmem:[%s10923_s3 + $0xc30] sm:$0xff] }
 0x14a   :  { %697 = vst [vmem:[#allocation2 + $0x6f0] sm:$0xff] %v696_v8  ;;  %v824_v8 = vld [vmem:[%s10923_s3 + $0xc38] sm:$0xff] }
 0x14b   :  { %699 = vst [vmem:[#allocation2 + $0xf20] sm:$0xff] %v698_v9  ;;  %v826_v9 = vld [vmem:[%s10923_s3 + $0xc40] sm:$0xff] }
 0x14c   :  { %701 = vst [vmem:[#allocation2 + $0xb58] sm:$0xff] %v700_v10  ;;  %v828_v10 = vld [vmem:[%s10923_s3 + $0xc48] sm:$0xff] }
 0x14d   :  { %703 = vst [vmem:[#allocation2 + $0x2d8] sm:$0xff] %v702_v11  ;;  %v830_v11 = vld [vmem:[%s10923_s3 + $0xc50] sm:$0xff] }
 0x14e   :  { %705 = vst [vmem:[#allocation2 + $0x208] sm:$0xff] %v704_v12  ;;  %v832_v12 = vld [vmem:[%s10923_s3 + $0xc58] sm:$0xff] }
 0x14f   :  { %707 = vst [vmem:[#allocation2 + $0xca8] sm:$0xff] %v706_v13  ;;  %v834_v13 = vld [vmem:[%s10923_s3 + $0xc60] sm:$0xff] }
 0x150   :  { %709 = vst [vmem:[#allocation2 + $0xf80] sm:$0xff] %v708_v14  ;;  %v836_v14 = vld [vmem:[%s10923_s3 + $0xc68] sm:$0xff] }
 0x151   :  { %711 = vst [vmem:[#allocation2 + $0xc90] sm:$0xff] %v710_v15  ;;  %v838_v15 = vld [vmem:[%s10923_s3 + $0xc70] sm:$0xff] }
 0x152   :  { %713 = vst [vmem:[#allocation2 + $0x800] sm:$0xff] %v712_v16  ;;  %v840_v16 = vld [vmem:[%s10923_s3 + $0xc78] sm:$0xff] }
 0x153   :  { %715 = vst [vmem:[#allocation2 + $0x4c0] sm:$0xff] %v714_v17  ;;  %v842_v17 = vld [vmem:[%s10923_s3 + $0xc80] sm:$0xff] }
 0x154   :  { %717 = vst [vmem:[#allocation2 + $0xf68] sm:$0xff] %v716_v18  ;;  %v844_v18 = vld [vmem:[%s10923_s3 + $0xc88] sm:$0xff] }
 0x155   :  { %719 = vst [vmem:[#allocation2 + $0xda8] sm:$0xff] %v718_v19  ;;  %v846_v19 = vld [vmem:[%s10923_s3 + $0xc90] sm:$0xff] }
 0x156   :  { %721 = vst [vmem:[#allocation2 + $0xec0] sm:$0xff] %v720_v20  ;;  %v848_v20 = vld [vmem:[%s10923_s3 + $0xc98] sm:$0xff] }
 0x157   :  { %723 = vst [vmem:[#allocation2 + $0x668] sm:$0xff] %v722_v21  ;;  %v850_v21 = vld [vmem:[%s10923_s3 + $0xca0] sm:$0xff] }
 0x158   :  { %725 = vst [vmem:[#allocation2 + $0x310] sm:$0xff] %v724_v22  ;;  %v852_v22 = vld [vmem:[%s10923_s3 + $0xca8] sm:$0xff] }
 0x159   :  { %727 = vst [vmem:[#allocation2 + $0xdf8] sm:$0xff] %v726_v23  ;;  %v854_v23 = vld [vmem:[%s10923_s3 + $0xcb0] sm:$0xff] }
 0x15a   :  { %729 = vst [vmem:[#allocation2 + $0x708] sm:$0xff] %v728_v24  ;;  %v856_v24 = vld [vmem:[%s10923_s3 + $0xcb8] sm:$0xff] }
 0x15b   :  { %731 = vst [vmem:[#allocation2 + $0x380] sm:$0xff] %v730_v25  ;;  %v858_v25 = vld [vmem:[%s10923_s3 + $0xcc0] sm:$0xff] }
 0x15c   :  { %733 = vst [vmem:[#allocation2 + $0x2f0] sm:$0xff] %v732_v26  ;;  %v860_v26 = vld [vmem:[%s10923_s3 + $0xcc8] sm:$0xff] }
 0x15d   :  { %735 = vst [vmem:[#allocation2 + $0x788] sm:$0xff] %v734_v27  ;;  %v862_v27 = vld [vmem:[%s10923_s3 + $0xcd0] sm:$0xff] }
 0x15e   :  { %737 = vst [vmem:[#allocation2 + $0x1c0] sm:$0xff] %v736_v28  ;;  %v864_v28 = vld [vmem:[%s10923_s3 + $0xcd8] sm:$0xff] }
 0x15f   :  { %739 = vst [vmem:[#allocation2 + $0x138] sm:$0xff] %v738_v29  ;;  %v866_v29 = vld [vmem:[%s10923_s3 + $0xce0] sm:$0xff] }
 0x160   :  { %741 = vst [vmem:[#allocation2 + $0x860] sm:$0xff] %v740_v30  ;;  %v868_v30 = vld [vmem:[%s10923_s3 + $0xce8] sm:$0xff] }
 0x161   :  { %743 = vst [vmem:[#allocation2 + $0x1a0] sm:$0xff] %v742_v31  ;;  %v870_v31 = vld [vmem:[%s10923_s3 + $0xcf0] sm:$0xff] }
 0x162   :  { %745 = vst [vmem:[#allocation2 + $0x518] sm:$0xff] %v744_v32  ;;  %v872_v32 = vld [vmem:[%s10923_s3 + $0xcf8] sm:$0xff] }
 0x163   :  { %747 = vst [vmem:[#allocation2 + $0x440] sm:$0xff] %v746_v33  ;;  %v874_v33 = vld [vmem:[%s10923_s3 + $0xd00] sm:$0xff] }
 0x164   :  { %749 = vst [vmem:[#allocation2 + $0x270] sm:$0xff] %v748_v34  ;;  %v876_v34 = vld [vmem:[%s10923_s3 + $0xd08] sm:$0xff] }
 0x165   :  { %751 = vst [vmem:[#allocation2 + $0xaa8] sm:$0xff] %v750_v35  ;;  %v878_v35 = vld [vmem:[%s10923_s3 + $0xd10] sm:$0xff] }
 0x166   :  { %753 = vst [vmem:[#allocation2 + $0x9c8] sm:$0xff] %v752_v36  ;;  %v880_v36 = vld [vmem:[%s10923_s3 + $0xd18] sm:$0xff] }
 0x167   :  { %755 = vst [vmem:[#allocation2 + $0xa70] sm:$0xff] %v754_v37  ;;  %v882_v37 = vld [vmem:[%s10923_s3 + $0xd20] sm:$0xff] }
 0x168   :  { %757 = vst [vmem:[#allocation2 + $0xf58] sm:$0xff] %v756_v38  ;;  %v884_v38 = vld [vmem:[%s10923_s3 + $0xd28] sm:$0xff] }
 0x169   :  { %759 = vst [vmem:[#allocation2 + $0xd00] sm:$0xff] %v758_v39  ;;  %v886_v39 = vld [vmem:[%s10923_s3 + $0xd30] sm:$0xff] }
 0x16a   :  { %761 = vst [vmem:[#allocation2 + $0x490] sm:$0xff] %v760_v40  ;;  %v888_v40 = vld [vmem:[%s10923_s3 + $0xd38] sm:$0xff] }
 0x16b   :  { %763 = vst [vmem:[#allocation2 + $0x4f0] sm:$0xff] %v762_v41  ;;  %v890_v41 = vld [vmem:[%s10923_s3 + $0xd40] sm:$0xff] }
 0x16c   :  { %765 = vst [vmem:[#allocation2 + $0x7d0] sm:$0xff] %v764_v42  ;;  %v892_v42 = vld [vmem:[%s10923_s3 + $0xd48] sm:$0xff] }
 0x16d   :  { %767 = vst [vmem:[#allocation2 + $0x8f0] sm:$0xff] %v766_v43  ;;  %v894_v43 = vld [vmem:[%s10923_s3 + $0xd50] sm:$0xff] }
 0x16e   :  { %769 = vst [vmem:[#allocation2 + $0xc48] sm:$0xff] %v768_v44  ;;  %v896_v44 = vld [vmem:[%s10923_s3 + $0xd58] sm:$0xff] }
 0x16f   :  { %771 = vst [vmem:[#allocation2 + $0x78] sm:$0xff] %v770_v45  ;;  %v898_v45 = vld [vmem:[%s10923_s3 + $0xd60] sm:$0xff] }
 0x170   :  { %773 = vst [vmem:[#allocation2 + $0x198] sm:$0xff] %v772_v46  ;;  %v900_v46 = vld [vmem:[%s10923_s3 + $0xd68] sm:$0xff] }
 0x171   :  { %775 = vst [vmem:[#allocation2 + $0xb90] sm:$0xff] %v774_v47  ;;  %v902_v47 = vld [vmem:[%s10923_s3 + $0xd70] sm:$0xff] }
 0x172   :  { %777 = vst [vmem:[#allocation2 + $0xf48] sm:$0xff] %v776_v48  ;;  %v904_v48 = vld [vmem:[%s10923_s3 + $0xd78] sm:$0xff] }
 0x173   :  { %779 = vst [vmem:[#allocation2 + $0x7c0] sm:$0xff] %v778_v49  ;;  %v906_v49 = vld [vmem:[%s10923_s3 + $0xd80] sm:$0xff] }
 0x174   :  { %781 = vst [vmem:[#allocation2 + $0xb70] sm:$0xff] %v780_v50  ;;  %v908_v50 = vld [vmem:[%s10923_s3 + $0xd88] sm:$0xff] }
 0x175   :  { %783 = vst [vmem:[#allocation2 + $0x9d8] sm:$0xff] %v782_v51  ;;  %v910_v51 = vld [vmem:[%s10923_s3 + $0xd90] sm:$0xff] }
 0x176   :  { %785 = vst [vmem:[#allocation2] sm:$0xff] %v784_v52  ;;  %v912_v52 = vld [vmem:[%s10923_s3 + $0xd98] sm:$0xff] }
 0x177   :  { %787 = vst [vmem:[#allocation2 + $0x718] sm:$0xff] %v786_v53  ;;  %v914_v53 = vld [vmem:[%s10923_s3 + $0xda0] sm:$0xff] }
 0x178   :  { %789 = vst [vmem:[#allocation2 + $0x4c8] sm:$0xff] %v788_v54  ;;  %v916_v54 = vld [vmem:[%s10923_s3 + $0xda8] sm:$0xff] }
 0x179   :  { %791 = vst [vmem:[#allocation2 + $0x388] sm:$0xff] %v790_v55  ;;  %v918_v55 = vld [vmem:[%s10923_s3 + $0xdb0] sm:$0xff] }
 0x17a   :  { %793 = vst [vmem:[#allocation2 + $0x568] sm:$0xff] %v792_v56  ;;  %v920_v56 = vld [vmem:[%s10923_s3 + $0xdb8] sm:$0xff] }
 0x17b   :  { %795 = vst [vmem:[#allocation2 + $0x9f8] sm:$0xff] %v794_v57  ;;  %v922_v57 = vld [vmem:[%s10923_s3 + $0xdc0] sm:$0xff] }
 0x17c   :  { %797 = vst [vmem:[#allocation2 + $0x2e8] sm:$0xff] %v796_v58  ;;  %v924_v58 = vld [vmem:[%s10923_s3 + $0xdc8] sm:$0xff] }
 0x17d   :  { %799 = vst [vmem:[#allocation2 + $0xa50] sm:$0xff] %v798_v59  ;;  %v926_v59 = vld [vmem:[%s10923_s3 + $0xdd0] sm:$0xff] }
 0x17e   :  { %801 = vst [vmem:[#allocation2 + $0x6d8] sm:$0xff] %v800_v60  ;;  %v928_v60 = vld [vmem:[%s10923_s3 + $0xdd8] sm:$0xff] }
 0x17f   :  { %803 = vst [vmem:[#allocation2 + $0x80] sm:$0xff] %v802_v61  ;;  %v930_v61 = vld [vmem:[%s10923_s3 + $0xde0] sm:$0xff] }
 0x180   :  { %805 = vst [vmem:[#allocation2 + $0x658] sm:$0xff] %v804_v62  ;;  %v932_v62 = vld [vmem:[%s10923_s3 + $0xde8] sm:$0xff] }
 0x181   :  { %807 = vst [vmem:[#allocation2 + $0x2b8] sm:$0xff] %v806_v63  ;;  %v934_v63 = vld [vmem:[%s10923_s3 + $0xdf0] sm:$0xff] }
 0x182   :  { %809 = vst [vmem:[#allocation2 + $0x230] sm:$0xff] %v808_v0  ;;  %v936_v0 = vld [vmem:[%s10923_s3 + $0xdf8] sm:$0xff] }
 0x183   :  { %811 = vst [vmem:[#allocation2 + $0xf88] sm:$0xff] %v810_v1  ;;  %v938_v1 = vld [vmem:[%s10923_s3 + $0xe00] sm:$0xff] }
 0x184   :  { %813 = vst [vmem:[#allocation2 + $0xa88] sm:$0xff] %v812_v2  ;;  %v940_v2 = vld [vmem:[%s10923_s3 + $0xe08] sm:$0xff] }
 0x185   :  { %815 = vst [vmem:[#allocation2 + $0xf8] sm:$0xff] %v814_v3  ;;  %v942_v3 = vld [vmem:[%s10923_s3 + $0xe10] sm:$0xff] }
 0x186   :  { %817 = vst [vmem:[#allocation2 + $0x520] sm:$0xff] %v816_v4  ;;  %v944_v4 = vld [vmem:[%s10923_s3 + $0xe18] sm:$0xff] }
 0x187   :  { %819 = vst [vmem:[#allocation2 + $0xe90] sm:$0xff] %v818_v5  ;;  %v946_v5 = vld [vmem:[%s10923_s3 + $0xe20] sm:$0xff] }
 0x188   :  { %821 = vst [vmem:[#allocation2 + $0xa78] sm:$0xff] %v820_v6  ;;  %v948_v6 = vld [vmem:[%s10923_s3 + $0xe28] sm:$0xff] }
 0x189   :  { %823 = vst [vmem:[#allocation2 + $0x348] sm:$0xff] %v822_v7  ;;  %v950_v7 = vld [vmem:[%s10923_s3 + $0xe30] sm:$0xff] }
 0x18a   :  { %825 = vst [vmem:[#allocation2 + $0xe00] sm:$0xff] %v824_v8  ;;  %v952_v8 = vld [vmem:[%s10923_s3 + $0xe38] sm:$0xff] }
 0x18b   :  { %827 = vst [vmem:[#allocation2 + $0x7c8] sm:$0xff] %v826_v9  ;;  %v954_v9 = vld [vmem:[%s10923_s3 + $0xe40] sm:$0xff] }
 0x18c   :  { %829 = vst [vmem:[#allocation2 + $0xfb0] sm:$0xff] %v828_v10  ;;  %v956_v10 = vld [vmem:[%s10923_s3 + $0xe48] sm:$0xff] }
 0x18d   :  { %831 = vst [vmem:[#allocation2 + $0x588] sm:$0xff] %v830_v11  ;;  %v958_v11 = vld [vmem:[%s10923_s3 + $0xe50] sm:$0xff] }
 0x18e   :  { %833 = vst [vmem:[#allocation2 + $0xa68] sm:$0xff] %v832_v12  ;;  %v960_v12 = vld [vmem:[%s10923_s3 + $0xe58] sm:$0xff] }
 0x18f   :  { %835 = vst [vmem:[#allocation2 + $0xe28] sm:$0xff] %v834_v13  ;;  %v962_v13 = vld [vmem:[%s10923_s3 + $0xe60] sm:$0xff] }
 0x190   :  { %837 = vst [vmem:[#allocation2 + $0xb8] sm:$0xff] %v836_v14  ;;  %v964_v14 = vld [vmem:[%s10923_s3 + $0xe68] sm:$0xff] }
 0x191   :  { %839 = vst [vmem:[#allocation2 + $0x140] sm:$0xff] %v838_v15  ;;  %v966_v15 = vld [vmem:[%s10923_s3 + $0xe70] sm:$0xff] }
 0x192   :  { %841 = vst [vmem:[#allocation2 + $0x1f0] sm:$0xff] %v840_v16  ;;  %v968_v16 = vld [vmem:[%s10923_s3 + $0xe78] sm:$0xff] }
 0x193   :  { %843 = vst [vmem:[#allocation2 + $0x988] sm:$0xff] %v842_v17  ;;  %v970_v17 = vld [vmem:[%s10923_s3 + $0xe80] sm:$0xff] }
 0x194   :  { %845 = vst [vmem:[#allocation2 + $0xb20] sm:$0xff] %v844_v18  ;;  %v972_v18 = vld [vmem:[%s10923_s3 + $0xe88] sm:$0xff] }
 0x195   :  { %847 = vst [vmem:[#allocation2 + $0xc00] sm:$0xff] %v846_v19  ;;  %v974_v19 = vld [vmem:[%s10923_s3 + $0xe90] sm:$0xff] }
 0x196   :  { %849 = vst [vmem:[#allocation2 + $0x1d8] sm:$0xff] %v848_v20  ;;  %v976_v20 = vld [vmem:[%s10923_s3 + $0xe98] sm:$0xff] }
 0x197   :  { %851 = vst [vmem:[#allocation2 + $0x108] sm:$0xff] %v850_v21  ;;  %v978_v21 = vld [vmem:[%s10923_s3 + $0xea0] sm:$0xff] }
 0x198   :  { %853 = vst [vmem:[#allocation2 + $0x160] sm:$0xff] %v852_v22  ;;  %v980_v22 = vld [vmem:[%s10923_s3 + $0xea8] sm:$0xff] }
 0x199   :  { %855 = vst [vmem:[#allocation2 + $0x930] sm:$0xff] %v854_v23  ;;  %v982_v23 = vld [vmem:[%s10923_s3 + $0xeb0] sm:$0xff] }
 0x19a   :  { %857 = vst [vmem:[#allocation2 + $0xa08] sm:$0xff] %v856_v24  ;;  %v984_v24 = vld [vmem:[%s10923_s3 + $0xeb8] sm:$0xff] }
 0x19b   :  { %859 = vst [vmem:[#allocation2 + $0x998] sm:$0xff] %v858_v25  ;;  %v986_v25 = vld [vmem:[%s10923_s3 + $0xec0] sm:$0xff] }
 0x19c   :  { %861 = vst [vmem:[#allocation2 + $0x928] sm:$0xff] %v860_v26  ;;  %v988_v26 = vld [vmem:[%s10923_s3 + $0xec8] sm:$0xff] }
 0x19d   :  { %863 = vst [vmem:[#allocation2 + $0xa20] sm:$0xff] %v862_v27  ;;  %v990_v27 = vld [vmem:[%s10923_s3 + $0xed0] sm:$0xff] }
 0x19e   :  { %865 = vst [vmem:[#allocation2 + $0x288] sm:$0xff] %v864_v28  ;;  %v992_v28 = vld [vmem:[%s10923_s3 + $0xed8] sm:$0xff] }
 0x19f   :  { %867 = vst [vmem:[#allocation2 + $0x890] sm:$0xff] %v866_v29  ;;  %v994_v29 = vld [vmem:[%s10923_s3 + $0xee0] sm:$0xff] }
 0x1a0   :  { %869 = vst [vmem:[#allocation2 + $0x1b0] sm:$0xff] %v868_v30  ;;  %v996_v30 = vld [vmem:[%s10923_s3 + $0xee8] sm:$0xff] }
 0x1a1   :  { %871 = vst [vmem:[#allocation2 + $0xcb0] sm:$0xff] %v870_v31  ;;  %v998_v31 = vld [vmem:[%s10923_s3 + $0xef0] sm:$0xff] }
 0x1a2   :  { %873 = vst [vmem:[#allocation2 + $0x5a8] sm:$0xff] %v872_v32  ;;  %v1000_v32 = vld [vmem:[%s10923_s3 + $0xef8] sm:$0xff] }
 0x1a3   :  { %875 = vst [vmem:[#allocation2 + $0x8e8] sm:$0xff] %v874_v33  ;;  %v1002_v33 = vld [vmem:[%s10923_s3 + $0xf00] sm:$0xff] }
 0x1a4   :  { %877 = vst [vmem:[#allocation2 + $0x420] sm:$0xff] %v876_v34  ;;  %v1004_v34 = vld [vmem:[%s10923_s3 + $0xf08] sm:$0xff] }
 0x1a5   :  { %879 = vst [vmem:[#allocation2 + $0xe58] sm:$0xff] %v878_v35  ;;  %v1006_v35 = vld [vmem:[%s10923_s3 + $0xf10] sm:$0xff] }
 0x1a6   :  { %881 = vst [vmem:[#allocation2 + $0x570] sm:$0xff] %v880_v36  ;;  %v1008_v36 = vld [vmem:[%s10923_s3 + $0xf18] sm:$0xff] }
 0x1a7   :  { %883 = vst [vmem:[#allocation2 + $0xc68] sm:$0xff] %v882_v37  ;;  %v1010_v37 = vld [vmem:[%s10923_s3 + $0xf20] sm:$0xff] }
 0x1a8   :  { %885 = vst [vmem:[#allocation2 + $0xe40] sm:$0xff] %v884_v38  ;;  %v1012_v38 = vld [vmem:[%s10923_s3 + $0xf28] sm:$0xff] }
 0x1a9   :  { %887 = vst [vmem:[#allocation2 + $0x6a8] sm:$0xff] %v886_v39  ;;  %v1014_v39 = vld [vmem:[%s10923_s3 + $0xf30] sm:$0xff] }
 0x1aa   :  { %889 = vst [vmem:[#allocation2 + $0xbd8] sm:$0xff] %v888_v40  ;;  %v1016_v40 = vld [vmem:[%s10923_s3 + $0xf38] sm:$0xff] }
 0x1ab   :  { %891 = vst [vmem:[#allocation2 + $0xc0] sm:$0xff] %v890_v41  ;;  %v1018_v41 = vld [vmem:[%s10923_s3 + $0xf40] sm:$0xff] }
 0x1ac   :  { %893 = vst [vmem:[#allocation2 + $0xdb0] sm:$0xff] %v892_v42  ;;  %v1020_v42 = vld [vmem:[%s10923_s3 + $0xf48] sm:$0xff] }
 0x1ad   :  { %895 = vst [vmem:[#allocation2 + $0xa28] sm:$0xff] %v894_v43  ;;  %v1022_v43 = vld [vmem:[%s10923_s3 + $0xf50] sm:$0xff] }
 0x1ae   :  { %897 = vst [vmem:[#allocation2 + $0xd70] sm:$0xff] %v896_v44  ;;  %v1024_v44 = vld [vmem:[%s10923_s3 + $0xf58] sm:$0xff] }
 0x1af   :  { %899 = vst [vmem:[#allocation2 + $0xb30] sm:$0xff] %v898_v45  ;;  %v1026_v45 = vld [vmem:[%s10923_s3 + $0xf60] sm:$0xff] }
 0x1b0   :  { %901 = vst [vmem:[#allocation2 + $0xa30] sm:$0xff] %v900_v46  ;;  %v1028_v46 = vld [vmem:[%s10923_s3 + $0xf68] sm:$0xff] }
 0x1b1   :  { %903 = vst [vmem:[#allocation2 + $0xed0] sm:$0xff] %v902_v47  ;;  %v1030_v47 = vld [vmem:[%s10923_s3 + $0xf70] sm:$0xff] }
 0x1b2   :  { %905 = vst [vmem:[#allocation2 + $0x1d0] sm:$0xff] %v904_v48  ;;  %v1032_v48 = vld [vmem:[%s10923_s3 + $0xf78] sm:$0xff] }
 0x1b3   :  { %907 = vst [vmem:[#allocation2 + $0x720] sm:$0xff] %v906_v49  ;;  %v1034_v49 = vld [vmem:[%s10923_s3 + $0xf80] sm:$0xff] }
 0x1b4   :  { %909 = vst [vmem:[#allocation2 + $0xc88] sm:$0xff] %v908_v50  ;;  %v1036_v50 = vld [vmem:[%s10923_s3 + $0xf88] sm:$0xff] }
 0x1b5   :  { %911 = vst [vmem:[#allocation2 + $0x838] sm:$0xff] %v910_v51  ;;  %v1038_v51 = vld [vmem:[%s10923_s3 + $0xf90] sm:$0xff] }
 0x1b6   :  { %913 = vst [vmem:[#allocation2 + $0xad8] sm:$0xff] %v912_v52  ;;  %v1040_v52 = vld [vmem:[%s10923_s3 + $0xf98] sm:$0xff] }
 0x1b7   :  { %915 = vst [vmem:[#allocation2 + $0x4e8] sm:$0xff] %v914_v53  ;;  %v1042_v53 = vld [vmem:[%s10923_s3 + $0xfa0] sm:$0xff] }
 0x1b8   :  { %917 = vst [vmem:[#allocation2 + $0x240] sm:$0xff] %v916_v54  ;;  %v1044_v54 = vld [vmem:[%s10923_s3 + $0xfa8] sm:$0xff] }
 0x1b9   :  { %919 = vst [vmem:[#allocation2 + $0xc80] sm:$0xff] %v918_v55  ;;  %v1046_v55 = vld [vmem:[%s10923_s3 + $0xfb0] sm:$0xff] }
 0x1ba   :  { %921 = vst [vmem:[#allocation2 + $0x98] sm:$0xff] %v920_v56  ;;  %v1048_v56 = vld [vmem:[%s10923_s3 + $0xfb8] sm:$0xff] }
 0x1bb   :  { %923 = vst [vmem:[#allocation2 + $0x90] sm:$0xff] %v922_v57 }
 0x1bc   :  { %925 = vst [vmem:[#allocation2 + $0x1c8] sm:$0xff] %v924_v58 }
 0x1bd   :  { %927 = vst [vmem:[#allocation2 + $0x360] sm:$0xff] %v926_v59 }
 0x1be   :  { %929 = vst [vmem:[#allocation2 + $0x710] sm:$0xff] %v928_v60 }
 0x1bf   :  { %931 = vst [vmem:[#allocation2 + $0xcb8] sm:$0xff] %v930_v61 }
 0x1c0   :  { %933 = vst [vmem:[#allocation2 + $0x460] sm:$0xff] %v932_v62 }
 0x1c1   :  { %935 = vst [vmem:[#allocation2 + $0xd08] sm:$0xff] %v934_v63 }
 0x1c2   :  { %937 = vst [vmem:[#allocation2 + $0x188] sm:$0xff] %v936_v0 }
 0x1c3   :  { %939 = vst [vmem:[#allocation2 + $0x5d8] sm:$0xff] %v938_v1 }
 0x1c4   :  { %941 = vst [vmem:[#allocation2 + $0x5e0] sm:$0xff] %v940_v2 }
 0x1c5   :  { %943 = vst [vmem:[#allocation2 + $0x7d8] sm:$0xff] %v942_v3 }
 0x1c6   :  { %945 = vst [vmem:[#allocation2 + $0x968] sm:$0xff] %v944_v4 }
 0x1c7   :  { %947 = vst [vmem:[#allocation2 + $0x660] sm:$0xff] %v946_v5 }
 0x1c8   :  { %949 = vst [vmem:[#allocation2 + $0xdc8] sm:$0xff] %v948_v6 }
 0x1c9   :  { %951 = vst [vmem:[#allocation2 + $0xf0] sm:$0xff] %v950_v7 }
 0x1ca   :  { %953 = vst [vmem:[#allocation2 + $0x3b8] sm:$0xff] %v952_v8 }
 0x1cb   :  { %955 = vst [vmem:[#allocation2 + $0x358] sm:$0xff] %v954_v9 }
 0x1cc   :  { %957 = vst [vmem:[#allocation2 + $0x698] sm:$0xff] %v956_v10 }
 0x1cd   :  { %959 = vst [vmem:[#allocation2 + $0xc8] sm:$0xff] %v958_v11 }
 0x1ce   :  { %961 = vst [vmem:[#allocation2 + $0x438] sm:$0xff] %v960_v12 }
 0x1cf   :  { %963 = vst [vmem:[#allocation2 + $0x808] sm:$0xff] %v962_v13 }
 0x1d0   :  { %965 = vst [vmem:[#allocation2 + $0xc78] sm:$0xff] %v964_v14 }
 0x1d1   :  { %967 = vst [vmem:[#allocation2 + $0x368] sm:$0xff] %v966_v15 }
 0x1d2   :  { %969 = vst [vmem:[#allocation2 + $0x58] sm:$0xff] %v968_v16 }
 0x1d3   :  { %971 = vst [vmem:[#allocation2 + $0x50] sm:$0xff] %v970_v17 }
 0x1d4   :  { %973 = vst [vmem:[#allocation2 + $0xfa0] sm:$0xff] %v972_v18 }
 0x1d5   :  { %975 = vst [vmem:[#allocation2 + $0xcd0] sm:$0xff] %v974_v19 }
 0x1d6   :  { %977 = vst [vmem:[#allocation2 + $0xa8] sm:$0xff] %v976_v20 }
 0x1d7   :  { %979 = vst [vmem:[#allocation2 + $0x608] sm:$0xff] %v978_v21 }
 0x1d8   :  { %981 = vst [vmem:[#allocation2 + $0xac8] sm:$0xff] %v980_v22 }
 0x1d9   :  { %983 = vst [vmem:[#allocation2 + $0x298] sm:$0xff] %v982_v23 }
 0x1da   :  { %985 = vst [vmem:[#allocation2 + $0xd10] sm:$0xff] %v984_v24 }
 0x1db   :  { %987 = vst [vmem:[#allocation2 + $0xcf8] sm:$0xff] %v986_v25 }
 0x1dc   :  { %989 = vst [vmem:[#allocation2 + $0x880] sm:$0xff] %v988_v26 }
 0x1dd   :  { %991 = vst [vmem:[#allocation2 + $0x540] sm:$0xff] %v990_v27 }
 0x1de   :  { %993 = vst [vmem:[#allocation2 + $0xf98] sm:$0xff] %v992_v28 }
 0x1df   :  { %995 = vst [vmem:[#allocation2 + $0xa00] sm:$0xff] %v994_v29 }
 0x1e0   :  { %997 = vst [vmem:[#allocation2 + $0xf40] sm:$0xff] %v996_v30 }
 0x1e1   :  { %999 = vst [vmem:[#allocation2 + $0xb68] sm:$0xff] %v998_v31 }
 0x1e2   :  { %1001 = vst [vmem:[#allocation2 + $0xce8] sm:$0xff] %v1000_v32 }
 0x1e3   :  { %1003 = vst [vmem:[#allocation2 + $0x8f8] sm:$0xff] %v1002_v33 }
 0x1e4   :  { %1005 = vst [vmem:[#allocation2 + $0x680] sm:$0xff] %v1004_v34 }
 0x1e5   :  { %1007 = vst [vmem:[#allocation2 + $0x398] sm:$0xff] %v1006_v35 }
 0x1e6   :  { %1009 = vst [vmem:[#allocation2 + $0x7e8] sm:$0xff] %v1008_v36 }
 0x1e7   :  { %1011 = vst [vmem:[#allocation2 + $0xdb8] sm:$0xff] %v1010_v37 }
 0x1e8   :  { %1013 = vst [vmem:[#allocation2 + $0xe08] sm:$0xff] %v1012_v38 }
 0x1e9   :  { %1015 = vst [vmem:[#allocation2 + $0x9a8] sm:$0xff] %v1014_v39 }
 0x1ea   :  { %1017 = vst [vmem:[#allocation2 + $0x38] sm:$0xff] %v1016_v40 }
 0x1eb   :  { %1019 = vst [vmem:[#allocation2 + $0x9f0] sm:$0xff] %v1018_v41 }
 0x1ec   :  { %1021 = vst [vmem:[#allocation2 + $0xd18] sm:$0xff] %v1020_v42 }
 0x1ed   :  { %1023 = vst [vmem:[#allocation2 + $0xa60] sm:$0xff] %v1022_v43 }
 0x1ee   :  { %1025 = vst [vmem:[#allocation2 + $0x840] sm:$0xff] %v1024_v44 }
 0x1ef   :  { %1027 = vst [vmem:[#allocation2 + $0xf38] sm:$0xff] %v1026_v45 }
 0x1f0   :  { %1029 = vst [vmem:[#allocation2 + $0x2b0] sm:$0xff] %v1028_v46 }
 0x1f1   :  { %1031 = vst [vmem:[#allocation2 + $0x878] sm:$0xff] %v1030_v47 }
 0x1f2   :  { %1033 = vst [vmem:[#allocation2 + $0x290] sm:$0xff] %v1032_v48 }
 0x1f3   :  { %1035 = vst [vmem:[#allocation2 + $0x620] sm:$0xff] %v1034_v49 }
 0x1f4   :  { %1037 = vst [vmem:[#allocation2 + $0x548] sm:$0xff] %v1036_v50 }
 0x1f5   :  { %1039 = vst [vmem:[#allocation2 + $0xbc0] sm:$0xff] %v1038_v51 }
 0x1f6   :  { %1041 = vst [vmem:[#allocation2 + $0x870] sm:$0xff] %v1040_v52 }
 0x1f7   :  { %1043 = vst [vmem:[#allocation2 + $0x4e0] sm:$0xff] %v1042_v53 }
 0x1f8   :  { %1045 = vst [vmem:[#allocation2 + $0xd30] sm:$0xff] %v1044_v54 }
 0x1f9   :  { %1047 = vst [vmem:[#allocation2 + $0x760] sm:$0xff] %v1046_v55 }
 0x1fa   :  { %1049 = vst [vmem:[#allocation2 + $0x2a0] sm:$0xff] %v1048_v56 }
 0x1fb   :  { %1055 = vsyncadd [#allocation3], 64512  ;;  %v1105_v57 = vld [vmem:[%s10914_s0 + $0x168] sm:$0xff]  ;;  %v1106_v59 = vld [vmem:[%s10914_s0 + $0x170] sm:$0xff]  ;;  %vm1144_vm0 = vcmask 523264  }
 0x1fc   :  { %v1129_v58 = vld [vmem:[%s10914_s0 + $0x228] sm:$0xff]  ;;  %1151 = vmatpush.msra.mxu0 %v1105_v57  ;;  %v1102_v60 = vld [vmem:[%s10914_s0 + $0x150] sm:$0xff]  ;;  %1197 = vmatpush.msra.mxu2 %v1106_v59  ;;  %v1103_v62 = vld [vmem:[%s10914_s0 + $0x158] sm:$0xff] }
 0x1fd   :  { %1182 = vmatpush.msra.mxu1 %v1129_v58  ;;  %v1126_v61 = vld [vmem:[%s10914_s0 + $0x210] sm:$0xff]  ;;  %v1099_v63 = vld [vmem:[%s10914_s0 + $0x138] sm:$0xff]  ;;  %v1100_v1 = vld [vmem:[%s10914_s0 + $0x140] sm:$0xff] }
 0x1fe   :  { %v1123_v0 = vld [vmem:[%s10914_s0 + $0x1f8] sm:$0xff]  ;;  %1152 = vmatpush.msra.mxu0 %v1102_v60  ;;  %1198 = vmatpush.msra.mxu2 %v1103_v62  ;;  %v1096_v2 = vld [vmem:[%s10914_s0 + $0x120] sm:$0xff]  ;;  %v1097_v4 = vld [vmem:[%s10914_s0 + $0x128] sm:$0xff]  ;;  %v5996_v62 = vmov 0  }
 0x1ff   :  { %1183 = vmatpush.msra.mxu1 %v1126_v61  ;;  %v1120_v3 = vld [vmem:[%s10914_s0 + $0x1e0] sm:$0xff]  ;;  %v1093_v5 = vld [vmem:[%s10914_s0 + $0x108] sm:$0xff]  ;;  %v1130_v7 = vld [vmem:[%s10914_s0 + $0x230] sm:$0xff]  ;;  %5939 = vset.pattern.permute.xlu0 %v5996_v62 }
 0x200   :  { %1153 = vmatpush.msra.mxu0 %v1099_v63  ;;  %1199 = vmatpush.msra.mxu2 %v1100_v1  ;;  %v1117_v6 = vld [vmem:[%s10914_s0 + $0x1c8] sm:$0xff]  ;;  %v1094_v8 = vld [vmem:[%s10914_s0 + $0x110] sm:$0xff]  ;;  %v1127_v9 = vld [vmem:[%s10914_s0 + $0x218] sm:$0xff] }
 0x201   :  { %1184 = vmatpush.msra.mxu1 %v1123_v0  ;;  %v1090_v10 = vld [vmem:[%s10914_s0 + $0xf0] sm:$0xff]  ;;  %1228 = vmatpush.msra.mxu3 %v1130_v7  ;;  %v1091_v12 = vld [vmem:[%s10914_s0 + $0xf8] sm:$0xff]  ;;  %v1124_v13 = vld [vmem:[%s10914_s0 + $0x200] sm:$0xff] }
 0x202   :  { %1154 = vmatpush.msra.mxu0 %v1096_v2  ;;  %1200 = vmatpush.msra.mxu2 %v1097_v4  ;;  %v1114_v11 = vld [vmem:[%s10914_s0 + $0x1b0] sm:$0xff]  ;;  %v1087_v14 = vld [vmem:[%s10914_s0 + $0xd8] sm:$0xff]  ;;  %v1088_v16 = vld [vmem:[%s10914_s0 + $0xe0] sm:$0xff] }
 0x203   :  { %1185 = vmatpush.msra.mxu1 %v1120_v3  ;;  %v1111_v15 = vld [vmem:[%s10914_s0 + $0x198] sm:$0xff]  ;;  %1229 = vmatpush.msra.mxu3 %v1127_v9  ;;  %v1121_v17 = vld [vmem:[%s10914_s0 + $0x1e8] sm:$0xff]  ;;  %v1084_v18 = vld [vmem:[%s10914_s0 + $0xc0] sm:$0xff] }
 0x204   :  { %1155 = vmatpush.msra.mxu0 %v1093_v5  ;;  %1201 = vmatpush.msra.mxu2 %v1094_v8  ;;  %v1108_v19 = vld [vmem:[%s10914_s0 + $0x180] sm:$0xff]  ;;  %v1085_v20 = vld [vmem:[%s10914_s0 + $0xc8] sm:$0xff]  ;;  %v1107_v21 = vld [vmem:[%s10914_s0 + $0x178] sm:$0xff] }
 0x205   :  { %1186 = vmatpush.msra.mxu1 %v1117_v6  ;;  %1230 = vmatpush.msra.mxu3 %v1124_v13  ;;  %v1081_v22 = vld [vmem:[%s10914_s0 + $0xa8] sm:$0xff]  ;;  %v1118_v23 = vld [vmem:[%s10914_s0 + $0x1d0] sm:$0xff]  ;;  %v1104_v25 = vld [vmem:[%s10914_s0 + $0x160] sm:$0xff] }
 0x206   :  { %1156 = vmatpush.msra.mxu0 %v1090_v10  ;;  %1202 = vmatpush.msra.mxu2 %v1091_v12  ;;  %v1082_v24 = vld [vmem:[%s10914_s0 + $0xb0] sm:$0xff]  ;;  %v1115_v27 = vld [vmem:[%s10914_s0 + $0x1b8] sm:$0xff]  ;;  %v1101_v29 = vld [vmem:[%s10914_s0 + $0x148] sm:$0xff] }
 0x207   :  { %1187 = vmatpush.msra.mxu1 %v1114_v11  ;;  %1231 = vmatpush.msra.mxu3 %v1121_v17  ;;  %v1078_v26 = vld [vmem:[%s10914_s0 + $0x90] sm:$0xff]  ;;  %v1079_v28 = vld [vmem:[%s10914_s0 + $0x98] sm:$0xff]  ;;  %v1112_v31 = vld [vmem:[%s10914_s0 + $0x1a0] sm:$0xff] }
 0x208   :  { %1157 = vmatpush.msra.mxu0 %v1087_v14  ;;  %1203 = vmatpush.msra.mxu2 %v1088_v16  ;;  %v1075_v30 = vld [vmem:[%s10914_s0 + $0x78] sm:$0xff]  ;;  %v1076_v32 = vld [vmem:[%s10914_s0 + $0x80] sm:$0xff]  ;;  %v1098_v33 = vld [vmem:[%s10914_s0 + $0x130] sm:$0xff] }
 0x209   :  { %1188 = vmatpush.msra.mxu1 %v1111_v15  ;;  %1232 = vmatpush.msra.mxu3 %v1118_v23  ;;  %v1072_v34 = vld [vmem:[%s10914_s0 + $0x60] sm:$0xff]  ;;  %v1109_v35 = vld [vmem:[%s10914_s0 + $0x188] sm:$0xff]  ;;  %v1095_v37 = vld [vmem:[%s10914_s0 + $0x118] sm:$0xff] }
 0x20a   :  { %1158 = vmatpush.msra.mxu0 %v1084_v18  ;;  %1204 = vmatpush.msra.mxu2 %v1085_v20  ;;  %v1073_v36 = vld [vmem:[%s10914_s0 + $0x68] sm:$0xff]  ;;  %v1070_v40 = vld [vmem:[%s10914_s0 + $0x50] sm:$0xff]  ;;  %v1092_v41 = vld [vmem:[%s10914_s0 + $0x100] sm:$0xff] }
 0x20b   :  { %1189 = vmatpush.msra.mxu1 %v1108_v19  ;;  %1233 = vmatpush.msra.mxu3 %v1115_v27  ;;  %v1069_v38 = vld [vmem:[%s10914_s0 + $0x48] sm:$0xff]  ;;  %v1066_v42 = vld [vmem:[%s10914_s0 + $0x30] sm:$0xff]  ;;  %v1131_v43 = vld [vmem:[%s10914_s0 + $0x238] sm:$0xff] }
 0x20c   :  { %1159 = vmatpush.msra.mxu0 %v1081_v22  ;;  %1205 = vmatpush.msra.mxu2 %v1082_v24  ;;  %v7704_v39 = vld [vmem:[%s10915_s1 + $0x8] sm:$0xff]  ;;  %v1067_v44 = vld [vmem:[%s10914_s0 + $0x38] sm:$0xff]  ;;  %v1128_v47 = vld [vmem:[%s10914_s0 + $0x220] sm:$0xff] }
 0x20d   :  { %1243 = vmatpush.msrb.mxu1 %v1107_v21  ;;  %1234 = vmatpush.msra.mxu3 %v1112_v31  ;;  %v1089_v45 = vld [vmem:[%s10914_s0 + $0xe8] sm:$0xff]  ;;  %v1063_v46 = vld [vmem:[%s10914_s0 + $0x18] sm:$0xff]  ;;  %v1064_v48 = vld [vmem:[%s10914_s0 + $0x20] sm:$0xff] }
 0x20e   :  { %1160 = vmatpush.msra.mxu0 %v1078_v26  ;;  %1206 = vmatpush.msra.mxu2 %v1079_v28  ;;  %v1086_v49 = vld [vmem:[%s10914_s0 + $0xd0] sm:$0xff]  ;;  %v1060_v50 = vld [vmem:[%s10914_s0] sm:$0xff]  ;;  %v1061_v51 = vld [vmem:[%s10914_s0 + $0x8] sm:$0xff] }
 0x20f   :  { %1244 = vmatpush.msrb.mxu1 %v1104_v25  ;;  %1235 = vmatpush.msra.mxu3 %v1109_v35  ;;  %v1125_v52 = vld [vmem:[%s10914_s0 + $0x208] sm:$0xff]  ;;  %v1056_v53 = vld [vmem:[%s10915_s1] sm:$0xff]  ;;  %v1083_v54 = vld [vmem:[%s10914_s0 + $0xb8] sm:$0xff] }
 0x210   :  { %1161 = vmatpush.msra.mxu0 %v1075_v30  ;;  %1207 = vmatpush.msra.mxu2 %v1076_v32  ;;  %v1122_v55 = vld [vmem:[%s10914_s0 + $0x1f0] sm:$0xff]  ;;  %v1059_v56 = vld [vmem:[%s10915_s1 + $0x18] sm:$0xf]  ;;  %v1080_v57 = vld [vmem:[%s10914_s0 + $0xa0] sm:$0xff] }
 0x211   :  { %1245 = vmatpush.msrb.mxu1 %v1101_v29  ;;  %5824 = vmatmul.msk.f32.vlgmr.msra.gmra.mxu3 %vm1144_vm0, %v7704_v39  ;;  %v1119_v58 = vld [vmem:[%s10914_s0 + $0x1d8] sm:$0xff]  ;;  %v1132_v59 = vld [vmem:[%s10916_s2] sm:$0xff]  ;;  %v1077_v60 = vld [vmem:[%s10914_s0 + $0x88] sm:$0xff] }
 0x212   :  { %1162 = vmatpush.msra.mxu0 %v1072_v34  ;;  %1208 = vmatpush.msra.mxu2 %v1073_v36  ;;  %v1116_v61 = vld [vmem:[%s10914_s0 + $0x1c0] sm:$0xff]  ;;  %v1074_v63 = vld [vmem:[%s10914_s0 + $0x70] sm:$0xff]  ;;  %v1113_v0 = vld [vmem:[%s10914_s0 + $0x1a8] sm:$0xff] }
 0x213   :  { %1246 = vmatpush.msrb.mxu1 %v1098_v33  ;;  %1274 = vmatpush.msrb.mxu3 %v1131_v43  ;;  %v1058_v1 = vld [vmem:[%s10915_s1 + $0x10] sm:$0xf]  ;;  %v1071_v2 = vld [vmem:[%s10914_s0 + $0x58] sm:$0xff]  ;;  %v1068_v4 = vld [vmem:[%s10914_s0 + $0x40] sm:$0xff] }
 0x214   :  { %1163 = vmatpush.msra.mxu0 %v1069_v38  ;;  %1209 = vmatpush.msra.mxu2 %v1070_v40  ;;  %v1110_v3 = vld [vmem:[%s10914_s0 + $0x190] sm:$0xff]  ;;  %v1133_v5 = vld [vmem:[%s10916_s2 + $0x8] sm:$0xf] }
 0x215   :  { %1247 = vmatpush.msrb.mxu1 %v1095_v37  ;;  %1275 = vmatpush.msrb.mxu3 %v1128_v47  ;;  %v1065_v6 = vld [vmem:[%s10914_s0 + $0x28] sm:$0xff]  ;;  %v1062_v7 = vld [vmem:[%s10914_s0 + $0x10] sm:$0xff] }
 0x216   :  { %1164 = vmatpush.msra.mxu0 %v1066_v42  ;;  %1210 = vmatpush.msra.mxu2 %v1067_v44 }
 0x217   :  { %1248 = vmatpush.msrb.mxu1 %v1092_v41  ;;  %1276 = vmatpush.msrb.mxu3 %v1125_v52 }
 0x218   :  { %1165 = vmatpush.msra.mxu0 %v1063_v46  ;;  %1211 = vmatpush.msra.mxu2 %v1064_v48 }
 0x219   :  { %1249 = vmatpush.msrb.mxu1 %v1089_v45  ;;  %1277 = vmatpush.msrb.mxu3 %v1122_v55 }
 0x21a   :  { %1166 = vmatpush.msra.mxu0 %v1060_v50  ;;  %5822 = vmatmul.msk.f32.vlgmr.msra.gmra.mxu1 %vm1144_vm0, %v7704_v39 }
 0x21b   :  { %1250 = vmatpush.msrb.mxu1 %v1086_v49  ;;  %1212 = vmatpush.msra.mxu2 %v1061_v51 }
 0x21c   :  { %1167 = vmatmul.f32.vlgmr.msra.gmra.mxu0 %v1056_v53  ;;  %1213 = vmatmul.f32.vlgmr.msra.gmra.mxu2 %v1056_v53 }
 0x21d   :  { %1251 = vmatpush.msrb.mxu1 %v1083_v54  ;;  %5825 = vmatmul.msk.f32.gmra.mxu3 %vm1144_vm0, %v1059_v56 }
 0x21e   :  { %1278 = vmatpush.msrb.mxu3 %v1119_v58  ;;  %1136 = vperm.xlu0 %5939, %v1132_v59  }
 0x21f   :  { %1252 = vmatpush.msrb.mxu1 %v1080_v57 }
 0x220   :  { %1279 = vmatpush.msrb.mxu3 %v1116_v61 }
 0x221   :  { %1253 = vmatpush.msrb.mxu1 %v1077_v60 }
 0x222   :  { %5823 = vmatmul.msk.f32.gmra.mxu1 %vm1144_vm0, %v1059_v56  ;;  %1280 = vmatpush.msrb.mxu3 %v1113_v0 }
 0x223   :  { %1254 = vmatpush.msrb.mxu1 %v1074_v63 }
 0x224   :  { %1170 = vmatmul.f32.gmra.mxu0 %v1058_v1  ;;  %1216 = vmatmul.f32.gmra.mxu2 %v1058_v1 }
 0x225   :  { %1255 = vmatpush.msrb.mxu1 %v1071_v2  ;;  %1281 = vmatpush.msrb.mxu3 %v1110_v3 }
 0x226   :  { %5826 = vmatmul.msk.f32.vlgmr.msrb.gmra.mxu3 %vm1144_vm0, %v7704_v39  ;;  %1141 = vperm.xlu0 %5939, %v1133_v5  }
 0x227   :  { %1256 = vmatpush.msrb.mxu1 %v1068_v4 }
 0x229   :  { %1257 = vmatpush.msrb.mxu1 %v1065_v6 }
 0x22b   :  { %1258 = vmatpush.msrb.mxu1 %v1062_v7 }
 0x22c   :  { %1259 = vmatmul.f32.vlgmr.msrb.gmra.mxu1 %v1056_v53 }
 0x22e   :  { %5827 = vmatmul.msk.f32.gmra.mxu3 %vm1144_vm0, %v1059_v56 }
 0x234   :  { %1262 = vmatmul.f32.gmra.mxu1 %v1058_v1 }
 0x290   :  { %v1137_v8 = vpop.permute.xlu0 %1136 }
 0x294   :  { %v1237_v10 = vpop.f32.mrf.mxu3 }
 0x297   :  { %v1191_v9 = vpop.f32.mrf.mxu1 }
 0x298   :  { %v1142_v15 = vpop.permute.xlu0 %1141 }
 0x299   :  { %v1168_v11 = vpop.f32.mrf.mxu0 }
 0x29a   :  { %v1169_v12 = vadd.f32 %v1168_v11, %v1137_v8 }
 0x29c   :  { %v1192_v13 = vadd.f32 %v1191_v9, %v1169_v12 }
 0x29e   :  { %v5828_v14 = vmul.f32 -1.442695, %v1192_v13 }
 0x29f   :  { %v1214_v16 = vpop.f32.mrf.mxu2  ;;  %v1194_v17 = vpop.f32.mrf.mxu1 }
 0x2a0   :  { %5940 = vpow2.f32 %v5828_v14  ;;  %v1215_v18 = vadd.f32 %v1214_v16, %v1137_v8  ;;  %v1240_v20 = vpop.f32.mrf.mxu3 }
 0x2a1   :  { %v1171_v19 = vpop.f32.mrf.mxu0 }
 0x2a2   :  { %v1238_v21 = vadd.f32 %v1237_v10, %v1215_v18  ;;  %v1172_v22 = vadd.f32 %v1171_v19, %v1142_v15 }
 0x2a4   :  { %v5829_v23 = vmul.f32 -1.442695, %v1238_v21  ;;  %v1195_v24 = vadd.f32 %v1194_v17, %v1172_v22 }
 0x2a6   :  { %v5941_v25 = vpop.eup %5940  ;;  %5942 = vpow2.f32 %v5829_v23  ;;  %v5831_v26 = vmul.f32 -1.442695, %v1195_v24 }
 0x2a7   :  { %v1307_v27 = vadd.f32 1.0, %v5941_v25  ;;  %v1217_v28 = vpop.f32.mrf.mxu2 }
 0x2a8   :  { %5944 = vpow2.f32 %v5831_v26  ;;  %v1218_v29 = vadd.f32 %v1217_v28, %v1142_v15 }
 0x2a9   :  { %5946 = vrcp.f32 %v1307_v27  ;;  %v1260_v30 = vpop.f32.mrf.mxu1  ;;  %v1283_v31 = vpop.f32.mrf.mxu3  ;;  %v1322_v46 = vand.u32 2147483647, %v1307_v27  ;;  %v1324_v47 = vand.u32 2147483648, %v1307_v27  ;;  %vm1318_vm2 = vweird.f32 %v1307_v27 }
 0x2aa   :  { %v1241_v32 = vadd.f32 %v1240_v20, %v1218_v29  ;;  %v1261_v33 = vadd.f32 %v1260_v30, %v1137_v8 }
 0x2ab   :  { %vm1323_vm4 = vcmp.eq.f32.partialorder %v1322_v46, 8.507059e+37  ;;  %v1325_v57 = vor.u32 1.1754944e-38, %v1324_v47 }
 0x2ac   :  { %v5943_v34 = vpop.eup %5942  ;;  %v5832_v35 = vmul.f32 -1.442695, %v1241_v32  ;;  %v1284_v36 = vadd.f32 %v1283_v31, %v1261_v33 }
 0x2ad   :  { %v1308_v37 = vadd.f32 1.0, %v5943_v34 }
 0x2ae   :  { %v5945_v38 = vpop.eup %5944  ;;  %5948 = vpow2.f32 %v5832_v35  ;;  %v5830_v39 = vmul.f32 -1.442695, %v1284_v36 }
 0x2af   :  { %v5947_v40 = vpop.eup %5946  ;;  %5950 = vrcp.f32 %v1308_v37  ;;  %v1310_v42 = vadd.f32 1.0, %v5945_v38  ;;  %v1339_v0 = vand.u32 2147483648, %v1308_v37  ;;  %v1337_v3 = vand.u32 2147483647, %v1308_v37 }
 0x2b0   :  { %v1314_v41 = vmul.f32 %v5947_v40, %v1307_v27  ;;  %5952 = vpow2.f32 %v5830_v39  ;;  %vm1319_vm1 = vweird.f32 %v5947_v40  ;;  %vm1333_vm6 = vweird.f32 %v1308_v37 }
 0x2b1   :  { %v1263_v43 = vpop.f32.mrf.mxu1  ;;  %5954 = vrcp.f32 %v1310_v42  ;;  %v1286_v45 = vpop.f32.mrf.mxu3  ;;  %vm1320_vm3 = vmor %vm1318_vm2, %vm1319_vm1  ;;  %v1367_v6 = vand.u32 2147483647, %v1310_v42  ;;  %v1369_v7 = vand.u32 2147483648, %v1310_v42  ;;  %v1340_v9 = vor.u32 1.1754944e-38, %v1339_v0 }
 0x2b2   :  { %v1315_v44 = vsub.f32 1.0, %v1314_v41  ;;  %v1264_v48 = vadd.f32 %v1263_v43, %v1142_v15  ;;  %vm1338_vm9 = vcmp.eq.f32.partialorder %v1337_v3, 8.507059e+37  ;;  %vm1363_vm10 = vweird.f32 %v1310_v42 }
 0x2b3   :  { %vm1368_vm12 = vcmp.eq.f32.partialorder %v1367_v6, 8.507059e+37  ;;  %v1370_v16 = vor.u32 1.1754944e-38, %v1369_v7 }
 0x2b4   :  { %v5949_v49 = vpop.eup %5948  ;;  %v1316_v50 = vmul.f32 %v5947_v40, %v1315_v44  ;;  %v1287_v53 = vadd.f32 %v1286_v45, %v1264_v48 }
 0x2b5   :  { %v5951_v51 = vpop.eup %5950  ;;  %v7808_v52 = vadd.f32 1.0, %v5949_v49 }
 0x2b6   :  { %v5953_v54 = vpop.eup %5952  ;;  %v1317_v55 = vadd.f32 %v5947_v40, %v1316_v50  ;;  %v1329_v56 = vmul.f32 %v5951_v51, %v1308_v37  ;;  %v5833_v62 = vmul.f32 -1.442695, %v1287_v53  ;;  %vm1334_vm5 = vweird.f32 %v5951_v51 }
 0x2b7   :  { %5956 = vrcp.f32 %v7808_v52  ;;  %v5955_v58 = vpop.eup %5954  ;;  %v1309_v61 = vadd.f32 1.0, %v5953_v54  ;;  %vm1335_vm7 = vmor %vm1333_vm6, %vm1334_vm5  ;;  %v1382_v20 = vand.u32 2147483647, %v7808_v52  ;;  %v1384_v21 = vand.u32 2147483648, %v7808_v52 }
 0x2b8   :  { %v1321_v59 = vsel %vm1320_vm3, %v5947_v40, %v1317_v55  ;;  %v1330_v60 = vsub.f32 1.0, %v1329_v56  ;;  %v1359_v1 = vmul.f32 %v5955_v58, %v1310_v42  ;;  %vm1364_vm8 = vweird.f32 %v5955_v58 }
 0x2b9   :  { %v7811_v63 = vsel %vm1323_vm4, %v1325_v57, %v1321_v59  ;;  %5958 = vrcp.f32 %v1309_v61  ;;  %vm1365_vm11 = vmor %vm1363_vm10, %vm1364_vm8  ;;  %vm1378_vm14 = vweird.f32 %v7808_v52  ;;  %v1354_v28 = vand.u32 2147483648, %v1309_v61 }
 0x2ba   :  { %v1331_v2 = vmul.f32 %v5951_v51, %v1330_v60  ;;  %v1360_v4 = vsub.f32 1.0, %v1359_v1  ;;  %5960 = vpow2.f32 %v5833_v62  ;;  %v1385_v29 = vor.u32 1.1754944e-38, %v1384_v21 }
 0x2bb   :  { %v1352_v31 = vand.u32 2147483647, %v1309_v61  ;;  %vm1383_vm1 = vcmp.eq.f32.partialorder %v1382_v20, 8.507059e+37  ;;  %vm1348_vm2 = vweird.f32 %v1309_v61  ;;  %v1355_v35 = vor.u32 1.1754944e-38, %v1354_v28 }
 0x2bc   :  { %v1332_v5 = vadd.f32 %v5951_v51, %v1331_v2  ;;  %v1361_v10 = vmul.f32 %v5955_v58, %v1360_v4 }
 0x2bd   :  { %v5957_v8 = vpop.eup %5956  ;;  %vm1353_vm4 = vcmp.eq.f32.partialorder %v1352_v31, 8.507059e+37 }
 0x2be   :  { %v1336_v11 = vsel %vm1335_vm7, %v5951_v51, %v1332_v5  ;;  %v1374_v12 = vmul.f32 %v5957_v8, %v7808_v52  ;;  %v1362_v14 = vadd.f32 %v5955_v58, %v1361_v10  ;;  %vm1379_vm13 = vweird.f32 %v5957_v8 }
 0x2bf   :  { %v7814_v13 = vsel %vm1338_vm9, %v1340_v9, %v1336_v11  ;;  %v5959_v15 = vpop.eup %5958  ;;  %vm1380_vm15 = vmor %vm1378_vm14, %vm1379_vm13 }
 0x2c0   :  { %v1375_v17 = vsub.f32 1.0, %v1374_v12  ;;  %v5961_v18 = vpop.eup %5960  ;;  %v1366_v19 = vsel %vm1365_vm11, %v5955_v58, %v1362_v14  ;;  %v1344_v22 = vmul.f32 %v5959_v15, %v1309_v61  ;;  %vm1349_vm0 = vweird.f32 %v5959_v15 }
 0x2c1   :  { %v7818_v23 = vsel %vm1368_vm12, %v1370_v16, %v1366_v19  ;;  %v1312_v25 = vadd.f32 1.0, %v5961_v18  ;;  %vm1350_vm3 = vmor %vm1348_vm2, %vm1349_vm0  ;;  %v10924_v48 = vrot.slane %v7814_v13, 7 }
 0x2c2   :  { %10944 = vst [vmem:[#allocation7_spill] sm:$0xff] %v7818_v23  ;;  %v1376_v24 = vmul.f32 %v5957_v8, %v1375_v17  ;;  %v1345_v26 = vsub.f32 1.0, %v1344_v22 }
 0x2c3   :  { %5962 = vrcp.f32 %v1312_v25  ;;  %v1399_v41 = vand.u32 2147483648, %v1312_v25  ;;  %v1397_v43 = vand.u32 2147483647, %v1312_v25  ;;  %vm1393_vm6 = vweird.f32 %v1312_v25 }
 0x2c4   :  { %v1377_v27 = vadd.f32 %v5957_v8, %v1376_v24  ;;  %v1346_v30 = vmul.f32 %v5959_v15, %v1345_v26 }
 0x2c5   :  { %v1400_v45 = vor.u32 1.1754944e-38, %v1399_v41  ;;  %vm1398_vm8 = vcmp.eq.f32.partialorder %v1397_v43, 8.507059e+37 }
 0x2c6   :  { %v1381_v32 = vsel %vm1380_vm15, %v5957_v8, %v1377_v27  ;;  %v1347_v34 = vadd.f32 %v5959_v15, %v1346_v30 }
 0x2c7   :  { %v7821_v33 = vsel %vm1383_vm1, %v1385_v29, %v1381_v32 }
 0x2c8   :  { %v1351_v36 = vsel %vm1350_vm3, %v5959_v15, %v1347_v34 }
 0x2c9   :  { %v5963_v37 = vpop.eup %5962  ;;  %v7823_v38 = vsel %vm1353_vm4, %v1355_v35, %v1351_v36 }
 0x2ca   :  { %v1389_v39 = vmul.f32 %v5963_v37, %v1312_v25  ;;  %vm1394_vm5 = vweird.f32 %v5963_v37 }
 0x2cb   :  { %vm1395_vm7 = vmor %vm1393_vm6, %vm1394_vm5 }
 0x2cc   :  { %v1390_v40 = vsub.f32 1.0, %v1389_v39 }
 0x2ce   :  { %v1391_v42 = vmul.f32 %v5963_v37, %v1390_v40 }
 0x2d0   :  { %v1392_v44 = vadd.f32 %v5963_v37, %v1391_v42 }
 0x2d2   :  { %v1396_v46 = vsel %vm1395_vm7, %v5963_v37, %v1392_v44 }
 0x2d3   :  { %v7825_v47 = vsel %vm1398_vm8, %v1400_v45, %v1396_v46 }
 0x2d4   :  { %5994 = dma.done.wait [#allocation3], 64512 }
 0x2d5   :  { %5995 = vsyncadd [#allocation3], 4294902784  ;;  %v2191_v49 = vrot.slane %v7823_v38, 1  ;;  %s5997_s0 = smov 94   ;;  %v1869_v50 = vrot.slane %v7814_v13, 1  ;;  %v2188_v51 = vrot.slane %v7814_v13, 2 }
 0x2d6   :  { %1874 = vrot.lane.b32.xlu1 %v7823_v38, %s5997_s0  ;;  %1548 = vrot.lane.b32.xlu0 %v10924_v48, %s5997_s0  ;;  %v1547_v52 = vrot.slane %v7823_v38, 7  ;;  %v1448_v53 = vld [vmem:[#allocation2 + $0x948] sm:$0xff]  ;;  %v1446_v54 = vld [vmem:[#allocation2 + $0xea0] sm:$0xff]  ;;  %v1444_v55 = vld [vmem:[#allocation2 + $0x3f8] sm:$0xff]  ;;  %v2511_v14 = vrot.slane %v7823_v38, 2  ;;  %vm1563_vm9 = vcmask 1041408  }
 0x2d7   :  { %2194 = vrot.lane.b32.xlu2 %v2191_v49, %s5997_s0  ;;  %v5964_v56 = vpack.i.bf16 %v2188_v51, %v1869_v50  ;;  %v1520_v57 = vunpack.c.l.bf16 %v1448_v53  ;;  %v1516_v58 = vunpack.c.l.bf16 %v1446_v54  ;;  %v1521_v59 = vunpack.c.h.bf16 %v1448_v53  ;;  %v1442_v60 = vld [vmem:[#allocation2 + $0x5c8] sm:$0xff]  ;;  %v7845_v0 = vld [vmem:[#allocation2 + $0xbf8] sm:$0xff]  ;;  %v1440_v2 = vld [vmem:[#allocation2 + $0xaf0] sm:$0xff] }
 0x2d8   :  { %v1517_v61 = vunpack.c.h.bf16 %v1446_v54  ;;  %v1512_v62 = vunpack.c.l.bf16 %v1444_v55  ;;  %v7847_v1 = vld [vmem:[#allocation2 + $0xb78] sm:$0xff]  ;;  %v1522_v3 = vunpack.c.l.bf16 %v7845_v0  ;;  %v7852_v5 = vld [vmem:[#allocation2 + $0xf08] sm:$0xff]  ;;  %v1513_v6 = vunpack.c.h.bf16 %v1444_v55  ;;  %v1436_v16 = vld [vmem:[#allocation2 + $0x790] sm:$0xff] }
 0x2d9   :  { %1576 = vmatpush.msrb.mxu0 %v1520_v57  ;;  %v1518_v4 = vunpack.c.l.bf16 %v7847_v1  ;;  %1616 = vmatpush.msra.mxu3 %v1521_v59  ;;  %v1508_v7 = vunpack.c.l.bf16 %v1442_v60  ;;  %v7854_v8 = vld [vmem:[#allocation2 + $0xd78] sm:$0xff]  ;;  %v1438_v9 = vld [vmem:[#allocation2 + $0x748] sm:$0xff]  ;;  %v1514_v10 = vunpack.c.l.bf16 %v7852_v5  ;;  %v1509_v11 = vunpack.c.h.bf16 %v1442_v60  ;;  %v7861_v20 = vld [vmem:[#allocation2 + $0x830] sm:$0xff] }
 0x2da   :  { %1656 = vmatpush.msra.mxu1 %v1522_v3  ;;  %v1504_v12 = vunpack.c.l.bf16 %v1440_v2  ;;  %v7858_v15 = vld [vmem:[#allocation2 + $0x5b8] sm:$0xff]  ;;  %v1510_v17 = vunpack.c.l.bf16 %v7854_v8  ;;  %v1505_v18 = vunpack.c.h.bf16 %v1440_v2  ;;  %v1500_v19 = vunpack.c.l.bf16 %v1438_v9  ;;  %v1434_v21 = vld [vmem:[#allocation2 + $0x728] sm:$0xff]  ;;  %v7865_v26 = vld [vmem:[#allocation2 + $0x340] sm:$0xff] }
 0x2db   :  { %1577 = vmatpush.msrb.mxu0 %v1516_v58  ;;  %1617 = vmatpush.msra.mxu3 %v1517_v61  ;;  %v1506_v22 = vunpack.c.l.bf16 %v7858_v15  ;;  %v1501_v24 = vunpack.c.h.bf16 %v1438_v9  ;;  %v1496_v25 = vunpack.c.l.bf16 %v1436_v16  ;;  %v1432_v27 = vld [vmem:[#allocation2 + $0xd58] sm:$0xff]  ;;  %v1502_v28 = vunpack.c.l.bf16 %v7861_v20  ;;  %v7870_v32 = vld [vmem:[#allocation2 + $0x6e8] sm:$0xff]  ;;  %v1430_v35 = vld [vmem:[#allocation2 + $0xca0] sm:$0xff] }
 0x2dc   :  { %1657 = vmatpush.msra.mxu1 %v1518_v4  ;;  %v1497_v29 = vunpack.c.h.bf16 %v1436_v16  ;;  %v7868_v30 = vld [vmem:[#allocation2 + $0xcd8] sm:$0x11]  ;;  %v1492_v31 = vunpack.c.l.bf16 %v1434_v21  ;;  %v1498_v36 = vunpack.c.l.bf16 %v7865_v26  ;;  %v1493_v37 = vunpack.c.h.bf16 %v1434_v21  ;;  %v7874_v39 = vld [vmem:[#allocation2 + $0x868] sm:$0xff]  ;;  %v7876_v41 = vld [vmem:[#allocation2 + $0x510] sm:$0xff] }
 0x2dd   :  { %1578 = vmatpush.msrb.mxu0 %v1512_v62  ;;  %1618 = vmatpush.msra.mxu3 %v1513_v6  ;;  %v1540_v34 = vunpack.c.l.bf16 %v7868_v30  ;;  %v1488_v40 = vunpack.c.l.bf16 %v1432_v27  ;;  %v1536_v42 = vunpack.c.l.bf16 %v7874_v39  ;;  %v1428_v43 = vld [vmem:[#allocation2 + $0x918] sm:$0xff]  ;;  %v1494_v44 = vunpack.c.l.bf16 %v7870_v32  ;;  %v7881_v46 = vld [vmem:[#allocation2 + $0xd68] sm:$0xff]  ;;  %v1426_v54 = vld [vmem:[#allocation2 + $0x450] sm:$0xff] }
 0x2de   :  { %1872 = vrot.lane.b32.xlu1 %v7814_v13, %s5997_s0  ;;  %1550 = vrot.lane.b32.xlu0 %v1547_v52, %s5997_s0  ;;  %v1489_v45 = vunpack.c.h.bf16 %v1432_v27  ;;  %v1484_v49 = vunpack.c.l.bf16 %v1430_v35  ;;  %v7883_v52 = vld [vmem:[#allocation2 + $0xb28] sm:$0xff]  ;;  %v1532_v53 = vunpack.c.l.bf16 %v7881_v46  ;;  %v1490_v55 = vunpack.c.l.bf16 %v7876_v41  ;;  %v7887_v57 = vld [vmem:[#allocation2 + $0x910] sm:$0xff]  ;;  %v7889_v59 = vld [vmem:[#allocation2 + $0xd20] sm:$0xff] }
 0x2df   :  { %5965 = vrot.lane.b32.xlu2 %v5964_v56, %s5997_s0  ;;  %1579 = vmatpush.msrb.mxu0 %v1508_v7  ;;  %v1485_v56 = vunpack.c.h.bf16 %v1430_v35  ;;  %v1480_v58 = vunpack.c.l.bf16 %v1428_v43  ;;  %v1528_v60 = vunpack.c.l.bf16 %v7887_v57  ;;  %v1424_v61 = vld [vmem:[#allocation2 + $0x770] sm:$0xff]  ;;  %v1486_v62 = vunpack.c.l.bf16 %v7883_v52  ;;  %v7893_v4 = vld [vmem:[#allocation2 + $0xb88] sm:$0xff]  ;;  %v8761_v48 = vld [vmem:[#allocation2 + $0x538] sm:$0xff] }
 0x2e0   :  { %1658 = vmatpush.msra.mxu1 %v1514_v10  ;;  %1619 = vmatpush.msra.mxu3 %v1509_v11  ;;  %v1481_v2 = vunpack.c.h.bf16 %v1428_v43  ;;  %v1476_v3 = vunpack.c.l.bf16 %v1426_v54  ;;  %v1422_v6 = vld [vmem:[#allocation2 + $0xc50] sm:$0xff]  ;;  %v1482_v7 = vunpack.c.l.bf16 %v7889_v59  ;;  %v1477_v9 = vunpack.c.h.bf16 %v1426_v54  ;;  %v7896_v11 = vld [vmem:[#allocation2 + $0x338] sm:$0xff] }
 0x2e1   :  { %1580 = vmatpush.msrb.mxu0 %v1504_v12  ;;  %5834 = vmatpush.msk.msrb.mxu2 %vm1563_vm9, %v1540_v34  ;;  %v1472_v10 = vunpack.c.l.bf16 %v1424_v61  ;;  %v1420_v12 = vld [vmem:[#allocation2 + $0x4d8] sm:$0xff]  ;;  %v1473_v16 = vunpack.c.h.bf16 %v1424_v61  ;;  %v1474_v21 = vunpack.c.l.bf16 %v7896_v11  ;;  %v1523_v34 = vunpack.c.h.bf16 %v7845_v0 }
 0x2e2   :  { %1659 = vmatpush.msra.mxu1 %v1510_v17  ;;  %1620 = vmatpush.msra.mxu3 %v1505_v18  ;;  %v1468_v17 = vunpack.c.l.bf16 %v1422_v6  ;;  %v7899_v18 = vld [vmem:[#allocation2 + $0x810] sm:$0xff]  ;;  %v1515_v0 = vunpack.c.h.bf16 %v7852_v5  ;;  %v1495_v5 = vunpack.c.h.bf16 %v7870_v32  ;;  %v1491_v54 = vunpack.c.h.bf16 %v7876_v41  ;;  %v7936_v41 = vld [vmem:[#allocation2 + $0xd28] sm:$0xff]  ;;  %v8794_v23 = vld [vmem:[#allocation2 + $0x498] sm:$0xff] }
 0x2e3   :  { %1581 = vmatpush.msrb.mxu0 %v1500_v19  ;;  %1608 = vmatpush.msrb.mxu2 %v1536_v42  ;;  %v7901_v19 = vld [vmem:[#allocation2 + $0xab0] sm:$0xff]  ;;  %v1470_v27 = vunpack.c.l.bf16 %v7899_v18  ;;  %vm1552_vm10 = vcmask 769024   ;;  %vm1556_vm11 = vcmask 1040384   ;;  %vm1559_vm12 = vcmask 277504  }
 0x2e4   :  { %1660 = vmatpush.msra.mxu1 %v1506_v22  ;;  %1621 = vmatpush.msra.mxu3 %v1501_v24  ;;  %v1469_v22 = vunpack.c.h.bf16 %v1422_v6  ;;  %v1464_v24 = vunpack.c.l.bf16 %v1420_v12  ;;  %v7916_v42 = vld [vmem:[#allocation2 + $0x70] sm:$0xff]  ;;  %v1461_v32 = vunpack.c.h.bf16 %v7901_v19  ;;  %v1475_v6 = vunpack.c.h.bf16 %v7896_v11 }
 0x2e5   :  { %1582 = vmatpush.msrb.mxu0 %v1496_v25  ;;  %1609 = vmatpush.msrb.mxu2 %v1532_v53  ;;  %v7904_v25 = vld [vmem:[#allocation2 + $0x818] sm:$0xff]  ;;  %v1499_v53 = vunpack.c.h.bf16 %v7865_v26 }
 0x2e6   :  { %2514 = vrot.lane.b32.xlu0 %v2511_v14, %s5997_s0  ;;  %1661 = vmatpush.msra.mxu1 %v1502_v28  ;;  %v1478_v14 = vunpack.c.l.bf16 %v7893_v4  ;;  %v1465_v28 = vunpack.c.h.bf16 %v1420_v12  ;;  %v1466_v35 = vunpack.c.l.bf16 %v7904_v25  ;;  %v1471_v12 = vunpack.c.h.bf16 %v7899_v18 }
 0x2e7   :  { %1622 = vmatpush.msra.mxu3 %v1497_v29  ;;  %1583 = vmatpush.msrb.mxu0 %v1492_v31  ;;  %v1460_v29 = vunpack.c.l.bf16 %v7901_v19  ;;  %v7908_v31 = vld [vmem:[#allocation2 + $0xbb0] sm:$0xff] }
 0x2e8   :  { %1662 = vmatpush.msra.mxu1 %v1498_v36  ;;  %1610 = vmatpush.msrb.mxu2 %v1528_v60  ;;  %v7912_v36 = vld [vmem:[#allocation2 + $0x578] sm:$0xff] }
 0x2e9   :  { %1623 = vmatpush.msra.mxu3 %v1493_v37  ;;  %1584 = vmatpush.msrb.mxu0 %v1488_v40  ;;  %v1519_v37 = vunpack.c.h.bf16 %v7847_v1  ;;  %v1462_v40 = vunpack.c.l.bf16 %v7908_v31  ;;  %v1844_v43 = vunpack.c.h.bf16 %v7912_v36  ;;  %v1507_v1 = vunpack.c.h.bf16 %v7858_v15  ;;  %v7928_v15 = vld [vmem:[#allocation2 + $0x488] sm:$0xff]  ;;  %v7934_v60 = vld [vmem:[#allocation2 + $0x18] sm:$0x11] }
 0x2ea   :  { %1663 = vmatpush.msra.mxu1 %v1494_v44  ;;  %v1840_v44 = vunpack.c.h.bf16 %v7916_v42  ;;  %v1836_v26 = vunpack.c.h.bf16 %v7928_v15  ;;  %v1543_v61 = vunpack.c.h.bf16 %v7934_v60 }
 0x2eb   :  { %1624 = vmatpush.msra.mxu3 %v1489_v45  ;;  %1585 = vmatpush.msrb.mxu0 %v1484_v49  ;;  %v1511_v45 = vunpack.c.h.bf16 %v7854_v8  ;;  %v1503_v49 = vunpack.c.h.bf16 %v7861_v20  ;;  %v1487_v8 = vunpack.c.h.bf16 %v7883_v52  ;;  %v1479_v52 = vunpack.c.h.bf16 %v7893_v4 }
 0x2ec   :  { %1664 = vmatpush.msra.mxu1 %v1490_v55  ;;  %v1450_v55 = vld [vmem:[#allocation2 + $0x9d0] sm:$0xff] }
 0x2ed   :  { %1625 = vmatpush.msra.mxu3 %v1485_v56  ;;  %1586 = vmatpush.msrb.mxu0 %v1480_v58  ;;  %v1541_v56 = vunpack.c.h.bf16 %v7868_v30  ;;  %v1524_v20 = vunpack.c.l.bf16 %v1450_v55  ;;  %v1483_v58 = vunpack.c.h.bf16 %v7889_v59  ;;  %v7942_v30 = vld [vmem:[#allocation2 + $0x88] sm:$0xff]  ;;  %v1832_v59 = vunpack.c.h.bf16 %v7936_v41 }
 0x2ee   :  { %1665 = vmatpush.msra.mxu1 %v1486_v62  ;;  %v7940_v62 = vld [vmem:[#allocation2 + $0xe30] sm:$0xff] }
 0x2ef   :  { %1626 = vmatpush.msra.mxu3 %v1481_v2  ;;  %1587 = vmatpush.msrb.mxu0 %v1476_v3  ;;  %v7944_v2 = vld [vmem:[#allocation2 + $0xbf0] sm:$0xff]  ;;  %v1537_v3 = vunpack.c.h.bf16 %v7874_v39  ;;  %v1539_v4 = vunpack.c.h.bf16 %v7940_v62 }
 0x2f0   :  { %1666 = vmatpush.msra.mxu1 %v1482_v7  ;;  %1611 = vmatpush.msrb.mxu2 %v1524_v20  ;;  %v7949_v7 = vld [vmem:[#allocation2 + $0x7f8] sm:$0xff]  ;;  %v1535_v39 = vunpack.c.h.bf16 %v7944_v2  ;;  %v8002_v20 = vld [vmem:[#allocation2 + $0x8a0] sm:$0x11] }
 0x2f1   :  { %1627 = vmatpush.msra.mxu3 %v1477_v9  ;;  %1588 = vmatpush.msrb.mxu0 %v1472_v10  ;;  %v1828_v9 = vunpack.c.h.bf16 %v7942_v30  ;;  %v1533_v10 = vunpack.c.h.bf16 %v7881_v46  ;;  %v1824_v11 = vunpack.c.h.bf16 %v7949_v7  ;;  %v1467_v46 = vunpack.c.h.bf16 %v7904_v25 }
 0x2f2   :  { %1667 = vmatpush.msra.mxu1 %v1478_v14  ;;  %5836 = vmatpush.msk.msra.mxu2 %vm1563_vm9, %v1541_v56  ;;  %v1529_v14 = vunpack.c.h.bf16 %v7887_v57  ;;  %v7967_v57 = vld [vmem:[#allocation2 + $0xa90] sm:$0xff]  ;;  %v8000_v56 = vld [vmem:[#allocation2 + $0x798] sm:$0x11] }
 0x2f3   :  { %1628 = vmatpush.msra.mxu3 %v1473_v16  ;;  %1589 = vmatpush.msrb.mxu0 %v1468_v17  ;;  %v7960_v16 = vld [vmem:[#allocation2 + $0xbd0] sm:$0xff] }
 0x2f4   :  { %1668 = vmatpush.msra.mxu1 %v1474_v21  ;;  %1648 = vmatpush.msra.mxu2 %v1537_v3  ;;  %v7962_v17 = vld [vmem:[#allocation2 + $0x8d0] sm:$0xff]  ;;  %v1531_v18 = vunpack.c.h.bf16 %v7960_v16  ;;  %v1525_v21 = vunpack.c.h.bf16 %v1450_v55 }
 0x2f5   :  { %1629 = vmatpush.msra.mxu3 %v1469_v22  ;;  %1590 = vmatpush.msrb.mxu0 %v1464_v24  ;;  %v1820_v19 = vunpack.c.h.bf16 %v7962_v17  ;;  %v7969_v22 = vld [vmem:[#allocation2 + $0xe8] sm:$0xff]  ;;  %v1463_v24 = vunpack.c.h.bf16 %v7908_v31 }
 0x2f6   :  { %1669 = vmatpush.msra.mxu1 %v1470_v27  ;;  %1649 = vmatpush.msra.mxu2 %v1533_v10  ;;  %v1527_v27 = vunpack.c.h.bf16 %v7967_v57  ;;  %v1816_v25 = vunpack.c.h.bf16 %v7969_v22 }
 0x2f7   :  { %1630 = vmatpush.msra.mxu3 %v1465_v28  ;;  %1591 = vmatpush.msrb.mxu0 %v1460_v29  ;;  %v7974_v28 = vld [vmem:[#allocation2 + $0x670] sm:$0xff] }
 0x2f8   :  { %1670 = vmatpush.msra.mxu1 %v1466_v35  ;;  %1650 = vmatpush.msra.mxu2 %v1529_v14  ;;  %v1812_v29 = vunpack.c.h.bf16 %v7974_v28 }
 0x2f9   :  { %1696 = vmatpush.msra.mxu0 %v1523_v34  ;;  %1631 = vmatpush.msra.mxu3 %v1461_v32  ;;  %v7977_v34 = vld [vmem:[#allocation2 + $0x7a0] sm:$0xff] }
 0x2fa   :  { %1671 = vmatpush.msra.mxu1 %v1462_v40  ;;  %1651 = vmatpush.msra.mxu2 %v1525_v21  ;;  %v1808_v35 = vunpack.c.h.bf16 %v7977_v34  ;;  %v7983_v40 = vld [vmem:[#allocation2 + $0x6f8] sm:$0xff]  ;;  %v8038_v21 = vld [vmem:[#allocation2 + $0x6c8] sm:$0xff] }
 0x2fb   :  { %1697 = vmatpush.msra.mxu0 %v1519_v37  ;;  %5840 = vmatpush.msk.msrb.mxu3 %vm1563_vm9, %v1543_v61  ;;  %v7980_v37 = vld [vmem:[#allocation2 + $0x618] sm:$0xff] }
 0x2fc   :  { %1936 = vmatpush.msrb.mxu1 %v1844_v43  ;;  %v1804_v31 = vunpack.c.h.bf16 %v7980_v37  ;;  %v1800_v43 = vunpack.c.h.bf16 %v7983_v40  ;;  %v8009_v61 = vld [vmem:[#allocation2 + $0xa38] sm:$0xff] }
 0x2fd   :  { %1698 = vmatpush.msra.mxu0 %v1515_v0  ;;  %1728 = vmatpush.msrb.mxu3 %v1539_v4  ;;  %v7986_v0 = vld [vmem:[#allocation2 + $0x8a8] sm:$0xff]  ;;  %v1866_v4 = vunpack.c.h.bf16 %v8002_v20 }
 0x2fe   :  { %1937 = vmatpush.msrb.mxu1 %v1840_v44  ;;  %v2831_v44 = vrot.slane %v7823_v38, 3 }
 0x2ff   :  { %1699 = vmatpush.msra.mxu0 %v1511_v45  ;;  %1729 = vmatpush.msrb.mxu3 %v1535_v39  ;;  %v1796_v45 = vunpack.c.h.bf16 %v7986_v0  ;;  %v8027_v39 = vld [vmem:[#allocation2 + $0xf28] sm:$0xff] }
 0x300   :  { %1938 = vmatpush.msrb.mxu1 %v1836_v26  ;;  %2834 = vrot.lane.b32.xlu1 %v2831_v44, %s5997_s0  ;;  %v8005_v26 = vld [vmem:[#allocation2 + $0xa18] sm:$0xff]  ;;  %v8051_v44 = vld [vmem:[#allocation2 + $0xda0] sm:$0xff] }
 0x301   :  { %1700 = vmatpush.msra.mxu0 %v1507_v1  ;;  %1730 = vmatpush.msrb.mxu3 %v1531_v18  ;;  %v7990_v1 = vld [vmem:[#allocation2 + $0x158] sm:$0xff]  ;;  %v1534_v18 = vunpack.c.l.bf16 %v7944_v2 }
 0x302   :  { %1939 = vmatpush.msrb.mxu1 %v1832_v59 }
 0x303   :  { %1701 = vmatpush.msra.mxu0 %v1503_v49  ;;  %1731 = vmatpush.msrb.mxu3 %v1527_v27  ;;  %v1792_v49 = vunpack.c.h.bf16 %v7990_v1 }
 0x304   :  { %1940 = vmatpush.msrb.mxu1 %v1828_v9  ;;  %v8018_v9 = vld [vmem:[#allocation2 + $0xc98] sm:$0xff] }
 0x305   :  { %1702 = vmatpush.msra.mxu0 %v1499_v53  ;;  %v7994_v53 = vld [vmem:[#allocation2 + $0x938] sm:$0xff] }
 0x306   :  { %1941 = vmatpush.msrb.mxu1 %v1824_v11  ;;  %v2163_v11 = vunpack.c.l.bf16 %v8005_v26 }
 0x307   :  { %1703 = vmatpush.msra.mxu0 %v1495_v5  ;;  %v1788_v5 = vunpack.c.h.bf16 %v7994_v53 }
 0x308   :  { %1942 = vmatpush.msrb.mxu1 %v1820_v19  ;;  %v8036_v19 = vld [vmem:[#allocation2 + $0x650] sm:$0xff] }
 0x309   :  { %1704 = vmatpush.msra.mxu0 %v1491_v54  ;;  %v7997_v54 = vld [vmem:[#allocation2 + $0x528] sm:$0xff] }
 0x30a   :  { %1943 = vmatpush.msrb.mxu1 %v1816_v25  ;;  %v1858_v25 = vunpack.c.h.bf16 %v8027_v39 }
 0x30b   :  { %1705 = vmatpush.msra.mxu0 %v1487_v8  ;;  %v1784_v8 = vunpack.c.h.bf16 %v7997_v54 }
 0x30c   :  { %1944 = vmatpush.msrb.mxu1 %v1812_v29  ;;  %v1530_v29 = vunpack.c.l.bf16 %v7960_v16  ;;  %v8054_v16 = vld [vmem:[#allocation2 + $0x300] sm:$0x11] }
 0x30d   :  { %1706 = vmatpush.msra.mxu0 %v1483_v58  ;;  %v1542_v58 = vunpack.c.l.bf16 %v7934_v60  ;;  %v1538_v60 = vunpack.c.l.bf16 %v7940_v62  ;;  %v8033_v62 = vld [vmem:[#allocation2 + $0xeb0] sm:$0xff] }
 0x30e   :  { %1945 = vmatpush.msrb.mxu1 %v1808_v35  ;;  %v2155_v2 = vunpack.c.l.bf16 %v8033_v62  ;;  %v1851_v35 = vunpack.c.l.bf16 %v8036_v19 }
 0x30f   :  { %1707 = vmatpush.msra.mxu0 %v1479_v52  ;;  %v8007_v52 = vld [vmem:[#allocation2 + $0x330] sm:$0xff] }
 0x310   :  { %1946 = vmatpush.msrb.mxu1 %v1804_v31  ;;  %v1859_v14 = vunpack.c.l.bf16 %v8007_v52  ;;  %v1854_v31 = vunpack.c.h.bf16 %v8038_v21 }
 0x311   :  { %1708 = vmatpush.msra.mxu0 %v1475_v6  ;;  %v1863_v6 = vunpack.c.l.bf16 %v8000_v56 }
 0x312   :  { %1947 = vmatpush.msrb.mxu1 %v1800_v43  ;;  %v8049_v43 = vld [vmem:[#allocation2 + $0xeb8] sm:$0xff] }
 0x313   :  { %1709 = vmatpush.msra.mxu0 %v1471_v12  ;;  %v8025_v12 = vld [vmem:[#allocation2 + $0xbb8] sm:$0xff] }
 0x314   :  { %1948 = vmatpush.msrb.mxu1 %v1796_v45  ;;  %v1855_v27 = vunpack.c.l.bf16 %v8025_v12  ;;  %v1526_v45 = vunpack.c.l.bf16 %v7967_v57  ;;  %v1839_v57 = vunpack.c.l.bf16 %v7916_v42  ;;  %v1835_v42 = vunpack.c.l.bf16 %v7928_v15 }
 0x315   :  { %1710 = vmatpush.msra.mxu0 %v1467_v46  ;;  %v1862_v46 = vunpack.c.h.bf16 %v8009_v61 }
 0x316   :  { %1949 = vmatpush.msrb.mxu1 %v1792_v49  ;;  %v1843_v49 = vunpack.c.l.bf16 %v7912_v36  ;;  %v2183_v36 = vunpack.c.l.bf16 %v8054_v16 }
 0x317   :  { %1711 = vmatpush.msra.mxu0 %v1463_v24  ;;  %v2159_v24 = vunpack.c.l.bf16 %v8018_v9 }
 0x318   :  { %1950 = vmatpush.msrb.mxu1 %v1788_v5  ;;  %v1847_v5 = vunpack.c.l.bf16 %v8049_v43 }
 0x31a   :  { %1951 = vmatpush.msrb.mxu1 %v1784_v8  ;;  %v8058_v8 = vld [vmem:[#allocation2 + $0x9c0] sm:$0xff] }
 0x348   :  { %v1549_v55 = vpop.permute.xlu0 %1548 }
 0x350   :  { %v1551_v32 = vpop.permute.xlu0 %1550 }
 0x351   :  { %v1553_v59 = vsel %vm1552_vm10, %v1549_v55, %v1551_v32  ;;  %v8014_v3 = vsel %vm1556_vm11, %v7814_v13, %v1551_v32  ;;  %v1850_v55 = vunpack.c.h.bf16 %v8051_v44  ;;  %v8062_v32 = vld [vmem:[#allocation2 + $0xb00] sm:$0xff] }
 0x352   :  { %v1557_v10 = vsel %vm1556_vm11, %v7811_v63, %v1553_v59  ;;  %5835 = vmatmul.msk.f32.vlgmr.msrb.gmra.mxu2 %vm1559_vm12, %v8014_v3  ;;  %v8068_v59 = vld [vmem:[#allocation2 + $0x750] sm:$0xff] }
 0x353   :  { %5838 = vmatpush.msk.msrb.mxu2 %vm1563_vm9, %v1542_v58  ;;  %1592 = vmatmul.f32.vlgmr.msrb.gmra.mxu0 %v1557_v10  ;;  %v1864_v58 = vunpack.c.h.bf16 %v8000_v56  ;;  %v1875_v56 = vpop.permute.xlu1 %1874 }
 0x354   :  { %1632 = vmatmul.f32.vlgmr.msra.gmra.mxu3 %v1557_v10  ;;  %1672 = vmatmul.f32.vlgmr.msra.gmra.mxu1 %v1557_v10 }
 0x355   :  { %5842 = vmatpush.msk.msra.mxu3 %vm1563_vm9, %v1863_v6  ;;  %5848 = vmatpush.msk.msrb.mxu0 %vm1563_vm9, %v1866_v4  ;;  %v1860_v6 = vunpack.c.h.bf16 %v8007_v52  ;;  %v8073_v4 = vld [vmem:[#allocation2 + $0x970] sm:$0xff]  ;;  %v2147_v52 = vunpack.c.l.bf16 %v8068_v59 }
 0x356   :  { %1688 = vmatpush.msrb.mxu2 %v1538_v60  ;;  %2216 = vmatpush.msra.mxu1 %v2163_v11  ;;  %v2151_v60 = vunpack.c.l.bf16 %v8058_v8  ;;  %v1856_v11 = vunpack.c.h.bf16 %v8025_v12  ;;  %v2175_v15 = vunpack.c.l.bf16 %v8073_v4 }
 0x357   :  { %1928 = vmatpush.msra.mxu3 %v1859_v14  ;;  %2048 = vmatpush.msrb.mxu0 %v1862_v46  ;;  %v8080_v14 = vld [vmem:[#allocation2 + $0x3c8] sm:$0xff]  ;;  %v1831_v46 = vunpack.c.l.bf16 %v7936_v41 }
 0x358   :  { %1689 = vmatpush.msrb.mxu2 %v1534_v18  ;;  %2217 = vmatpush.msra.mxu1 %v2159_v24  ;;  %v1852_v18 = vunpack.c.h.bf16 %v8036_v19  ;;  %v8087_v24 = vld [vmem:[#allocation2 + $0xd40] sm:$0xff]  ;;  %v2171_v12 = vunpack.c.l.bf16 %v8080_v14  ;;  %v8093_v41 = vld [vmem:[#allocation2 + $0x408] sm:$0xff]  ;;  %v8098_v19 = vsel %vm1556_vm11, %v1869_v50, %v1875_v56  ;;  %v2164_v50 = vunpack.c.h.bf16 %v8005_v26 }
 0x359   :  { %1929 = vmatpush.msra.mxu3 %v1855_v27  ;;  %2049 = vmatpush.msrb.mxu0 %v1858_v25  ;;  %v1827_v27 = vunpack.c.l.bf16 %v7942_v30  ;;  %v8091_v25 = vld [vmem:[#allocation2 + $0x200] sm:$0xff]  ;;  %v2167_v30 = vunpack.c.l.bf16 %v8087_v24  ;;  %v2160_v26 = vunpack.c.h.bf16 %v8018_v9  ;;  %v1811_v9 = vunpack.c.l.bf16 %v7974_v28 }
 0x35a   :  { %1690 = vmatpush.msrb.mxu2 %v1530_v29  ;;  %2218 = vmatpush.msra.mxu1 %v2155_v2  ;;  %v1848_v29 = vunpack.c.h.bf16 %v8049_v43  ;;  %v8102_v2 = vld [vmem:[#allocation2 + $0x118] sm:$0xff]  ;;  %v8111_v43 = vld [vmem:[#allocation2 + $0x480] sm:$0xff] }
 0x35b   :  { %1930 = vmatpush.msra.mxu3 %v1851_v35  ;;  %2050 = vmatpush.msrb.mxu0 %v1854_v31  ;;  %v1823_v35 = vunpack.c.l.bf16 %v7949_v7  ;;  %v1845_v31 = vunpack.c.l.bf16 %v8091_v25  ;;  %v1841_v7 = vunpack.c.l.bf16 %v8102_v2  ;;  %v8144_v28 = vld [vmem:[#allocation2 + $0xe60] sm:$0xff] }
 0x35c   :  { %5837 = vmatmul.msk.f32.vlgmr.msra.gmra.mxu2 %vm1559_vm12, %v8014_v3  ;;  %1712 = vmatmul.f32.vlgmr.msra.gmra.mxu0 %v1557_v10  ;;  %v2179_v10 = vunpack.c.l.bf16 %v8062_v32 }
 0x35d   :  { %1691 = vmatpush.msrb.mxu2 %v1526_v45  ;;  %5841 = vmatmul.msk.f32.vlgmr.msrb.gmra.mxu3 %vm1559_vm12, %v8014_v3  ;;  %v1873_v45 = vpop.permute.xlu1 %1872 }
 0x35e   :  { %1931 = vmatpush.msra.mxu3 %v1847_v5  ;;  %2051 = vmatpush.msrb.mxu0 %v1850_v55  ;;  %v2143_v5 = vunpack.c.l.bf16 %v8093_v41  ;;  %v1819_v55 = vunpack.c.l.bf16 %v7962_v17  ;;  %v1815_v17 = vunpack.c.l.bf16 %v7969_v22 }
 0x35f   :  { %1896 = vmatpush.msra.mxu2 %v1843_v49  ;;  %2219 = vmatpush.msra.mxu1 %v2151_v60  ;;  %v8108_v49 = vld [vmem:[#allocation2 + $0xe98] sm:$0xff]  ;;  %v2156_v60 = vunpack.c.h.bf16 %v8033_v62  ;;  %v8141_v62 = vpop.permute.xlu2 %2194 }
 0x360   :  { %5844 = vmatpush.msk.msrb.mxu3 %vm1563_vm9, %v1864_v58  ;;  %5850 = vmatpush.msk.msra.mxu0 %vm1563_vm9, %v2183_v36  ;;  %v1876_v58 = vsel %vm1552_vm10, %v1873_v45, %v1875_v56  ;;  %v1837_v36 = vunpack.c.l.bf16 %v8111_v43  ;;  %v8132_v56 = vld [vmem:[#allocation2 + $0xbe0] sm:$0xff] }
 0x361   :  { %1897 = vmatpush.msra.mxu2 %v1839_v57  ;;  %2220 = vmatpush.msra.mxu1 %v2147_v52  ;;  %v2139_v57 = vunpack.c.l.bf16 %v8108_v49  ;;  %v8139_v52 = vld [vmem:[#allocation2 + $0x6e0] sm:$0xff] }
 0x362   :  { %1968 = vmatpush.msrb.mxu3 %v1860_v6  ;;  %2248 = vmatpush.msra.mxu0 %v2179_v10  ;;  %v8126_v6 = vld [vmem:[#allocation2 + $0x350] sm:$0xff] }
 0x363   :  { %1898 = vmatpush.msra.mxu2 %v1835_v42  ;;  %2221 = vmatpush.msra.mxu1 %v2143_v5  ;;  %v8129_v42 = vld [vmem:[#allocation2 + $0xa48] sm:$0xff]  ;;  %v1833_v10 = vunpack.c.l.bf16 %v8126_v6  ;;  %v2140_v5 = vunpack.c.h.bf16 %v8108_v49  ;;  %v1791_v49 = vunpack.c.l.bf16 %v7990_v1 }
 0x364   :  { %1969 = vmatpush.msrb.mxu3 %v1856_v11  ;;  %2249 = vmatpush.msra.mxu0 %v2175_v15  ;;  %v2152_v11 = vunpack.c.h.bf16 %v8058_v8  ;;  %v2135_v15 = vunpack.c.l.bf16 %v8129_v42  ;;  %v8150_v8 = vld [vmem:[#allocation2 + $0xe38] sm:$0xff]  ;;  %v8189_v1 = vld [vmem:[#allocation2 + $0x628] sm:$0xff] }
 0x365   :  { %1899 = vmatpush.msra.mxu2 %v1831_v46  ;;  %5843 = vmatmul.msk.f32.vlgmr.msra.gmra.mxu3 %vm1559_vm12, %v8098_v19  ;;  %v1807_v46 = vunpack.c.l.bf16 %v7977_v34  ;;  %v8155_v34 = vld [vmem:[#allocation2 + $0x100] sm:$0xff]  ;;  %v2127_v45 = vunpack.c.l.bf16 %v8150_v8 }
 0x366   :  { %5839 = vmatmul.msk.f32.vlgmr.msrb.gmra.mxu2 %vm1559_vm12, %v8014_v3  ;;  %1970 = vmatpush.msrb.mxu3 %v1852_v18  ;;  %v1868_v3 = vrot.slane %v7811_v63, 1  ;;  %v1829_v18 = vunpack.c.l.bf16 %v8132_v56 }
 0x367   :  { %2250 = vmatpush.msra.mxu0 %v2171_v12  ;;  %1900 = vmatpush.msra.mxu2 %v1827_v27  ;;  %v2148_v27 = vunpack.c.h.bf16 %v8068_v59  ;;  %v1803_v12 = vunpack.c.l.bf16 %v7980_v37  ;;  %v2144_v59 = vunpack.c.h.bf16 %v8093_v41  ;;  %v8163_v37 = vld [vmem:[#allocation2 + $0x20] sm:$0xff]  ;;  %v1795_v41 = vunpack.c.l.bf16 %v7986_v0 }
 0x368   :  { %5849 = vmatmul.msk.f32.vlgmr.msrb.gmra.mxu0 %vm1559_vm12, %v8098_v19  ;;  %1971 = vmatpush.msrb.mxu3 %v1848_v29  ;;  %v8135_v22 = vsel %vm1556_vm11, %v1868_v3, %v1876_v58  ;;  %v2131_v29 = vunpack.c.l.bf16 %v8139_v52  ;;  %v1817_v3 = vunpack.c.l.bf16 %v8163_v37  ;;  %v8176_v58 = vld [vmem:[#allocation2 + $0x1e0] sm:$0xff] }
 0x369   :  { %2251 = vmatpush.msra.mxu0 %v2167_v30  ;;  %1901 = vmatpush.msra.mxu2 %v1823_v35  ;;  %v1825_v30 = vunpack.c.l.bf16 %v8144_v28  ;;  %v8160_v35 = vld [vmem:[#allocation2 + $0x190] sm:$0xff] }
 0x36a   :  { %1976 = vmatpush.msra.mxu3 %v1845_v31  ;;  %2222 = vmatpush.msra.mxu1 %v2139_v57  ;;  %v1799_v31 = vunpack.c.l.bf16 %v7983_v40  ;;  %v2123_v40 = vunpack.c.l.bf16 %v8160_v35  ;;  %v8179_v57 = vld [vmem:[#allocation2 + $0xd50] sm:$0xff] }
 0x36b   :  { %2256 = vmatpush.msrb.mxu0 %v2164_v50  ;;  %1902 = vmatpush.msra.mxu2 %v1819_v55  ;;  %v1821_v50 = vunpack.c.l.bf16 %v8155_v34  ;;  %v8168_v55 = vld [vmem:[#allocation2 + $0x478] sm:$0xff] }
 0x36c   :  { %1977 = vmatpush.msra.mxu3 %v1841_v7  ;;  %1952 = vmatmul.f32.vlgmr.msrb.gmra.mxu1 %v8135_v22  ;;  %v8171_v7 = vld [vmem:[#allocation2 + $0xa80] sm:$0xff]  ;;  %v2119_v0 = vunpack.c.l.bf16 %v8168_v55 }
 0x36d   :  { %2257 = vmatpush.msrb.mxu0 %v2160_v26  ;;  %1903 = vmatpush.msra.mxu2 %v1815_v17  ;;  %v2136_v26 = vunpack.c.h.bf16 %v8129_v42  ;;  %v1813_v17 = vunpack.c.l.bf16 %v8171_v7  ;;  %v1787_v42 = vunpack.c.l.bf16 %v7994_v53 }
 0x36e   :  { %1978 = vmatpush.msra.mxu3 %v1837_v36  ;;  %2223 = vmatpush.msra.mxu1 %v2135_v15  ;;  %v2132_v36 = vunpack.c.h.bf16 %v8139_v52  ;;  %v8194_v15 = vld [vmem:[#allocation2 + $0xde0] sm:$0xff]  ;;  %v1783_v52 = vunpack.c.l.bf16 %v7997_v54 }
 0x36f   :  { %2258 = vmatpush.msrb.mxu0 %v2156_v60  ;;  %1904 = vmatpush.msra.mxu2 %v1811_v9  ;;  %v8184_v60 = vpop.permute.xlu2 %5965  ;;  %v8186_v9 = vld [vmem:[#allocation2 + $0x8d8] sm:$0xff]  ;;  %v2107_v54 = vunpack.c.l.bf16 %v8194_v15 }
 0x370   :  { %5845 = vmatmul.msk.f32.vlgmr.msrb.gmra.mxu3 %vm1559_vm12, %v8098_v19  ;;  %2224 = vmatpush.msra.mxu1 %v2131_v29  ;;  %v5967_v53 = vunpack.i.l.bf16 %v8184_v60  ;;  %v2124_v29 = vunpack.c.h.bf16 %v8160_v35  ;;  %v8212_v35 = vld [vmem:[#allocation2 + $0x8e0] sm:$0xff] }
 0x371   :  { %1979 = vmatpush.msra.mxu3 %v1833_v10  ;;  %2259 = vmatpush.msrb.mxu0 %v2152_v11  ;;  %v2115_v10 = vunpack.c.l.bf16 %v8176_v58  ;;  %v1809_v11 = vunpack.c.l.bf16 %v8179_v57 }
 0x372   :  { %1905 = vmatpush.msra.mxu2 %v1807_v46  ;;  %2225 = vmatpush.msra.mxu1 %v2127_v45  ;;  %v2128_v46 = vunpack.c.h.bf16 %v8150_v8  ;;  %v8205_v8 = vld [vmem:[#allocation2 + $0x318] sm:$0xff]  ;;  %v2187_v45 = vrot.slane %v7811_v63, 2 }
 0x373   :  { %1980 = vmatpush.msra.mxu3 %v1829_v18  ;;  %2260 = vmatpush.msrb.mxu0 %v2148_v27  ;;  %v8197_v18 = vld [vmem:[#allocation2 + $0x5f0] sm:$0xff]  ;;  %v2111_v27 = vunpack.c.l.bf16 %v8186_v9 }
 0x374   :  { %1906 = vmatpush.msra.mxu2 %v1803_v12  ;;  %2226 = vmatpush.msra.mxu1 %v2123_v40  ;;  %v1805_v12 = vunpack.c.l.bf16 %v8189_v1  ;;  %v1861_v40 = vunpack.c.l.bf16 %v8009_v61  ;;  %v2112_v61 = vunpack.c.h.bf16 %v8186_v9  ;;  %v1849_v9 = vunpack.c.l.bf16 %v8051_v44 }
 0x375   :  { %1981 = vmatpush.msra.mxu3 %v1825_v30  ;;  %2261 = vmatpush.msrb.mxu0 %v2144_v59  ;;  %v8203_v30 = vld [vmem:[#allocation2 + $0x640] sm:$0xff]  ;;  %v1865_v59 = vunpack.c.l.bf16 %v8002_v20  ;;  %v1797_v20 = vunpack.c.l.bf16 %v8205_v8 }
 0x376   :  { %1907 = vmatpush.msra.mxu2 %v1799_v31  ;;  %2227 = vmatpush.msra.mxu1 %v2119_v0  ;;  %v1801_v31 = vunpack.c.l.bf16 %v8197_v18  ;;  %v2104_v44 = vunpack.c.h.bf16 %v8203_v30 }
 0x377   :  { %1982 = vmatpush.msra.mxu3 %v1821_v50  ;;  %2262 = vmatpush.msrb.mxu0 %v2140_v5  ;;  %v2120_v50 = vunpack.c.h.bf16 %v8168_v55  ;;  %v2103_v5 = vunpack.c.l.bf16 %v8203_v30  ;;  %v8221_v55 = vld [vmem:[#allocation2 + $0xec8] sm:$0xff]  ;;  %v2180_v30 = vunpack.c.h.bf16 %v8062_v32  ;;  %v1834_v32 = vunpack.c.h.bf16 %v8126_v6 }
 0x378   :  { %1908 = vmatpush.msra.mxu2 %v1795_v41  ;;  %2228 = vmatpush.msra.mxu1 %v2115_v10  ;;  %v2196_v41 = vsel %vm1552_vm10, %v5967_v53, %v8141_v62  ;;  %v3151_v10 = vrot.slane %v7823_v38, 4  ;;  %v1842_v53 = vunpack.c.h.bf16 %v8102_v2  ;;  %v8273_v2 = vld [vmem:[#allocation2 + $0xae8] sm:$0xff] }
 0x379   :  { %1983 = vmatpush.msra.mxu3 %v1817_v3  ;;  %2263 = vmatpush.msrb.mxu0 %v2136_v26  ;;  %v2116_v3 = vunpack.c.h.bf16 %v8176_v58  ;;  %v1857_v26 = vunpack.c.l.bf16 %v8027_v39  ;;  %v8227_v0 = vsel %vm1556_vm11, %v2187_v45, %v2196_v41  ;;  %v1853_v58 = vunpack.c.l.bf16 %v8038_v21  ;;  %v8284_v45 = vld [vmem:[#allocation2 + $0x428] sm:$0xff] }
 0x37a   :  { %1909 = vmatpush.msra.mxu2 %v1791_v49  ;;  %2229 = vmatpush.msra.mxu1 %v2111_v27  ;;  %v1793_v49 = vunpack.c.l.bf16 %v8212_v35  ;;  %v2108_v39 = vunpack.c.h.bf16 %v8194_v15  ;;  %v8245_v21 = vsel %vm1556_vm11, %v2188_v51, %v8141_v62  ;;  %v1846_v15 = vunpack.c.h.bf16 %v8091_v25  ;;  %v8261_v27 = vld [vmem:[#allocation2 + $0x328] sm:$0xff]  ;;  %v8263_v25 = vld [vmem:[#allocation2 + $0xa10] sm:$0xff] }
 0x37b   :  { %1984 = vmatpush.msra.mxu3 %v1813_v17  ;;  %2264 = vmatpush.msrb.mxu0 %v2132_v36  ;;  %v2828_v17 = vrot.slane %v7814_v13, 4  ;;  %v1789_v36 = vunpack.c.l.bf16 %v8221_v55  ;;  %v2184_v62 = vunpack.c.h.bf16 %v8054_v16  ;;  %v1838_v16 = vunpack.c.h.bf16 %v8111_v43  ;;  %v8282_v43 = vld [vmem:[#allocation2 + $0x8] sm:$0xff] }
 0x37c   :  { %1910 = vmatpush.msra.mxu2 %v1787_v42  ;;  %2230 = vmatpush.msra.mxu1 %v2107_v54  ;;  %v8233_v42 = vld [vmem:[#allocation2 + $0x418] sm:$0xff]  ;;  %v8271_v54 = vld [vmem:[#allocation2 + $0x4a8] sm:$0xff]  ;;  %v2172_v41 = vunpack.c.h.bf16 %v8080_v14  ;;  %v2487_v6 = vunpack.c.l.bf16 %v8282_v43  ;;  %v8301_v14 = vld [vmem:[#allocation2 + $0x950] sm:$0xff] }
 0x37d   :  { %1985 = vmatpush.msra.mxu3 %v1809_v11  ;;  %2265 = vmatpush.msrb.mxu0 %v2128_v46  ;;  %v8239_v11 = vld [vmem:[#allocation2 + $0xb98] sm:$0x11]  ;;  %v1785_v46 = vunpack.c.l.bf16 %v8233_v42 }
 0x37e   :  { %1911 = vmatpush.msra.mxu2 %v1783_v52  ;;  %2231 = vmatpush.msra.mxu1 %v2103_v5  ;;  %v8253_v52 = vld [vmem:[#allocation2 + $0x7b8] sm:$0xff]  ;;  %v2503_v51 = vunpack.c.l.bf16 %v8239_v11  ;;  %v2162_v5 = vunpack.c.h.bf16 %v8273_v2 }
 0x37f   :  { %1986 = vmatpush.msra.mxu3 %v1805_v12  ;;  %2266 = vmatpush.msrb.mxu0 %v2124_v29  ;;  %v2499_v12 = vunpack.c.l.bf16 %v8253_v52  ;;  %v2508_v29 = vrot.slane %v7814_v13, 3 }
 0x380   :  { %1912 = vmatmul.f32.vlgmr.msra.gmra.mxu2 %v8135_v22  ;;  %2232 = vmatmul.f32.vlgmr.msra.gmra.mxu1 %v8227_v0 }
 0x381   :  { %5846 = vmatpush.msk.msrb.mxu2 %vm1563_vm9, %v1865_v59  ;;  %1987 = vmatpush.msra.mxu3 %v1801_v31  ;;  %v2166_v59 = vunpack.c.h.bf16 %v8263_v25  ;;  %v2176_v31 = vunpack.c.h.bf16 %v8073_v4  ;;  %v1830_v4 = vunpack.c.h.bf16 %v8132_v56 }
 0x382   :  { %2267 = vmatpush.msrb.mxu0 %v2120_v50  ;;  %3152 = vrot.lane.b32.xlu1 %v2828_v17, %s5997_s0  ;;  %v2491_v50 = vunpack.c.l.bf16 %v8271_v54 }
 0x383   :  { %2008 = vmatpush.msrb.mxu2 %v1861_v40  ;;  %1988 = vmatpush.msra.mxu3 %v1797_v20  ;;  %v8294_v40 = vld [vmem:[#allocation2 + $0xef8] sm:$0x11]  ;;  %v2158_v20 = vunpack.c.h.bf16 %v8284_v45 }
 0x384   :  { %2268 = vmatpush.msrb.mxu0 %v2116_v3  ;;  %3154 = vrot.lane.b32.xlu0 %v3151_v10, %s5997_s0  ;;  %v2168_v3 = vunpack.c.h.bf16 %v8087_v24  ;;  %v2185_v56 = vunpack.c.l.bf16 %v8294_v40  ;;  %v8308_v24 = vld [vmem:[#allocation2 + $0x980] sm:$0xff]  ;;  %v2500_v10 = vunpack.c.h.bf16 %v8253_v52  ;;  %v1814_v52 = vunpack.c.h.bf16 %v8171_v7 }
 0x385   :  { %2009 = vmatpush.msrb.mxu2 %v1857_v26  ;;  %1989 = vmatpush.msra.mxu3 %v1793_v49  ;;  %v1826_v26 = vunpack.c.h.bf16 %v8144_v28  ;;  %v8299_v49 = vld [vmem:[#allocation2 + $0x500] sm:$0xff] }
 0x386   :  { %2269 = vmatpush.msrb.mxu0 %v2112_v61  ;;  %2832 = vrot.lane.b32.xlu2 %v2508_v29, %s5997_s0  ;;  %v2504_v61 = vunpack.c.h.bf16 %v8239_v11  ;;  %v2154_v28 = vunpack.c.h.bf16 %v8299_v49  ;;  %v8319_v11 = vld [vmem:[#allocation2 + $0x5d0] sm:$0xff] }
 0x387   :  { %2010 = vmatpush.msrb.mxu2 %v1853_v58  ;;  %1990 = vmatpush.msra.mxu3 %v1789_v36  ;;  %v8305_v58 = vld [vmem:[#allocation2 + $0x1e8] sm:$0xff]  ;;  %v1822_v36 = vunpack.c.h.bf16 %v8155_v34  ;;  %v1818_v34 = vunpack.c.h.bf16 %v8163_v37 }
 0x388   :  { %2270 = vmatpush.msrb.mxu0 %v2108_v39  ;;  %2336 = vmatpush.msrb.mxu1 %v2166_v59  ;;  %v2181_v39 = vunpack.c.l.bf16 %v8301_v14  ;;  %v8347_v59 = vld [vmem:[#allocation2 + $0xd80] sm:$0xff] }
 0x389   :  { %2011 = vmatpush.msrb.mxu2 %v1849_v9  ;;  %5851 = vmatmul.msk.f32.vlgmr.msra.gmra.mxu0 %vm1559_vm12, %v8245_v21  ;;  %v8313_v9 = vld [vmem:[#allocation2 + $0x400] sm:$0xff] }
 0x38a   :  { %1991 = vmatpush.msra.mxu3 %v1785_v46  ;;  %5847 = vmatmul.msk.f32.vlgmr.msrb.gmra.mxu2 %vm1559_vm12, %v8098_v19  ;;  %v2495_v19 = vunpack.c.l.bf16 %v8261_v27  ;;  %v2150_v46 = vunpack.c.h.bf16 %v8305_v58  ;;  %v2146_v37 = vunpack.c.h.bf16 %v8313_v9 }
 0x38b   :  { %2016 = vmatpush.msra.mxu2 %v1846_v15  ;;  %2271 = vmatpush.msrb.mxu0 %v2104_v44  ;;  %v2177_v15 = vunpack.c.l.bf16 %v8308_v24  ;;  %v2496_v44 = vunpack.c.h.bf16 %v8261_v27  ;;  %v1810_v27 = vunpack.c.h.bf16 %v8179_v57  ;;  %v2186_v57 = vunpack.c.h.bf16 %v8294_v40  ;;  %v8365_v40 = vld [vmem:[#allocation2 + $0x4b8] sm:$0xff] }
 0x38c   :  { %1992 = vmatmul.f32.vlgmr.msra.gmra.mxu3 %v8135_v22  ;;  %2337 = vmatpush.msrb.mxu1 %v2162_v5  ;;  %v8355_v5 = vld [vmem:[#allocation2 + $0x3a0] sm:$0xff] }
 0x38d   :  { %5858 = vmatpush.msk.msra.mxu0 %vm1563_vm9, %v2503_v51  ;;  %5852 = vmatpush.msk.msrb.mxu3 %vm1563_vm9, %v2184_v62  ;;  %v8327_v51 = vpop.permute.xlu0 %2514  ;;  %v8329_v62 = vld [vmem:[#allocation2 + $0xba8] sm:$0xff] }
 0x38e   :  { %2017 = vmatpush.msra.mxu2 %v1842_v53  ;;  %2338 = vmatpush.msrb.mxu1 %v2158_v20  ;;  %v2173_v53 = vunpack.c.l.bf16 %v8319_v11  ;;  %v8343_v7 = vsel %vm1556_vm11, %v2508_v29, %v8327_v51  ;;  %v2178_v20 = vunpack.c.h.bf16 %v8308_v24  ;;  %v1794_v24 = vunpack.c.h.bf16 %v8212_v35 }
 0x38f   :  { %2568 = vmatpush.msra.mxu0 %v2499_v12  ;;  %2288 = vmatpush.msrb.mxu3 %v2180_v30  ;;  %v2492_v12 = vunpack.c.h.bf16 %v8271_v54  ;;  %v8334_v30 = vld [vmem:[#allocation2 + $0x9b8] sm:$0x11]  ;;  %v2488_v54 = vunpack.c.h.bf16 %v8282_v43  ;;  %v2182_v43 = vunpack.c.h.bf16 %v8301_v14 }
 0x390   :  { %2018 = vmatpush.msra.mxu2 %v1838_v16  ;;  %2339 = vmatpush.msrb.mxu1 %v2154_v28  ;;  %v8337_v16 = vld [vmem:[#allocation2 + $0x9b0] sm:$0xff] }
 0x391   :  { %2569 = vmatpush.msra.mxu0 %v2495_v19  ;;  %2289 = vmatpush.msrb.mxu3 %v2176_v31  ;;  %v2169_v19 = vunpack.c.l.bf16 %v8329_v62  ;;  %v2505_v31 = vunpack.c.l.bf16 %v8334_v30  ;;  %v2142_v29 = vunpack.c.h.bf16 %v8337_v16  ;;  %v8380_v28 = vld [vmem:[#allocation2 + $0x170] sm:$0xff] }
 0x392   :  { %2019 = vmatpush.msra.mxu2 %v1834_v32  ;;  %2272 = vmatmul.f32.vlgmr.msrb.gmra.mxu0 %v8227_v0  ;;  %v8351_v32 = vld [vmem:[#allocation2 + $0xad0] sm:$0xff]  ;;  %v2126_v35 = vunpack.c.h.bf16 %v8380_v28 }
 0x393   :  { %2570 = vmatpush.msra.mxu0 %v2491_v50  ;;  %2290 = vmatpush.msrb.mxu3 %v2172_v41  ;;  %v1806_v50 = vunpack.c.h.bf16 %v8189_v1  ;;  %v2501_v41 = vunpack.c.l.bf16 %v8347_v59  ;;  %v2138_v1 = vunpack.c.h.bf16 %v8351_v32 }
 0x394   :  { %2020 = vmatpush.msra.mxu2 %v1830_v4  ;;  %2340 = vmatpush.msrb.mxu1 %v2150_v46  ;;  %v8361_v4 = vld [vmem:[#allocation2 + $0x370] sm:$0xff]  ;;  %v1790_v46 = vunpack.c.h.bf16 %v8221_v55 }
 0x395   :  { %2571 = vmatpush.msra.mxu0 %v2487_v6  ;;  %2291 = vmatpush.msrb.mxu3 %v2168_v3  ;;  %v1802_v6 = vunpack.c.h.bf16 %v8197_v18  ;;  %v2497_v3 = vunpack.c.l.bf16 %v8355_v5  ;;  %v2134_v14 = vunpack.c.h.bf16 %v8361_v4  ;;  %v8375_v18 = vld [vmem:[#allocation2 + $0x778] sm:$0xff] }
 0x396   :  { %2021 = vmatpush.msra.mxu2 %v1826_v26  ;;  %5853 = vmatmul.msk.f32.vlgmr.msrb.gmra.mxu3 %vm1559_vm12, %v8245_v21  ;;  %v1798_v26 = vunpack.c.h.bf16 %v8205_v8 }
 0x397   :  { %5854 = vmatpush.msk.msra.mxu3 %vm1563_vm9, %v2185_v56  ;;  %5860 = vmatpush.msk.msrb.mxu0 %vm1563_vm9, %v2504_v61  ;;  %v8373_v56 = vld [vmem:[#allocation2 + $0xe70] sm:$0xff]  ;;  %v2493_v61 = vunpack.c.l.bf16 %v8365_v40 }
 0x398   :  { %2022 = vmatpush.msra.mxu2 %v1822_v36  ;;  %2341 = vmatpush.msrb.mxu1 %v2146_v37  ;;  %v2174_v36 = vunpack.c.h.bf16 %v8319_v11  ;;  %v2130_v8 = vunpack.c.h.bf16 %v8373_v56  ;;  %v8390_v11 = vld [vmem:[#allocation2 + $0x2d0] sm:$0xff]  ;;  %v8399_v37 = vld [vmem:[#allocation2 + $0xc60] sm:$0xff] }
 0x399   :  { %2328 = vmatpush.msra.mxu3 %v2181_v39  ;;  %2608 = vmatpush.msrb.mxu0 %v2500_v10  ;;  %v8382_v39 = vld [vmem:[#allocation2 + $0x30] sm:$0xff]  ;;  %v2489_v10 = vunpack.c.l.bf16 %v8375_v18 }
 0x39a   :  { %2023 = vmatpush.msra.mxu2 %v1818_v34  ;;  %5859 = vmatmul.msk.f32.vlgmr.msra.gmra.mxu0 %vm1559_vm12, %v8343_v7  ;;  %v2170_v34 = vunpack.c.h.bf16 %v8329_v62  ;;  %v1786_v62 = vunpack.c.h.bf16 %v8233_v42  ;;  %v2482_v42 = vunpack.c.h.bf16 %v8399_v37 }
 0x39b   :  { %2329 = vmatpush.msra.mxu3 %v2177_v15  ;;  %2609 = vmatpush.msrb.mxu0 %v2496_v44  ;;  %v8388_v15 = vld [vmem:[#allocation2 + $0x7f0] sm:$0xff]  ;;  %v2483_v44 = vunpack.c.l.bf16 %v8382_v39 }
 0x39c   :  { %2024 = vmatpush.msra.mxu2 %v1814_v52  ;;  %2342 = vmatpush.msrb.mxu1 %v2142_v29  ;;  %v8396_v52 = vld [vmem:[#allocation2 + $0x248] sm:$0xff]  ;;  %v2486_v55 = vunpack.c.h.bf16 %v8388_v15 }
 0x39d   :  { %2330 = vmatpush.msra.mxu3 %v2173_v53  ;;  %2610 = vmatpush.msrb.mxu0 %v2492_v12  ;;  %v2122_v53 = vunpack.c.h.bf16 %v8390_v11  ;;  %v8403_v12 = vld [vmem:[#allocation2 + $0x128] sm:$0xff] }
 0x39e   :  { %2025 = vmatpush.msra.mxu2 %v1810_v27  ;;  %2343 = vmatpush.msrb.mxu1 %v2138_v1  ;;  %v8405_v27 = vld [vmem:[#allocation2 + $0x848] sm:$0xff]  ;;  %v8424_v1 = vld [vmem:[#allocation2 + $0x9a0] sm:$0xff] }
 0x39f   :  { %2331 = vmatpush.msra.mxu3 %v2169_v19  ;;  %2611 = vmatpush.msrb.mxu0 %v2488_v54  ;;  %v2479_v19 = vunpack.c.l.bf16 %v8396_v52  ;;  %v8408_v54 = vld [vmem:[#allocation2 + $0x468] sm:$0xff]  ;;  %v2475_v29 = vunpack.c.l.bf16 %v8405_v27 }
 0x3a0   :  { %2026 = vmatpush.msra.mxu2 %v1806_v50  ;;  %2344 = vmatpush.msrb.mxu1 %v2134_v14  ;;  %v2118_v50 = vunpack.c.h.bf16 %v8403_v12 }
 0x3a1   :  { %5856 = vmatpush.msk.msrb.mxu3 %vm1563_vm9, %v2186_v57  ;;  %5862 = vmatpush.msk.msra.mxu0 %vm1563_vm9, %v2505_v31  ;;  %v2165_v57 = vunpack.c.l.bf16 %v8263_v25  ;;  %v8412_v31 = vld [vmem:[#allocation2 + $0x278] sm:$0xff]  ;;  %v2161_v25 = vunpack.c.l.bf16 %v8273_v2  ;;  %v2157_v2 = vunpack.c.l.bf16 %v8284_v45 }
 0x3a2   :  { %2027 = vmatpush.msra.mxu2 %v1802_v6  ;;  %5855 = vmatmul.msk.f32.vlgmr.msra.gmra.mxu3 %vm1559_vm12, %v8245_v21  ;;  %v2478_v6 = vunpack.c.h.bf16 %v8408_v54 }
 0x3a3   :  { %2368 = vmatpush.msrb.mxu3 %v2182_v43  ;;  %2648 = vmatpush.msra.mxu0 %v2501_v41  ;;  %v8418_v43 = vld [vmem:[#allocation2 + $0x678] sm:$0xff]  ;;  %v8420_v41 = vld [vmem:[#allocation2 + $0x5b0] sm:$0xff] }
 0x3a4   :  { %2028 = vmatpush.msra.mxu2 %v1798_v26  ;;  %2345 = vmatpush.msrb.mxu1 %v2130_v8  ;;  %v8430_v26 = vld [vmem:[#allocation2 + $0x220] sm:$0xff]  ;;  %v2471_v14 = vunpack.c.l.bf16 %v8418_v43  ;;  %v8440_v8 = vld [vmem:[#allocation2 + $0x228] sm:$0xff] }
 0x3a5   :  { %2369 = vmatpush.msrb.mxu3 %v2178_v20  ;;  %2649 = vmatpush.msra.mxu0 %v2497_v3  ;;  %v2114_v20 = vunpack.c.h.bf16 %v8412_v31  ;;  %v8428_v3 = vld [vmem:[#allocation2 + $0xcf0] sm:$0xff] }
 0x3a6   :  { %2029 = vmatpush.msra.mxu2 %v1794_v24  ;;  %2346 = vmatpush.msrb.mxu1 %v2126_v35  ;;  %v8438_v24 = vld [vmem:[#allocation2 + $0x3c0] sm:$0xff] }
 0x3a7   :  { %2650 = vmatpush.msra.mxu0 %v2493_v61  ;;  %2370 = vmatpush.msrb.mxu3 %v2174_v36  ;;  %v2474_v61 = vunpack.c.h.bf16 %v8420_v41  ;;  %v8434_v36 = vld [vmem:[#allocation2 + $0x780] sm:$0xff]  ;;  %v2463_v35 = vunpack.c.l.bf16 %v8438_v24 }
 0x3a8   :  { %2030 = vmatpush.msra.mxu2 %v1790_v46  ;;  %5861 = vmatmul.msk.f32.vlgmr.msrb.gmra.mxu0 %vm1559_vm12, %v8343_v7  ;;  %v2153_v46 = vunpack.c.l.bf16 %v8299_v49  ;;  %v2106_v45 = vunpack.c.h.bf16 %v8434_v36  ;;  %v10926_v49 = vrot.slane %v7814_v13, 5 }
 0x3a9   :  { %2651 = vmatpush.msra.mxu0 %v2489_v10  ;;  %2371 = vmatpush.msrb.mxu3 %v2170_v34  ;;  %v2467_v10 = vunpack.c.l.bf16 %v8428_v3  ;;  %v2470_v34 = vunpack.c.h.bf16 %v8430_v26 }
 0x3aa   :  { %2031 = vmatpush.msra.mxu2 %v1786_v62  ;;  %2347 = vmatpush.msrb.mxu1 %v2122_v53  ;;  %v8450_v62 = vld [vmem:[#allocation2 + $0x7a8] sm:$0xff]  ;;  %v2149_v53 = vunpack.c.l.bf16 %v8305_v58  ;;  %v2145_v58 = vunpack.c.l.bf16 %v8313_v9  ;;  %v2141_v9 = vunpack.c.l.bf16 %v8337_v16  ;;  %v8487_v16 = vld [vmem:[#allocation2 + $0xd8] sm:$0xff] }
 0x3ab   :  { %2536 = vmatpush.msra.mxu3 %v2483_v44  ;;  %2656 = vmatpush.msrb.mxu0 %v2486_v55  ;;  %v2466_v44 = vunpack.c.h.bf16 %v8440_v8  ;;  %v8452_v55 = vld [vmem:[#allocation2 + $0x6a0] sm:$0xff] }
 0x3ac   :  { %2032 = vmatmul.f32.vlgmr.msra.gmra.mxu2 %v8135_v22  ;;  %2348 = vmatpush.msrb.mxu1 %v2118_v50  ;;  %v2110_v22 = vunpack.c.h.bf16 %v8424_v1  ;;  %v2462_v50 = vunpack.c.h.bf16 %v8452_v55 }
 0x3ad   :  { %2537 = vmatpush.msra.mxu3 %v2479_v19  ;;  %2657 = vmatpush.msrb.mxu0 %v2482_v42  ;;  %v8457_v19 = vld [vmem:[#allocation2 + $0xc30] sm:$0xff]  ;;  %v8459_v42 = vld [vmem:[#allocation2 + $0xd38] sm:$0xff] }
 0x3ae   :  { %2296 = vmatpush.msrb.mxu2 %v2165_v57  ;;  %5857 = vmatmul.msk.f32.vlgmr.msrb.gmra.mxu3 %vm1559_vm12, %v8245_v21  ;;  %v2485_v21 = vunpack.c.l.bf16 %v8388_v15  ;;  %v2459_v57 = vunpack.c.l.bf16 %v8450_v62  ;;  %v8467_v15 = vld [vmem:[#allocation2 + $0xba0] sm:$0xff] }
 0x3af   :  { %2538 = vmatpush.msra.mxu3 %v2475_v29  ;;  %2658 = vmatpush.msrb.mxu0 %v2478_v6  ;;  %v2481_v29 = vunpack.c.l.bf16 %v8399_v37  ;;  %v8465_v6 = vld [vmem:[#allocation2 + $0xf10] sm:$0xff]  ;;  %v2477_v37 = vunpack.c.l.bf16 %v8408_v54 }
 0x3b0   :  { %2297 = vmatpush.msrb.mxu2 %v2161_v25  ;;  %2349 = vmatpush.msrb.mxu1 %v2114_v20  ;;  %v2455_v25 = vunpack.c.l.bf16 %v8457_v19  ;;  %v2458_v20 = vunpack.c.h.bf16 %v8459_v42 }
 0x3b1   :  { %2539 = vmatpush.msra.mxu3 %v2471_v14  ;;  %2659 = vmatpush.msrb.mxu0 %v2474_v61  ;;  %v8477_v14 = vld [vmem:[#allocation2 + $0xb80] sm:$0xff]  ;;  %v8479_v61 = vld [vmem:[#allocation2 + $0x448] sm:$0xff] }
 0x3b2   :  { %2298 = vmatpush.msrb.mxu2 %v2157_v2  ;;  %2350 = vmatpush.msrb.mxu1 %v2110_v22  ;;  %v2451_v2 = vunpack.c.l.bf16 %v8465_v6  ;;  %v2454_v22 = vunpack.c.h.bf16 %v8467_v15  ;;  %v2447_v54 = vunpack.c.l.bf16 %v8477_v14 }
 0x3b3   :  { %2540 = vmatpush.msra.mxu3 %v2467_v10  ;;  %2660 = vmatpush.msrb.mxu0 %v2470_v34  ;;  %v2137_v10 = vunpack.c.l.bf16 %v8351_v32  ;;  %v2473_v34 = vunpack.c.l.bf16 %v8420_v41  ;;  %v8495_v32 = vld [vmem:[#allocation2 + $0x688] sm:$0xff] }
 0x3b4   :  { %2299 = vmatpush.msrb.mxu2 %v2153_v46  ;;  %2351 = vmatpush.msrb.mxu1 %v2106_v45  ;;  %v8485_v46 = vld [vmem:[#allocation2 + $0x2c0] sm:$0xff]  ;;  %v2450_v45 = vunpack.c.h.bf16 %v8479_v61 }
 0x3b5   :  { %2541 = vmatpush.msra.mxu3 %v2463_v35  ;;  %2661 = vmatpush.msrb.mxu0 %v2466_v44  ;;  %v2133_v35 = vunpack.c.l.bf16 %v8361_v4  ;;  %v2469_v44 = vunpack.c.l.bf16 %v8430_v26  ;;  %v2443_v41 = vunpack.c.l.bf16 %v8485_v46  ;;  %v8503_v4 = vld [vmem:[#allocation2 + $0xc70] sm:$0xff] }
 0x3b6   :  { %2300 = vmatpush.msrb.mxu2 %v2149_v53  ;;  %2352 = vmatmul.f32.vlgmr.msrb.gmra.mxu1 %v8227_v0  ;;  %v8493_v53 = vld [vmem:[#allocation2 + $0x940] sm:$0xff] }
 0x3b7   :  { %2616 = vmatpush.msra.mxu1 %v2485_v21  ;;  %3472 = vrot.lane.b32.xlu0 %v10926_v49, %s5997_s0  ;;  %v2446_v21 = vunpack.c.h.bf16 %v8487_v16  ;;  %v2439_v26 = vunpack.c.l.bf16 %v8493_v53  ;;  %v8791_v49 = vld [vmem:[#allocation2 + $0x610] sm:$0xff] }
 0x3b8   :  { %2542 = vmatpush.msra.mxu3 %v2459_v57  ;;  %2662 = vmatpush.msrb.mxu0 %v2462_v50  ;;  %v2129_v57 = vunpack.c.l.bf16 %v8373_v56  ;;  %v2465_v50 = vunpack.c.l.bf16 %v8440_v8  ;;  %v8511_v56 = vld [vmem:[#allocation2 + $0xb50] sm:$0xff] }
 0x3b9   :  { %2301 = vmatpush.msrb.mxu2 %v2145_v58  ;;  %2617 = vmatpush.msra.mxu1 %v2481_v29  ;;  %v8501_v58 = vld [vmem:[#allocation2 + $0x168] sm:$0xff]  ;;  %v2442_v29 = vunpack.c.h.bf16 %v8495_v32 }
 0x3ba   :  { %2543 = vmatpush.msra.mxu3 %v2455_v25  ;;  %2663 = vmatpush.msrb.mxu0 %v2458_v20  ;;  %v2125_v25 = vunpack.c.l.bf16 %v8380_v28  ;;  %v2461_v20 = vunpack.c.l.bf16 %v8452_v55  ;;  %v2435_v8 = vunpack.c.l.bf16 %v8501_v58  ;;  %v2457_v28 = vunpack.c.l.bf16 %v8459_v42  ;;  %v8520_v55 = vld [vmem:[#allocation2 + $0x8b8] sm:$0xff] }
 0x3bb   :  { %2302 = vmatpush.msrb.mxu2 %v2141_v9  ;;  %2618 = vmatpush.msra.mxu1 %v2477_v37  ;;  %v8509_v9 = vld [vmem:[#allocation2 + $0xe10] sm:$0xff]  ;;  %v2438_v37 = vunpack.c.h.bf16 %v8503_v4 }
 0x3bc   :  { %2544 = vmatpush.msra.mxu3 %v2451_v2  ;;  %2664 = vmatpush.msrb.mxu0 %v2454_v22  ;;  %v5968_v2 = vunpack.i.h.bf16 %v8184_v60  ;;  %v2121_v22 = vunpack.c.l.bf16 %v8390_v11  ;;  %v2117_v60 = vunpack.c.l.bf16 %v8403_v12  ;;  %v8528_v11 = vld [vmem:[#allocation2 + $0xab8] sm:$0xff]  ;;  %v2113_v12 = vunpack.c.l.bf16 %v8412_v31 }
 0x3bd   :  { %2303 = vmatpush.msrb.mxu2 %v2137_v10  ;;  %2619 = vmatpush.msra.mxu1 %v2473_v34  ;;  %v8518_v10 = vld [vmem:[#allocation2 + $0x28] sm:$0xff]  ;;  %v2431_v34 = vunpack.c.l.bf16 %v8509_v9  ;;  %v2445_v31 = vunpack.c.l.bf16 %v8487_v16 }
 0x3be   :  { %2545 = vmatpush.msra.mxu3 %v2447_v54  ;;  %2665 = vmatpush.msrb.mxu0 %v2450_v45  ;;  %v2434_v54 = vunpack.c.h.bf16 %v8511_v56  ;;  %v2453_v45 = vunpack.c.l.bf16 %v8467_v15  ;;  %v2427_v42 = vunpack.c.l.bf16 %v8518_v10  ;;  %v2449_v15 = vunpack.c.l.bf16 %v8479_v61  ;;  %v8546_v61 = vld [vmem:[#allocation2 + $0x458] sm:$0xff] }
 0x3bf   :  { %2304 = vmatpush.msrb.mxu2 %v2133_v35  ;;  %2620 = vmatpush.msra.mxu1 %v2469_v44  ;;  %v8526_v35 = vld [vmem:[#allocation2 + $0xd48] sm:$0xff]  ;;  %v2430_v44 = vunpack.c.h.bf16 %v8520_v55  ;;  %v2821_v16 = vunpack.c.l.bf16 %v8546_v61 }
 0x3c0   :  { %2546 = vmatpush.msra.mxu3 %v2443_v41  ;;  %2666 = vmatpush.msrb.mxu0 %v2446_v21  ;;  %v2507_v41 = vrot.slane %v7811_v63, 3  ;;  %v2516_v21 = vsel %vm1552_vm10, %v5968_v2, %v8327_v51  ;;  %v8555_v2 = vld [vmem:[#allocation2 + $0x6b8] sm:$0xff] }
 0x3c1   :  { %2305 = vmatpush.msrb.mxu2 %v2129_v57  ;;  %2621 = vmatpush.msra.mxu1 %v2465_v50  ;;  %v2423_v57 = vunpack.c.l.bf16 %v8526_v35  ;;  %v2426_v50 = vunpack.c.h.bf16 %v8528_v11 }
 0x3c2   :  { %2547 = vmatpush.msra.mxu3 %v2439_v26  ;;  %2667 = vmatpush.msrb.mxu0 %v2442_v29  ;;  %v8539_v26 = vld [vmem:[#allocation2 + $0x888] sm:$0x11]  ;;  %v2109_v29 = vunpack.c.l.bf16 %v8424_v1  ;;  %v8543_v51 = vsel %vm1556_vm11, %v2507_v41, %v2516_v21  ;;  %v2441_v1 = vunpack.c.l.bf16 %v8495_v32  ;;  %v2498_v32 = vunpack.c.h.bf16 %v8355_v5  ;;  %v8593_v21 = vld [vmem:[#allocation2 + $0x900] sm:$0xff] }
 0x3c3   :  { %2306 = vmatpush.msrb.mxu2 %v2125_v25  ;;  %2622 = vmatpush.msra.mxu1 %v2461_v20  ;;  %v2506_v25 = vunpack.c.h.bf16 %v8334_v30  ;;  %v2825_v20 = vunpack.c.l.bf16 %v8539_v26  ;;  %v2437_v30 = vunpack.c.l.bf16 %v8503_v4  ;;  %v2480_v4 = vunpack.c.h.bf16 %v8396_v52 }
 0x3c4   :  { %2548 = vmatpush.msra.mxu3 %v2435_v8  ;;  %2668 = vmatpush.msrb.mxu0 %v2438_v37  ;;  %v2105_v8 = vunpack.c.l.bf16 %v8434_v36  ;;  %v2502_v37 = vunpack.c.h.bf16 %v8347_v59  ;;  %v2484_v36 = vunpack.c.h.bf16 %v8382_v39  ;;  %v2817_v59 = vunpack.c.l.bf16 %v8555_v2 }
 0x3c5   :  { %2307 = vmatpush.msrb.mxu2 %v2121_v22  ;;  %2623 = vmatpush.msra.mxu1 %v2457_v28  ;;  %v8564_v22 = vld [vmem:[#allocation2 + $0x5f8] sm:$0xff]  ;;  %v3471_v28 = vrot.slane %v7823_v38, 5  ;;  %v2494_v5 = vunpack.c.h.bf16 %v8365_v40  ;;  %v2490_v52 = vunpack.c.h.bf16 %v8375_v18  ;;  %v2826_v40 = vunpack.c.h.bf16 %v8539_v26 }
 0x3c6   :  { %2549 = vmatpush.msra.mxu3 %v2431_v34  ;;  %2669 = vmatpush.msrb.mxu0 %v2434_v54  ;;  %v2433_v34 = vunpack.c.l.bf16 %v8511_v56  ;;  %v8570_v54 = vld [vmem:[#allocation2 + $0xe80] sm:$0xff]  ;;  %v2813_v39 = vunpack.c.l.bf16 %v8564_v22  ;;  %v8607_v26 = vld [vmem:[#allocation2 + $0xd98] sm:$0xff] }
 0x3c7   :  { %2308 = vmatpush.msrb.mxu2 %v2117_v60  ;;  %2624 = vmatpush.msra.mxu1 %v2453_v45  ;;  %v2476_v60 = vunpack.c.h.bf16 %v8405_v27  ;;  %v2429_v45 = vunpack.c.l.bf16 %v8520_v55  ;;  %v2809_v56 = vunpack.c.l.bf16 %v8570_v54  ;;  %v8584_v27 = vld [vmem:[#allocation2 + $0x320] sm:$0xff]  ;;  %v8586_v55 = vld [vmem:[#allocation2 + $0xdd0] sm:$0xff] }
 0x3c8   :  { %2550 = vmatpush.msra.mxu3 %v2427_v42  ;;  %2670 = vmatpush.msrb.mxu0 %v2430_v44  ;;  %v8580_v42 = vld [vmem:[#allocation2 + $0x110] sm:$0x11]  ;;  %v2425_v44 = vunpack.c.l.bf16 %v8528_v11  ;;  %v3790_v11 = vrot.slane %v7823_v38, 6  ;;  %v2460_v38 = vunpack.c.h.bf16 %v8450_v62 }
 0x3c9   :  { %2309 = vmatpush.msrb.mxu2 %v2113_v12  ;;  %2625 = vmatpush.msra.mxu1 %v2449_v15  ;;  %v2823_v18 = vunpack.c.l.bf16 %v8580_v42  ;;  %v2819_v12 = vunpack.c.l.bf16 %v8584_v27  ;;  %v2804_v15 = vunpack.c.h.bf16 %v8586_v55  ;;  %v8630_v62 = vld [vmem:[#allocation2 + $0x410] sm:$0xff] }
 0x3ca   :  { %2551 = vmatpush.msra.mxu3 %v2423_v57  ;;  %2671 = vmatpush.msrb.mxu0 %v2426_v50  ;;  %v8598_v57 = vld [vmem:[#allocation2 + $0x738] sm:$0xff] }
 0x3cb   :  { %2310 = vmatpush.msrb.mxu2 %v2109_v29  ;;  %2552 = vmatmul.f32.vlgmr.msra.gmra.mxu3 %v8543_v51  ;;  %v2464_v29 = vunpack.c.h.bf16 %v8438_v24  ;;  %v8621_v24 = vld [vmem:[#allocation2 + $0xf78] sm:$0xff] }
 0x3cc   :  { %2626 = vmatpush.msra.mxu1 %v2445_v31  ;;  %5863 = vmatmul.msk.f32.vlgmr.msra.gmra.mxu0 %vm1559_vm12, %v8343_v7  ;;  %v2815_v31 = vunpack.c.l.bf16 %v8593_v21 }
 0x3cd   :  { %5864 = vmatpush.msk.msrb.mxu3 %vm1563_vm9, %v2506_v25  ;;  %5870 = vmatpush.msk.msra.mxu0 %vm1563_vm9, %v2825_v20  ;;  %v8612_v25 = vld [vmem:[#allocation2 + $0x178] sm:$0xff]  ;;  %v8617_v20 = vld [vmem:[#allocation2 + $0x990] sm:$0xff] }
 0x3ce   :  { %2311 = vmatpush.msrb.mxu2 %v2105_v8  ;;  %2627 = vmatpush.msra.mxu1 %v2441_v1  ;;  %v2811_v8 = vunpack.c.l.bf16 %v8607_v26  ;;  %v2796_v1 = vunpack.c.h.bf16 %v8612_v25 }
 0x3cf   :  { %2688 = vmatpush.msrb.mxu3 %v2502_v37  ;;  %2968 = vmatpush.msra.mxu0 %v2821_v16  ;;  %v2814_v37 = vunpack.c.h.bf16 %v8564_v22  ;;  %v8626_v16 = vpop.permute.xlu1 %2834  ;;  %v2824_v22 = vunpack.c.h.bf16 %v8580_v42  ;;  %v8659_v42 = vld [vmem:[#allocation2 + $0xee0] sm:$0xff] }
 0x3d0   :  { %2312 = vmatmul.f32.vlgmr.msrb.gmra.mxu2 %v8227_v0  ;;  %2628 = vmatpush.msra.mxu1 %v2437_v30  ;;  %v2472_v0 = vunpack.c.h.bf16 %v8418_v43  ;;  %v2468_v43 = vunpack.c.h.bf16 %v8428_v3  ;;  %v2822_v3 = vunpack.c.h.bf16 %v8546_v61  ;;  %v2818_v61 = vunpack.c.h.bf16 %v8555_v2 }
 0x3d1   :  { %2576 = vmatpush.msra.mxu2 %v2484_v36  ;;  %2689 = vmatpush.msrb.mxu3 %v2498_v32  ;;  %v2456_v2 = vunpack.c.h.bf16 %v8457_v19  ;;  %v2807_v30 = vunpack.c.l.bf16 %v8617_v20  ;;  %v2792_v36 = vunpack.c.h.bf16 %v8621_v24  ;;  %v2810_v32 = vunpack.c.h.bf16 %v8570_v54 }
 0x3d2   :  { %2969 = vmatpush.msra.mxu0 %v2817_v59  ;;  %3474 = vrot.lane.b32.xlu2 %v3471_v28, %s5997_s0  ;;  %v8634_v59 = vld [vmem:[#allocation2 + $0xe88] sm:$0xff]  ;;  %v8637_v28 = vld [vmem:[#allocation2 + $0x820] sm:$0xff]  ;;  %v8645_v19 = vsel %vm1556_vm11, %v2828_v17, %v8626_v16  ;;  %v2452_v54 = vunpack.c.h.bf16 %v8465_v6 }
 0x3d3   :  { %2577 = vmatpush.msra.mxu2 %v2480_v4  ;;  %2629 = vmatpush.msra.mxu1 %v2433_v34  ;;  %v3123_v34 = vunpack.c.l.bf16 %v8630_v62  ;;  %v3119_v17 = vunpack.c.l.bf16 %v8637_v28 }
 0x3d4   :  { %2690 = vmatpush.msrb.mxu3 %v2494_v5  ;;  %2970 = vmatpush.msra.mxu0 %v2813_v39  ;;  %v8649_v5 = vld [vmem:[#allocation2 + $0xbe8] sm:$0xff] }
 0x3d5   :  { %2578 = vmatpush.msra.mxu2 %v2476_v60  ;;  %2630 = vmatpush.msra.mxu1 %v2429_v45  ;;  %v8590_v41 = vpop.f32.mrf.mxu2  ;;  %v2788_v60 = vunpack.c.h.bf16 %v8634_v59  ;;  %v2820_v45 = vunpack.c.h.bf16 %v8584_v27  ;;  %v2784_v6 = vunpack.c.h.bf16 %v8649_v5 }
 0x3d6   :  { %2691 = vmatpush.msrb.mxu3 %v2490_v52  ;;  %2971 = vmatpush.msra.mxu0 %v2809_v56  ;;  %v8655_v52 = vld [vmem:[#allocation2 + $0x68] sm:$0xff]  ;;  %v2448_v56 = vunpack.c.h.bf16 %v8477_v14  ;;  %v8670_v14 = vld [vmem:[#allocation2 + $0xb38] sm:$0xff] }
 0x3d7   :  { %2579 = vmatpush.msra.mxu2 %v2472_v0  ;;  %2672 = vmatmul.f32.vlgmr.msrb.gmra.mxu0 %v8543_v51  ;;  %v8600_v50 = vpop.f32.mrf.mxu3  ;;  %v2816_v0 = vunpack.c.h.bf16 %v8593_v21  ;;  %v3115_v27 = vunpack.c.l.bf16 %v8655_v52  ;;  %v8679_v21 = vld [vmem:[%s10917_s4] sm:$0xf] }
 0x3d8   :  { %5865 = vmatmul.msk.f32.vlgmr.msrb.gmra.mxu3 %vm1559_vm12, %v8343_v7  ;;  %5872 = vmatpush.msk.msrb.mxu0 %vm1563_vm9, %v2826_v40  ;;  %v2800_v7 = vunpack.c.h.bf16 %v8598_v57  ;;  %v8666_v40 = vld [vmem:[#allocation2 + $0x5e8] sm:$0xff] }
 0x3d9   :  { %5866 = vmatpush.msk.msra.mxu3 %vm1563_vm9, %v2823_v18  ;;  %2631 = vmatpush.msra.mxu1 %v2425_v44  ;;  %v2444_v18 = vunpack.c.h.bf16 %v8485_v46  ;;  %v2780_v44 = vunpack.c.h.bf16 %v8659_v42  ;;  %v2440_v46 = vunpack.c.h.bf16 %v8493_v53  ;;  %v2436_v53 = vunpack.c.h.bf16 %v8501_v58 }
 0x3da   :  { %2580 = vmatpush.msra.mxu2 %v2468_v43  ;;  %2632 = vmatmul.f32.vlgmr.msra.gmra.mxu1 %v8543_v51  ;;  %v2812_v43 = vunpack.c.h.bf16 %v8607_v26  ;;  %v2808_v26 = vunpack.c.h.bf16 %v8617_v20 }
 0x3db   :  { %2888 = vmatpush.msra.mxu3 %v2819_v12  ;;  %2896 = vmatpush.msrb.mxu1 %v2804_v15  ;;  %v8674_v12 = vld [vmem:[#allocation2 + $0xf00] sm:$0xff]  ;;  %v3111_v15 = vunpack.c.l.bf16 %v8666_v40 }
 0x3dc   :  { %3008 = vmatpush.msrb.mxu0 %v2822_v3  ;;  %3793 = vrot.lane.b32.xlu1 %v3790_v11, %s5997_s0  ;;  %v8683_v3 = vld [vmem:[#allocation2 + $0x958] sm:$0xff]  ;;  %v2776_v11 = vunpack.c.h.bf16 %v8670_v14 }
 0x3dd   :  { %2581 = vmatpush.msra.mxu2 %v2464_v29  ;;  %2889 = vmatpush.msra.mxu3 %v2815_v31  ;;  %v8687_v29 = vld [vmem:[#allocation2 + $0xb48] sm:$0xff]  ;;  %v8689_v31 = vld [vmem:[#allocation2 + $0x260] sm:$0xff]  ;;  %v2772_v20 = vunpack.c.h.bf16 %v8683_v3 }
 0x3de   :  { %2897 = vmatpush.msrb.mxu1 %v2800_v7  ;;  %3009 = vmatpush.msrb.mxu0 %v2818_v61  ;;  %v1412_v7 = vperm.slane %v8679_v21, 2  ;;  %v1673_v61 = vpop.f32.mrf.mxu1  ;;  %v3103_v58 = vunpack.c.l.bf16 %v8689_v31 }
 0x3df   :  { %2582 = vmatpush.msra.mxu2 %v2460_v38  ;;  %2890 = vmatpush.msra.mxu3 %v2811_v8  ;;  %v8639_v4 = vpop.f32.mrf.mxu2  ;;  %v3107_v38 = vunpack.c.l.bf16 %v8674_v12  ;;  %v8694_v8 = vld [vmem:[#allocation2 + $0xc10] sm:$0xff] }
 0x3e0   :  { %2898 = vmatpush.msrb.mxu1 %v2796_v1  ;;  %3010 = vmatpush.msrb.mxu0 %v2814_v37  ;;  %v8651_v39 = vpop.f32.mrf.mxu3  ;;  %v8696_v37 = vpop.f32.mrf.mxu0 }
 0x3e1   :  { %10945 = vst [vmem:[#allocation8_spill] sm:$0xff] %v8651_v39  ;;  %2583 = vmatpush.msra.mxu2 %v2456_v2  ;;  %2891 = vmatpush.msra.mxu3 %v2807_v30  ;;  %v8699_v2 = vld [vmem:[#allocation2 + $0xb0] sm:$0xff]  ;;  %v8701_v30 = vld [vmem:[#allocation2 + $0xaa0] sm:$0xff] }
 0x3e2   :  { %2899 = vmatpush.msrb.mxu1 %v2792_v36  ;;  %3011 = vmatpush.msrb.mxu0 %v2810_v32  ;;  %v2805_v32 = vunpack.c.l.bf16 %v8687_v29 }
 0x3e3   :  { %5868 = vmatpush.msk.msrb.mxu3 %vm1563_vm9, %v2824_v22  ;;  %5871 = vmatmul.msk.f32.vlgmr.msra.gmra.mxu0 %vm1559_vm12, %v8645_v19  ;;  %v8705_v22 = vld [vmem:[#allocation2 + $0x4a0] sm:$0xff] }
 0x3e4   :  { %3176 = vmatpush.msra.mxu0 %v3123_v34  ;;  %2584 = vmatpush.msra.mxu2 %v2452_v54  ;;  %v2432_v54 = vunpack.c.h.bf16 %v8509_v9  ;;  %v2428_v9 = vunpack.c.h.bf16 %v8518_v10  ;;  %v2424_v10 = vunpack.c.h.bf16 %v8526_v35 }
 0x3e5   :  { %2900 = vmatpush.msrb.mxu1 %v2788_v60  ;;  %2928 = vmatpush.msrb.mxu3 %v2820_v45  ;;  %v2768_v60 = vunpack.c.h.bf16 %v8694_v8  ;;  %v8711_v45 = vld [vmem:[#allocation2 + $0x580] sm:$0xff] }
 0x3e6   :  { %3177 = vmatpush.msra.mxu0 %v3119_v17  ;;  %2585 = vmatpush.msra.mxu2 %v2448_v56  ;;  %v8713_v17 = vld [vmem:[#allocation2 + $0x3b0] sm:$0xff] }
 0x3e7   :  { %2901 = vmatpush.msrb.mxu1 %v2784_v6  ;;  %2929 = vmatpush.msrb.mxu3 %v2816_v0  ;;  %v2801_v6 = vunpack.c.l.bf16 %v8699_v2  ;;  %v3099_v0 = vunpack.c.l.bf16 %v8701_v30 }
 0x3e8   :  { %3178 = vmatpush.msra.mxu0 %v3115_v27  ;;  %2586 = vmatpush.msra.mxu2 %v2444_v18  ;;  %v8707_v34 = vpop.f32.mrf.mxu3  ;;  %v8719_v27 = vld [vmem:[#allocation2 + $0xe18] sm:$0xff]  ;;  %v2764_v18 = vunpack.c.h.bf16 %v8705_v22 }
 0x3e9   :  { %v1693_v1 = vpop.f32.mrf.mxu2  ;;  %2902 = vmatpush.msrb.mxu1 %v2780_v44  ;;  %2930 = vmatpush.msrb.mxu3 %v2812_v43  ;;  %v8725_v44 = vld [vmem:[#allocation2 + $0x648] sm:$0xff]  ;;  %v2797_v43 = vunpack.c.l.bf16 %v8711_v45 }
 0x3ea   :  { %v1694_v36 = vadd.f32 %v1693_v1, %v1673_v61  ;;  %3179 = vmatpush.msra.mxu0 %v3111_v15  ;;  %2587 = vmatpush.msra.mxu2 %v2440_v46  ;;  %v3095_v15 = vunpack.c.l.bf16 %v8713_v17  ;;  %v8729_v46 = vld [vmem:[#allocation2 + $0xf60] sm:$0xff]  ;;  %v8736_v61 = vld [vmem:[#allocation2 + $0xb18] sm:$0xff]  ;;  %v1953_v1 = vpop.f32.mrf.mxu1 }
 0x3eb   :  { %2903 = vmatpush.msrb.mxu1 %v2776_v11  ;;  %2931 = vmatpush.msrb.mxu3 %v2808_v26  ;;  %v1411_v11 = vperm.slane %v8679_v21, 1  ;;  %v1654_v26 = vadd.f32 %v8639_v4, %v8600_v50  ;;  %v8743_v50 = vld [vmem:[#allocation2 + $0x4f8] sm:$0xff]  ;;  %v2756_v35 = vunpack.c.h.bf16 %v8736_v61 }
 0x3ec   :  { %v8715_v56 = vadd.f32 %v1694_v36, %v1412_v7  ;;  %3180 = vmatpush.msra.mxu0 %v3107_v38  ;;  %2588 = vmatpush.msra.mxu2 %v2436_v53  ;;  %v2760_v7 = vunpack.c.h.bf16 %v8719_v27  ;;  %v8738_v38 = vld [vmem:[#allocation2 + $0xc40] sm:$0xff]  ;;  %v2793_v53 = vunpack.c.l.bf16 %v8725_v44  ;;  %v3091_v36 = vunpack.c.l.bf16 %v8729_v46 }
 0x3ed   :  { %5867 = vmatmul.msk.f32.vlgmr.msra.gmra.mxu3 %vm1559_vm12, %v8645_v19  ;;  %2904 = vmatpush.msrb.mxu1 %v2772_v20  ;;  %v2803_v20 = vunpack.c.l.bf16 %v8586_v55  ;;  %v2789_v4 = vunpack.c.l.bf16 %v8738_v38  ;;  %v10925_v55 = vrot.slane %v7814_v13, 6 }
 0x3ee   :  { %2936 = vmatpush.msra.mxu3 %v2805_v32  ;;  %3181 = vmatpush.msra.mxu0 %v3103_v58  ;;  %v8747_v32 = vld [vmem:[#allocation2 + $0x218] sm:$0xff]  ;;  %v8749_v58 = vld [vmem:[#allocation2 + $0xae0] sm:$0xff] }
 0x3ef   :  { %2589 = vmatpush.msra.mxu2 %v2432_v54  ;;  %2905 = vmatpush.msrb.mxu1 %v2768_v60  ;;  %v8751_v60 = vpop.f32.mrf.mxu0 }
 0x3f0   :  { %2937 = vmatpush.msra.mxu3 %v2801_v6  ;;  %3182 = vmatpush.msra.mxu0 %v3099_v0  ;;  %v1737_v6 = vadd.f32 %v1654_v26, %v1411_v11  ;;  %v2799_v0 = vunpack.c.l.bf16 %v8598_v57  ;;  %v2752_v11 = vunpack.c.h.bf16 %v8747_v32  ;;  %v2785_v26 = vunpack.c.l.bf16 %v8749_v58  ;;  %v8765_v57 = vld [vmem:[#allocation2 + $0x470] sm:$0xff] }
 0x3f1   :  { %2590 = vmatpush.msra.mxu2 %v2428_v9  ;;  %2906 = vmatpush.msrb.mxu1 %v2764_v18  ;;  %v8755_v9 = vld [vmem:[#allocation2 + $0x758] sm:$0xff] }
 0x3f2   :  { %2938 = vmatpush.msra.mxu3 %v2797_v43  ;;  %3183 = vmatpush.msra.mxu0 %v3095_v15  ;;  %v3087_v43 = vunpack.c.l.bf16 %v8743_v50  ;;  %v8759_v15 = vld [vmem:[#allocation2 + $0x40] sm:$0xff] }
 0x3f3   :  { %v1973_v54 = vpop.f32.mrf.mxu3  ;;  %2591 = vmatpush.msra.mxu2 %v2424_v10  ;;  %2907 = vmatpush.msrb.mxu1 %v2760_v7  ;;  %v2833_v10 = vpop.permute.xlu2 %2832 }
 0x3f4   :  { %v1974_v18 = vadd.f32 %v1973_v54, %v1953_v1  ;;  %2939 = vmatpush.msra.mxu3 %v2793_v53  ;;  %2592 = vmatmul.f32.vlgmr.msra.gmra.mxu2 %v8543_v51  ;;  %v2795_v51 = vunpack.c.l.bf16 %v8612_v25  ;;  %v3083_v53 = vunpack.c.l.bf16 %v8755_v9  ;;  %v8771_v1 = vld [vmem:[#allocation2 + $0x2e0] sm:$0xff]  ;;  %v8773_v54 = vld [vmem:[#allocation2 + $0x908] sm:$0xff]  ;;  %v2836_v25 = vsel %vm1552_vm10, %v2833_v10, %v8626_v16 }
 0x3f5   :  { %2856 = vmatpush.msrb.mxu2 %v2803_v20  ;;  %3184 = vmatpush.msra.mxu0 %v3091_v36  ;;  %v2748_v20 = vunpack.c.h.bf16 %v8759_v15  ;;  %v2781_v36 = vunpack.c.l.bf16 %v8761_v48 }
 0x3f6   :  { %v8767_v7 = vadd.f32 %v1974_v18, %v1737_v6  ;;  %2908 = vmatpush.msrb.mxu1 %v2756_v35  ;;  %2940 = vmatpush.msra.mxu3 %v2789_v4  ;;  %v2827_v35 = vrot.slane %v7811_v63, 4  ;;  %v2791_v4 = vunpack.c.l.bf16 %v8621_v24  ;;  %v3079_v6 = vunpack.c.l.bf16 %v8765_v57  ;;  %v8787_v18 = vld [vmem:[#allocation2 + $0xc20] sm:$0xff] }
 0x3f7   :  { %3791 = vrot.lane.b32.xlu2 %v10925_v55, %s5997_s0  ;;  %2857 = vmatpush.msrb.mxu2 %v2799_v0  ;;  %v2744_v0 = vunpack.c.h.bf16 %v8771_v1  ;;  %v2777_v55 = vunpack.c.l.bf16 %v8773_v54  ;;  %v3075_v16 = vunpack.c.l.bf16 %v8787_v18  ;;  %v8803_v10 = vpop.f32.mrf.mxu0 }
 0x3f8   :  { %5869 = vmatmul.msk.f32.vlgmr.msrb.gmra.mxu3 %vm1559_vm12, %v8645_v19  ;;  %3185 = vmatpush.msra.mxu0 %v3087_v43  ;;  %v2787_v43 = vunpack.c.l.bf16 %v8634_v59  ;;  %v8797_v24 = vsel %vm1556_vm11, %v2827_v35, %v2836_v25  ;;  %10946 = vst [vmem:[#allocation9_spill] sm:$0xff] %v8803_v10  ;;  %v2783_v59 = vunpack.c.l.bf16 %v8649_v5  ;;  %v8811_v35 = vld [vmem:[#allocation2 + $0xde8] sm:$0xff]  ;;  %v2779_v25 = vunpack.c.l.bf16 %v8659_v42  ;;  %v8827_v10 = vld [vmem:[#allocation2 + $0x960] sm:$0x11] }
 0x3f9   :  { %2909 = vmatpush.msrb.mxu1 %v2752_v11  ;;  %2941 = vmatpush.msra.mxu3 %v2785_v26  ;;  %v3124_v11 = vunpack.c.h.bf16 %v8630_v62  ;;  %v8801_v26 = vld [vmem:[#allocation2 + $0x268] sm:$0xff]  ;;  %v1410_v5 = vperm.slane %v8679_v21, 0  ;;  %v2775_v42 = vunpack.c.l.bf16 %v8670_v14  ;;  %v3146_v14 = vunpack.c.h.bf16 %v8827_v10 }
 0x3fa   :  { %2858 = vmatpush.msrb.mxu2 %v2795_v51  ;;  %3186 = vmatpush.msra.mxu0 %v3083_v53  ;;  %v2773_v51 = vunpack.c.l.bf16 %v8791_v49  ;;  %v8807_v53 = vld [vmem:[#allocation2 + $0x690] sm:$0xff]  ;;  %v2769_v62 = vunpack.c.l.bf16 %v8801_v26 }
 0x3fb   :  { %2910 = vmatpush.msrb.mxu1 %v2748_v20  ;;  %2942 = vmatpush.msra.mxu3 %v2781_v36  ;;  %v3071_v20 = vunpack.c.l.bf16 %v8794_v23  ;;  %v3120_v36 = vunpack.c.h.bf16 %v8637_v28  ;;  %v3067_v28 = vunpack.c.l.bf16 %v8807_v53 }
 0x3fc   :  { %2859 = vmatpush.msrb.mxu2 %v2791_v4  ;;  %3187 = vmatpush.msra.mxu0 %v3079_v6  ;;  %v8816_v4 = vld [vmem:[#allocation2 + $0x308] sm:$0xff]  ;;  %v3116_v6 = vunpack.c.h.bf16 %v8655_v52 }
 0x3fd   :  { %2911 = vmatpush.msrb.mxu1 %v2744_v0  ;;  %2943 = vmatpush.msra.mxu3 %v2777_v55  ;;  %v1614_v55 = vadd.f32 %v8590_v41, %v8696_v37  ;;  %v8823_v0 = vld [vmem:[#allocation2 + $0xee8] sm:$0xff]  ;;  %v3063_v41 = vunpack.c.l.bf16 %v8816_v4  ;;  %v3112_v37 = vunpack.c.h.bf16 %v8666_v40  ;;  %v2233_v39 = vpop.f32.mrf.mxu1  ;;  %v3108_v40 = vunpack.c.h.bf16 %v8674_v12 }
 0x3fe   :  { %2860 = vmatpush.msrb.mxu2 %v2787_v43  ;;  %2912 = vmatmul.f32.vlgmr.msrb.gmra.mxu1 %v8797_v24  ;;  %v2765_v43 = vunpack.c.l.bf16 %v8811_v35  ;;  %v2761_v52 = vunpack.c.l.bf16 %v8823_v0  ;;  %v4109_v12 = vrot.slane %v7825_v47, 7 }
 0x3ff   :  { %3188 = vmatpush.msra.mxu0 %v3075_v16  ;;  %3216 = vmatpush.msra.mxu1 %v3124_v11  ;;  %v8831_v16 = vld [vmem:[#allocation2 + $0x9e0] sm:$0xff]  ;;  %v8834_v11 = vld [vmem:[#allocation2 + $0x430] sm:$0xff] }
 0x400   :  { %2944 = vmatpush.msra.mxu3 %v2773_v51  ;;  %2861 = vmatpush.msrb.mxu2 %v2783_v59  ;;  %v1736_v59 = vadd.f32 %v1614_v55, %v1410_v5  ;;  %v3142_v5 = vunpack.c.h.bf16 %v8834_v11  ;;  %v4108_v55 = vrot.slane %v7821_v33, 7 }
 0x401   :  { %3189 = vmatpush.msra.mxu0 %v3071_v20  ;;  %3217 = vmatpush.msra.mxu1 %v3120_v36  ;;  %v2771_v20 = vunpack.c.l.bf16 %v8683_v3 }
 0x402   :  { %2945 = vmatpush.msra.mxu3 %v2769_v62  ;;  %2862 = vmatpush.msrb.mxu2 %v2779_v25  ;;  %v2757_v62 = vunpack.c.l.bf16 %v8831_v16  ;;  %v8841_v25 = vld [vmem:[#allocation2 + $0x550] sm:$0xff] }
 0x403   :  { %v1913_v51 = vpop.f32.mrf.mxu2  ;;  %3190 = vmatpush.msra.mxu0 %v3067_v28  ;;  %3218 = vmatpush.msra.mxu1 %v3116_v6  ;;  %v8845_v28 = vld [vmem:[#allocation2 + $0xe50] sm:$0xff] }
 0x404   :  { %v1934_v36 = vadd.f32 %v8707_v34, %v1913_v51  ;;  %2946 = vmatpush.msra.mxu3 %v2765_v43  ;;  %2863 = vmatpush.msrb.mxu2 %v2775_v42  ;;  %v2767_v34 = vunpack.c.l.bf16 %v8694_v8  ;;  %v8851_v43 = vld [vmem:[#allocation2 + $0x828] sm:$0xff]  ;;  %v8856_v51 = vld [vmem:[#allocation2 + $0xb40] sm:$0xff]  ;;  %v8860_v8 = vpop.permute.xlu0 %3154 }
 0x405   :  { %3191 = vmatpush.msra.mxu0 %v3063_v41  ;;  %3219 = vmatpush.msra.mxu1 %v3112_v37  ;;  %v3104_v41 = vunpack.c.h.bf16 %v8689_v31  ;;  %v2753_v37 = vunpack.c.l.bf16 %v8841_v25  ;;  %v3100_v31 = vunpack.c.h.bf16 %v8701_v30  ;;  %v3096_v30 = vunpack.c.h.bf16 %v8713_v17 }
 0x406   :  { %v2056_v3 = vadd.f32 %v1934_v36, %v1736_v59  ;;  %v2253_v6 = vpop.f32.mrf.mxu0  ;;  %2947 = vmatpush.msra.mxu3 %v2761_v52  ;;  %5873 = vmatmul.msk.f32.vlgmr.msrb.gmra.mxu0 %vm1559_vm12, %v8645_v19  ;;  %v3138_v19 = vunpack.c.h.bf16 %v8845_v28  ;;  %v2763_v52 = vunpack.c.l.bf16 %v8705_v22  ;;  %v3153_v59 = vpop.permute.xlu1 %3152  ;;  %v8862_v36 = vld [vmem:[#allocation2 + $0x5c0] sm:$0xff]  ;;  %v3134_v22 = vunpack.c.h.bf16 %v8856_v51 }
 0x407   :  { %v2254_v42 = vadd.f32 %v2253_v6, %v2233_v39  ;;  %5880 = vmatpush.msk.msrb.mxu0 %vm1563_vm9, %v3146_v14  ;;  %2864 = vmatpush.msrb.mxu2 %v2771_v20  ;;  %v2749_v14 = vunpack.c.l.bf16 %v8851_v43  ;;  %v8869_v20 = vld [vmem:[#allocation2 + $0x180] sm:$0xff] }
 0x408   :  { %3220 = vmatpush.msra.mxu1 %v3108_v40  ;;  %2948 = vmatpush.msra.mxu3 %v2757_v62  ;;  %v2759_v40 = vunpack.c.l.bf16 %v8719_v27  ;;  %v3147_v62 = vrot.slane %v7811_v63, 5  ;;  %v3130_v6 = vunpack.c.h.bf16 %v8869_v20  ;;  %v8883_v27 = vld [vmem:[#allocation2 + $0x48] sm:$0xff] }
 0x409   :  { %v8864_v39 = vadd.f32 %v2254_v42, %v2056_v3  ;;  %3328 = vmatpush.msrb.mxu0 %v3142_v5  ;;  %4110 = vrot.lane.b32.xlu1 %v4108_v55, %s5997_s0  ;;  %v3156_v5 = vsel %vm1552_vm10, %v3153_v59, %v8860_v8  ;;  %v2745_v55 = vunpack.c.l.bf16 %v8862_v36  ;;  %v8879_v3 = vld [vmem:[#allocation2 + $0xcc8] sm:$0x11]  ;;  %v8885_v42 = vld [vmem:[#allocation2 + $0x598] sm:$0xff]  ;;  %v2751_v59 = vunpack.c.l.bf16 %v8747_v32  ;;  %v8906_v32 = vld [vmem:[#allocation2 + $0xdf0] sm:$0xff] }
 0x40a   :  { %4112 = vrot.lane.b32.xlu0 %v4109_v12, %s5997_s0  ;;  %2865 = vmatpush.msrb.mxu2 %v2767_v34  ;;  %v2755_v12 = vunpack.c.l.bf16 %v8736_v61  ;;  %v8888_v17 = vsel %vm1556_vm11, %v3147_v62, %v3156_v5  ;;  %v3443_v61 = vunpack.c.l.bf16 %v8883_v27  ;;  %v2747_v5 = vunpack.c.l.bf16 %v8759_v15 }
 0x40b   :  { %3221 = vmatpush.msra.mxu1 %v3104_v41  ;;  %2949 = vmatpush.msra.mxu3 %v2753_v37  ;;  %v3092_v41 = vunpack.c.h.bf16 %v8729_v46  ;;  %v3144_v37 = vunpack.c.h.bf16 %v8879_v3  ;;  %v3140_v46 = vunpack.c.h.bf16 %v8885_v42  ;;  %v2743_v15 = vunpack.c.l.bf16 %v8771_v1 }
 0x40c   :  { %3329 = vmatpush.msrb.mxu0 %v3138_v19  ;;  %2866 = vmatpush.msrb.mxu2 %v2763_v52  ;;  %v8892_v19 = vld [vmem:[#allocation2 + $0x700] sm:$0xff]  ;;  %v3076_v1 = vunpack.c.h.bf16 %v8787_v18  ;;  %v3145_v18 = vunpack.c.l.bf16 %v8827_v10 }
 0x40d   :  { %v2013_v34 = vpop.f32.mrf.mxu2  ;;  %3222 = vmatpush.msra.mxu1 %v3100_v31  ;;  %2950 = vmatpush.msra.mxu3 %v2749_v14  ;;  %v8896_v31 = vld [vmem:[#allocation2 + $0x600] sm:$0xff]  ;;  %v3439_v62 = vunpack.c.l.bf16 %v8892_v19 }
 0x40e   :  { %3330 = vmatpush.msrb.mxu0 %v3134_v22  ;;  %2867 = vmatpush.msrb.mxu2 %v2759_v40  ;;  %v3088_v22 = vunpack.c.h.bf16 %v8743_v50  ;;  %v8900_v40 = vld [vmem:[#allocation2 + $0x1b8] sm:$0xff]  ;;  %v3084_v50 = vunpack.c.h.bf16 %v8755_v9 }
 0x40f   :  { %v1993_v52 = vpop.f32.mrf.mxu3  ;;  %3223 = vmatpush.msra.mxu1 %v3096_v30  ;;  %2951 = vmatpush.msra.mxu3 %v2745_v55  ;;  %v3136_v55 = vunpack.c.h.bf16 %v8896_v31 }
 0x410   :  { %v2014_v14 = vadd.f32 %v2013_v34, %v1993_v52  ;;  %3331 = vmatpush.msrb.mxu0 %v3130_v6  ;;  %2868 = vmatpush.msrb.mxu2 %v2755_v12  ;;  %v8914_v6 = vld [vmem:[#allocation2 + $0x7e0] sm:$0xff]  ;;  %v3435_v12 = vunpack.c.l.bf16 %v8900_v40  ;;  %v3132_v34 = vunpack.c.h.bf16 %v8906_v32  ;;  %v2806_v52 = vunpack.c.h.bf16 %v8687_v29 }
 0x411   :  { %2952 = vmatmul.f32.vlgmr.msra.gmra.mxu3 %v8797_v24  ;;  %3192 = vmatmul.f32.vlgmr.msra.gmra.mxu0 %v8888_v17  ;;  %v3431_v9 = vunpack.c.l.bf16 %v8914_v6 }
 0x412   :  { %v8909_v30 = vadd.f32 %v2014_v14, %v8715_v56  ;;  %3224 = vmatpush.msra.mxu1 %v3092_v41  ;;  %5876 = vmatpush.msk.msrb.mxu3 %vm1563_vm9, %v3144_v37  ;;  %v3080_v56 = vunpack.c.h.bf16 %v8765_v57  ;;  %v8920_v41 = vld [vmem:[#allocation2 + $0xe48] sm:$0xff]  ;;  %v8922_v37 = vld [vmem:[#allocation2 + $0xaf8] sm:$0xff]  ;;  %v8929_v14 = vld [vmem:[#allocation2 + $0xe0] sm:$0xff] }
 0x413   :  { %3496 = vmatpush.msra.mxu0 %v3443_v61  ;;  %2869 = vmatpush.msrb.mxu2 %v2751_v59  ;;  %v2273_v61 = vpop.f32.mrf.mxu0  ;;  %v3128_v57 = vunpack.c.h.bf16 %v8920_v41  ;;  %v3427_v59 = vunpack.c.l.bf16 %v8922_v37 }
 0x414   :  { %3225 = vmatpush.msra.mxu1 %v3088_v22  ;;  %3248 = vmatpush.msrb.mxu3 %v3140_v46  ;;  %v2802_v22 = vunpack.c.h.bf16 %v8699_v2  ;;  %v3423_v2 = vunpack.c.l.bf16 %v8929_v14 }
 0x415   :  { %3497 = vmatpush.msra.mxu0 %v3439_v62  ;;  %2870 = vmatpush.msrb.mxu2 %v2747_v5  ;;  %v10947_v62 = vrot.slane %v7814_v13, 5  ;;  %v3072_v5 = vunpack.c.h.bf16 %v8794_v23 }
 0x416   :  { %3226 = vmatpush.msra.mxu1 %v3084_v50  ;;  %3249 = vmatpush.msrb.mxu3 %v3136_v55  ;;  %v8941_v50 = vld [vmem:[#allocation2 + $0x638] sm:$0xff] }
 0x417   :  { %3498 = vmatpush.msra.mxu0 %v3435_v12  ;;  %2871 = vmatpush.msrb.mxu2 %v2743_v15  ;;  %v8936_v29 = vsel %vm1556_vm11, %v10947_v62, %v8860_v8  ;;  %v2798_v12 = vunpack.c.h.bf16 %v8711_v45  ;;  %v3141_v8 = vunpack.c.l.bf16 %v8834_v11  ;;  %v3068_v15 = vunpack.c.h.bf16 %v8807_v53  ;;  %v8959_v11 = vld [vmem:[#allocation2 + $0xcc0] sm:$0xff] }
 0x418   :  { %3227 = vmatpush.msra.mxu1 %v3080_v56  ;;  %3250 = vmatpush.msrb.mxu3 %v3132_v34  ;;  %v8947_v56 = vld [vmem:[#allocation2 + $0x9e8] sm:$0xff]  ;;  %v3419_v23 = vunpack.c.l.bf16 %v8941_v50  ;;  %v2794_v34 = vunpack.c.h.bf16 %v8725_v44  ;;  %v3137_v45 = vunpack.c.l.bf16 %v8845_v28  ;;  %v3064_v53 = vunpack.c.h.bf16 %v8816_v4 }
 0x419   :  { %v2293_v46 = vpop.f32.mrf.mxu3  ;;  %3499 = vmatpush.msra.mxu0 %v3431_v9  ;;  %2872 = vmatmul.f32.vlgmr.msrb.gmra.mxu2 %v8797_v24  ;;  %v2790_v9 = vunpack.c.h.bf16 %v8738_v38  ;;  %v3133_v44 = vunpack.c.l.bf16 %v8856_v51  ;;  %v3411_v4 = vunpack.c.l.bf16 %v8959_v11  ;;  %v2786_v28 = vunpack.c.h.bf16 %v8749_v58 }
 0x41a   :  { %v2294_v55 = vadd.f32 %v2293_v46, %v2273_v61  ;;  %2976 = vmatpush.msra.mxu2 %v2806_v52  ;;  %3228 = vmatpush.msra.mxu1 %v3076_v1  ;;  %v8963_v52 = vld [vmem:[#allocation2 + $0xc38] sm:$0x11]  ;;  %v8966_v1 = vld [vmem:[#allocation2 + $0x3a8] sm:$0xff]  ;;  %v3129_v38 = vunpack.c.l.bf16 %v8869_v20  ;;  %v2782_v58 = vunpack.c.h.bf16 %v8761_v48  ;;  %v8986_v20 = vld [vmem:[#allocation2 + $0x250] sm:$0xff] }
 0x41b   :  { %3251 = vmatpush.msrb.mxu3 %v3128_v57  ;;  %3500 = vmatpush.msra.mxu0 %v3427_v59  ;;  %10949 = vst [vmem:[#allocation11_spill] sm:$0xff] %v8963_v52  ;;  %v8968_v61 = vld [vmem:[#allocation2 + $0xea8] sm:$0xff]  ;;  %v8972_v57 = vld [vmem:[#allocation2 + $0x978] sm:$0xff]  ;;  %v8975_v59 = vld [vmem:[#allocation2 + $0x60] sm:$0xff]  ;;  %v3463_v51 = vunpack.c.l.bf16 %v8963_v52  ;;  %v3126_v46 = vunpack.c.h.bf16 %v8966_v1 }
 0x41c   :  { %v8950_v10 = vadd.f32 %v2294_v55, %v8767_v7  ;;  %2977 = vmatpush.msra.mxu2 %v2802_v22  ;;  %5877 = vmatmul.msk.f32.vlgmr.msrb.gmra.mxu3 %vm1559_vm12, %v8936_v29  ;;  %v3415_v7 = vunpack.c.l.bf16 %v8947_v56  ;;  %10950 = vst [vmem:[#allocation12_spill] sm:$0xff] %v8972_v57  ;;  %v8977_v22 = vld [vmem:[#allocation2 + $0xf18] sm:$0xff]  ;;  %v3407_v62 = vunpack.c.l.bf16 %v8968_v61  ;;  %v3459_v55 = vunpack.c.l.bf16 %v8972_v57  ;;  %v9055_v57 = vld [vmem:[#allocation2 + $0xa0] sm:$0xff] }
 0x41d   :  { %5878 = vmatpush.msk.msra.mxu3 %vm1563_vm9, %v3145_v18  ;;  %3229 = vmatpush.msra.mxu1 %v3072_v5  ;;  %v8982_v18 = vld [vmem:[#allocation2 + $0xd0] sm:$0xff]  ;;  %v8988_v5 = vld [vmem:[#allocation2 + $0xdd8] sm:$0xff] }
 0x41e   :  { %10948 = vst [vmem:[#allocation10_spill] sm:$0xff] %v8950_v10  ;;  %3501 = vmatpush.msra.mxu0 %v3423_v2  ;;  %2978 = vmatpush.msra.mxu2 %v2798_v12  ;;  %v3122_v2 = vunpack.c.h.bf16 %v8975_v59  ;;  %v3403_v12 = vunpack.c.l.bf16 %v8977_v22  ;;  %v8997_v48 = vld [vmem:[#allocation2 + $0x558] sm:$0xff]  ;;  %v10954_v10 = vld [vmem:[#allocation8_spill] sm:$0xff] }
 0x41f   :  { %3288 = vmatpush.msra.mxu3 %v3141_v8  ;;  %3230 = vmatpush.msra.mxu1 %v3068_v15  ;;  %10951 = vst [vmem:[#allocation13_spill] sm:$0xff] %v8982_v18  ;;  %v8993_v8 = vld [vmem:[#allocation2 + $0xb60] sm:$0xff]  ;;  %v2778_v15 = vunpack.c.h.bf16 %v8773_v54  ;;  %v9057_v52 = vld [vmem:[#allocation2 + $0x898] sm:$0xff] }
 0x420   :  { %3502 = vmatpush.msra.mxu0 %v3419_v23  ;;  %2979 = vmatpush.msra.mxu2 %v2794_v34  ;;  %10952 = vst [vmem:[#allocation14_spill] sm:$0xff] %v8993_v8  ;;  %v8999_v23 = vld [vmem:[#allocation2 + $0xc58] sm:$0xff]  ;;  %v3455_v34 = vunpack.c.l.bf16 %v8982_v18  ;;  %v9007_v54 = vld [vmem:[#allocation2 + $0x560] sm:$0xff] }
 0x421   :  { %3289 = vmatpush.msra.mxu3 %v3137_v45  ;;  %3231 = vmatpush.msra.mxu1 %v3064_v53  ;;  %v3118_v45 = vunpack.c.h.bf16 %v8986_v20  ;;  %v3399_v53 = vunpack.c.l.bf16 %v8988_v5 }
 0x422   :  { %3503 = vmatpush.msra.mxu0 %v3415_v7  ;;  %2980 = vmatpush.msra.mxu2 %v2790_v9  ;;  %v9004_v7 = vld [vmem:[#allocation2 + $0xc08] sm:$0xff]  ;;  %v2774_v9 = vunpack.c.h.bf16 %v8791_v49  ;;  %v9017_v49 = vld [vmem:[#allocation2 + $0x740] sm:$0xff] }
 0x423   :  { %3232 = vmatmul.f32.vlgmr.msra.gmra.mxu1 %v8888_v17  ;;  %3290 = vmatpush.msra.mxu3 %v3133_v44  ;;  %10953 = vst [vmem:[#allocation15_spill] sm:$0xff] %v9004_v7  ;;  %v9009_v44 = vld [vmem:[#allocation2 + $0x920] sm:$0xff] }
 0x424   :  { %3504 = vmatpush.msra.mxu0 %v3411_v4  ;;  %2981 = vmatpush.msra.mxu2 %v2786_v28  ;;  %v3451_v4 = vunpack.c.l.bf16 %v8993_v8  ;;  %v3114_v28 = vunpack.c.h.bf16 %v8997_v48  ;;  %v9034_v8 = vld [vmem:[#allocation2 + $0x150] sm:$0x11] }
 0x425   :  { %3291 = vmatpush.msra.mxu3 %v3129_v38  ;;  %5882 = vmatpush.msk.msrb.mxu1 %vm1563_vm9, %v3463_v51  ;;  %v3395_v38 = vunpack.c.l.bf16 %v8999_v23  ;;  %v2770_v51 = vunpack.c.h.bf16 %v8801_v26  ;;  %v9025_v26 = vld [vmem:[#allocation2 + $0x590] sm:$0xff] }
 0x426   :  { %3505 = vmatpush.msra.mxu0 %v3407_v62  ;;  %2982 = vmatpush.msra.mxu2 %v2782_v58  ;;  %v3447_v62 = vunpack.c.l.bf16 %v9004_v7  ;;  %v9020_v58 = vpop.f32.mrf.mxu3  ;;  %v1734_v7 = vadd.f32 %v10954_v10, %v8751_v60  ;;  %v9042_v10 = vld [vmem:[#allocation2 + $0xd88] sm:$0xff] }
 0x427   :  { %3296 = vmatpush.msrb.mxu3 %v3126_v46  ;;  %3528 = vmatpush.msrb.mxu1 %v3459_v55  ;;  %v9015_v46 = vld [vmem:[#allocation2 + $0x3d0] sm:$0xff]  ;;  %v3110_v55 = vunpack.c.h.bf16 %v9007_v54 }
 0x428   :  { %3506 = vmatpush.msra.mxu0 %v3403_v12  ;;  %2983 = vmatpush.msra.mxu2 %v2778_v15  ;;  %v2766_v12 = vunpack.c.h.bf16 %v8811_v35  ;;  %v9027_v15 = vld [vmem:[#allocation2 + $0x6c0] sm:$0xff]  ;;  %v2762_v35 = vunpack.c.h.bf16 %v8823_v0  ;;  %v3466_v0 = vunpack.c.h.bf16 %v9034_v8 }
 0x429   :  { %3297 = vmatpush.msrb.mxu3 %v3122_v2  ;;  %3529 = vmatpush.msrb.mxu1 %v3455_v34  ;;  %v3391_v2 = vunpack.c.l.bf16 %v9009_v44  ;;  %v1413_v34 = vperm.slane %v8679_v21, 3  ;;  %v3102_v21 = vunpack.c.h.bf16 %v9025_v26  ;;  %v3383_v60 = vunpack.c.l.bf16 %v9027_v15 }
 0x42a   :  { %3507 = vmatpush.msra.mxu0 %v3399_v53  ;;  %2984 = vmatpush.msra.mxu2 %v2774_v9  ;;  %v3387_v53 = vunpack.c.l.bf16 %v9017_v49  ;;  %v3444_v9 = vunpack.c.h.bf16 %v8883_v27 }
 0x42b   :  { %3298 = vmatpush.msrb.mxu3 %v3118_v45  ;;  %3530 = vmatpush.msrb.mxu1 %v3451_v4  ;;  %v3106_v45 = vunpack.c.h.bf16 %v9015_v46  ;;  %v9038_v4 = vld [vmem:[#allocation2 + $0x378] sm:$0xff] }
 0x42c   :  { %3508 = vmatpush.msra.mxu0 %v3395_v38  ;;  %2985 = vmatpush.msra.mxu2 %v2770_v51  ;;  %v9048_v38 = vld [vmem:[#allocation2 + $0x238] sm:$0xff]  ;;  %v1739_v51 = vadd.f32 %v1734_v7, %v1413_v34 }
 0x42d   :  { %3299 = vmatpush.msrb.mxu3 %v3114_v28  ;;  %3531 = vmatpush.msrb.mxu1 %v3447_v62  ;;  %v2758_v28 = vunpack.c.h.bf16 %v8831_v16  ;;  %v3098_v62 = vunpack.c.h.bf16 %v9038_v4  ;;  %v2754_v16 = vunpack.c.h.bf16 %v8841_v25  ;;  %v3094_v7 = vunpack.c.h.bf16 %v9048_v38 }
 0x42e   :  { %3509 = vmatpush.msra.mxu0 %v3391_v2  ;;  %2986 = vmatpush.msra.mxu2 %v2766_v12  ;;  %v10955_v2 = vld [vmem:[#allocation9_spill] sm:$0xff]  ;;  %v3462_v12 = vunpack.c.h.bf16 %v9042_v10 }
 0x42f   :  { %3300 = vmatpush.msrb.mxu3 %v3110_v55  ;;  %5881 = vmatmul.msk.f32.vlgmr.msrb.gmra.mxu0 %vm1559_vm12, %v8936_v29  ;;  %v2033_v27 = vpop.f32.mrf.mxu2  ;;  %v3440_v55 = vunpack.c.h.bf16 %v8892_v19  ;;  %v2750_v19 = vunpack.c.h.bf16 %v8851_v43  ;;  %v3473_v43 = vpop.permute.xlu0 %3472 }
 0x430   :  { %3510 = vmatpush.msra.mxu0 %v3387_v53  ;;  %v2054_v18 = vadd.f32 %v10955_v2, %v2033_v27  ;;  %2987 = vmatpush.msra.mxu2 %v2762_v35  ;;  %v9063_v53 = vld [vmem:[#allocation2 + $0xfb8] sm:$0xff]  ;;  %v3143_v2 = vunpack.c.l.bf16 %v8879_v3 }
 0x431   :  { %3301 = vmatpush.msrb.mxu3 %v3106_v45  ;;  %3536 = vmatpush.msra.mxu1 %v3444_v9  ;;  %v3436_v45 = vunpack.c.h.bf16 %v8900_v40  ;;  %v2373_v35 = vpop.f32.mrf.mxu3  ;;  %v3458_v9 = vunpack.c.h.bf16 %v9055_v57  ;;  %v2746_v40 = vunpack.c.h.bf16 %v8862_v36  ;;  %v9073_v27 = vld [vmem:[#allocation2 + $0xa98] sm:$0xff] }
 0x432   :  { %3511 = vmatpush.msra.mxu0 %v3383_v60  ;;  %v2059_v34 = vadd.f32 %v2054_v18, %v1739_v51  ;;  %2988 = vmatpush.msra.mxu2 %v2758_v28  ;;  %v9067_v60 = vld [vmem:[#allocation2 + $0xd60] sm:$0xff]  ;;  %v9069_v28 = vpop.permute.xlu2 %3474  ;;  %v3454_v51 = vunpack.c.h.bf16 %v9063_v53 }
 0x433   :  { %3302 = vmatpush.msrb.mxu3 %v3102_v21  ;;  %v2353_v25 = vpop.f32.mrf.mxu1  ;;  %3537 = vmatpush.msra.mxu1 %v3440_v55  ;;  %v3090_v21 = vunpack.c.h.bf16 %v9057_v52  ;;  %v3086_v36 = vunpack.c.h.bf16 %v9067_v60 }
 0x434   :  { %5888 = vmatpush.msk.msrb.mxu0 %vm1563_vm9, %v3466_v0  ;;  %v2374_v18 = vadd.f32 %v2373_v35, %v2353_v25  ;;  %2989 = vmatpush.msra.mxu2 %v2754_v16  ;;  %v3432_v0 = vunpack.c.h.bf16 %v8914_v6  ;;  %v3467_v6 = vrot.slane %v7811_v63, 6  ;;  %v3476_v16 = vsel %vm1552_vm10, %v3473_v43, %v9069_v28  ;;  %v9089_v25 = vld [vmem:[#allocation2 + $0x3f0] sm:$0xff]  ;;  %v9110_v43 = vld [vmem:[#allocation2 + $0x2a8] sm:$0xff] }
 0x435   :  { %3303 = vmatpush.msrb.mxu3 %v3098_v62  ;;  %4430 = vrot.lane.b32.xlu0 %v7821_v33, %s5997_s0  ;;  %v9078_v62 = vld [vmem:[#allocation2 + $0xb08] sm:$0xff]  ;;  %v3763_v35 = vunpack.c.l.bf16 %v9089_v25 }
 0x436   :  { %3648 = vmatpush.msrb.mxu0 %v3462_v12  ;;  %v9080_v55 = vadd.f32 %v2374_v18, %v2059_v34  ;;  %2990 = vmatpush.msra.mxu2 %v2750_v19  ;;  %v3428_v12 = vunpack.c.h.bf16 %v8922_v37  ;;  %v3139_v34 = vunpack.c.l.bf16 %v8885_v42  ;;  %v3082_v3 = vunpack.c.h.bf16 %v9078_v62  ;;  %v9093_v19 = vld [vmem:[#allocation2 + $0x5a0] sm:$0xff]  ;;  %v9104_v42 = vld [vmem:[#allocation2 + $0xe78] sm:$0xff] }
 0x437   :  { %3304 = vmatpush.msrb.mxu3 %v3094_v7  ;;  %3538 = vmatpush.msra.mxu1 %v3436_v45  ;;  %v3450_v7 = vunpack.c.h.bf16 %v9073_v27  ;;  %v9096_v45 = vld [vmem:[#allocation2 + $0xf90] sm:$0xff]  ;;  %v9100_v37 = vsel %vm1556_vm11, %v3467_v6, %v3476_v16  ;;  %v3078_v18 = vunpack.c.h.bf16 %v9093_v19  ;;  %v3416_v6 = vunpack.c.h.bf16 %v8947_v56 }
 0x438   :  { %3649 = vmatpush.msrb.mxu0 %v3458_v9  ;;  %2991 = vmatpush.msra.mxu2 %v2746_v40  ;;  %v3424_v9 = vunpack.c.h.bf16 %v8929_v14  ;;  %v3759_v40 = vunpack.c.l.bf16 %v9096_v45  ;;  %v3131_v14 = vunpack.c.l.bf16 %v8906_v32  ;;  %v3412_v56 = vunpack.c.h.bf16 %v8959_v11 }
 0x439   :  { %3305 = vmatpush.msrb.mxu3 %v3090_v21  ;;  %3539 = vmatpush.msra.mxu1 %v3432_v0  ;;  %v9106_v21 = vpop.f32.mrf.mxu0  ;;  %v3420_v0 = vunpack.c.h.bf16 %v8941_v50  ;;  %v3127_v50 = vunpack.c.l.bf16 %v8920_v41  ;;  %v3465_v11 = vunpack.c.l.bf16 %v9034_v8  ;;  %v3113_v8 = vunpack.c.l.bf16 %v8997_v48 }
 0x43a   :  { %3650 = vmatpush.msrb.mxu0 %v3454_v51  ;;  %2992 = vmatmul.f32.vlgmr.msra.gmra.mxu2 %v8797_v24  ;;  %v3135_v24 = vunpack.c.l.bf16 %v8896_v31  ;;  %v9114_v51 = vld [vmem:[#allocation2 + $0x3e0] sm:$0xff]  ;;  %v3074_v31 = vunpack.c.h.bf16 %v9104_v42  ;;  %v10956_v48 = vrot.slane %v7814_v13, 6 }
 0x43b   :  { %5874 = vmatpush.msk.msrb.mxu2 %vm1563_vm9, %v3143_v2  ;;  %3306 = vmatpush.msrb.mxu3 %v3086_v36  ;;  %v9121_v2 = vld [vmem:[#allocation2 + $0x8c0] sm:$0xff]  ;;  %v3755_v36 = vunpack.c.l.bf16 %v9110_v43  ;;  %v3070_v16 = vunpack.c.h.bf16 %v9114_v51 }
 0x43c   :  { %3540 = vmatpush.msra.mxu1 %v3428_v12  ;;  %3651 = vmatpush.msrb.mxu0 %v3450_v7  ;;  %v9127_v12 = vld [vmem:[#allocation2 + $0x2f8] sm:$0xff]  ;;  %v9129_v7 = vld [vmem:[#allocation2 + $0x508] sm:$0xff]  ;;  %v3751_v32 = vunpack.c.l.bf16 %v9121_v2 }
 0x43d   :  { %3208 = vmatpush.msrb.mxu2 %v3139_v34  ;;  %3307 = vmatpush.msrb.mxu3 %v3082_v3  ;;  %v3125_v34 = vunpack.c.l.bf16 %v8966_v1  ;;  %v3066_v41 = vunpack.c.h.bf16 %v9127_v12  ;;  %v3747_v3 = vunpack.c.l.bf16 %v9129_v7  ;;  %v3408_v1 = vunpack.c.h.bf16 %v8968_v61 }
 0x43e   :  { %3512 = vmatmul.f32.vlgmr.msra.gmra.mxu0 %v9100_v37  ;;  %5879 = vmatmul.msk.f32.vlgmr.msra.gmra.mxu3 %vm1559_vm12, %v8936_v29 }
 0x43f   :  { %3815 = vmatpush.msra.mxu0 %v3763_v35  ;;  %3541 = vmatpush.msra.mxu1 %v3424_v9  ;;  %v9136_v35 = vld [vmem:[#allocation2 + $0xdc0] sm:$0xff]  ;;  %v3121_v9 = vunpack.c.l.bf16 %v8975_v59  ;;  %v3404_v59 = vunpack.c.h.bf16 %v8977_v22 }
 0x440   :  { %3209 = vmatpush.msrb.mxu2 %v3135_v24  ;;  %3308 = vmatpush.msrb.mxu3 %v3078_v18  ;;  %v9143_v24 = vld [vmem:[#allocation2 + $0xfa8] sm:$0xff] }
 0x441   :  { %3816 = vmatpush.msra.mxu0 %v3759_v40  ;;  %3542 = vmatpush.msra.mxu1 %v3420_v0  ;;  %v9145_v18 = vpop.f32.mrf.mxu0  ;;  %v3743_v40 = vunpack.c.l.bf16 %v9136_v35  ;;  %v3117_v0 = vunpack.c.l.bf16 %v8986_v20  ;;  %v3739_v61 = vunpack.c.l.bf16 %v9143_v24  ;;  %v3400_v20 = vunpack.c.h.bf16 %v8988_v5 }
 0x442   :  { %3210 = vmatpush.msrb.mxu2 %v3131_v14  ;;  %3309 = vmatpush.msrb.mxu3 %v3074_v31  ;;  %v9151_v14 = vld [vmem:[#allocation2 + $0x8b0] sm:$0xff]  ;;  %v3457_v31 = vunpack.c.l.bf16 %v9055_v57  ;;  %v3396_v57 = vunpack.c.h.bf16 %v8999_v23 }
 0x443   :  { %3817 = vmatpush.msra.mxu0 %v3755_v36  ;;  %3543 = vmatpush.msra.mxu1 %v3416_v6  ;;  %v9159_v36 = vld [vmem:[#allocation2 + $0x210] sm:$0xff]  ;;  %v3735_v22 = vunpack.c.l.bf16 %v9151_v14  ;;  %v3453_v6 = vunpack.c.l.bf16 %v9063_v53  ;;  %v3449_v53 = vunpack.c.l.bf16 %v9073_v27 }
 0x444   :  { %3211 = vmatpush.msrb.mxu2 %v3127_v50  ;;  %3310 = vmatpush.msrb.mxu3 %v3070_v16  ;;  %v9168_v50 = vsel %vm1556_vm11, %v10956_v48, %v9069_v28  ;;  %v3731_v5 = vunpack.c.l.bf16 %v9159_v36  ;;  %v9172_v16 = vld [vmem:[#allocation2 + $0x8c8] sm:$0xff]  ;;  %v3392_v28 = vunpack.c.h.bf16 %v9009_v44  ;;  %v3101_v44 = vunpack.c.l.bf16 %v9025_v26 }
 0x445   :  { %3818 = vmatpush.msra.mxu0 %v3751_v32  ;;  %5875 = vmatmul.msk.f32.vlgmr.msrb.gmra.mxu2 %vm1559_vm12, %v8936_v29  ;;  %v3461_v29 = vunpack.c.l.bf16 %v9042_v10  ;;  %v3109_v10 = vunpack.c.l.bf16 %v9007_v54  ;;  %v9174_v32 = vld [vmem:[#allocation2 + $0x4d0] sm:$0xff]  ;;  %v3105_v54 = vunpack.c.l.bf16 %v9015_v46  ;;  %v3384_v26 = vunpack.c.h.bf16 %v9027_v15 }
 0x446   :  { %3256 = vmatpush.msra.mxu2 %v3125_v34  ;;  %3544 = vmatpush.msra.mxu1 %v3412_v56  ;;  %v9179_v34 = vld [vmem:[#allocation2 + $0x3d8] sm:$0xff]  ;;  %v9181_v56 = vld [vmem:[#allocation2 + $0x390] sm:$0xff] }
 0x447   :  { %3311 = vmatpush.msrb.mxu3 %v3066_v41  ;;  %3819 = vmatpush.msra.mxu0 %v3747_v3  ;;  %v3446_v41 = vunpack.c.h.bf16 %v9172_v16  ;;  %v3727_v3 = vunpack.c.l.bf16 %v9174_v32 }
 0x448   :  { %3257 = vmatpush.msra.mxu2 %v3121_v9  ;;  %3312 = vmatmul.f32.vlgmr.msrb.gmra.mxu3 %v8888_v17  ;;  %v3388_v9 = vunpack.c.h.bf16 %v9017_v49  ;;  %v3097_v49 = vunpack.c.l.bf16 %v9038_v4  ;;  %v9213_v4 = vld [vmem:[#allocation2 + $0xca8] sm:$0xff] }
 0x449   :  { %3545 = vmatpush.msra.mxu1 %v3408_v1  ;;  %5886 = vmatpush.msk.msra.mxu3 %vm1563_vm9, %v3465_v11  ;;  %v2653_v27 = vpop.f32.mrf.mxu0  ;;  %v9190_v1 = vld [vmem:[#allocation2 + $0xa40] sm:$0xff]  ;;  %v9192_v11 = vld [vmem:[#allocation2 + $0xc18] sm:$0xff] }
 0x44a   :  { %3820 = vmatpush.msra.mxu0 %v3743_v40  ;;  %3258 = vmatpush.msra.mxu2 %v3117_v0  ;;  %v3442_v40 = vunpack.c.h.bf16 %v9179_v34  ;;  %v3723_v0 = vunpack.c.l.bf16 %v9181_v56 }
 0x44b   :  { %3546 = vmatpush.msra.mxu1 %v3404_v59  ;;  %3608 = vmatpush.msra.mxu3 %v3461_v29  ;;  %v9196_v59 = vld [vmem:[#allocation2 + $0xc90] sm:$0x11]  ;;  %v3438_v29 = vunpack.c.h.bf16 %v9190_v1 }
 0x44c   :  { %3821 = vmatpush.msra.mxu0 %v3739_v61  ;;  %3259 = vmatpush.msra.mxu2 %v3113_v8  ;;  %v3719_v61 = vunpack.c.l.bf16 %v9192_v11  ;;  %v9207_v8 = vld [vmem:[#allocation2 + $0x630] sm:$0xff] }
 0x44d   :  { %3547 = vmatpush.msra.mxu1 %v3400_v20  ;;  %3609 = vmatpush.msra.mxu3 %v3457_v31  ;;  %v9209_v20 = vld [vmem:[#allocation2 + $0xac0] sm:$0xff]  ;;  %v3783_v31 = vunpack.c.l.bf16 %v9196_v59  ;;  %v3434_v48 = vunpack.c.h.bf16 %v9207_v8 }
 0x44e   :  { %3822 = vmatpush.msra.mxu0 %v3735_v22  ;;  %3260 = vmatpush.msra.mxu2 %v3109_v10  ;;  %v2553_v23 = vpop.f32.mrf.mxu3  ;;  %v3093_v22 = vunpack.c.l.bf16 %v9048_v38  ;;  %v9216_v10 = vld [vmem:[#allocation2 + $0xef0] sm:$0xff] }
 0x44f   :  { %5883 = vmatmul.msk.f32.vlgmr.msrb.gmra.mxu1 %vm1559_vm12, %v9168_v50  ;;  %3610 = vmatpush.msra.mxu3 %v3453_v6  ;;  %v2574_v46 = vadd.f32 %v9106_v21, %v2553_v23  ;;  %v9218_v6 = vld [vmem:[#allocation2 + $0xc28] sm:$0xff] }
 0x450   :  { %3548 = vmatpush.msra.mxu1 %v3396_v57  ;;  %3823 = vmatpush.msra.mxu0 %v3731_v5  ;;  %v3715_v57 = vunpack.c.l.bf16 %v9209_v20  ;;  %v9222_v5 = vld [vmem:[#allocation2 + $0x2d8] sm:$0xff] }
 0x451   :  { %3261 = vmatpush.msra.mxu2 %v3105_v54  ;;  %3611 = vmatpush.msra.mxu3 %v3449_v53  ;;  %v9199_v21 = vadd.f32 %v2574_v46, %v8864_v39  ;;  %v3089_v54 = vunpack.c.l.bf16 %v9057_v52  ;;  %v9227_v53 = vld [vmem:[#allocation2 + $0xe68] sm:$0xff]  ;;  %v3794_v46 = vpop.permute.xlu1 %3793  ;;  %v3775_v52 = vunpack.c.l.bf16 %v9222_v5 }
 0x452   :  { %3549 = vmatpush.msra.mxu1 %v3392_v28  ;;  %4432 = vrot.lane.b32.xlu2 %v7825_v47, %s5997_s0  ;;  %v9229_v28 = vld [vmem:[#allocation2 + $0xf50] sm:$0xff] }
 0x453   :  { %10957 = vst [vmem:[#allocation8_spill] sm:$0xff] %v9199_v21  ;;  %3616 = vmatpush.msrb.mxu3 %v3446_v41  ;;  %3824 = vmatpush.msra.mxu0 %v3727_v3  ;;  %v2313_v39 = vpop.f32.mrf.mxu2  ;;  %v3430_v41 = vunpack.c.h.bf16 %v9216_v10  ;;  %v3711_v3 = vunpack.c.l.bf16 %v9218_v6  ;;  %v9257_v21 = vld [vmem:[#allocation2 + $0x800] sm:$0x11] }
 0x454   :  { %3262 = vmatpush.msra.mxu2 %v3101_v44  ;;  %3550 = vmatpush.msra.mxu1 %v3388_v9  ;;  %v2334_v15 = vadd.f32 %v9020_v58, %v2313_v39  ;;  %v3779_v58 = vunpack.c.l.bf16 %v9213_v4  ;;  %v3085_v9 = vunpack.c.l.bf16 %v9067_v60 }
 0x455   :  { %3617 = vmatpush.msrb.mxu3 %v3442_v40  ;;  %3825 = vmatpush.msra.mxu0 %v3723_v0  ;;  %v3792_v40 = vpop.permute.xlu2 %3791  ;;  %v9241_v0 = vld [vmem:[#allocation2 + $0xed8] sm:$0xff] }
 0x456   :  { %3263 = vmatpush.msra.mxu2 %v3097_v49  ;;  %3551 = vmatpush.msra.mxu1 %v3384_v26  ;;  %v2378_v38 = vadd.f32 %v2334_v15, %v8909_v30  ;;  %v9234_v30 = vld [vmem:[#allocation2 + $0xf20] sm:$0xff]  ;;  %v9243_v49 = vld [vmem:[#allocation2 + $0xf70] sm:$0xff]  ;;  %v2673_v26 = vpop.f32.mrf.mxu0 }
 0x457   :  { %3618 = vmatpush.msrb.mxu3 %v3438_v29  ;;  %3826 = vmatpush.msra.mxu0 %v3719_v61  ;;  %v2633_v23 = vpop.f32.mrf.mxu1  ;;  %v3426_v29 = vunpack.c.h.bf16 %v9227_v53  ;;  %v9247_v61 = vld [vmem:[#allocation2 + $0xa58] sm:$0xff]  ;;  %v3771_v60 = vunpack.c.l.bf16 %v9234_v30 }
 0x458   :  { %5890 = vmatpush.msk.msrb.mxu1 %vm1563_vm9, %v3783_v31  ;;  %3264 = vmatpush.msra.mxu2 %v3093_v22  ;;  %v2654_v44 = vadd.f32 %v2653_v27, %v2633_v23  ;;  %v3707_v27 = vunpack.c.l.bf16 %v9229_v28  ;;  %v3081_v31 = vunpack.c.l.bf16 %v9078_v62  ;;  %v3787_v22 = vrot.slane %v7811_v63, 7  ;;  %v9263_v63 = vld [vmem:[#allocation2 + $0xf80] sm:$0xff] }
 0x459   :  { %3552 = vmatmul.f32.vlgmr.msra.gmra.mxu1 %v9100_v37  ;;  %5889 = vmatmul.msk.f32.vlgmr.msrb.gmra.mxu0 %vm1559_vm12, %v9168_v50  ;;  %v3703_v23 = vunpack.c.l.bf16 %v9243_v49  ;;  %v3077_v62 = vunpack.c.l.bf16 %v9093_v19  ;;  %v3764_v19 = vunpack.c.h.bf16 %v9089_v25  ;;  %v4749_v25 = vrot.slane %v7825_v47, 1 }
 0x45a   :  { %3619 = vmatpush.msrb.mxu3 %v3434_v48  ;;  %3827 = vmatpush.msra.mxu0 %v3715_v57  ;;  %v9249_v39 = vadd.f32 %v2654_v44, %v2378_v38  ;;  %v3795_v48 = vsel %vm1552_vm10, %v3792_v40, %v3794_v46  ;;  %v3422_v57 = vunpack.c.h.bf16 %v9241_v0  ;;  %v9278_v40 = vld [vmem:[#allocation2 + $0x4b0] sm:$0xff] }
 0x45b   :  { %3847 = vmatpush.msrb.mxu1 %v3779_v58  ;;  %3265 = vmatpush.msra.mxu2 %v3089_v54  ;;  %v2693_v15 = vpop.f32.mrf.mxu3  ;;  %v3767_v58 = vunpack.c.l.bf16 %v9247_v61  ;;  %v9261_v54 = vld [vmem:[#allocation2 + $0x148] sm:$0xff] }
 0x45c   :  { %3620 = vmatpush.msrb.mxu3 %v3430_v41  ;;  %3828 = vmatpush.msra.mxu0 %v3711_v3  ;;  %v2694_v38 = vadd.f32 %v2693_v15, %v2673_v26  ;;  %v10958_v3 = vrot.slane %v7814_v13, 7  ;;  %v3073_v13 = vunpack.c.l.bf16 %v9104_v42  ;;  %v3782_v26 = vunpack.c.h.bf16 %v9263_v63 }
 0x45d   :  { %3848 = vmatpush.msrb.mxu1 %v3775_v52  ;;  %3266 = vmatpush.msra.mxu2 %v3085_v9  ;;  %v9274_v52 = vsel %vm1556_vm11, %v3787_v22, %v3795_v48  ;;  %v3786_v9 = vunpack.c.h.bf16 %v9257_v21  ;;  %v3756_v42 = vunpack.c.h.bf16 %v9110_v43  ;;  %v9300_v48 = vld [vmem:[#allocation2 + $0x6b0] sm:$0xff] }
 0x45e   :  { %3621 = vmatpush.msrb.mxu3 %v3426_v29  ;;  %3829 = vmatpush.msra.mxu0 %v3707_v27  ;;  %v9266_v41 = vadd.f32 %v2694_v38, %v9080_v55  ;;  %v9271_v44 = vsel %vm1556_vm11, %v10958_v3, %v3794_v46  ;;  %v3418_v55 = vunpack.c.h.bf16 %v9261_v54  ;;  %v3760_v46 = vunpack.c.h.bf16 %v9096_v45  ;;  %v9284_v29 = vld [vmem:[#allocation2 + $0x208] sm:$0xff]  ;;  %v9286_v27 = vld [vmem:[#allocation2 + $0x858] sm:$0xff]  ;;  %v9304_v38 = vld [vmem:[#allocation2 + $0x6f0] sm:$0xff] }
 0x45f   :  { %3849 = vmatpush.msrb.mxu1 %v3771_v60  ;;  %3267 = vmatpush.msra.mxu2 %v3081_v31  ;;  %v3414_v60 = vunpack.c.h.bf16 %v9278_v40  ;;  %v3069_v45 = vunpack.c.l.bf16 %v9114_v51  ;;  %v9296_v31 = vld [vmem:[#allocation2 + $0xb58] sm:$0xff]  ;;  %v3778_v22 = vunpack.c.h.bf16 %v9284_v29  ;;  %v3410_v15 = vunpack.c.h.bf16 %v9286_v27  ;;  %v9308_v51 = vld [vmem:[#allocation2 + $0xbc8] sm:$0xff] }
 0x460   :  { %3622 = vmatpush.msrb.mxu3 %v3422_v57  ;;  %3830 = vmatpush.msra.mxu0 %v3703_v23  ;;  %v3065_v57 = vunpack.c.l.bf16 %v9127_v12  ;;  %v3752_v23 = vunpack.c.h.bf16 %v9121_v2  ;;  %v3774_v43 = vunpack.c.h.bf16 %v9296_v31  ;;  %v3406_v3 = vunpack.c.h.bf16 %v9300_v48 }
 0x461   :  { %3850 = vmatpush.msrb.mxu1 %v3767_v58  ;;  %3268 = vmatpush.msra.mxu2 %v3077_v62  ;;  %v10959_v58 = vld [vmem:[#allocation11_spill] sm:$0xff]  ;;  %v3748_v2 = vunpack.c.h.bf16 %v9129_v7  ;;  %v3770_v12 = vunpack.c.h.bf16 %v9304_v38  ;;  %v3744_v7 = vunpack.c.h.bf16 %v9136_v35  ;;  %v9337_v35 = vld [vmem:[#allocation2 + $0x4f0] sm:$0xff] }
 0x462   :  { %3831 = vmatmul.f32.vlgmr.msra.gmra.mxu0 %v9274_v52  ;;  %5891 = vmatmul.msk.f32.vlgmr.msrb.gmra.mxu1 %vm1559_vm12, %v9271_v44  ;;  %v3464_v62 = vunpack.c.h.bf16 %v10959_v58  ;;  %v9335_v58 = vld [vmem:[#allocation2 + $0x120] sm:$0xff] }
 0x463   :  { %3855 = vmatpush.msra.mxu1 %v3764_v19  ;;  %5896 = vmatpush.msk.msrb.mxu0 %vm1563_vm9, %v3786_v9  ;;  %v9312_v19 = vld [vmem:[#allocation2 + $0xb90] sm:$0xff] }
 0x464   :  { %3623 = vmatpush.msrb.mxu3 %v3418_v55  ;;  %3269 = vmatpush.msra.mxu2 %v3073_v13  ;;  %v10960_v9 = vld [vmem:[#allocation12_spill] sm:$0xff]  ;;  %v3402_v13 = vunpack.c.h.bf16 %v9308_v51 }
 0x465   :  { %3856 = vmatpush.msra.mxu1 %v3760_v46  ;;  %3967 = vmatpush.msrb.mxu0 %v3782_v26  ;;  %v3460_v55 = vunpack.c.h.bf16 %v10960_v9  ;;  %v9318_v46 = vld [vmem:[#allocation2 + $0x1a8] sm:$0xff]  ;;  %v9320_v26 = vld [vmem:[#allocation2 + $0x78] sm:$0xff]  ;;  %v9345_v9 = vld [vmem:[#allocation2 + $0x530] sm:$0xff] }
 0x466   :  { %4752 = vrot.lane.b32.xlu1 %v4749_v25, %s5997_s0  ;;  %3624 = vmatpush.msrb.mxu3 %v3414_v60  ;;  %v4082_v25 = vunpack.c.l.bf16 %v9312_v19  ;;  %v10961_v60 = vld [vmem:[#allocation13_spill] sm:$0xff] }
 0x467   :  { %3270 = vmatpush.msra.mxu2 %v3069_v45  ;;  %3857 = vmatpush.msra.mxu1 %v3756_v42  ;;  %v3456_v45 = vunpack.c.h.bf16 %v10961_v60  ;;  %v9327_v42 = vld [vmem:[#allocation2 + $0x3e8] sm:$0xff]  ;;  %v3732_v60 = vunpack.c.h.bf16 %v9159_v36  ;;  %v3728_v36 = vunpack.c.h.bf16 %v9174_v32  ;;  %v3781_v32 = vunpack.c.l.bf16 %v9263_v63 }
 0x468   :  { %3968 = vmatpush.msrb.mxu0 %v3778_v22  ;;  %3625 = vmatpush.msrb.mxu3 %v3410_v15  ;;  %v9329_v22 = vld [vmem:[#allocation2 + $0x8f0] sm:$0xff]  ;;  %v3398_v15 = vunpack.c.h.bf16 %v9318_v46 }
 0x469   :  { %3271 = vmatpush.msra.mxu2 %v3065_v57  ;;  %3858 = vmatpush.msra.mxu1 %v3752_v23  ;;  %v4078_v57 = vunpack.c.l.bf16 %v9320_v26  ;;  %v10962_v23 = vld [vmem:[#allocation14_spill] sm:$0xff] }
 0x46a   :  { %3969 = vmatpush.msrb.mxu0 %v3774_v43  ;;  %3272 = vmatmul.f32.vlgmr.msra.gmra.mxu2 %v8888_v17  ;;  %v3740_v17 = vunpack.c.h.bf16 %v9143_v24  ;;  %v3452_v43 = vunpack.c.h.bf16 %v10962_v23  ;;  %v9361_v23 = vld [vmem:[#allocation2 + $0xaa8] sm:$0xff] }
 0x46b   :  { %5884 = vmatpush.msk.msrb.mxu2 %vm1563_vm9, %v3464_v62  ;;  %3626 = vmatpush.msrb.mxu3 %v3406_v3  ;;  %v3394_v62 = vunpack.c.h.bf16 %v9327_v42  ;;  %v4074_v3 = vunpack.c.l.bf16 %v9329_v22 }
 0x46c   :  { %3859 = vmatpush.msra.mxu1 %v3748_v2  ;;  %3970 = vmatpush.msrb.mxu0 %v3770_v12  ;;  %v3736_v2 = vunpack.c.h.bf16 %v9151_v14  ;;  %v10963_v12 = vld [vmem:[#allocation15_spill] sm:$0xff]  ;;  %v3445_v14 = vunpack.c.l.bf16 %v9172_v16  ;;  %v3785_v16 = vunpack.c.l.bf16 %v9257_v21  ;;  %v3433_v21 = vunpack.c.l.bf16 %v9207_v8  ;;  %v10964_v8 = vld [vmem:[#allocation10_spill] sm:$0xff] }
 0x46d   :  { %3568 = vmatpush.msrb.mxu2 %v3460_v55  ;;  %3627 = vmatpush.msrb.mxu3 %v3402_v13  ;;  %v3448_v24 = vunpack.c.h.bf16 %v10963_v12  ;;  %v3390_v55 = vunpack.c.h.bf16 %v9335_v58  ;;  %v4070_v13 = vunpack.c.l.bf16 %v9337_v35  ;;  %v3720_v12 = vunpack.c.h.bf16 %v9192_v11 }
 0x46e   :  { %4134 = vmatpush.msra.mxu0 %v4082_v25  ;;  %5887 = vmatmul.msk.f32.vlgmr.msra.gmra.mxu3 %vm1559_vm12, %v9168_v50  ;;  %v9349_v25 = vld [vmem:[#allocation2 + $0xd00] sm:$0xff]  ;;  %v3773_v11 = vunpack.c.l.bf16 %v9296_v31  ;;  %v10933_v31 = vrot.slane %v7821_v33, 1 }
 0x46f   :  { %3860 = vmatpush.msra.mxu1 %v3744_v7  ;;  %3569 = vmatpush.msrb.mxu2 %v3456_v45  ;;  %v3386_v7 = vunpack.c.h.bf16 %v9345_v9  ;;  %v9354_v45 = vld [vmem:[#allocation2 + $0xa70] sm:$0xff] }
 0x470   :  { %3628 = vmatpush.msrb.mxu3 %v3398_v15  ;;  %4135 = vmatpush.msra.mxu0 %v4078_v57  ;;  %v9356_v15 = vpop.f32.mrf.mxu3  ;;  %v4066_v57 = vunpack.c.l.bf16 %v9349_v25 }
 0x471   :  { %3861 = vmatpush.msra.mxu1 %v3740_v17  ;;  %3570 = vmatpush.msrb.mxu2 %v3452_v43  ;;  %v3441_v17 = vunpack.c.l.bf16 %v9179_v34  ;;  %v4062_v43 = vunpack.c.l.bf16 %v9354_v45 }
 0x472   :  { %3629 = vmatpush.msrb.mxu3 %v3394_v62  ;;  %4136 = vmatpush.msra.mxu0 %v4074_v3  ;;  %v3437_v62 = vunpack.c.l.bf16 %v9190_v1  ;;  %v3724_v3 = vunpack.c.h.bf16 %v9181_v56  ;;  %v3777_v1 = vunpack.c.l.bf16 %v9284_v29 }
 0x473   :  { %3862 = vmatpush.msra.mxu1 %v3736_v2  ;;  %3571 = vmatpush.msrb.mxu2 %v3448_v24  ;;  %v9369_v2 = vld [vmem:[#allocation2 + $0x440] sm:$0xff] }
 0x474   :  { %3630 = vmatpush.msrb.mxu3 %v3390_v55  ;;  %4137 = vmatpush.msra.mxu0 %v4070_v13  ;;  %v9376_v24 = vld [vmem:[#allocation2 + $0x1a0] sm:$0xff]  ;;  %v4054_v63 = vunpack.c.l.bf16 %v9369_v2  ;;  %v3429_v55 = vunpack.c.l.bf16 %v9216_v10  ;;  %v3716_v13 = vunpack.c.h.bf16 %v9209_v20  ;;  %v3712_v10 = vunpack.c.h.bf16 %v9218_v6 }
 0x475   :  { %5885 = vmatmul.msk.f32.vlgmr.msrb.gmra.mxu2 %vm1559_vm12, %v9168_v50  ;;  %3863 = vmatpush.msra.mxu1 %v3732_v60  ;;  %v4058_v50 = vunpack.c.l.bf16 %v9361_v23  ;;  %v3421_v6 = vunpack.c.l.bf16 %v9241_v0  ;;  %v3704_v0 = vunpack.c.h.bf16 %v9243_v49  ;;  %v9428_v49 = vld [vmem:[#allocation2 + $0x130] sm:$0xff] }
 0x476   :  { %3576 = vmatpush.msra.mxu2 %v3445_v14  ;;  %3631 = vmatpush.msrb.mxu3 %v3386_v7  ;;  %v9387_v14 = vld [vmem:[#allocation2 + $0x10] sm:$0xff]  ;;  %v9389_v7 = vld [vmem:[#allocation2 + $0x138] sm:$0xff] }
 0x477   :  { %4138 = vmatpush.msra.mxu0 %v4066_v57  ;;  %3632 = vmatmul.f32.vlgmr.msrb.gmra.mxu3 %v9100_v37  ;;  %v2593_v34 = vpop.f32.mrf.mxu2  ;;  %v3425_v57 = vunpack.c.l.bf16 %v9227_v53  ;;  %v4046_v53 = vunpack.c.l.bf16 %v9389_v7 }
 0x478   :  { %3577 = vmatpush.msra.mxu2 %v3441_v17  ;;  %3864 = vmatpush.msra.mxu1 %v3728_v36  ;;  %v2614_v56 = vadd.f32 %v9145_v18, %v2593_v34  ;;  %v4050_v18 = vunpack.c.l.bf16 %v9376_v24  ;;  %v3769_v17 = vunpack.c.l.bf16 %v9304_v38  ;;  %v9395_v36 = vld [vmem:[#allocation2 + $0x730] sm:$0xff]  ;;  %v9403_v38 = vld [vmem:[#allocation2 + $0x258] sm:$0xff] }
 0x479   :  { %5894 = vmatpush.msk.msra.mxu3 %vm1563_vm9, %v3785_v16  ;;  %4139 = vmatpush.msra.mxu0 %v4062_v43  ;;  %v9397_v16 = vld [vmem:[#allocation2 + $0x788] sm:$0xff]  ;;  %v3762_v34 = vunpack.c.h.bf16 %v9395_v36 }
 0x47a   :  { %3578 = vmatpush.msra.mxu2 %v3437_v62  ;;  %3865 = vmatpush.msra.mxu1 %v3724_v3  ;;  %v2697_v60 = vadd.f32 %v2614_v56, %v10964_v8  ;;  %v3766_v62 = vunpack.c.h.bf16 %v9387_v14  ;;  %v3708_v3 = vunpack.c.h.bf16 %v9229_v28  ;;  %v3417_v28 = vunpack.c.l.bf16 %v9261_v54  ;;  %v9430_v54 = vld [vmem:[#allocation2 + $0x668] sm:$0xff] }
 0x47b   :  { %3927 = vmatpush.msra.mxu3 %v3781_v32  ;;  %4140 = vmatpush.msra.mxu0 %v4058_v50  ;;  %v2913_v29 = vpop.f32.mrf.mxu1  ;;  %v2933_v20 = vpop.f32.mrf.mxu3  ;;  %v9405_v32 = vld [vmem:[#allocation2 + $0x380] sm:$0xff]  ;;  %v3758_v56 = vunpack.c.h.bf16 %v9403_v38  ;;  %v3413_v8 = vunpack.c.l.bf16 %v9278_v40 }
 0x47c   :  { %3579 = vmatpush.msra.mxu2 %v3433_v21  ;;  %3866 = vmatpush.msra.mxu1 %v3720_v12  ;;  %v2934_v43 = vadd.f32 %v2933_v20, %v2913_v29  ;;  %v4042_v21 = vunpack.c.l.bf16 %v9397_v16  ;;  %v9411_v12 = vld [vmem:[#allocation2 + $0x9f8] sm:$0x11]  ;;  %v9440_v20 = vld [vmem:[#allocation2 + $0xda8] sm:$0xff] }
 0x47d   :  { %3928 = vmatpush.msra.mxu3 %v3777_v1  ;;  %4141 = vmatpush.msra.mxu0 %v4054_v63  ;;  %v4038_v1 = vunpack.c.l.bf16 %v9405_v32  ;;  %v9420_v63 = vld [vmem:[#allocation2 + $0xf30] sm:$0xff]  ;;  %v9434_v29 = vld [vmem:[#allocation2 + $0x718] sm:$0xff] }
 0x47e   :  { %3580 = vmatpush.msra.mxu2 %v3429_v55  ;;  %3867 = vmatpush.msra.mxu1 %v3716_v13  ;;  %v9407_v50 = vadd.f32 %v2934_v43, %v2697_v60  ;;  %v9422_v55 = vld [vmem:[#allocation2 + $0xdf8] sm:$0xff]  ;;  %v4102_v13 = vunpack.c.l.bf16 %v9411_v12  ;;  %v9426_v60 = vld [vmem:[#allocation2 + $0x388] sm:$0xff]  ;;  %10965 = vst [vmem:[#allocation9_spill] sm:$0xff] %v9434_v29  ;;  %v4030_v43 = vunpack.c.l.bf16 %v9430_v54 }
 0x47f   :  { %3929 = vmatpush.msra.mxu3 %v3773_v11  ;;  %4142 = vmatpush.msra.mxu0 %v4050_v18  ;;  %v3754_v11 = vunpack.c.h.bf16 %v9420_v63  ;;  %v4034_v18 = vunpack.c.l.bf16 %v9422_v55  ;;  %v4098_v40 = vunpack.c.l.bf16 %v9426_v60 }
 0x480   :  { %3581 = vmatpush.msra.mxu2 %v3425_v57  ;;  %3868 = vmatpush.msra.mxu1 %v3712_v10  ;;  %v3409_v57 = vunpack.c.l.bf16 %v9286_v27  ;;  %v9438_v10 = vld [vmem:[#allocation2 + $0xe20] sm:$0xff]  ;;  %v4094_v27 = vunpack.c.l.bf16 %v9434_v29 }
 0x481   :  { %3930 = vmatpush.msra.mxu3 %v3769_v17  ;;  %4750 = vrot.lane.b32.xlu2 %v10933_v31, %s5997_s0  ;;  %v3750_v17 = vunpack.c.h.bf16 %v9428_v49 }
 0x482   :  { %4143 = vmatpush.msra.mxu0 %v4046_v53  ;;  %3582 = vmatpush.msra.mxu2 %v3421_v6  ;;  %v3405_v53 = vunpack.c.l.bf16 %v9300_v48  ;;  %v4111_v6 = vpop.permute.xlu1 %4110  ;;  %v3401_v48 = vunpack.c.l.bf16 %v9308_v51  ;;  %v9471_v51 = vld [vmem:[#allocation2 + $0x568] sm:$0xff] }
 0x483   :  { %3935 = vmatpush.msrb.mxu3 %v3766_v62  ;;  %3869 = vmatpush.msra.mxu1 %v3708_v3  ;;  %v9445_v62 = vld [vmem:[#allocation2 + $0x9d8] sm:$0xff]  ;;  %v4113_v3 = vpop.permute.xlu0 %4112 }
 0x484   :  { %4144 = vmatpush.msra.mxu0 %v4042_v21  ;;  %3583 = vmatpush.msra.mxu2 %v3417_v28  ;;  %10966 = vst [vmem:[#allocation11_spill] sm:$0xff] %v9445_v62  ;;  %v9454_v21 = vld [vmem:[#allocation2 + $0x4c0] sm:$0xff]  ;;  %v3746_v28 = vunpack.c.h.bf16 %v9438_v10 }
 0x485   :  { %3936 = vmatpush.msrb.mxu3 %v3762_v34  ;;  %3870 = vmatpush.msra.mxu1 %v3704_v0  ;;  %v9452_v34 = vld [vmem:[#allocation2 + $0x2c8] sm:$0xff]  ;;  %v4026_v0 = vunpack.c.l.bf16 %v9440_v20 }
 0x486   :  { %4145 = vmatpush.msra.mxu0 %v4038_v1  ;;  %3584 = vmatpush.msra.mxu2 %v3413_v8  ;;  %v4090_v1 = vunpack.c.l.bf16 %v9445_v62  ;;  %v3742_v8 = vunpack.c.h.bf16 %v9452_v34  ;;  %v9520_v62 = vld [vmem:[#allocation2 + $0x998] sm:$0xff] }
 0x487   :  { %3937 = vmatpush.msrb.mxu3 %v3758_v56  ;;  %5898 = vmatpush.msk.msrb.mxu1 %vm1563_vm9, %v4102_v13  ;;  %v9458_v56 = vld [vmem:[#allocation2 + $0x7c0] sm:$0xff]  ;;  %v4114_v13 = vsel %vm1552_vm10, %v4111_v6, %v4113_v3  ;;  %v9479_v6 = vsel %vm1556_vm11, %v7821_v33, %v4113_v3  ;;  %v4101_v3 = vunpack.c.h.bf16 %v9471_v51 }
 0x488   :  { %3871 = vmatmul.f32.vlgmr.msra.gmra.mxu1 %v9274_v52  ;;  %5897 = vmatmul.msk.f32.vlgmr.msrb.gmra.mxu0 %vm1559_vm12, %v9271_v44  ;;  %10967 = vst [vmem:[#allocation12_spill] sm:$0xff] %v9458_v56  ;;  %v4086_v31 = vunpack.c.l.bf16 %v9458_v56 }
 0x489   :  { %3938 = vmatpush.msrb.mxu3 %v3754_v11  ;;  %4146 = vmatpush.msra.mxu0 %v4034_v18  ;;  %v4022_v11 = vunpack.c.l.bf16 %v9454_v21  ;;  %v9465_v18 = vld [vmem:[#allocation2 + $0x2e8] sm:$0x11] }
 0x48a   :  { %4166 = vmatpush.msrb.mxu1 %v4098_v40  ;;  %3585 = vmatpush.msra.mxu2 %v3409_v57  ;;  %v3397_v40 = vunpack.c.l.bf16 %v9318_v46  ;;  %v9469_v57 = vld [vmem:[#allocation2 + $0x850] sm:$0xff]  ;;  %v4105_v46 = vunpack.c.h.bf16 %v9465_v18 }
 0x48b   :  { %3939 = vmatpush.msrb.mxu3 %v3750_v17  ;;  %4147 = vmatpush.msra.mxu0 %v4030_v43  ;;  %v10968_v17 = vld [vmem:[#allocation7_spill] sm:$0xff] }
 0x48c   :  { %4167 = vmatpush.msrb.mxu1 %v4094_v27  ;;  %3586 = vmatpush.msra.mxu2 %v3405_v53  ;;  %v9475_v43 = vsel %vm1556_vm11, %v10968_v17, %v4114_v13  ;;  %v4083_v27 = vunpack.c.h.bf16 %v9312_v19  ;;  %v3738_v53 = vunpack.c.h.bf16 %v9469_v57  ;;  %v4079_v13 = vunpack.c.h.bf16 %v9320_v26  ;;  %v9505_v19 = vld [vmem:[#allocation2 + $0xb10] sm:$0xff] }
 0x48d   :  { %3940 = vmatpush.msrb.mxu3 %v3746_v28  ;;  %4148 = vmatpush.msra.mxu0 %v4026_v0  ;;  %v3393_v28 = vunpack.c.l.bf16 %v9327_v42  ;;  %v9485_v0 = vld [vmem:[#allocation2 + $0x7b0] sm:$0xff] }
 0x48e   :  { %4168 = vmatpush.msrb.mxu1 %v4090_v1  ;;  %3587 = vmatpush.msra.mxu2 %v3401_v48  ;;  %v9489_v1 = vld [vmem:[#allocation2 + $0x4c8] sm:$0xff]  ;;  %v5069_v48 = vrot.slane %v7825_v47, 2  ;;  %v9496_v42 = vld [vmem:[#allocation2 + $0xd90] sm:$0xff]  ;;  %v3734_v26 = vunpack.c.h.bf16 %v9485_v0 }
 0x48f   :  { %3941 = vmatpush.msrb.mxu3 %v3742_v8  ;;  %4149 = vmatpush.msra.mxu0 %v4022_v11  ;;  %v9501_v8 = vld [vmem:[#allocation2] sm:$0xff]  ;;  %v4075_v11 = vunpack.c.h.bf16 %v9329_v22  ;;  %v3730_v47 = vunpack.c.h.bf16 %v9496_v42  ;;  %v4071_v22 = vunpack.c.h.bf16 %v9337_v35 }
 0x490   :  { %4169 = vmatpush.msrb.mxu1 %v4086_v31  ;;  %3588 = vmatpush.msra.mxu2 %v3397_v40  ;;  %v3389_v31 = vunpack.c.l.bf16 %v9335_v58  ;;  %v4097_v40 = vunpack.c.h.bf16 %v9489_v1  ;;  %v10969_v58 = vrot.slane %v7821_v33, 2 }
 0x491   :  { %4150 = vmatmul.f32.vlgmr.msra.gmra.mxu0 %v9475_v43  ;;  %5899 = vmatmul.msk.f32.vlgmr.msrb.gmra.mxu1 %vm1559_vm12, %v9479_v6 }
 0x492   :  { %4174 = vmatpush.msra.mxu1 %v4083_v27  ;;  %5904 = vmatpush.msk.msrb.mxu0 %vm1563_vm9, %v4105_v46  ;;  %v2973_v27 = vpop.f32.mrf.mxu0  ;;  %v3385_v46 = vunpack.c.l.bf16 %v9345_v9  ;;  %v3726_v9 = vunpack.c.h.bf16 %v9505_v19 }
 0x493   :  { %3942 = vmatpush.msrb.mxu3 %v3738_v53  ;;  %3589 = vmatpush.msra.mxu2 %v3393_v28  ;;  %v4093_v53 = vunpack.c.h.bf16 %v9501_v8  ;;  %v9515_v28 = vld [vmem:[#allocation2 + $0xb70] sm:$0xff] }
 0x494   :  { %4175 = vmatpush.msra.mxu1 %v4079_v13  ;;  %4286 = vmatpush.msrb.mxu0 %v4101_v3  ;;  %v2953_v56 = vpop.f32.mrf.mxu3  ;;  %v9517_v13 = vld [vmem:[#allocation2 + $0xce0] sm:$0xff]  ;;  %v4089_v29 = vunpack.c.h.bf16 %v9515_v28 }
 0x495   :  { %5070 = vrot.lane.b32.xlu1 %v10969_v58, %s5997_s0  ;;  %5072 = vrot.lane.b32.xlu0 %v5069_v48, %s5997_s0  ;;  %v2974_v3 = vadd.f32 %v2973_v27, %v2953_v56  ;;  %v3784_v58 = vunpack.c.h.bf16 %v9196_v59  ;;  %v4067_v48 = vunpack.c.h.bf16 %v9349_v25  ;;  %v3722_v56 = vunpack.c.h.bf16 %v9517_v13  ;;  %v9533_v59 = vld [vmem:[#allocation2 + $0x930] sm:$0xff]  ;;  %v9537_v25 = vld [vmem:[#allocation2 + $0x1f8] sm:$0xff]  ;;  %v9542_v27 = vld [vmem:[#allocation2 + $0x108] sm:$0xff] }
 0x496   :  { %3943 = vmatpush.msrb.mxu3 %v3734_v26  ;;  %3590 = vmatpush.msra.mxu2 %v3389_v31  ;;  %v9529_v26 = vld [vmem:[#allocation2 + $0x768] sm:$0xff]  ;;  %v3780_v31 = vunpack.c.h.bf16 %v9213_v4  ;;  %v4397_v4 = vunpack.c.l.bf16 %v9533_v59 }
 0x497   :  { %4176 = vmatpush.msra.mxu1 %v4075_v11  ;;  %4287 = vmatpush.msrb.mxu0 %v4097_v40  ;;  %v9525_v35 = vadd.f32 %v2974_v3, %v9249_v39  ;;  %v4401_v11 = vunpack.c.l.bf16 %v9520_v62  ;;  %v4063_v39 = vunpack.c.h.bf16 %v9354_v45  ;;  %v3776_v40 = vunpack.c.h.bf16 %v9222_v5 }
 0x498   :  { %3944 = vmatpush.msrb.mxu3 %v3730_v47  ;;  %3591 = vmatpush.msra.mxu2 %v3385_v46  ;;  %v3718_v47 = vunpack.c.h.bf16 %v9529_v26  ;;  %v9546_v46 = vld [vmem:[#allocation2 + $0x280] sm:$0xff]  ;;  %v3772_v45 = vunpack.c.h.bf16 %v9234_v30  ;;  %v4393_v5 = vunpack.c.l.bf16 %v9542_v27  ;;  %v9560_v30 = vld [vmem:[#allocation2 + $0x988] sm:$0xff] }
 0x499   :  { %4177 = vmatpush.msra.mxu1 %v4071_v22  ;;  %4288 = vmatpush.msrb.mxu0 %v4093_v53  ;;  %v3714_v22 = vunpack.c.h.bf16 %v9537_v25  ;;  %v9550_v53 = vld [vmem:[#allocation2 + $0xc00] sm:$0xff]  ;;  %v3710_v3 = vunpack.c.h.bf16 %v9546_v46 }
 0x49a   :  { %3592 = vmatmul.f32.vlgmr.msra.gmra.mxu2 %v9100_v37  ;;  %3945 = vmatpush.msrb.mxu3 %v3726_v9  ;;  %v4059_v37 = vunpack.c.h.bf16 %v9361_v23  ;;  %v3768_v23 = vunpack.c.h.bf16 %v9247_v61  ;;  %v9558_v9 = vld [vmem:[#allocation2 + $0x6d0] sm:$0xff] }
 0x49b   :  { %5892 = vmatpush.msk.msrb.mxu2 %vm1563_vm9, %v3784_v58  ;;  %4178 = vmatpush.msra.mxu1 %v4067_v48  ;;  %v4389_v48 = vunpack.c.l.bf16 %v9550_v53  ;;  %v3706_v61 = vunpack.c.h.bf16 %v9558_v9 }
 0x49c   :  { %4289 = vmatpush.msrb.mxu0 %v4089_v29  ;;  %3946 = vmatpush.msrb.mxu3 %v3722_v56  ;;  %v4055_v29 = vunpack.c.h.bf16 %v9369_v2  ;;  %v3765_v2 = vunpack.c.l.bf16 %v9387_v14  ;;  %v4104_v14 = vunpack.c.l.bf16 %v9465_v18  ;;  %v4096_v18 = vunpack.c.l.bf16 %v9489_v1 }
 0x49d   :  { %3887 = vmatpush.msrb.mxu2 %v3780_v31  ;;  %5895 = vmatmul.msk.f32.vlgmr.msra.gmra.mxu3 %vm1559_vm12, %v9271_v44  ;;  %v4051_v31 = vunpack.c.h.bf16 %v9376_v24  ;;  %v4047_v24 = vunpack.c.h.bf16 %v9389_v7  ;;  %v3753_v7 = vunpack.c.l.bf16 %v9420_v63  ;;  %v4092_v63 = vunpack.c.l.bf16 %v9501_v8 }
 0x49e   :  { %4454 = vmatpush.msra.mxu0 %v4401_v11  ;;  %4179 = vmatpush.msra.mxu1 %v4063_v39  ;;  %v4385_v39 = vunpack.c.l.bf16 %v9560_v30  ;;  %v3745_v1 = vunpack.c.l.bf16 %v9438_v10  ;;  %v3741_v10 = vunpack.c.l.bf16 %v9452_v34  ;;  %v4023_v34 = vunpack.c.h.bf16 %v9454_v21  ;;  %v9635_v21 = vld [vmem:[#allocation2 + $0x490] sm:$0xff] }
 0x49f   :  { %3888 = vmatpush.msrb.mxu2 %v3776_v40  ;;  %3947 = vmatpush.msrb.mxu3 %v3718_v47  ;;  %v3253_v58 = vpop.f32.mrf.mxu3  ;;  %v9567_v40 = vld [vmem:[#allocation2 + $0x140] sm:$0xff]  ;;  %v3761_v47 = vunpack.c.l.bf16 %v9395_v36  ;;  %v4043_v36 = vunpack.c.h.bf16 %v9397_v16 }
 0x4a0   :  { %4455 = vmatpush.msra.mxu0 %v4397_v4  ;;  %4180 = vmatpush.msra.mxu1 %v4059_v37  ;;  %v3233_v56 = vpop.f32.mrf.mxu1  ;;  %v9577_v37 = vld [vmem:[#allocation2 + $0xe28] sm:$0xff] }
 0x4a1   :  { %3889 = vmatpush.msrb.mxu2 %v3772_v45  ;;  %3948 = vmatpush.msrb.mxu3 %v3714_v22  ;;  %v3254_v11 = vadd.f32 %v3253_v58, %v3233_v56  ;;  %v4381_v45 = vunpack.c.l.bf16 %v9567_v40  ;;  %v3757_v22 = vunpack.c.l.bf16 %v9403_v38  ;;  %v4039_v38 = vunpack.c.h.bf16 %v9405_v32  ;;  %v9599_v58 = vld [vmem:[#allocation2 + $0x348] sm:$0xff]  ;;  %v9605_v56 = vld [vmem:[#allocation2 + $0x198] sm:$0xff] }
 0x4a2   :  { %4456 = vmatpush.msra.mxu0 %v4393_v5  ;;  %4181 = vmatpush.msra.mxu1 %v4055_v29  ;;  %v9583_v5 = vld [vmem:[#allocation2 + $0x588] sm:$0xff] }
 0x4a3   :  { %3890 = vmatpush.msrb.mxu2 %v3768_v23  ;;  %3949 = vmatpush.msrb.mxu3 %v3710_v3  ;;  %v9571_v4 = vadd.f32 %v3254_v11, %v9407_v50  ;;  %v4100_v50 = vunpack.c.l.bf16 %v9471_v51  ;;  %v9591_v29 = vld [vmem:[#allocation2 + $0x7c8] sm:$0xff]  ;;  %v4373_v16 = vunpack.c.l.bf16 %v9583_v5  ;;  %v3749_v51 = vunpack.c.l.bf16 %v9428_v49 }
 0x4a4   :  { %4457 = vmatpush.msra.mxu0 %v4389_v48  ;;  %5893 = vmatmul.msk.f32.vlgmr.msrb.gmra.mxu2 %vm1559_vm12, %v9271_v44  ;;  %v4377_v44 = vunpack.c.l.bf16 %v9577_v37  ;;  %v4035_v23 = vunpack.c.h.bf16 %v9422_v55  ;;  %v9597_v3 = vld [vmem:[#allocation2 + $0xf48] sm:$0xff]  ;;  %v4369_v32 = vunpack.c.l.bf16 %v9591_v29  ;;  %v4031_v49 = vunpack.c.h.bf16 %v9430_v54  ;;  %v9607_v55 = vld [vmem:[#allocation2 + $0xe90] sm:$0xff] }
 0x4a5   :  { %10970 = vst [vmem:[#allocation13_spill] sm:$0xff] %v9571_v4  ;;  %3895 = vmatpush.msra.mxu2 %v3765_v2  ;;  %4182 = vmatpush.msra.mxu1 %v4051_v31  ;;  %v4088_v48 = vunpack.c.l.bf16 %v9515_v28  ;;  %v4085_v8 = vunpack.c.h.bf16 %v9597_v3  ;;  %v4365_v2 = vunpack.c.l.bf16 %v9599_v58  ;;  %v9611_v31 = vpop.f32.mrf.mxu0  ;;  %v4027_v54 = vunpack.c.h.bf16 %v9440_v20  ;;  %v9615_v11 = vld [vmem:[#allocation2 + $0xc48] sm:$0xff]  ;;  %v9617_v28 = vld [vmem:[#allocation2 + $0xf8] sm:$0xff]  ;;  %v9681_v4 = vld [vmem:[#allocation2 + $0x270] sm:$0xff] }
 0x4a6   :  { %3950 = vmatpush.msrb.mxu3 %v3706_v61  ;;  %4458 = vmatpush.msra.mxu0 %v4385_v39  ;;  %v4081_v61 = vunpack.c.h.bf16 %v9605_v56  ;;  %v4361_v39 = vunpack.c.l.bf16 %v9607_v55  ;;  %v4077_v20 = vunpack.c.h.bf16 %v9615_v11 }
 0x4a7   :  { %3896 = vmatpush.msra.mxu2 %v3761_v47  ;;  %3951 = vmatmul.f32.vlgmr.msrb.gmra.mxu3 %v9274_v52  ;;  %v9621_v47 = vld [vmem:[#allocation2 + $0xe58] sm:$0x11] }
 0x4a8   :  { %4183 = vmatpush.msra.mxu1 %v4047_v24  ;;  %5902 = vmatpush.msk.msra.mxu3 %vm1563_vm9, %v4104_v14  ;;  %v3737_v24 = vunpack.c.l.bf16 %v9469_v57  ;;  %v4357_v14 = vunpack.c.l.bf16 %v9617_v28  ;;  %v9637_v57 = vld [vmem:[#allocation2 + $0x2b8] sm:$0xff] }
 0x4a9   :  { %4459 = vmatpush.msra.mxu0 %v4381_v45  ;;  %3897 = vmatpush.msra.mxu2 %v3757_v22  ;;  %v9627_v45 = vld [vmem:[#allocation2 + $0x7d0] sm:$0xff]  ;;  %v9629_v22 = vld [vmem:[#allocation2 + $0xf88] sm:$0xff] }
 0x4aa   :  { %4184 = vmatpush.msra.mxu1 %v4043_v36  ;;  %4246 = vmatpush.msra.mxu3 %v4100_v50  ;;  %v4421_v36 = vunpack.c.l.bf16 %v9621_v47  ;;  %v3733_v50 = vunpack.c.l.bf16 %v9485_v0 }
 0x4ab   :  { %4460 = vmatpush.msra.mxu0 %v4377_v44  ;;  %3898 = vmatpush.msra.mxu2 %v3753_v7  ;;  %v9633_v44 = vld [vmem:[#allocation2 + $0x8e8] sm:$0xff]  ;;  %v4073_v7 = vunpack.c.h.bf16 %v9627_v45 }
 0x4ac   :  { %4185 = vmatpush.msra.mxu1 %v4039_v38  ;;  %4247 = vmatpush.msra.mxu3 %v4096_v18  ;;  %10971 = vst [vmem:[#allocation14_spill] sm:$0xff] %v9633_v44  ;;  %v4353_v38 = vunpack.c.l.bf16 %v9629_v22  ;;  %v9641_v18 = vld [vmem:[#allocation2 + $0xcb0] sm:$0xff]  ;;  %v4417_v0 = vunpack.c.l.bf16 %v9633_v44 }
 0x4ad   :  { %4461 = vmatpush.msra.mxu0 %v4373_v16  ;;  %3899 = vmatpush.msra.mxu2 %v3749_v51  ;;  %10972 = vst [vmem:[#allocation15_spill] sm:$0xff] %v9641_v18  ;;  %v9643_v16 = vpop.f32.mrf.mxu2  ;;  %v3729_v51 = vunpack.c.l.bf16 %v9496_v42  ;;  %v4413_v42 = vunpack.c.l.bf16 %v9641_v18 }
 0x4ae   :  { %4186 = vmatpush.msra.mxu1 %v4035_v23  ;;  %4248 = vmatpush.msra.mxu3 %v4092_v63  ;;  %v9647_v23 = vld [vmem:[#allocation2 + $0xf58] sm:$0xff]  ;;  %v9649_v63 = vld [vmem:[#allocation2 + $0x80] sm:$0xff] }
 0x4af   :  { %4462 = vmatpush.msra.mxu0 %v4369_v32  ;;  %3900 = vmatpush.msra.mxu2 %v3745_v1  ;;  %v4069_v32 = vunpack.c.h.bf16 %v9635_v21  ;;  %v4349_v1 = vunpack.c.l.bf16 %v9637_v57 }
 0x4b0   :  { %4187 = vmatpush.msra.mxu1 %v4031_v49  ;;  %4249 = vmatpush.msra.mxu3 %v4088_v48  ;;  %v9654_v49 = vld [vmem:[#allocation2 + $0x890] sm:$0xff]  ;;  %v9656_v48 = vpop.f32.mrf.mxu0 }
 0x4b1   :  { %4463 = vmatpush.msra.mxu0 %v4365_v2  ;;  %3901 = vmatpush.msra.mxu2 %v3741_v10  ;;  %10973 = vst [vmem:[#allocation10_spill] sm:$0xff] %v9654_v49  ;;  %v4433_v2 = vpop.permute.xlu2 %4432  ;;  %v4431_v10 = vpop.permute.xlu0 %4430 }
 0x4b2   :  { %4254 = vmatpush.msrb.mxu3 %v4085_v8  ;;  %4188 = vmatpush.msra.mxu1 %v4027_v54  ;;  %v3725_v8 = vunpack.c.l.bf16 %v9505_v19  ;;  %v9663_v54 = vld [vmem:[#allocation2 + $0x9c8] sm:$0xff]  ;;  %v3721_v19 = vunpack.c.l.bf16 %v9517_v13  ;;  %v9683_v13 = vld [vmem:[#allocation2 + $0x420] sm:$0xff] }
 0x4b3   :  { %4464 = vmatpush.msra.mxu0 %v4361_v39  ;;  %3902 = vmatpush.msra.mxu2 %v3737_v24  ;;  %v4065_v39 = vunpack.c.h.bf16 %v9647_v23  ;;  %v4345_v24 = vunpack.c.l.bf16 %v9649_v63 }
 0x4b4   :  { %4255 = vmatpush.msrb.mxu3 %v4081_v61  ;;  %4189 = vmatpush.msra.mxu1 %v4023_v34  ;;  %v9665_v61 = vld [vmem:[#allocation2 + $0xa50] sm:$0xff]  ;;  %v9669_v34 = vld [vmem:[#allocation2 + $0xa20] sm:$0xff] }
 0x4b5   :  { %4465 = vmatpush.msra.mxu0 %v4357_v14  ;;  %3903 = vmatpush.msra.mxu2 %v3733_v50  ;;  %10974 = vst [vmem:[#allocation7_spill] sm:$0xff] %v9669_v34  ;;  %v4426_v14 = vrot.slane %v10968_v17, 1  ;;  %v4061_v50 = vunpack.c.h.bf16 %v9663_v54 }
 0x4b6   :  { %4256 = vmatpush.msrb.mxu3 %v4077_v20  ;;  %5906 = vmatpush.msk.msrb.mxu1 %vm1563_vm9, %v4421_v36  ;;  %v4409_v20 = vunpack.c.l.bf16 %v9654_v49  ;;  %v4434_v36 = vsel %vm1552_vm10, %v4431_v10, %v4433_v2  ;;  %v9695_v10 = vld [vmem:[#allocation2 + $0x518] sm:$0xff] }
 0x4b7   :  { %4190 = vmatmul.f32.vlgmr.msra.gmra.mxu1 %v9475_v43  ;;  %5905 = vmatmul.msk.f32.vlgmr.msrb.gmra.mxu0 %vm1559_vm12, %v9479_v6 }
 0x4b8   :  { %4257 = vmatpush.msrb.mxu3 %v4073_v7  ;;  %4466 = vmatpush.msra.mxu0 %v4353_v38  ;;  %v4341_v7 = vunpack.c.l.bf16 %v9665_v61  ;;  %v9677_v38 = vld [vmem:[#allocation2 + $0x570] sm:$0x11] }
 0x4b9   :  { %4486 = vmatpush.msrb.mxu1 %v4417_v0  ;;  %3904 = vmatpush.msra.mxu2 %v3729_v51  ;;  %v4405_v0 = vunpack.c.l.bf16 %v9669_v34  ;;  %v3717_v51 = vunpack.c.l.bf16 %v9529_v26  ;;  %v4424_v26 = vunpack.c.h.bf16 %v9677_v38  ;;  %v3713_v34 = vunpack.c.l.bf16 %v9537_v25 }
 0x4ba   :  { %4258 = vmatpush.msrb.mxu3 %v4069_v32  ;;  %4467 = vmatpush.msra.mxu0 %v4349_v1  ;;  %v10975_v32 = vrot.slane %v7821_v33, 1  ;;  %v3709_v25 = vunpack.c.l.bf16 %v9546_v46 }
 0x4bb   :  { %4487 = vmatpush.msrb.mxu1 %v4413_v42  ;;  %3905 = vmatpush.msra.mxu2 %v3725_v8  ;;  %v9691_v42 = vsel %vm1556_vm11, %v4426_v14, %v4434_v36  ;;  %v4402_v8 = vunpack.c.h.bf16 %v9520_v62  ;;  %v4420_v62 = vunpack.c.h.bf16 %v9683_v13  ;;  %v9704_v14 = vld [vmem:[#allocation2 + $0x860] sm:$0xff]  ;;  %v4053_v36 = vunpack.c.h.bf16 %v9695_v10 }
 0x4bc   :  { %4259 = vmatpush.msrb.mxu3 %v4065_v39  ;;  %4468 = vmatpush.msra.mxu0 %v4345_v24  ;;  %v9688_v1 = vsel %vm1556_vm11, %v10975_v32, %v4433_v2  ;;  %v4057_v24 = vunpack.c.h.bf16 %v9681_v4  ;;  %v9699_v2 = vld [vmem:[#allocation2 + $0x5a8] sm:$0xff]  ;;  %v4049_v46 = vunpack.c.h.bf16 %v9704_v14 }
 0x4bd   :  { %4488 = vmatpush.msrb.mxu1 %v4409_v20  ;;  %3906 = vmatpush.msra.mxu2 %v3721_v19  ;;  %v2993_v39 = vpop.f32.mrf.mxu2  ;;  %v4398_v19 = vunpack.c.h.bf16 %v9533_v59  ;;  %v4394_v59 = vunpack.c.h.bf16 %v9542_v27  ;;  %v9731_v27 = vld [vmem:[#allocation2 + $0x2f0] sm:$0xff] }
 0x4be   :  { %4260 = vmatpush.msrb.mxu3 %v4061_v50  ;;  %4469 = vmatpush.msra.mxu0 %v4341_v7  ;;  %v3014_v20 = vadd.f32 %v9611_v31, %v2993_v39  ;;  %v9711_v50 = vld [vmem:[#allocation2 + $0x1b0] sm:$0xff]  ;;  %v9716_v7 = vpop.f32.mrf.mxu0  ;;  %v9729_v39 = vld [vmem:[#allocation2 + $0x288] sm:$0xff] }
 0x4bf   :  { %4489 = vmatpush.msrb.mxu1 %v4405_v0  ;;  %3907 = vmatpush.msra.mxu2 %v3717_v51  ;;  %v4416_v0 = vunpack.c.h.bf16 %v9699_v2  ;;  %v9721_v51 = vld [vmem:[#allocation2 + $0x1c0] sm:$0xff] }
 0x4c0   :  { %4470 = vmatmul.f32.vlgmr.msra.gmra.mxu0 %v9691_v42  ;;  %5907 = vmatmul.msk.f32.vlgmr.msrb.gmra.mxu1 %vm1559_vm12, %v9688_v1  ;;  %v9714_v31 = vadd.f32 %v3014_v20, %v9266_v41  ;;  %v3705_v41 = vunpack.c.l.bf16 %v9558_v9  ;;  %v4045_v20 = vunpack.c.h.bf16 %v9721_v51  ;;  %v4103_v9 = vunpack.c.h.bf16 %v9411_v12 }
 0x4c1   :  { %4494 = vmatpush.msra.mxu1 %v4402_v8  ;;  %5912 = vmatpush.msk.msrb.mxu0 %vm1563_vm9, %v4424_v26  ;;  %v9723_v32 = vpop.f32.mrf.mxu3  ;;  %v4390_v8 = vunpack.c.h.bf16 %v9550_v53  ;;  %v4412_v26 = vunpack.c.h.bf16 %v9711_v50  ;;  %v4386_v53 = vunpack.c.h.bf16 %v9560_v30  ;;  %v4382_v12 = vunpack.c.h.bf16 %v9567_v40  ;;  %v9750_v30 = vld [vmem:[#allocation2 + $0x310] sm:$0xff] }
 0x4c2   :  { %4261 = vmatpush.msrb.mxu3 %v4057_v24  ;;  %3908 = vmatpush.msra.mxu2 %v3713_v34  ;;  %v9734_v24 = vld [vmem:[#allocation2 + $0x7d8] sm:$0xff]  ;;  %v2894_v34 = vadd.f32 %v9356_v15, %v9643_v16  ;;  %v4378_v40 = vunpack.c.h.bf16 %v9577_v37  ;;  %v4374_v37 = vunpack.c.h.bf16 %v9583_v5 }
 0x4c3   :  { %4495 = vmatpush.msra.mxu1 %v4398_v19  ;;  %4606 = vmatpush.msrb.mxu0 %v4420_v62  ;;  %v4408_v19 = vunpack.c.h.bf16 %v9729_v39  ;;  %v4041_v62 = vunpack.c.h.bf16 %v9731_v27  ;;  %v4721_v15 = vunpack.c.l.bf16 %v9734_v24  ;;  %v9746_v16 = vld [vmem:[#allocation2 + $0x5d8] sm:$0xff] }
 0x4c4   :  { %4262 = vmatpush.msrb.mxu3 %v4053_v36  ;;  %3909 = vmatpush.msra.mxu2 %v3709_v25  ;;  %v9742_v36 = vld [vmem:[#allocation2 + $0x708] sm:$0xff]  ;;  %v4099_v25 = vunpack.c.h.bf16 %v9426_v60 }
 0x4c5   :  { %4496 = vmatpush.msra.mxu1 %v4394_v59  ;;  %4607 = vmatpush.msrb.mxu0 %v4416_v0  ;;  %v10976_v0 = vld [vmem:[#allocation8_spill] sm:$0xff]  ;;  %v4037_v60 = vunpack.c.h.bf16 %v9742_v36 }
 0x4c6   :  { %4263 = vmatpush.msrb.mxu3 %v4049_v46  ;;  %3910 = vmatpush.msra.mxu2 %v3705_v41  ;;  %v3016_v46 = vadd.f32 %v2894_v34, %v10976_v0  ;;  %v10977_v41 = vld [vmem:[#allocation9_spill] sm:$0xff]  ;;  %v3513_v34 = vpop.f32.mrf.mxu0  ;;  %v4033_v0 = vunpack.c.h.bf16 %v9750_v30 }
 0x4c7   :  { %4497 = vmatpush.msra.mxu1 %v4390_v8  ;;  %4608 = vmatpush.msrb.mxu0 %v4412_v26  ;;  %v4095_v8 = vunpack.c.h.bf16 %v10977_v41  ;;  %v9756_v26 = vld [vmem:[#allocation2 + $0xd08] sm:$0xff]  ;;  %v9765_v41 = vld [vmem:[#allocation2 + $0xcb8] sm:$0xff] }
 0x4c8   :  { %3911 = vmatmul.f32.vlgmr.msra.gmra.mxu2 %v9274_v52  ;;  %4264 = vmatpush.msrb.mxu3 %v4045_v20  ;;  %v3213_v59 = vpop.f32.mrf.mxu2  ;;  %v4717_v52 = vunpack.c.l.bf16 %v9746_v16  ;;  %v9761_v20 = vld [vmem:[#allocation2 + $0xec0] sm:$0xff] }
 0x4c9   :  { %5900 = vmatpush.msk.msrb.mxu2 %vm1563_vm9, %v4103_v9  ;;  %4498 = vmatpush.msra.mxu1 %v4386_v53  ;;  %v3214_v49 = vadd.f32 %v3213_v59, %v9656_v48  ;;  %v10978_v9 = vld [vmem:[#allocation11_spill] sm:$0xff]  ;;  %v4713_v48 = vunpack.c.l.bf16 %v9756_v26  ;;  %v4029_v59 = vunpack.c.h.bf16 %v9761_v20 }
 0x4ca   :  { %4609 = vmatpush.msrb.mxu0 %v4408_v19  ;;  %4265 = vmatpush.msrb.mxu3 %v4041_v62  ;;  %v4091_v53 = vunpack.c.h.bf16 %v10978_v9  ;;  %v9774_v9 = vld [vmem:[#allocation2 + $0xf68] sm:$0xff] }
 0x4cb   :  { %4206 = vmatpush.msrb.mxu2 %v4099_v25  ;;  %v3336_v18 = vadd.f32 %v3214_v49, %v3016_v46  ;;  %v3313_v44 = vpop.f32.mrf.mxu3  ;;  %5903 = vmatmul.msk.f32.vlgmr.msra.gmra.mxu3 %vm1559_vm12, %v9479_v6  ;;  %v10979_v25 = vld [vmem:[#allocation12_spill] sm:$0xff]  ;;  %v9776_v49 = vld [vmem:[#allocation2 + $0x360] sm:$0xff] }
 0x4cc   :  { %4774 = vmatpush.msra.mxu0 %v4721_v15  ;;  %4499 = vmatpush.msra.mxu1 %v4382_v12  ;;  %v3334_v19 = vadd.f32 %v9716_v7, %v3313_v44  ;;  %v3533_v62 = vpop.f32.mrf.mxu1  ;;  %v4087_v15 = vunpack.c.h.bf16 %v10979_v25  ;;  %v4709_v12 = vunpack.c.l.bf16 %v9765_v41  ;;  %v4084_v44 = vunpack.c.l.bf16 %v9597_v3  ;;  %v9817_v25 = vld [vmem:[#allocation2 + $0x720] sm:$0xff] }
 0x4cd   :  { %4207 = vmatpush.msrb.mxu2 %v4095_v8  ;;  %4266 = vmatpush.msrb.mxu3 %v4037_v60  ;;  %v3534_v46 = vadd.f32 %v3533_v62, %v3513_v34  ;;  %v4370_v7 = vunpack.c.h.bf16 %v9591_v29  ;;  %v4025_v60 = vunpack.c.h.bf16 %v9774_v9  ;;  %v4366_v29 = vunpack.c.h.bf16 %v9599_v58  ;;  %v9815_v62 = vld [vmem:[#allocation2 + $0x928] sm:$0xff] }
 0x4ce   :  { %4775 = vmatpush.msra.mxu0 %v4717_v52  ;;  %4500 = vmatpush.msra.mxu1 %v4378_v40  ;;  %v9780_v5 = vadd.f32 %v3334_v19, %v9714_v31  ;;  %v4705_v52 = vunpack.c.l.bf16 %v9776_v49  ;;  %v9788_v40 = vld [vmem:[#allocation2 + $0x90] sm:$0xff]  ;;  %v4080_v31 = vunpack.c.l.bf16 %v9605_v56  ;;  %v4423_v3 = vunpack.c.l.bf16 %v9677_v38 }
 0x4cf   :  { %4208 = vmatpush.msrb.mxu2 %v4091_v53  ;;  %4267 = vmatpush.msrb.mxu3 %v4033_v0  ;;  %v9784_v8 = vadd.f32 %v3534_v46, %v3336_v18  ;;  %v9795_v18 = vld [vmem:[#allocation2 + $0xc80] sm:$0xff]  ;;  %v4701_v34 = vunpack.c.l.bf16 %v9788_v40  ;;  %v4076_v53 = vunpack.c.l.bf16 %v9615_v11  ;;  %v4362_v56 = vunpack.c.h.bf16 %v9607_v55 }
 0x4d0   :  { %4776 = vmatpush.msra.mxu0 %v4713_v48  ;;  %4501 = vmatpush.msra.mxu1 %v4374_v37  ;;  %v4419_v0 = vunpack.c.l.bf16 %v9683_v13  ;;  %v9801_v48 = vld [vmem:[#allocation2 + $0x4e8] sm:$0xff]  ;;  %v4072_v58 = vunpack.c.l.bf16 %v9627_v45  ;;  %v4358_v11 = vunpack.c.h.bf16 %v9617_v28  ;;  %v4415_v38 = vunpack.c.l.bf16 %v9699_v2  ;;  %v9809_v37 = vld [vmem:[#allocation2 + $0x838] sm:$0xff] }
 0x4d1   :  { %10980 = vst [vmem:[#allocation8_spill] sm:$0xff] %v9784_v8  ;;  %4209 = vmatpush.msrb.mxu2 %v4087_v15  ;;  %4268 = vmatpush.msrb.mxu3 %v4029_v59  ;;  %v4693_v55 = vunpack.c.l.bf16 %v9801_v48  ;;  %v4068_v13 = vunpack.c.l.bf16 %v9635_v21  ;;  %v4354_v19 = vunpack.c.h.bf16 %v9629_v22  ;;  %v4411_v45 = vunpack.c.l.bf16 %v9711_v50  ;;  %v9823_v59 = vld [vmem:[#allocation2 + $0xa08] sm:$0xff]  ;;  %v9825_v22 = vld [vmem:[#allocation2 + $0xed0] sm:$0xff] }
 0x4d2   :  { %4777 = vmatpush.msra.mxu0 %v4709_v12  ;;  %5901 = vmatmul.msk.f32.vlgmr.msrb.gmra.mxu2 %vm1559_vm12, %v9479_v6  ;;  %v4697_v6 = vunpack.c.l.bf16 %v9795_v18  ;;  %v4689_v28 = vunpack.c.l.bf16 %v9809_v37  ;;  %v4064_v2 = vunpack.c.l.bf16 %v9647_v23  ;;  %v4350_v21 = vunpack.c.h.bf16 %v9637_v57  ;;  %v9833_v57 = vld [vmem:[#allocation2 + $0xb30] sm:$0xff] }
 0x4d3   :  { %4214 = vmatpush.msra.mxu2 %v4084_v44  ;;  %4502 = vmatpush.msra.mxu1 %v4370_v7  ;;  %v4407_v15 = vunpack.c.l.bf16 %v9729_v39  ;;  %v4404_v50 = vunpack.c.h.bf16 %v9815_v62  ;;  %v4685_v46 = vunpack.c.l.bf16 %v9817_v25  ;;  %v4060_v23 = vunpack.c.l.bf16 %v9663_v54  ;;  %v9831_v44 = vld [vmem:[#allocation2 + $0x160] sm:$0xff] }
 0x4d4   :  { %4269 = vmatpush.msrb.mxu3 %v4025_v60  ;;  %4778 = vmatpush.msra.mxu0 %v4705_v52  ;;  %v4346_v12 = vunpack.c.h.bf16 %v9649_v63  ;;  %v4400_v39 = vunpack.c.h.bf16 %v9823_v59  ;;  %v4681_v7 = vunpack.c.l.bf16 %v9825_v22  ;;  %v9837_v60 = vld [vmem:[#allocation2 + $0x808] sm:$0x11]  ;;  %v4056_v52 = vunpack.c.l.bf16 %v9681_v4  ;;  %v9851_v4 = vld [vmem:[#allocation2 + $0xb20] sm:$0xff] }
 0x4d5   :  { %4215 = vmatpush.msra.mxu2 %v4080_v31  ;;  %4270 = vmatmul.f32.vlgmr.msrb.gmra.mxu3 %v9475_v43  ;;  %v4342_v54 = vunpack.c.h.bf16 %v9665_v61  ;;  %v4396_v63 = vunpack.c.h.bf16 %v9831_v44  ;;  %v4677_v31 = vunpack.c.l.bf16 %v9833_v57  ;;  %v9853_v61 = vld [vmem:[#allocation2 + $0xc0] sm:$0xff] }
 0x4d6   :  { %4503 = vmatpush.msra.mxu1 %v4366_v29  ;;  %5910 = vmatpush.msk.msra.mxu3 %vm1563_vm9, %v4423_v3  ;;  %v9843_v29 = vld [vmem:[#allocation2 + $0x1d8] sm:$0xff]  ;;  %v9845_v3 = vld [vmem:[#allocation2 + $0xa28] sm:$0xff]  ;;  %v3653_v8 = vpop.f32.mrf.mxu0 }
 0x4d7   :  { %4779 = vmatpush.msra.mxu0 %v4701_v34  ;;  %4216 = vmatpush.msra.mxu2 %v4076_v53  ;;  %v4741_v34 = vunpack.c.l.bf16 %v9837_v60  ;;  %v4052_v53 = vunpack.c.l.bf16 %v9695_v10 }
 0x4d8   :  { %4504 = vmatpush.msra.mxu1 %v4362_v56  ;;  %4566 = vmatpush.msra.mxu3 %v4419_v0  ;;  %v9849_v56 = vld [vmem:[#allocation2 + $0xc8] sm:$0xff]  ;;  %v4392_v0 = vunpack.c.h.bf16 %v9843_v29 }
 0x4d9   :  { %4780 = vmatpush.msra.mxu0 %v4697_v6  ;;  %4217 = vmatpush.msra.mxu2 %v4072_v58  ;;  %v4673_v6 = vunpack.c.l.bf16 %v9845_v3  ;;  %v9857_v58 = vld [vmem:[#allocation2 + $0x358] sm:$0xff]  ;;  %v4737_v10 = vunpack.c.l.bf16 %v9849_v56 }
 0x4da   :  { %4505 = vmatpush.msra.mxu1 %v4358_v11  ;;  %4567 = vmatpush.msra.mxu3 %v4415_v38  ;;  %10981 = vst [vmem:[#allocation9_spill] sm:$0xff] %v9857_v58  ;;  %v4048_v11 = vunpack.c.l.bf16 %v9704_v14  ;;  %v9861_v38 = vld [vmem:[#allocation2 + $0x1f0] sm:$0xff]  ;;  %v4733_v14 = vunpack.c.l.bf16 %v9857_v58 }
 0x4db   :  { %4781 = vmatpush.msra.mxu0 %v4693_v55  ;;  %4218 = vmatpush.msra.mxu2 %v4068_v13  ;;  %v9863_v55 = vld [vmem:[#allocation2 + $0x6a8] sm:$0xff]  ;;  %v4388_v13 = vunpack.c.h.bf16 %v9851_v4 }
 0x4dc   :  { %4506 = vmatpush.msra.mxu1 %v4354_v19  ;;  %4568 = vmatpush.msra.mxu3 %v4411_v45  ;;  %v4669_v19 = vunpack.c.l.bf16 %v9853_v61  ;;  %v9868_v45 = vld [vmem:[#allocation2 + $0xf0] sm:$0xff] }
 0x4dd   :  { %4782 = vmatpush.msra.mxu0 %v4689_v28  ;;  %4219 = vmatpush.msra.mxu2 %v4064_v2  ;;  %10982 = vst [vmem:[#allocation11_spill] sm:$0xff] %v9868_v45  ;;  %v4044_v28 = vunpack.c.l.bf16 %v9721_v51  ;;  %v4751_v2 = vpop.permute.xlu2 %4750  ;;  %v4040_v51 = vunpack.c.l.bf16 %v9731_v27  ;;  %v9895_v27 = vld [vmem:[#allocation2 + $0x438] sm:$0xff] }
 0x4de   :  { %4507 = vmatpush.msra.mxu1 %v4350_v21  ;;  %4569 = vmatpush.msra.mxu3 %v4407_v15  ;;  %v4753_v21 = vpop.permute.xlu1 %4752  ;;  %v9875_v15 = vld [vmem:[#allocation2 + $0xb8] sm:$0xff] }
 0x4df   :  { %4783 = vmatpush.msra.mxu0 %v4685_v46  ;;  %4220 = vmatpush.msra.mxu2 %v4060_v23  ;;  %v4384_v46 = vunpack.c.h.bf16 %v9861_v38  ;;  %v4665_v23 = vunpack.c.l.bf16 %v9863_v55 }
 0x4e0   :  { %4574 = vmatpush.msrb.mxu3 %v4404_v50  ;;  %4508 = vmatpush.msra.mxu1 %v4346_v12  ;;  %v9877_v50 = vld [vmem:[#allocation2 + $0xc68] sm:$0xff]  ;;  %v9881_v12 = vld [vmem:[#allocation2 + $0x660] sm:$0xff] }
 0x4e1   :  { %4784 = vmatpush.msra.mxu0 %v4681_v7  ;;  %4221 = vmatpush.msra.mxu2 %v4056_v52  ;;  %10983 = vst [vmem:[#allocation12_spill] sm:$0xff] %v9881_v12  ;;  %v4745_v7 = vrot.slane %v10968_v17, 2  ;;  %v4754_v52 = vsel %vm1552_vm10, %v4751_v2, %v4753_v21  ;;  %v9911_v2 = vld [vmem:[#allocation2 + $0x698] sm:$0xff] }
 0x4e2   :  { %4575 = vmatpush.msrb.mxu3 %v4400_v39  ;;  %4509 = vmatpush.msra.mxu1 %v4342_v54  ;;  %v4729_v39 = vunpack.c.l.bf16 %v9868_v45  ;;  %v4380_v54 = vunpack.c.h.bf16 %v9875_v15  ;;  %v9981_v45 = vld [vmem:[#allocation2 + $0xdb8] sm:$0xff] }
 0x4e3   :  { %4785 = vmatpush.msra.mxu0 %v4677_v31  ;;  %4222 = vmatpush.msra.mxu2 %v4052_v53  ;;  %v9889_v31 = vld [vmem:[#allocation2 + $0xc78] sm:$0x11]  ;;  %v4036_v53 = vunpack.c.l.bf16 %v9742_v36 }
 0x4e4   :  { %4576 = vmatpush.msrb.mxu3 %v4396_v63  ;;  %5914 = vmatpush.msk.msrb.mxu1 %vm1563_vm9, %v4741_v34  ;;  %v4661_v63 = vunpack.c.l.bf16 %v9877_v50  ;;  %v4725_v34 = vunpack.c.l.bf16 %v9881_v12  ;;  %v4744_v36 = vunpack.c.h.bf16 %v9889_v31  ;;  %v9979_v12 = vld [vmem:[#allocation2 + $0x6d8] sm:$0xff] }
 0x4e5   :  { %4510 = vmatmul.f32.vlgmr.msra.gmra.mxu1 %v9691_v42  ;;  %5913 = vmatmul.msk.f32.vlgmr.msrb.gmra.mxu0 %vm1559_vm12, %v9688_v1 }
 0x4e6   :  { %4577 = vmatpush.msrb.mxu3 %v4392_v0  ;;  %4786 = vmatpush.msra.mxu0 %v4673_v6  ;;  %v9893_v0 = vld [vmem:[#allocation2 + $0xa68] sm:$0xff]  ;;  %v10984_v6 = vrot.slane %v7821_v33, 2 }
 0x4e7   :  { %4806 = vmatpush.msrb.mxu1 %v4737_v10  ;;  %4223 = vmatpush.msra.mxu2 %v4048_v11  ;;  %v9903_v11 = vsel %vm1556_vm11, %v4745_v7, %v4754_v52  ;;  %v4736_v52 = vunpack.c.h.bf16 %v9911_v2 }
 0x4e8   :  { %4578 = vmatpush.msrb.mxu3 %v4388_v13  ;;  %4787 = vmatpush.msra.mxu0 %v4669_v19  ;;  %v9900_v10 = vsel %vm1556_vm11, %v10984_v6, %v4753_v21  ;;  %v4722_v13 = vunpack.c.h.bf16 %v9734_v24  ;;  %v9907_v19 = vld [vmem:[#allocation2 + $0xfb0] sm:$0xff]  ;;  %v4718_v21 = vunpack.c.h.bf16 %v9746_v16  ;;  %v4714_v16 = vunpack.c.h.bf16 %v9756_v26  ;;  %v9937_v26 = vld [vmem:[#allocation2 + $0xdc8] sm:$0xff]  ;;  %v9939_v6 = vld [vmem:[#allocation2 + $0x520] sm:$0xff] }
 0x4e9   :  { %4807 = vmatpush.msrb.mxu1 %v4733_v14  ;;  %4224 = vmatpush.msra.mxu2 %v4044_v28  ;;  %v4376_v14 = vunpack.c.h.bf16 %v9893_v0  ;;  %v4032_v28 = vunpack.c.l.bf16 %v9750_v30  ;;  %v4028_v30 = vunpack.c.l.bf16 %v9761_v20 }
 0x4ea   :  { %4579 = vmatpush.msrb.mxu3 %v4384_v46  ;;  %4788 = vmatpush.msra.mxu0 %v4665_v23  ;;  %v4740_v46 = vunpack.c.h.bf16 %v9895_v27  ;;  %v9915_v23 = vld [vmem:[#allocation2 + $0xe00] sm:$0xff] }
 0x4eb   :  { %4808 = vmatpush.msrb.mxu1 %v4729_v39  ;;  %4225 = vmatpush.msra.mxu2 %v4040_v51  ;;  %v4372_v39 = vunpack.c.h.bf16 %v9907_v19  ;;  %v9922_v51 = vld [vmem:[#allocation2 + $0x3b8] sm:$0xff] }
 0x4ec   :  { %4580 = vmatpush.msrb.mxu3 %v4380_v54  ;;  %4789 = vmatpush.msra.mxu0 %v4661_v63  ;;  %v9928_v54 = vld [vmem:[#allocation2 + $0xa78] sm:$0xff]  ;;  %v4368_v63 = vunpack.c.h.bf16 %v9915_v23 }
 0x4ed   :  { %4809 = vmatpush.msrb.mxu1 %v4725_v34  ;;  %4226 = vmatpush.msra.mxu2 %v4036_v53  ;;  %v3273_v24 = vpop.f32.mrf.mxu2  ;;  %v4024_v34 = vunpack.c.l.bf16 %v9774_v9  ;;  %v4732_v53 = vunpack.c.h.bf16 %v9922_v51  ;;  %v9944_v9 = vld [vmem:[#allocation2 + $0xf38] sm:$0xff] }
 0x4ee   :  { %4790 = vmatmul.f32.vlgmr.msra.gmra.mxu0 %v9903_v11  ;;  %5915 = vmatmul.msk.f32.vlgmr.msrb.gmra.mxu1 %vm1559_vm12, %v9900_v10  ;;  %v3294_v7 = vadd.f32 %v9723_v32, %v3273_v24  ;;  %v4710_v32 = vunpack.c.h.bf16 %v9765_v41  ;;  %v4706_v41 = vunpack.c.h.bf16 %v9776_v49  ;;  %v9958_v49 = vld [vmem:[#allocation2 + $0x230] sm:$0xff] }
 0x4ef   :  { %4814 = vmatpush.msra.mxu1 %v4722_v13  ;;  %5920 = vmatpush.msk.msrb.mxu0 %vm1563_vm9, %v4744_v36  ;;  %v4364_v36 = vunpack.c.h.bf16 %v9928_v54 }
 0x4f0   :  { %4581 = vmatpush.msrb.mxu3 %v4376_v14  ;;  %4227 = vmatpush.msra.mxu2 %v4032_v28  ;;  %v9933_v20 = vadd.f32 %v3294_v7, %v9525_v35  ;;  %v4422_v35 = vunpack.c.h.bf16 %v9621_v47  ;;  %v4728_v14 = vunpack.c.h.bf16 %v9937_v26  ;;  %v4360_v28 = vunpack.c.h.bf16 %v9939_v6  ;;  %v10986_v7 = vld [vmem:[#allocation15_spill] sm:$0xff] }
 0x4f1   :  { %4815 = vmatpush.msra.mxu1 %v4718_v21  ;;  %4926 = vmatpush.msrb.mxu0 %v4740_v46  ;;  %v9941_v13 = vpop.f32.mrf.mxu3  ;;  %v9950_v21 = vld [vmem:[#allocation2 + $0xa88] sm:$0xff]  ;;  %v10985_v46 = vld [vmem:[#allocation14_spill] sm:$0xff]  ;;  %v4702_v47 = vunpack.c.h.bf16 %v9788_v40 }
 0x4f2   :  { %4582 = vmatpush.msrb.mxu3 %v4372_v39  ;;  %4228 = vmatpush.msra.mxu2 %v4028_v30  ;;  %v4418_v24 = vunpack.c.h.bf16 %v10985_v46  ;;  %v5041_v39 = vunpack.c.l.bf16 %v9944_v9  ;;  %v9954_v30 = vld [vmem:[#allocation2 + $0xa60] sm:$0xff]  ;;  %v9971_v46 = vld [vmem:[#allocation2 + $0x9a8] sm:$0xff] }
 0x4f3   :  { %4816 = vmatpush.msra.mxu1 %v4714_v16  ;;  %4927 = vmatpush.msrb.mxu0 %v4736_v52  ;;  %v4414_v16 = vunpack.c.h.bf16 %v10986_v7  ;;  %v4356_v52 = vunpack.c.h.bf16 %v9950_v21 }
 0x4f4   :  { %4583 = vmatpush.msrb.mxu3 %v4368_v63  ;;  %4229 = vmatpush.msra.mxu2 %v4024_v34  ;;  %v9963_v63 = vld [vmem:[#allocation2 + $0x9f0] sm:$0xff]  ;;  %v3553_v34 = vpop.f32.mrf.mxu1 }
 0x4f5   :  { %4817 = vmatpush.msra.mxu1 %v4710_v32  ;;  %4928 = vmatpush.msrb.mxu0 %v4732_v53  ;;  %v5037_v32 = vunpack.c.l.bf16 %v9954_v30  ;;  %v9967_v53 = vld [vmem:[#allocation2 + $0x658] sm:$0xff] }
 0x4f6   :  { %4230 = vmatmul.f32.vlgmr.msra.gmra.mxu2 %v9475_v43  ;;  %4584 = vmatpush.msrb.mxu3 %v4364_v36  ;;  %v4698_v43 = vunpack.c.h.bf16 %v9795_v18  ;;  %v10987_v36 = vld [vmem:[#allocation10_spill] sm:$0xff]  ;;  %v4694_v18 = vunpack.c.h.bf16 %v9801_v48  ;;  %v4403_v48 = vunpack.c.l.bf16 %v9815_v62 }
 0x4f7   :  { %5908 = vmatpush.msk.msrb.mxu2 %vm1563_vm9, %v4422_v35  ;;  %4818 = vmatpush.msra.mxu1 %v4706_v41  ;;  %v4410_v35 = vunpack.c.h.bf16 %v10987_v36  ;;  %v4352_v41 = vunpack.c.h.bf16 %v9958_v49  ;;  %v4348_v36 = vunpack.c.h.bf16 %v9967_v53  ;;  %v10001_v62 = vld [vmem:[#allocation2 + $0x8f8] sm:$0xff] }
 0x4f8   :  { %4929 = vmatpush.msrb.mxu0 %v4728_v14  ;;  %4585 = vmatpush.msrb.mxu3 %v4360_v28  ;;  %v3573_v40 = vpop.f32.mrf.mxu2  ;;  %v5033_v14 = vunpack.c.l.bf16 %v9963_v63 }
 0x4f9   :  { %4526 = vmatpush.msrb.mxu2 %v4418_v24  ;;  %v3574_v7 = vadd.f32 %v3573_v40, %v3553_v34  ;;  %5911 = vmatmul.msk.f32.vlgmr.msra.gmra.mxu3 %vm1559_vm12, %v9688_v1  ;;  %v10988_v24 = vld [vmem:[#allocation7_spill] sm:$0xff]  ;;  %v10989_v34 = vld [vmem:[#allocation13_spill] sm:$0xff] }
 0x4fa   :  { %5094 = vmatpush.msra.mxu0 %v5041_v39  ;;  %4819 = vmatpush.msra.mxu1 %v4702_v47  ;;  %v3633_v28 = vpop.f32.mrf.mxu3  ;;  %v4406_v39 = vunpack.c.h.bf16 %v10988_v24  ;;  %v5029_v47 = vunpack.c.l.bf16 %v9971_v46  ;;  %v4344_v24 = vunpack.c.h.bf16 %v9979_v12 }
 0x4fb   :  { %4527 = vmatpush.msrb.mxu2 %v4414_v16  ;;  %4586 = vmatpush.msrb.mxu3 %v4356_v52  ;;  %v9984_v40 = vadd.f32 %v3574_v7, %v10989_v34  ;;  %v3654_v58 = vadd.f32 %v3653_v8, %v3633_v28  ;;  %v4690_v16 = vunpack.c.h.bf16 %v9809_v37  ;;  %v5025_v7 = vunpack.c.l.bf16 %v9981_v45  ;;  %v9994_v8 = vld [vmem:[#allocation2 + $0x398] sm:$0xff]  ;;  %v10021_v28 = vld [vmem:[#allocation2 + $0x968] sm:$0xff]  ;;  %v10029_v34 = vld [vmem:[#allocation2 + $0x5e0] sm:$0xff] }
 0x4fc   :  { %5095 = vmatpush.msra.mxu0 %v5037_v32  ;;  %4820 = vmatpush.msra.mxu1 %v4698_v43  ;;  %v4399_v32 = vunpack.c.l.bf16 %v9823_v59  ;;  %v4686_v37 = vunpack.c.h.bf16 %v9817_v25  ;;  %v4395_v43 = vunpack.c.l.bf16 %v9831_v44  ;;  %v4682_v59 = vunpack.c.h.bf16 %v9825_v22 }
 0x4fd   :  { %4528 = vmatpush.msrb.mxu2 %v4410_v35  ;;  %4587 = vmatpush.msrb.mxu3 %v4352_v41  ;;  %v9990_v52 = vadd.f32 %v3654_v58, %v9780_v5  ;;  %v4743_v5 = vunpack.c.l.bf16 %v9889_v31  ;;  %v5021_v58 = vunpack.c.l.bf16 %v9994_v8  ;;  %v4739_v35 = vunpack.c.l.bf16 %v9895_v27  ;;  %v10007_v41 = vld [vmem:[#allocation2 + $0xb68] sm:$0xff] }
 0x4fe   :  { %5096 = vmatpush.msra.mxu0 %v5033_v14  ;;  %4821 = vmatpush.msra.mxu1 %v4694_v18  ;;  %v4391_v25 = vunpack.c.l.bf16 %v9843_v29  ;;  %v4678_v44 = vunpack.c.h.bf16 %v9833_v57  ;;  %v4735_v31 = vunpack.c.l.bf16 %v9911_v2  ;;  %v10015_v14 = vld [vmem:[#allocation2 + $0xa00] sm:$0xff]  ;;  %v5013_v22 = vunpack.c.l.bf16 %v10007_v41 }
 0x4ff   :  { %4529 = vmatpush.msrb.mxu2 %v4406_v39  ;;  %4588 = vmatpush.msrb.mxu3 %v4348_v36  ;;  %v4387_v27 = vunpack.c.l.bf16 %v9851_v4  ;;  %v4674_v18 = vunpack.c.h.bf16 %v9845_v3  ;;  %v4731_v29 = vunpack.c.l.bf16 %v9922_v51  ;;  %v10023_v39 = vld [vmem:[#allocation2 + $0x540] sm:$0xff]  ;;  %v5009_v57 = vunpack.c.l.bf16 %v10015_v14  ;;  %v10031_v3 = vld [vmem:[#allocation2 + $0xcf8] sm:$0xff] }
 0x500   :  { %5097 = vmatpush.msra.mxu0 %v5029_v47  ;;  %5909 = vmatmul.msk.f32.vlgmr.msrb.gmra.mxu2 %vm1559_vm12, %v9688_v1  ;;  %v5017_v1 = vunpack.c.l.bf16 %v10001_v62  ;;  %v4383_v2 = vunpack.c.l.bf16 %v9861_v38  ;;  %v4670_v4 = vunpack.c.h.bf16 %v9853_v61  ;;  %v4727_v36 = vunpack.c.l.bf16 %v9937_v26  ;;  %v10039_v61 = vld [vmem:[#allocation2 + $0x298] sm:$0xff] }
 0x501   :  { %4534 = vmatpush.msra.mxu2 %v4403_v48  ;;  %4822 = vmatpush.msra.mxu1 %v4690_v16  ;;  %v4724_v51 = vunpack.c.h.bf16 %v10021_v28  ;;  %v5005_v47 = vunpack.c.l.bf16 %v10023_v39  ;;  %v4379_v38 = vunpack.c.l.bf16 %v9875_v15  ;;  %v4666_v48 = vunpack.c.h.bf16 %v9863_v55  ;;  %v10037_v16 = vld [vmem:[#allocation2 + $0x188] sm:$0xff] }
 0x502   :  { %4589 = vmatpush.msrb.mxu3 %v4344_v24  ;;  %5098 = vmatpush.msra.mxu0 %v5025_v7  ;;  %v4720_v26 = vunpack.c.h.bf16 %v10029_v34  ;;  %v5001_v24 = vunpack.c.l.bf16 %v10031_v3  ;;  %v10043_v7 = vld [vmem:[#allocation2 + $0x760] sm:$0x11]  ;;  %v4662_v15 = vunpack.c.h.bf16 %v9877_v50  ;;  %v4716_v55 = vunpack.c.h.bf16 %v10037_v16  ;;  %v10057_v50 = vld [vmem:[#allocation2 + $0x710] sm:$0xff] }
 0x503   :  { %4535 = vmatpush.msra.mxu2 %v4399_v32  ;;  %4590 = vmatmul.f32.vlgmr.msrb.gmra.mxu3 %v9691_v42  ;;  %v4375_v32 = vunpack.c.l.bf16 %v9893_v0  ;;  %v10059_v0 = vld [vmem:[#allocation2 + $0xcd0] sm:$0xff] }
 0x504   :  { %4823 = vmatpush.msra.mxu1 %v4686_v37  ;;  %5918 = vmatpush.msk.msra.mxu3 %vm1563_vm9, %v4743_v5  ;;  %v4997_v37 = vunpack.c.l.bf16 %v10039_v61  ;;  %v10049_v5 = vld [vmem:[#allocation2 + $0x460] sm:$0xff] }
 0x505   :  { %5099 = vmatpush.msra.mxu0 %v5021_v58  ;;  %4536 = vmatpush.msra.mxu2 %v4395_v43  ;;  %v10051_v58 = vld [vmem:[#allocation2 + $0x608] sm:$0xff]  ;;  %v5061_v43 = vunpack.c.l.bf16 %v10043_v7 }
 0x506   :  { %4824 = vmatpush.msra.mxu1 %v4682_v59  ;;  %4886 = vmatpush.msra.mxu3 %v4739_v35  ;;  %v4371_v59 = vunpack.c.l.bf16 %v9907_v19  ;;  %v10055_v35 = vld [vmem:[#allocation2 + $0x4e0] sm:$0xff] }
 0x507   :  { %5100 = vmatpush.msra.mxu0 %v5017_v1  ;;  %4537 = vmatpush.msra.mxu2 %v4391_v25  ;;  %v4712_v1 = vunpack.c.h.bf16 %v10049_v5  ;;  %v4993_v25 = vunpack.c.l.bf16 %v10051_v58  ;;  %v5057_v19 = vunpack.c.l.bf16 %v10055_v35 }
 0x508   :  { %4825 = vmatpush.msra.mxu1 %v4678_v44  ;;  %4887 = vmatpush.msra.mxu3 %v4735_v31  ;;  %v10063_v44 = vld [vmem:[#allocation2 + $0xbc0] sm:$0xff]  ;;  %v4367_v31 = vunpack.c.l.bf16 %v9915_v23 }
 0x509   :  { %5101 = vmatpush.msra.mxu0 %v5013_v22  ;;  %4538 = vmatpush.msra.mxu2 %v4387_v27  ;;  %v10067_v22 = vld [vmem:[#allocation2 + $0x1c8] sm:$0xff]  ;;  %v10069_v27 = vld [vmem:[#allocation2 + $0x50] sm:$0xff]  ;;  %v5053_v23 = vunpack.c.l.bf16 %v10063_v44 }
 0x50a   :  { %4826 = vmatpush.msra.mxu1 %v4674_v18  ;;  %4888 = vmatpush.msra.mxu3 %v4731_v29  ;;  %v4708_v18 = vunpack.c.h.bf16 %v10057_v50  ;;  %v4989_v29 = vunpack.c.l.bf16 %v10059_v0 }
 0x50b   :  { %5102 = vmatpush.msra.mxu0 %v5009_v57  ;;  %4539 = vmatpush.msra.mxu2 %v4383_v2  ;;  %v10074_v57 = vld [vmem:[#allocation2 + $0x620] sm:$0xff]  ;;  %v4363_v2 = vunpack.c.l.bf16 %v9928_v54 }
 0x50c   :  { %4827 = vmatpush.msra.mxu1 %v4670_v4  ;;  %4889 = vmatpush.msra.mxu3 %v4727_v36  ;;  %v5071_v4 = vpop.permute.xlu1 %5070  ;;  %v5073_v36 = vpop.permute.xlu0 %5072  ;;  %v5049_v54 = vunpack.c.l.bf16 %v10074_v57 }
 0x50d   :  { %5103 = vmatpush.msra.mxu0 %v5005_v47  ;;  %4540 = vmatpush.msra.mxu2 %v4379_v38  ;;  %v10083_v47 = vld [vmem:[#allocation2 + $0x368] sm:$0xff]  ;;  %v4704_v38 = vunpack.c.h.bf16 %v10067_v22 }
 0x50e   :  { %4894 = vmatpush.msrb.mxu3 %v4724_v51  ;;  %4828 = vmatpush.msra.mxu1 %v4666_v48  ;;  %v10081_v51 = vld [vmem:[#allocation2 + $0x98] sm:$0xff]  ;;  %v4985_v48 = vunpack.c.l.bf16 %v10069_v27 }
 0x50f   :  { %5104 = vmatpush.msra.mxu0 %v5001_v24  ;;  %4541 = vmatpush.msra.mxu2 %v4375_v32  ;;  %v5066_v24 = vrot.slane %v7821_v33, 3  ;;  %v4359_v32 = vunpack.c.l.bf16 %v9939_v6  ;;  %v10100_v6 = vld [vmem:[#allocation2 + $0xad8] sm:$0xff] }
 0x510   :  { %4895 = vmatpush.msrb.mxu3 %v4720_v26  ;;  %4829 = vmatpush.msra.mxu1 %v4662_v15  ;;  %v10087_v26 = vld [vmem:[#allocation2 + $0x878] sm:$0xff]  ;;  %v5065_v15 = vrot.slane %v10968_v17, 3 }
 0x511   :  { %5105 = vmatpush.msra.mxu0 %v4997_v37  ;;  %4542 = vmatpush.msra.mxu2 %v4371_v59  ;;  %v4700_v37 = vunpack.c.h.bf16 %v10081_v51  ;;  %v10096_v59 = vld [vmem:[#allocation2 + $0x240] sm:$0xff]  ;;  %v5045_v33 = vunpack.c.l.bf16 %v10087_v26  ;;  %v10103_v17 = vsel %vm1556_vm11, %v5066_v24, %v5073_v36  ;;  %v10129_v24 = vpop.f32.mrf.mxu1 }
 0x512   :  { %4896 = vmatpush.msrb.mxu3 %v4716_v55  ;;  %5922 = vmatpush.msk.msrb.mxu1 %vm1563_vm9, %v5061_v43  ;;  %v5074_v55 = vsel %vm1552_vm10, %v5071_v4, %v5073_v36  ;;  %v4981_v43 = vunpack.c.l.bf16 %v10083_v47 }
 0x513   :  { %4830 = vmatmul.f32.vlgmr.msra.gmra.mxu1 %v9903_v11  ;;  %5921 = vmatmul.msk.f32.vlgmr.msrb.gmra.mxu0 %vm1559_vm12, %v9900_v10 }
 0x514   :  { %4897 = vmatpush.msrb.mxu3 %v4712_v1  ;;  %5106 = vmatpush.msra.mxu0 %v4993_v25  ;;  %v4355_v1 = vunpack.c.l.bf16 %v9950_v21  ;;  %v10106_v25 = vsel %vm1556_vm11, %v5065_v15, %v5074_v55  ;;  %v5042_v21 = vunpack.c.h.bf16 %v9944_v9  ;;  %v4343_v9 = vunpack.c.l.bf16 %v9979_v12  ;;  %v10133_v12 = vld [vmem:[#allocation2 + $0xd70] sm:$0xff] }
 0x515   :  { %5126 = vmatpush.msrb.mxu1 %v5057_v19  ;;  %4543 = vmatpush.msra.mxu2 %v4367_v31  ;;  %v4696_v19 = vunpack.c.h.bf16 %v10096_v59  ;;  %v4351_v31 = vunpack.c.l.bf16 %v9958_v49  ;;  %v5038_v49 = vunpack.c.h.bf16 %v9954_v30  ;;  %v4742_v30 = vunpack.c.h.bf16 %v9837_v60  ;;  %v10146_v60 = vld [vmem:[#allocation2 + $0xdb0] sm:$0xff] }
 0x516   :  { %4898 = vmatpush.msrb.mxu3 %v4708_v18  ;;  %5107 = vmatpush.msra.mxu0 %v4989_v29  ;;  %v10110_v18 = vld [vmem:[#allocation2 + $0xc88] sm:$0xff]  ;;  %v4692_v29 = vunpack.c.h.bf16 %v10100_v6  ;;  %v5030_v15 = vunpack.c.h.bf16 %v9971_v46  ;;  %v10990_v46 = vld [vmem:[#allocation9_spill] sm:$0xff] }
 0x517   :  { %5127 = vmatpush.msrb.mxu1 %v5053_v23  ;;  %4544 = vmatpush.msra.mxu2 %v4363_v2  ;;  %v4347_v23 = vunpack.c.l.bf16 %v9967_v53  ;;  %v10118_v2 = vld [vmem:[#allocation2 + $0x1d0] sm:$0xff]  ;;  %v4688_v4 = vunpack.c.h.bf16 %v10110_v18 }
 0x518   :  { %4899 = vmatpush.msrb.mxu3 %v4704_v38  ;;  %5108 = vmatpush.msra.mxu0 %v4985_v48  ;;  %v10123_v38 = vld [vmem:[#allocation2 + $0xa30] sm:$0xff]  ;;  %v5034_v48 = vunpack.c.h.bf16 %v9963_v63 }
 0x519   :  { %5128 = vmatpush.msrb.mxu1 %v5049_v54  ;;  %4545 = vmatpush.msra.mxu2 %v4359_v32  ;;  %v4684_v54 = vunpack.c.h.bf16 %v10118_v2  ;;  %v4680_v63 = vunpack.c.h.bf16 %v10123_v38 }
 0x51a   :  { %4900 = vmatpush.msrb.mxu3 %v4700_v37  ;;  %5109 = vmatpush.msra.mxu0 %v4981_v43  ;;  %v10143_v37 = vpop.f32.mrf.mxu0  ;;  %v4734_v43 = vunpack.c.h.bf16 %v10990_v46 }
 0x51b   :  { %5129 = vmatpush.msrb.mxu1 %v5045_v33  ;;  %4546 = vmatpush.msra.mxu2 %v4355_v1  ;;  %v10152_v33 = vld [vmem:[#allocation2 + $0xbd8] sm:$0xff]  ;;  %v5022_v1 = vunpack.c.h.bf16 %v9994_v8  ;;  %v4980_v8 = vld [vmem:[#allocation2 + $0x2a0] sm:$0x11] }
 0x51c   :  { %5110 = vmatmul.f32.vlgmr.msra.gmra.mxu0 %v10106_v25  ;;  %5923 = vmatmul.msk.f32.vlgmr.msrb.gmra.mxu1 %vm1559_vm12, %v10103_v17 }
 0x51d   :  { %4901 = vmatpush.msrb.mxu3 %v4696_v19  ;;  %4547 = vmatpush.msra.mxu2 %v4351_v31  ;;  %v3593_v36 = vpop.f32.mrf.mxu2  ;;  %v4672_v31 = vunpack.c.h.bf16 %v10146_v60 }
 0x51e   :  { %5919 = vmatmul.msk.f32.vlgmr.msra.gmra.mxu3 %vm1559_vm12, %v9900_v10  ;;  %v3614_v53 = vadd.f32 %v9941_v13, %v3593_v36  ;;  %5134 = vmatpush.msra.mxu1 %v5042_v21  ;;  %v4738_v13 = vunpack.c.h.bf16 %v9849_v56  ;;  %v4676_v56 = vunpack.c.h.bf16 %v10133_v12  ;;  %v10157_v21 = vld [vmem:[#allocation2 + $0xe40] sm:$0xff] }
 0x51f   :  { %4902 = vmatpush.msrb.mxu3 %v4692_v29  ;;  %4548 = vmatpush.msra.mxu2 %v4347_v23  ;;  %v3872_v29 = vpop.f32.mrf.mxu1  ;;  %v10992_v23 = vld [vmem:[#allocation12_spill] sm:$0xff] }
 0x520   :  { %v10136_v32 = vadd.f32 %v3614_v53, %v9933_v20  ;;  %5135 = vmatpush.msra.mxu1 %v5038_v49  ;;  %v10141_v55 = vpop.f32.mrf.mxu3  ;;  %v5026_v20 = vunpack.c.h.bf16 %v9981_v45  ;;  %v5018_v45 = vunpack.c.h.bf16 %v10001_v62  ;;  %v4726_v49 = vunpack.c.h.bf16 %v10992_v23 }
 0x521   :  { %4903 = vmatpush.msrb.mxu3 %v4688_v4  ;;  %4549 = vmatpush.msra.mxu2 %v4343_v9  ;;  %v4668_v4 = vunpack.c.h.bf16 %v10152_v33  ;;  %v5014_v53 = vunpack.c.h.bf16 %v10007_v41  ;;  %v4719_v41 = vunpack.c.l.bf16 %v10029_v34  ;;  %v10183_v34 = vld [vmem:[#allocation2 + $0x548] sm:$0xff]  ;;  %v5064_v23 = vunpack.c.h.bf16 %v4980_v8 }
 0x522   :  { %4550 = vmatmul.f32.vlgmr.msra.gmra.mxu2 %v9691_v42  ;;  %5136 = vmatpush.msra.mxu1 %v5034_v48  ;;  %v10991_v42 = vld [vmem:[#allocation11_spill] sm:$0xff]  ;;  %v4723_v48 = vunpack.c.l.bf16 %v10021_v28  ;;  %v3972_v62 = vpop.f32.mrf.mxu0  ;;  %v10174_v28 = vld [vmem:[#allocation2 + $0x870] sm:$0xff] }
 0x523   :  { %5916 = vmatpush.msk.msrb.mxu2 %vm1563_vm9, %v4742_v30  ;;  %4904 = vmatpush.msrb.mxu3 %v4684_v54  ;;  %v4730_v19 = vunpack.c.h.bf16 %v10991_v42  ;;  %v4664_v30 = vunpack.c.h.bf16 %v10157_v21  ;;  %v10165_v54 = vld [vmem:[#allocation2 + $0xd30] sm:$0xff] }
 0x524   :  { %5137 = vmatpush.msra.mxu1 %v5030_v15  ;;  %v10189_v42 = vld [vmem:[#allocation2 + $0x290] sm:$0xff]  ;;  %5928 = vmatpush.msk.msrb.mxu0 %vm1563_vm9, %v5064_v23  ;;  %v10269_v23 = vld [vmem:[#allocation2 + $0xfa0] sm:$0xff] }
 0x525   :  { %4846 = vmatpush.msrb.mxu2 %v4738_v13  ;;  %4905 = vmatpush.msrb.mxu3 %v4680_v63  ;;  %v5010_v63 = vunpack.c.h.bf16 %v10015_v14 }
 0x526   :  { %5138 = vmatpush.msra.mxu1 %v5026_v20  ;;  %v5063_v20 = vunpack.c.l.bf16 %v4980_v8  ;;  %v10210_v8 = vld [vmem:[#allocation2 + $0x38] sm:$0xff] }
 0x527   :  { %4847 = vmatpush.msrb.mxu2 %v4734_v43  ;;  %4906 = vmatpush.msrb.mxu3 %v4676_v56  ;;  %v3892_v9 = vpop.f32.mrf.mxu2  ;;  %v5059_v43 = vunpack.c.l.bf16 %v10165_v54  ;;  %v5006_v56 = vunpack.c.h.bf16 %v10023_v39  ;;  %v5051_v39 = vunpack.c.l.bf16 %v10183_v34 }
 0x528   :  { %v3893_v36 = vadd.f32 %v3892_v9, %v3872_v29  ;;  %5139 = vmatpush.msra.mxu1 %v5022_v1  ;;  %v5055_v1 = vunpack.c.l.bf16 %v10174_v28  ;;  %v4994_v29 = vunpack.c.h.bf16 %v10051_v58  ;;  %v5060_v9 = vunpack.c.h.bf16 %v10165_v54  ;;  %v10224_v54 = vld [vmem:[#allocation2 + $0x7e8] sm:$0xff] }
 0x529   :  { %4848 = vmatpush.msrb.mxu2 %v4730_v19  ;;  %4907 = vmatpush.msrb.mxu3 %v4672_v31  ;;  %v10193_v19 = vld [vmem:[#allocation2 + $0x2b0] sm:$0xff]  ;;  %v4998_v31 = vunpack.c.h.bf16 %v10039_v61  ;;  %v10203_v61 = vld [vmem:[#allocation2 + $0xd18] sm:$0xff]  ;;  %v4695_v58 = vunpack.c.l.bf16 %v10096_v59  ;;  %v5032_v59 = vunpack.c.h.bf16 %v10210_v8 }
 0x52a   :  { %v10168_v15 = vadd.f32 %v3893_v36, %v9984_v40  ;;  %v3952_v13 = vpop.f32.mrf.mxu3  ;;  %5140 = vmatpush.msra.mxu1 %v5018_v45  ;;  %v4715_v40 = vunpack.c.l.bf16 %v10037_v16  ;;  %v5002_v16 = vunpack.c.h.bf16 %v10031_v3  ;;  %v5047_v3 = vunpack.c.l.bf16 %v10189_v42  ;;  %v10198_v45 = vld [vmem:[#allocation2 + $0x840] sm:$0xff]  ;;  %5246 = vmatpush.msrb.mxu0 %v5060_v9 }
 0x52b   :  { %4849 = vmatpush.msrb.mxu2 %v4726_v49  ;;  %4908 = vmatpush.msrb.mxu3 %v4668_v4  ;;  %v3973_v46 = vadd.f32 %v3972_v62, %v3952_v13  ;;  %v4699_v49 = vunpack.c.l.bf16 %v10081_v51  ;;  %v5040_v4 = vunpack.c.h.bf16 %v10198_v45  ;;  %v5036_v51 = vunpack.c.h.bf16 %v10203_v61 }
 0x52c   :  { %5917 = vmatmul.msk.f32.vlgmr.msrb.gmra.mxu2 %vm1559_vm12, %v9900_v10  ;;  %5141 = vmatpush.msra.mxu1 %v5014_v53  ;;  %v4711_v10 = vunpack.c.l.bf16 %v10049_v5  ;;  %v4703_v5 = vunpack.c.l.bf16 %v10067_v22  ;;  %v4990_v22 = vunpack.c.h.bf16 %v10059_v0  ;;  %v4986_v36 = vunpack.c.h.bf16 %v10069_v27  ;;  %v10216_v0 = vld [vmem:[#allocation2 + $0xe08] sm:$0xff] }
 0x52d   :  { %4854 = vmatpush.msra.mxu2 %v4723_v48  ;;  %4909 = vmatpush.msrb.mxu3 %v4664_v30  ;;  %v10179_v14 = vadd.f32 %v3973_v46, %v9990_v52  ;;  %v4707_v52 = vunpack.c.l.bf16 %v10057_v50  ;;  %v5044_v50 = vunpack.c.h.bf16 %v10193_v19  ;;  %v5056_v53 = vunpack.c.h.bf16 %v10174_v28  ;;  %v10238_v28 = vld [vmem:[#allocation2 + $0xf40] sm:$0xff] }
 0x52e   :  { %4910 = vmatmul.f32.vlgmr.msrb.gmra.mxu3 %v9903_v11  ;;  %5142 = vmatpush.msra.mxu1 %v5010_v63  ;;  %v4691_v48 = vunpack.c.l.bf16 %v10100_v6  ;;  %v4982_v30 = vunpack.c.h.bf16 %v10083_v47  ;;  %v5052_v62 = vunpack.c.h.bf16 %v10183_v34  ;;  %v4687_v27 = vunpack.c.l.bf16 %v10110_v18 }
 0x52f   :  { %4855 = vmatpush.msra.mxu2 %v4719_v41  ;;  %5926 = vmatpush.msk.msra.mxu3 %vm1563_vm9, %v5063_v20  ;;  %v5028_v6 = vunpack.c.h.bf16 %v10216_v0  ;;  %v5048_v13 = vunpack.c.h.bf16 %v10189_v42  ;;  %v4683_v63 = vunpack.c.l.bf16 %v10118_v2  ;;  %v10229_v41 = vld [vmem:[#allocation2 + $0x680] sm:$0xff]  ;;  %v5024_v47 = vunpack.c.h.bf16 %v10224_v54  ;;  %v10233_v20 = vld [vmem:[#allocation2 + $0xce8] sm:$0xff] }
 0x530   :  { %5143 = vmatpush.msra.mxu1 %v5006_v56  ;;  %5247 = vmatpush.msrb.mxu0 %v5056_v53  ;;  %v4679_v18 = vunpack.c.l.bf16 %v10123_v38  ;;  %v5020_v46 = vunpack.c.h.bf16 %v10229_v41  ;;  %v4675_v2 = vunpack.c.l.bf16 %v10133_v12  ;;  %v4671_v38 = vunpack.c.l.bf16 %v10146_v60  ;;  %v10248_v12 = vld [vmem:[#allocation2 + $0x880] sm:$0xff] }
 0x531   :  { %4856 = vmatpush.msra.mxu2 %v4715_v40  ;;  %5206 = vmatpush.msra.mxu3 %v5059_v43  ;;  %v5016_v40 = vunpack.c.h.bf16 %v10233_v20  ;;  %v10244_v43 = vld [vmem:[#allocation2 + $0xf98] sm:$0xff]  ;;  %v5012_v56 = vunpack.c.h.bf16 %v10238_v28  ;;  %v4667_v34 = vunpack.c.l.bf16 %v10152_v33  ;;  %v5004_v60 = vunpack.c.h.bf16 %v10248_v12 }
 0x532   :  { %5144 = vmatpush.msra.mxu1 %v5002_v16  ;;  %5248 = vmatpush.msrb.mxu0 %v5052_v62  ;;  %v10252_v16 = vld [vmem:[#allocation2 + $0xd10] sm:$0xff]  ;;  %v5062_v42 = vunpack.c.h.bf16 %v10043_v7  ;;  %v5054_v7 = vunpack.c.h.bf16 %v10063_v44  ;;  %v4988_v44 = vunpack.c.h.bf16 %v10269_v23  ;;  %v5023_v62 = vunpack.c.l.bf16 %v10224_v54 }
 0x533   :  { %4857 = vmatpush.msra.mxu2 %v4711_v10  ;;  %5207 = vmatpush.msra.mxu3 %v5055_v1  ;;  %v5008_v10 = vunpack.c.h.bf16 %v10244_v43  ;;  %v4663_v1 = vunpack.c.l.bf16 %v10157_v21  ;;  %v5000_v33 = vunpack.c.h.bf16 %v10252_v16  ;;  %v5011_v54 = vunpack.c.l.bf16 %v10238_v28 }
 0x534   :  { %5145 = vmatpush.msra.mxu1 %v4998_v31  ;;  %5249 = vmatpush.msrb.mxu0 %v5048_v13  ;;  %v10260_v31 = vld [vmem:[#allocation2 + $0xa8] sm:$0xff] }
 0x535   :  { %4858 = vmatpush.msra.mxu2 %v4707_v52  ;;  %5208 = vmatpush.msra.mxu3 %v5051_v39  ;;  %v10256_v52 = vld [vmem:[#allocation2 + $0xac8] sm:$0xff]  ;;  %v5058_v39 = vunpack.c.h.bf16 %v10055_v35  ;;  %v4992_v35 = vunpack.c.h.bf16 %v10260_v31 }
 0x536   :  { %5146 = vmatpush.msra.mxu1 %v4994_v29  ;;  %5929 = vmatmul.msk.f32.vlgmr.msrb.gmra.mxu0 %vm1559_vm12, %v10103_v17  ;;  %v4996_v21 = vunpack.c.h.bf16 %v10256_v52  ;;  %v10265_v29 = vpop.f32.mrf.mxu1  ;;  %v10319_v13 = vld [vmem:[%s10918_s5 + $0x68] sm:$0xff] }
 0x537   :  { %4859 = vmatpush.msra.mxu2 %v4703_v5  ;;  %5209 = vmatpush.msra.mxu3 %v5047_v3 }
 0x538   :  { %5147 = vmatpush.msra.mxu1 %v4990_v22  ;;  %5927 = vmatmul.msk.f32.vlgmr.msra.gmra.mxu3 %vm1559_vm12, %v10103_v17  ;;  %v5046_v22 = vunpack.c.h.bf16 %v10087_v26  ;;  %v5035_v26 = vunpack.c.l.bf16 %v10203_v61  ;;  %v10303_v61 = vld [vmem:[%s10918_s5 + $0x78] sm:$0xff] }
 0x539   :  { %5214 = vmatpush.msrb.mxu3 %v5044_v50  ;;  %4860 = vmatpush.msra.mxu2 %v4699_v49  ;;  %v10276_v49 = vld [vmem:[#allocation2 + $0x58] sm:$0xff] }
 0x53a   :  { %5148 = vmatpush.msra.mxu1 %v4986_v36  ;;  %v4984_v9 = vunpack.c.h.bf16 %v10276_v49 }
 0x53b   :  { %5215 = vmatpush.msrb.mxu3 %v5040_v4  ;;  %4861 = vmatpush.msra.mxu2 %v4695_v58  ;;  %v10280_v4 = vpop.f32.mrf.mxu0  ;;  %v5039_v58 = vunpack.c.l.bf16 %v10198_v45 }
 0x53c   :  { %5149 = vmatpush.msra.mxu1 %v4982_v30  ;;  %v5027_v30 = vunpack.c.l.bf16 %v10216_v0 }
 0x53d   :  { %5216 = vmatpush.msrb.mxu3 %v5036_v51  ;;  %4862 = vmatpush.msra.mxu2 %v4691_v48 }
 0x53e   :  { %5150 = vmatmul.f32.vlgmr.msra.gmra.mxu1 %v10106_v25 }
 0x53f   :  { %5217 = vmatpush.msrb.mxu3 %v5032_v59  ;;  %4863 = vmatpush.msra.mxu2 %v4687_v27  ;;  %v5031_v59 = vunpack.c.l.bf16 %v10210_v8  ;;  %v5428_v8 = vunpack.c.l.bf16 %v10303_v61  ;;  %v5015_v27 = vunpack.c.l.bf16 %v10233_v20  ;;  %v10332_v20 = vld [vmem:[%s10918_s5 + $0x58] sm:$0xff] }
 0x540   :  { %v5420_v28 = vunpack.c.l.bf16 %v10332_v20 }
 0x541   :  { %5218 = vmatpush.msrb.mxu3 %v5028_v6  ;;  %4864 = vmatpush.msra.mxu2 %v4683_v63  ;;  %v5007_v6 = vunpack.c.l.bf16 %v10244_v43  ;;  %v5003_v63 = vunpack.c.l.bf16 %v10248_v12  ;;  %v4987_v12 = vunpack.c.l.bf16 %v10269_v23  ;;  %v10381_v23 = vld [vmem:[%s10918_s5 + $0x20] sm:$0xff] }
 0x542   :  { %5532 = vmatpush.msra.mxu0 %v5428_v8 }
 0x543   :  { %5219 = vmatpush.msrb.mxu3 %v5024_v47  ;;  %4865 = vmatpush.msra.mxu2 %v4679_v18  ;;  %v4291_v53 = vpop.f32.mrf.mxu0  ;;  %v4999_v47 = vunpack.c.l.bf16 %v10252_v16  ;;  %v10327_v18 = vld [vmem:[%s10918_s5 + $0x60] sm:$0xff]  ;;  %v4983_v16 = vunpack.c.l.bf16 %v10276_v49 }
 0x545   :  { %5220 = vmatpush.msrb.mxu3 %v5020_v46  ;;  %4866 = vmatpush.msra.mxu2 %v4675_v2  ;;  %v10337_v46 = vld [vmem:[%s10918_s5 + $0x50] sm:$0xff]  ;;  %v5422_v2 = vunpack.c.l.bf16 %v10327_v18 }
 0x546   :  { %v5418_v43 = vunpack.c.l.bf16 %v10337_v46 }
 0x547   :  { %5221 = vmatpush.msrb.mxu3 %v5016_v40  ;;  %4867 = vmatpush.msra.mxu2 %v4671_v38  ;;  %v4995_v40 = vunpack.c.l.bf16 %v10256_v52  ;;  %v10345_v38 = vld [vmem:[%s10918_s5 + $0x48] sm:$0xff] }
 0x549   :  { %5222 = vmatpush.msrb.mxu3 %v5012_v56  ;;  %4868 = vmatpush.msra.mxu2 %v4667_v34  ;;  %v4991_v56 = vunpack.c.l.bf16 %v10260_v31  ;;  %v5416_v34 = vunpack.c.l.bf16 %v10345_v38 }
 0x54b   :  { %5223 = vmatpush.msrb.mxu3 %v5008_v10  ;;  %4869 = vmatpush.msra.mxu2 %v4663_v1  ;;  %v3912_v5 = vpop.f32.mrf.mxu2  ;;  %v10354_v10 = vld [vmem:[%s10918_s5 + $0x40] sm:$0xff]  ;;  %v10359_v1 = vld [vmem:[%s10918_s5 + $0x38] sm:$0xff]  ;;  %v4471_v31 = vpop.f32.mrf.mxu0 }
 0x54c   :  { %4870 = vmatmul.f32.vlgmr.msra.gmra.mxu2 %v9903_v11  ;;  %v3933_v3 = vadd.f32 %v10141_v55, %v3912_v5  ;;  %v5050_v11 = vunpack.c.h.bf16 %v10074_v57  ;;  %v4191_v57 = vpop.f32.mrf.mxu1  ;;  %v5412_v52 = vunpack.c.l.bf16 %v10359_v1 }
 0x54d   :  { %5224 = vmatpush.msrb.mxu3 %v5004_v60  ;;  %5924 = vmatpush.msk.msrb.mxu2 %vm1563_vm9, %v5062_v42  ;;  %v5414_v60 = vunpack.c.l.bf16 %v10354_v10  ;;  %v10366_v42 = vld [vmem:[%s10918_s5 + $0x30] sm:$0xff] }
 0x54e   :  { %v10273_v50 = vadd.f32 %v3933_v3, %v10136_v32  ;;  %v10278_v55 = vpop.f32.mrf.mxu3  ;;  %v5043_v32 = vunpack.c.l.bf16 %v10193_v19 }
 0x54f   :  { %5225 = vmatpush.msrb.mxu3 %v5000_v33  ;;  %5166 = vmatpush.msrb.mxu2 %v5058_v39  ;;  %v10372_v33 = vld [vmem:[%s10918_s5 + $0x28] sm:$0xff]  ;;  %v5410_v39 = vunpack.c.l.bf16 %v10366_v42 }
 0x551   :  { %5226 = vmatpush.msrb.mxu3 %v4996_v21  ;;  %5167 = vmatpush.msrb.mxu2 %v5054_v7  ;;  %v5408_v21 = vunpack.c.l.bf16 %v10372_v33 }
 0x553   :  { %5227 = vmatpush.msrb.mxu3 %v4992_v35  ;;  %5168 = vmatpush.msrb.mxu2 %v5050_v11  ;;  %v5406_v35 = vunpack.c.l.bf16 %v10381_v23 }
 0x554   :  { %v4491_v5 = vpop.f32.mrf.mxu1 }
 0x555   :  { %5228 = vmatpush.msrb.mxu3 %v4988_v44  ;;  %5169 = vmatpush.msrb.mxu2 %v5046_v22  ;;  %v4211_v51 = vpop.f32.mrf.mxu2 }
 0x556   :  { %5925 = vmatmul.msk.f32.vlgmr.msrb.gmra.mxu2 %vm1559_vm12, %v10103_v17  ;;  %v4212_v36 = vadd.f32 %v4211_v51, %v4191_v57 }
 0x557   :  { %5229 = vmatpush.msrb.mxu3 %v4984_v9  ;;  %5174 = vmatpush.msra.mxu2 %v5043_v32  ;;  %v10398_v9 = vld [vmem:[%s10918_s5 + $0x10] sm:$0xff]  ;;  %v10404_v32 = vld [vmem:[%s10918_s5 + $0x8] sm:$0xff] }
 0x558   :  { %5230 = vmatmul.f32.vlgmr.msrb.gmra.mxu3 %v10106_v25  ;;  %v10292_v48 = vadd.f32 %v4212_v36, %v10168_v15  ;;  %v4271_v19 = vpop.f32.mrf.mxu3  ;;  %v10308_v15 = vld [vmem:[%s10918_s5 + $0x70] sm:$0xff]  ;;  %v5400_v57 = vunpack.c.l.bf16 %v10404_v32 }
 0x559   :  { %5175 = vmatpush.msra.mxu2 %v5039_v58  ;;  %v4292_v45 = vadd.f32 %v4291_v53, %v4271_v19  ;;  %v5426_v0 = vunpack.c.l.bf16 %v10308_v15  ;;  %v10410_v58 = vld [vmem:[%s10918_s5] sm:$0xff]  ;;  %v5429_v53 = vunpack.c.h.bf16 %v10303_v61  ;;  %v5421_v61 = vunpack.c.h.bf16 %v10332_v20 }
 0x55a   :  { %v5398_v36 = vunpack.c.l.bf16 %v10410_v58  ;;  %v5413_v20 = vunpack.c.h.bf16 %v10359_v1  ;;  %v5403_v1 = vunpack.c.h.bf16 %v10398_v9 }
 0x55b   :  { %5176 = vmatpush.msra.mxu2 %v5035_v26  ;;  %v10297_v17 = vadd.f32 %v4292_v45, %v10179_v14  ;;  %v5019_v14 = vunpack.c.l.bf16 %v10229_v41  ;;  %5533 = vmatpush.msra.mxu0 %v5426_v0  ;;  %v5424_v41 = vunpack.c.l.bf16 %v10319_v13  ;;  %v5427_v45 = vunpack.c.h.bf16 %v10308_v15 }
 0x55c   :  { %v5425_v0 = vunpack.c.h.bf16 %v10319_v13  ;;  %v3853_v15 = vadd.f32 %v10129_v24, %v10143_v37  ;;  %v4172_v13 = vadd.f32 %v10265_v29, %v10280_v4  ;;  %v5411_v24 = vunpack.c.h.bf16 %v10366_v42 }
 0x55d   :  { %5177 = vmatpush.msra.mxu2 %v5031_v59  ;;  %5534 = vmatpush.msra.mxu0 %v5424_v41  ;;  %v10993_v41 = vld [vmem:[#allocation8_spill] sm:$0xff]  ;;  %v5407_v29 = vunpack.c.h.bf16 %v10381_v23  ;;  %v5399_v42 = vunpack.c.h.bf16 %v10410_v58  ;;  %v10505_v58 = vld [vmem:[%s10918_s5 + $0x1d8] sm:$0xff] }
 0x55e   :  { %v10481_v23 = vld [vmem:[%s10918_s5 + $0x1e8] sm:$0xff] }
 0x55f   :  { %5178 = vmatpush.msra.mxu2 %v5027_v30  ;;  %5535 = vmatpush.msra.mxu0 %v5422_v2  ;;  %v5409_v2 = vunpack.c.h.bf16 %v10372_v33  ;;  %v10458_v33 = vld [vmem:[%s10918_s5 + $0x1f8] sm:$0xff] }
 0x561   :  { %5179 = vmatpush.msra.mxu2 %v5023_v62  ;;  %5536 = vmatpush.msra.mxu0 %v5420_v28 }
 0x562   :  { %v4511_v44 = vpop.f32.mrf.mxu1  ;;  %v4611_v22 = vpop.f32.mrf.mxu0 }
 0x563   :  { %5180 = vmatpush.msra.mxu2 %v5019_v14  ;;  %5537 = vmatpush.msra.mxu0 %v5418_v43 }
 0x565   :  { %5181 = vmatpush.msra.mxu2 %v5015_v27  ;;  %5538 = vmatpush.msra.mxu0 %v5416_v34  ;;  %v5423_v27 = vunpack.c.h.bf16 %v10327_v18  ;;  %v4492_v18 = vadd.f32 %v4491_v5, %v4471_v31  ;;  %v10444_v34 = vld [vmem:[%s10918_s5 + $0xf8] sm:$0xff]  ;;  %v5524_v5 = vunpack.c.l.bf16 %v10458_v33 }
 0x567   :  { %5182 = vmatpush.msra.mxu2 %v5011_v54  ;;  %5539 = vmatpush.msra.mxu0 %v5414_v60  ;;  %v5401_v60 = vunpack.c.h.bf16 %v10404_v32 }
 0x568   :  { %5592 = vmatpush.msra.mxu3 %v5524_v5 }
 0x569   :  { %5183 = vmatpush.msra.mxu2 %v5007_v6  ;;  %5540 = vmatpush.msra.mxu0 %v5412_v52  ;;  %v10453_v52 = vld [vmem:[%s10918_s5 + $0xf0] sm:$0xff] }
 0x56a   :  { %v5458_v31 = vunpack.c.l.bf16 %v10453_v52 }
 0x56b   :  { %5184 = vmatpush.msra.mxu2 %v5003_v63  ;;  %5541 = vmatpush.msra.mxu0 %v5410_v39  ;;  %v4791_v62 = vpop.f32.mrf.mxu0  ;;  %v4811_v8 = vpop.f32.mrf.mxu1  ;;  %v5415_v63 = vunpack.c.h.bf16 %v10354_v10  ;;  %v10463_v39 = vld [vmem:[%s10918_s5 + $0xe8] sm:$0xff] }
 0x56d   :  { %5185 = vmatpush.msra.mxu2 %v4999_v47  ;;  %5542 = vmatpush.msra.mxu0 %v5408_v21  ;;  %v3975_v47 = vadd.f32 %v3853_v15, %v10993_v41  ;;  %v5456_v21 = vunpack.c.l.bf16 %v10463_v39  ;;  %v10536_v15 = vld [vmem:[%s10918_s5 + $0xc0] sm:$0xff] }
 0x56f   :  { %5186 = vmatpush.msra.mxu2 %v4995_v40  ;;  %5543 = vmatpush.msra.mxu0 %v5406_v35  ;;  %v4294_v37 = vadd.f32 %v4172_v13, %v3975_v47 }
 0x571   :  { %5187 = vmatpush.msra.mxu2 %v4991_v56  ;;  %v4614_v28 = vadd.f32 %v4492_v18, %v4294_v37  ;;  %v10558_v37 = vld [vmem:[%s10918_s5 + $0x1c0] sm:$0xff] }
 0x573   :  { %5188 = vmatpush.msra.mxu2 %v4987_v12  ;;  %v5460_v12 = vunpack.c.l.bf16 %v10444_v34 }
 0x575   :  { %5189 = vmatpush.msra.mxu2 %v4983_v16  ;;  %5552 = vmatpush.msrb.mxu1 %v5460_v12 }
 0x576   :  { %5190 = vmatmul.f32.vlgmr.msra.gmra.mxu2 %v10106_v25  ;;  %v10390_v25 = vld [vmem:[%s10918_s5 + $0x18] sm:$0xff] }
 0x577   :  { %v5405_v56 = vunpack.c.h.bf16 %v10390_v25  ;;  %5553 = vmatpush.msrb.mxu1 %v5458_v31 }
 0x579   :  { %v4231_v3 = vpop.f32.mrf.mxu2  ;;  %5554 = vmatpush.msrb.mxu1 %v5456_v21 }
 0x57a   :  { %v4252_v7 = vadd.f32 %v10278_v55, %v4231_v3  ;;  %v5404_v55 = vunpack.c.l.bf16 %v10390_v25  ;;  %v10471_v3 = vld [vmem:[%s10918_s5 + $0x1f0] sm:$0xff]  ;;  %v10487_v25 = vld [vmem:[%s10918_s5 + $0xd8] sm:$0xff] }
 0x57b   :  { %v5522_v35 = vunpack.c.l.bf16 %v10471_v3 }
 0x57c   :  { %v10385_v11 = vadd.f32 %v4252_v7, %v10273_v50  ;;  %v10392_v49 = vpop.f32.mrf.mxu3  ;;  %5544 = vmatpush.msra.mxu0 %v5404_v55  ;;  %v5402_v50 = vunpack.c.l.bf16 %v10398_v9  ;;  %v10476_v7 = vld [vmem:[%s10918_s5 + $0xe0] sm:$0xff]  ;;  %v5520_v9 = vunpack.c.l.bf16 %v10481_v23 }
 0x57d   :  { %v10492_v55 = vld [vmem:[%s10918_s5 + $0x1e0] sm:$0xff]  ;;  %5593 = vmatpush.msra.mxu3 %v5522_v35  ;;  %v10606_v35 = vld [vmem:[%s10918_s5 + $0x98] sm:$0xff] }
 0x57e   :  { %5545 = vmatpush.msra.mxu0 %v5402_v50 }
 0x57f   :  { %5594 = vmatpush.msra.mxu3 %v5520_v9 }
 0x580   :  { %5546 = vmatpush.msra.mxu0 %v5400_v57  ;;  %v10500_v57 = vld [vmem:[%s10918_s5 + $0xd0] sm:$0xff] }
 0x582   :  { %5547 = vmatpush.msra.mxu0 %v5398_v36 }
 0x583   :  { %v4531_v51 = vpop.f32.mrf.mxu2 }
 0x584   :  { %v4532_v26 = vadd.f32 %v4531_v51, %v4511_v44  ;;  %5612 = vmatpush.msrb.mxu0 %v5429_v53 }
 0x586   :  { %v10415_v19 = vadd.f32 %v4532_v26, %v10292_v48  ;;  %v4591_v59 = vpop.f32.mrf.mxu3  ;;  %5613 = vmatpush.msrb.mxu0 %v5427_v45  ;;  %v5419_v48 = vunpack.c.h.bf16 %v10337_v46  ;;  %v4812_v46 = vadd.f32 %v4811_v8, %v4791_v62  ;;  %v5452_v26 = vunpack.c.l.bf16 %v10487_v25 }
 0x587   :  { %v4612_v30 = vadd.f32 %v4611_v22, %v4591_v59  ;;  %v5454_v22 = vunpack.c.l.bf16 %v10476_v7  ;;  %v5450_v59 = vunpack.c.l.bf16 %v10500_v57  ;;  %v5516_v45 = vunpack.c.l.bf16 %v10505_v58 }
 0x588   :  { %5614 = vmatpush.msrb.mxu0 %v5425_v0 }
 0x589   :  { %v10420_v14 = vadd.f32 %v4612_v30, %v10297_v17  ;;  %v5417_v17 = vunpack.c.h.bf16 %v10345_v38  ;;  %v4934_v38 = vadd.f32 %v4812_v46, %v4614_v28  ;;  %5555 = vmatpush.msrb.mxu1 %v5454_v22  ;;  %v10522_v30 = vld [vmem:[%s10918_s5 + $0xc8] sm:$0xff]  ;;  %v5436_v22 = vunpack.c.l.bf16 %v10606_v35 }
 0x58a   :  { %5615 = vmatpush.msrb.mxu0 %v5423_v27  ;;  %v5448_v0 = vunpack.c.l.bf16 %v10522_v30 }
 0x58b   :  { %5556 = vmatpush.msrb.mxu1 %v5452_v26 }
 0x58c   :  { %5616 = vmatpush.msrb.mxu0 %v5421_v61 }
 0x58d   :  { %5557 = vmatpush.msrb.mxu1 %v5450_v59  ;;  %v10635_v59 = vld [vmem:[%s10918_s5 + $0x190] sm:$0xff] }
 0x58e   :  { %5617 = vmatpush.msrb.mxu0 %v5419_v48 }
 0x58f   :  { %5558 = vmatpush.msrb.mxu1 %v5448_v0  ;;  %v10647_v0 = vld [vmem:[%s10918_s5 + $0x188] sm:$0xff] }
 0x590   :  { %v10427_v54 = vpop.f32.mrf.mxu1  ;;  %v10429_v6 = vpop.f32.mrf.mxu0  ;;  %5618 = vmatpush.msrb.mxu0 %v5417_v17  ;;  %v10541_v17 = vld [vmem:[%s10918_s5 + $0x1c8] sm:$0xff] }
 0x591   :  { %v5512_v41 = vunpack.c.l.bf16 %v10541_v17 }
 0x592   :  { %5619 = vmatpush.msrb.mxu0 %v5415_v63  ;;  %v5446_v63 = vunpack.c.l.bf16 %v10536_v15 }
 0x594   :  { %5620 = vmatpush.msrb.mxu0 %v5413_v20  ;;  %5559 = vmatpush.msrb.mxu1 %v5446_v63  ;;  %v5461_v63 = vunpack.c.h.bf16 %v10444_v34  ;;  %v5459_v34 = vunpack.c.h.bf16 %v10453_v52  ;;  %v10683_v52 = vld [vmem:[%s10918_s5 + $0x160] sm:$0xff] }
 0x596   :  { %5621 = vmatpush.msrb.mxu0 %v5411_v24  ;;  %v10553_v24 = vld [vmem:[%s10918_s5 + $0xb8] sm:$0xff] }
 0x597   :  { %v5444_v46 = vunpack.c.l.bf16 %v10553_v24 }
 0x598   :  { %5622 = vmatpush.msrb.mxu0 %v5409_v2  ;;  %v5510_v2 = vunpack.c.l.bf16 %v10558_v37 }
 0x599   :  { %v5111_v4 = vpop.f32.mrf.mxu0  ;;  %v5131_v40 = vpop.f32.mrf.mxu1  ;;  %5560 = vmatpush.msrb.mxu1 %v5444_v46  ;;  %v10675_v46 = vld [vmem:[%s10918_s5 + $0x168] sm:$0xff] }
 0x59a   :  { %v5132_v43 = vadd.f32 %v5131_v40, %v5111_v4  ;;  %5623 = vmatpush.msrb.mxu0 %v5407_v29  ;;  %v10572_v29 = vld [vmem:[%s10918_s5 + $0x1b8] sm:$0xff]  ;;  %v10577_v4 = vld [vmem:[%s10918_s5 + $0xa8] sm:$0xff]  ;;  %v10582_v40 = vld [vmem:[%s10918_s5 + $0x1b0] sm:$0xff] }
 0x59b   :  { %v5440_v12 = vunpack.c.l.bf16 %v10577_v4 }
 0x59c   :  { %v5254_v10 = vadd.f32 %v5132_v43, %v4934_v38  ;;  %5624 = vmatpush.msrb.mxu0 %v5405_v56  ;;  %v5508_v56 = vunpack.c.l.bf16 %v10572_v29 }
 0x59e   :  { %v5930_v16 = vmul.f32 -1.442695, %v5254_v10  ;;  %5625 = vmatpush.msrb.mxu0 %v5403_v1  ;;  %v5506_v10 = vunpack.c.l.bf16 %v10582_v40 }
 0x5a0   :  { %5970 = vpow2.f32 %v5930_v16  ;;  %5626 = vmatpush.msrb.mxu0 %v5401_v60 }
 0x5a1   :  { %v10509_v36 = vpop.f32.mrf.mxu3 }
 0x5a2   :  { %5627 = vmatpush.msrb.mxu0 %v5399_v42  ;;  %v10599_v42 = vld [vmem:[%s10918_s5 + $0x1a8] sm:$0xff] }
 0x5a3   :  { %v5504_v21 = vunpack.c.l.bf16 %v10599_v42 }
 0x5a5   :  { %v4551_v44 = vpop.f32.mrf.mxu2 }
 0x5a6   :  { %v5971_v50 = vpop.eup %5970  ;;  %v4572_v32 = vadd.f32 %v10392_v49, %v4551_v44  ;;  %v5518_v49 = vunpack.c.l.bf16 %v10492_v55  ;;  %v10611_v44 = vld [vmem:[%s10918_s5 + $0x1a0] sm:$0xff] }
 0x5a7   :  { %v10507_v51 = vadd.f32 1.0, %v5971_v50  ;;  %v5502_v9 = vunpack.c.l.bf16 %v10611_v44  ;;  %v10618_v50 = vld [vmem:[%s10918_s5 + $0x90] sm:$0xff] }
 0x5a8   :  { %v10514_v53 = vadd.f32 %v4572_v32, %v10385_v11  ;;  %5595 = vmatpush.msra.mxu3 %v5518_v49  ;;  %v10527_v11 = vld [vmem:[%s10918_s5 + $0x1d0] sm:$0xff]  ;;  %v10623_v32 = vld [vmem:[%s10918_s5 + $0x198] sm:$0xff]  ;;  %v10630_v49 = vld [vmem:[%s10918_s5 + $0x88] sm:$0xff] }
 0x5a9   :  { %5972 = vrcp.f32 %v10507_v51  ;;  %v5514_v27 = vunpack.c.l.bf16 %v10527_v11  ;;  %v5283_v20 = vand.u32 2147483647, %v10507_v51  ;;  %vm5279_vm14 = vweird.f32 %v10507_v51 }
 0x5aa   :  { %5596 = vmatpush.msra.mxu3 %v5516_v45  ;;  %v5500_v26 = vunpack.c.l.bf16 %v10623_v32  ;;  %v5432_v45 = vunpack.c.l.bf16 %v10630_v49 }
 0x5ab   :  { %vm5284_vm0 = vcmp.eq.f32.partialorder %v5283_v20, 8.507059e+37 }
 0x5ac   :  { %5597 = vmatpush.msra.mxu3 %v5514_v27 }
 0x5ae   :  { %5598 = vmatpush.msra.mxu3 %v5512_v41  ;;  %v10661_v41 = vld [vmem:[%s10918_s5 + $0x180] sm:$0xff] }
 0x5af   :  { %v5973_v62 = vpop.eup %5972  ;;  %v4851_v8 = vpop.f32.mrf.mxu2 }
 0x5b0   :  { %v4852_v61 = vadd.f32 %v4851_v8, %v10427_v54  ;;  %v5275_v48 = vmul.f32 %v5973_v62, %v10507_v51  ;;  %vm5280_vm13 = vweird.f32 %v5973_v62  ;;  %5599 = vmatpush.msra.mxu3 %v5510_v2  ;;  %v10642_v8 = vld [vmem:[%s10918_s5 + $0x80] sm:$0xff]  ;;  %v5488_v2 = vunpack.c.l.bf16 %v10675_v46 }
 0x5b1   :  { %v4911_v13 = vpop.f32.mrf.mxu3  ;;  %vm5281_vm15 = vmor %vm5279_vm14, %vm5280_vm13  ;;  %v5430_v27 = vunpack.c.l.bf16 %v10642_v8 }
 0x5b2   :  { %v10546_v54 = vadd.f32 %v4852_v61, %v10415_v19  ;;  %v4932_v47 = vadd.f32 %v10429_v6, %v4911_v13  ;;  %v5276_v18 = vsub.f32 1.0, %v5275_v48  ;;  %v10563_v19 = vld [vmem:[%s10918_s5 + $0xb0] sm:$0xff]  ;;  %v5285_v6 = vand.u32 2147483648, %v10507_v51  ;;  %5600 = vmatpush.msra.mxu3 %v5508_v56  ;;  %v10654_v48 = vld [vmem:[%s10918_s5 + $0x178] sm:$0xff] }
 0x5b3   :  { %v5442_v28 = vunpack.c.l.bf16 %v10563_v19  ;;  %v5434_v51 = vunpack.c.l.bf16 %v10618_v50  ;;  %v5496_v61 = vunpack.c.l.bf16 %v10647_v0  ;;  %v5492_v13 = vunpack.c.l.bf16 %v10654_v48 }
 0x5b4   :  { %v10585_v38 = vadd.f32 %v4932_v47, %v10420_v14  ;;  %v5277_v43 = vmul.f32 %v5973_v62, %v5276_v18  ;;  %v5286_v16 = vor.u32 1.1754944e-38, %v5285_v6  ;;  %v10594_v14 = vld [vmem:[%s10918_s5 + $0xa0] sm:$0xff]  ;;  %5601 = vmatpush.msra.mxu3 %v5506_v10  ;;  %v5494_v47 = vunpack.c.l.bf16 %v10661_v41  ;;  %v10667_v18 = vld [vmem:[%s10918_s5 + $0x170] sm:$0xff] }
 0x5b5   :  { %5561 = vmatpush.msrb.mxu1 %v5442_v28  ;;  %v5438_v5 = vunpack.c.l.bf16 %v10594_v14  ;;  %5572 = vmatpush.msrb.mxu2 %v5492_v13  ;;  %v5490_v20 = vunpack.c.l.bf16 %v10667_v18  ;;  %v5525_v6 = vunpack.c.h.bf16 %v10458_v33  ;;  %v5457_v28 = vunpack.c.h.bf16 %v10463_v39  ;;  %v10691_v39 = vld [vmem:[%s10918_s5 + $0x158] sm:$0xff] }
 0x5b6   :  { %v5278_v1 = vadd.f32 %v5973_v62, %v5277_v43  ;;  %5602 = vmatpush.msra.mxu3 %v5504_v21  ;;  %v5523_v43 = vunpack.c.h.bf16 %v10471_v3  ;;  %v5486_v33 = vunpack.c.l.bf16 %v10683_v52  ;;  %v5455_v56 = vunpack.c.h.bf16 %v10476_v7  ;;  %v10699_v7 = vld [vmem:[%s10918_s5 + $0x150] sm:$0xff]  ;;  %v10720_v21 = vld [vmem:[%s10918_s5 + $0x138] sm:$0xff] }
 0x5b7   :  { %5562 = vmatpush.msrb.mxu1 %v5440_v12  ;;  %5573 = vmatpush.msrb.mxu2 %v5490_v20  ;;  %v5521_v12 = vunpack.c.h.bf16 %v10481_v23  ;;  %v5484_v3 = vunpack.c.l.bf16 %v10691_v39  ;;  %v5453_v10 = vunpack.c.h.bf16 %v10487_v25  ;;  %v5451_v23 = vunpack.c.h.bf16 %v10500_v57  ;;  %v10712_v25 = vld [vmem:[%s10918_s5 + $0x140] sm:$0xff] }
 0x5b8   :  { %v5282_v60 = vsel %vm5281_vm15, %v5973_v62, %v5278_v1  ;;  %5603 = vmatpush.msra.mxu3 %v5502_v9  ;;  %v5498_v62 = vunpack.c.l.bf16 %v10635_v59  ;;  %v5519_v1 = vunpack.c.h.bf16 %v10492_v55  ;;  %v5449_v57 = vunpack.c.h.bf16 %v10522_v30  ;;  %v10730_v30 = vld [vmem:[%s10918_s5 + $0x130] sm:$0xff] }
 0x5b9   :  { %v5287_v31 = vsel %vm5284_vm0, %v5286_v16, %v5282_v60  ;;  %5563 = vmatpush.msrb.mxu1 %v5438_v5  ;;  %5574 = vmatpush.msrb.mxu2 %v5488_v2  ;;  %v10705_v16 = vld [vmem:[%s10918_s5 + $0x148] sm:$0xff]  ;;  %v5482_v60 = vunpack.c.l.bf16 %v10699_v7  ;;  %v5515_v5 = vunpack.c.h.bf16 %v10527_v11  ;;  %v5507_v13 = vunpack.c.h.bf16 %v10582_v40  ;;  %v10759_v40 = vld [vmem:[%s10918_s5 + $0x118] sm:$0xff] }
 0x5ba   :  { %5548 = vmatmul.f32.vlgmr.msra.gmra.mxu0 %v5287_v31  ;;  %5604 = vmatpush.msra.mxu3 %v5500_v26  ;;  %v5480_v55 = vunpack.c.l.bf16 %v10705_v16  ;;  %v5476_v26 = vunpack.c.l.bf16 %v10720_v21  ;;  %v5439_v20 = vunpack.c.h.bf16 %v10594_v14 }
 0x5bb   :  { %5564 = vmatpush.msrb.mxu1 %v5436_v22  ;;  %5575 = vmatpush.msrb.mxu2 %v5486_v33  ;;  %v5447_v22 = vunpack.c.h.bf16 %v10536_v15  ;;  %v10732_v11 = vpop.f32.mrf.mxu3  ;;  %v5511_v15 = vunpack.c.h.bf16 %v10558_v37  ;;  %v5441_v37 = vunpack.c.h.bf16 %v10577_v4  ;;  %v5505_v4 = vunpack.c.h.bf16 %v10599_v42  ;;  %v10767_v42 = vld [vmem:[%s10918_s5 + $0x110] sm:$0xff] }
 0x5bc   :  { %5605 = vmatpush.msra.mxu3 %v5498_v62  ;;  %v5474_v62 = vunpack.c.l.bf16 %v10730_v30  ;;  %v5503_v33 = vunpack.c.h.bf16 %v10611_v44  ;;  %v10777_v44 = vld [vmem:[%s10918_s5 + $0x108] sm:$0xff] }
 0x5bd   :  { %5565 = vmatpush.msrb.mxu1 %v5434_v51  ;;  %5576 = vmatpush.msrb.mxu2 %v5484_v3  ;;  %v5513_v51 = vunpack.c.h.bf16 %v10541_v17  ;;  %v10740_v17 = vld [vmem:[%s10918_s5 + $0x128] sm:$0xff]  ;;  %v5435_v3 = vunpack.c.h.bf16 %v10618_v50 }
 0x5be   :  { %5606 = vmatpush.msra.mxu3 %v5496_v61  ;;  %v5509_v61 = vunpack.c.h.bf16 %v10572_v29 }
 0x5bf   :  { %5566 = vmatpush.msrb.mxu1 %v5432_v45  ;;  %5577 = vmatpush.msrb.mxu2 %v5482_v60  ;;  %v5445_v45 = vunpack.c.h.bf16 %v10553_v24  ;;  %v5472_v24 = vunpack.c.l.bf16 %v10740_v17  ;;  %v5499_v60 = vunpack.c.h.bf16 %v10635_v59  ;;  %v5495_v59 = vunpack.c.h.bf16 %v10661_v41 }
 0x5c0   :  { %5607 = vmatpush.msra.mxu3 %v5494_v47  ;;  %v5251_v47 = vpop.f32.mrf.mxu0  ;;  %v5483_v41 = vunpack.c.h.bf16 %v10699_v7 }
 0x5c1   :  { %5567 = vmatpush.msrb.mxu1 %v5430_v27  ;;  %5578 = vmatpush.msrb.mxu2 %v5480_v55  ;;  %v5443_v27 = vunpack.c.h.bf16 %v10563_v19  ;;  %v10751_v19 = vld [vmem:[%s10918_s5 + $0x120] sm:$0xff]  ;;  %v5497_v55 = vunpack.c.h.bf16 %v10647_v0  ;;  %v5487_v0 = vunpack.c.h.bf16 %v10683_v52  ;;  %v5477_v52 = vunpack.c.h.bf16 %v10720_v21 }
 0x5c2   :  { %5628 = vmatmul.f32.vlgmr.msrb.gmra.mxu0 %v5287_v31  ;;  %5672 = vmatpush.msrb.mxu3 %v5525_v6  ;;  %v5517_v31 = vunpack.c.h.bf16 %v10505_v58  ;;  %v5478_v58 = vunpack.c.l.bf16 %v10712_v25  ;;  %v5470_v29 = vunpack.c.l.bf16 %v10751_v19 }
 0x5c3   :  { %5632 = vmatpush.msra.mxu1 %v5461_v63  ;;  %v5151_v63 = vpop.f32.mrf.mxu1 }
 0x5c4   :  { %5673 = vmatpush.msrb.mxu3 %v5523_v43  ;;  %5579 = vmatpush.msrb.mxu2 %v5478_v58  ;;  %v5437_v43 = vunpack.c.h.bf16 %v10606_v35 }
 0x5c5   :  { %5633 = vmatpush.msra.mxu1 %v5459_v34 }
 0x5c6   :  { %5674 = vmatpush.msrb.mxu3 %v5521_v12  ;;  %5580 = vmatpush.msrb.mxu2 %v5476_v26  ;;  %v5466_v12 = vunpack.c.l.bf16 %v10767_v42 }
 0x5c7   :  { %5634 = vmatpush.msra.mxu1 %v5457_v28  ;;  %v5468_v28 = vunpack.c.l.bf16 %v10759_v40 }
 0x5c8   :  { %5675 = vmatpush.msrb.mxu3 %v5519_v1  ;;  %5581 = vmatpush.msrb.mxu2 %v5474_v62 }
 0x5c9   :  { %5635 = vmatpush.msra.mxu1 %v5455_v56 }
 0x5ca   :  { %5676 = vmatpush.msrb.mxu3 %v5517_v31  ;;  %5582 = vmatpush.msrb.mxu2 %v5472_v24  ;;  %v5431_v31 = vunpack.c.h.bf16 %v10642_v8 }
 0x5cb   :  { %5636 = vmatpush.msra.mxu1 %v5453_v10  ;;  %v5501_v10 = vunpack.c.h.bf16 %v10623_v32 }
 0x5cc   :  { %5677 = vmatpush.msrb.mxu3 %v5515_v5  ;;  %5583 = vmatpush.msrb.mxu2 %v5470_v29  ;;  %v5489_v5 = vunpack.c.h.bf16 %v10675_v46  ;;  %v5479_v46 = vunpack.c.h.bf16 %v10712_v25  ;;  %v5473_v25 = vunpack.c.h.bf16 %v10740_v17 }
 0x5cd   :  { %5637 = vmatpush.msra.mxu1 %v5451_v23  ;;  %v5433_v23 = vunpack.c.h.bf16 %v10630_v49  ;;  %v5493_v49 = vunpack.c.h.bf16 %v10654_v48  ;;  %v5485_v48 = vunpack.c.h.bf16 %v10691_v39  ;;  %v5475_v39 = vunpack.c.h.bf16 %v10730_v30 }
 0x5ce   :  { %5678 = vmatpush.msrb.mxu3 %v5513_v51  ;;  %5584 = vmatpush.msrb.mxu2 %v5468_v28  ;;  %v5471_v30 = vunpack.c.h.bf16 %v10751_v19  ;;  %v5467_v19 = vunpack.c.h.bf16 %v10767_v42 }
 0x5cf   :  { %v10724_v9 = vpop.f32.mrf.mxu2  ;;  %5638 = vmatpush.msra.mxu1 %v5449_v57  ;;  %v5491_v57 = vunpack.c.h.bf16 %v10667_v18  ;;  %v5481_v18 = vunpack.c.h.bf16 %v10705_v16 }
 0x5d0   :  { %5679 = vmatpush.msrb.mxu3 %v5511_v15  ;;  %5585 = vmatpush.msrb.mxu2 %v5466_v12 }
 0x5d1   :  { %5639 = vmatpush.msra.mxu1 %v5447_v22 }
 0x5d2   :  { %5680 = vmatpush.msrb.mxu3 %v5509_v61 }
 0x5d3   :  { %5640 = vmatpush.msra.mxu1 %v5445_v45 }
 0x5d4   :  { %5681 = vmatpush.msrb.mxu3 %v5507_v13 }
 0x5d5   :  { %5641 = vmatpush.msra.mxu1 %v5443_v27 }
 0x5d6   :  { %5682 = vmatpush.msrb.mxu3 %v5505_v4 }
 0x5d7   :  { %5642 = vmatpush.msra.mxu1 %v5441_v37 }
 0x5d8   :  { %5683 = vmatpush.msrb.mxu3 %v5503_v33 }
 0x5d9   :  { %v5171_v34 = vpop.f32.mrf.mxu2  ;;  %5643 = vmatpush.msra.mxu1 %v5439_v20 }
 0x5da   :  { %v5172_v6 = vadd.f32 %v5171_v34, %v5151_v63  ;;  %5684 = vmatpush.msrb.mxu3 %v5501_v10 }
 0x5db   :  { %v5231_v2 = vpop.f32.mrf.mxu3  ;;  %5644 = vmatpush.msra.mxu1 %v5437_v43 }
 0x5dc   :  { %v5252_v14 = vadd.f32 %v5251_v47, %v5231_v2  ;;  %v5255_v56 = vadd.f32 %v5172_v6, %v10546_v54  ;;  %v5464_v54 = vunpack.c.l.bf16 %v10777_v44  ;;  %5685 = vmatpush.msrb.mxu3 %v5499_v60  ;;  %v4892_v47 = vadd.f32 %v10509_v36, %v10724_v9 }
 0x5dd   :  { %5645 = vmatpush.msra.mxu1 %v5435_v3  ;;  %v5469_v36 = vunpack.c.h.bf16 %v10759_v40 }
 0x5de   :  { %v5257_v35 = vadd.f32 %v5252_v14, %v10585_v38  ;;  %v5931_v1 = vmul.f32 -1.442695, %v5255_v56  ;;  %v10785_v38 = vld [vmem:[%s10918_s5 + $0x100] sm:$0xff]  ;;  %5586 = vmatpush.msrb.mxu2 %v5464_v54  ;;  %5686 = vmatpush.msrb.mxu3 %v5497_v55  ;;  %v4936_v9 = vadd.f32 %v4892_v47, %v10514_v53  ;;  %v5465_v14 = vunpack.c.h.bf16 %v10777_v44  ;;  %v5741_v55 = vld [vmem:[%s10920_s7 + $0x58] sm:$0xff] }
 0x5df   :  { %5646 = vmatpush.msra.mxu1 %v5433_v23  ;;  %v5462_v32 = vunpack.c.l.bf16 %v10785_v38  ;;  %v5463_v12 = vunpack.c.h.bf16 %v10785_v38  ;;  %v5744_v38 = vld [vmem:[%s10920_s7 + $0x70] sm:$0xff] }
 0x5e0   :  { %v5933_v50 = vmul.f32 -1.442695, %v5257_v35  ;;  %5974 = vpow2.f32 %v5931_v1  ;;  %5687 = vmatpush.msrb.mxu3 %v5495_v59  ;;  %v5740_v59 = vld [vmem:[%s10920_s7 + $0x50] sm:$0xff] }
 0x5e1   :  { %5587 = vmatpush.msrb.mxu2 %v5462_v32  ;;  %5647 = vmatpush.msra.mxu1 %v5431_v31  ;;  %v5743_v32 = vld [vmem:[%s10920_s7 + $0x68] sm:$0xff]  ;;  %v5742_v31 = vld [vmem:[%s10920_s7 + $0x60] sm:$0xff] }
 0x5e2   :  { %5976 = vpow2.f32 %v5933_v50  ;;  %v5745_v50 = vld [vmem:[%s10920_s7 + $0x78] sm:$0xff] }
 0x5e3   :  { %5652 = vmatpush.msra.mxu2 %v5493_v49  ;;  %5766 = vmatpush.msra.mxu0 %v5745_v50  ;;  %v5761_v49 = vld [vmem:[%s10920_s7 + $0xf8] sm:$0xff] }
 0x5e5   :  { %5653 = vmatpush.msra.mxu2 %v5491_v57  ;;  %5767 = vmatpush.msra.mxu0 %v5744_v38  ;;  %v5760_v57 = vld [vmem:[%s10920_s7 + $0xf0] sm:$0xff] }
 0x5e6   :  { %v5975_v58 = vpop.eup %5974 }
 0x5e7   :  { %v5271_v22 = vadd.f32 1.0, %v5975_v58  ;;  %5654 = vmatpush.msra.mxu2 %v5489_v5  ;;  %5768 = vmatpush.msra.mxu0 %v5743_v32  ;;  %v5739_v5 = vld [vmem:[%s10920_s7 + $0x48] sm:$0xff] }
 0x5e8   :  { %v5977_v8 = vpop.eup %5976  ;;  %v5759_v58 = vld [vmem:[%s10920_s7 + $0xe8] sm:$0xff] }
 0x5e9   :  { %v5273_v51 = vadd.f32 1.0, %v5977_v8  ;;  %5978 = vrcp.f32 %v5271_v22  ;;  %5655 = vmatpush.msra.mxu2 %v5487_v0  ;;  %v5300_v61 = vand.u32 2147483648, %v5271_v22  ;;  %v5298_v37 = vand.u32 2147483647, %v5271_v22  ;;  %5769 = vmatpush.msra.mxu0 %v5742_v31  ;;  %v5738_v8 = vld [vmem:[%s10920_s7 + $0x40] sm:$0xff]  ;;  %v5737_v0 = vld [vmem:[%s10920_s7 + $0x38] sm:$0xff] }
 0x5ea   :  { %vm5294_vm3 = vweird.f32 %v5271_v22 }
 0x5eb   :  { %5980 = vrcp.f32 %v5273_v51  ;;  %5656 = vmatpush.msra.mxu2 %v5485_v48  ;;  %v5330_v16 = vand.u32 2147483648, %v5273_v51  ;;  %v5328_v63 = vand.u32 2147483647, %v5273_v51  ;;  %v5301_v29 = vor.u32 1.1754944e-38, %v5300_v61  ;;  %5770 = vmatpush.msra.mxu0 %v5741_v55  ;;  %v5736_v48 = vld [vmem:[%s10920_s7 + $0x30] sm:$0xff] }
 0x5ec   :  { %vm5324_vm5 = vweird.f32 %v5273_v51  ;;  %vm5299_vm6 = vcmp.eq.f32.partialorder %v5298_v37, 8.507059e+37  ;;  %v5731_v37 = vld [vmem:[%s10920_s7 + $0x8] sm:$0xff] }
 0x5ed   :  { %5657 = vmatpush.msra.mxu2 %v5483_v41  ;;  %v5331_v34 = vor.u32 1.1754944e-38, %v5330_v16  ;;  %vm5329_vm8 = vcmp.eq.f32.partialorder %v5328_v63, 8.507059e+37  ;;  %5771 = vmatpush.msra.mxu0 %v5740_v59  ;;  %v5756_v41 = vld [vmem:[%s10920_s7 + $0xd0] sm:$0xff]  ;;  %v5751_v16 = vld [vmem:[%s10920_s7 + $0xa8] sm:$0xff]  ;;  %v5730_v63 = vld [vmem:[%s10920_s7] sm:$0xff] }
 0x5ef   :  { %v5979_v26 = vpop.eup %5978  ;;  %5658 = vmatpush.msra.mxu2 %v5481_v18  ;;  %5772 = vmatpush.msra.mxu0 %v5739_v5  ;;  %v5735_v18 = vld [vmem:[%s10920_s7 + $0x28] sm:$0xff] }
 0x5f0   :  { %v5290_v15 = vmul.f32 %v5979_v26, %v5271_v22  ;;  %vm5295_vm1 = vweird.f32 %v5979_v26  ;;  %v5758_v22 = vld [vmem:[%s10920_s7 + $0xe0] sm:$0xff] }
 0x5f1   :  { %v5981_v45 = vpop.eup %5980  ;;  %5659 = vmatpush.msra.mxu2 %v5479_v46  ;;  %vm5296_vm4 = vmor %vm5294_vm3, %vm5295_vm1  ;;  %5773 = vmatpush.msra.mxu0 %v5738_v8  ;;  %v5526_v46 = vld [vmem:[%s10919_s6] sm:$0x3] }
 0x5f2   :  { %v5320_v62 = vmul.f32 %v5981_v45, %v5273_v51  ;;  %v5291_v27 = vsub.f32 1.0, %v5290_v15  ;;  %vm5325_vm2 = vweird.f32 %v5981_v45  ;;  %v5757_v51 = vld [vmem:[%s10920_s7 + $0xd8] sm:$0xff]  ;;  %v5754_v15 = vld [vmem:[%s10920_s7 + $0xc0] sm:$0xff]  ;;  %v5528_v61 = vperm.slane %v5526_v46, 0 }
 0x5f3   :  { %5660 = vmatpush.msra.mxu2 %v5477_v52  ;;  %vm5326_vm7 = vmor %vm5324_vm5, %vm5325_vm2  ;;  %5774 = vmatpush.msra.mxu0 %v5737_v0  ;;  %v5733_v52 = vld [vmem:[%s10920_s7 + $0x18] sm:$0xff]  ;;  %vm5806_vm5 = vcmask 1024  }
 0x5f4   :  { %v5321_v24 = vsub.f32 1.0, %v5320_v62  ;;  %v5292_v7 = vmul.f32 %v5979_v26, %v5291_v27  ;;  %v5753_v27 = vld [vmem:[%s10920_s7 + $0xb8] sm:$0xff] }
 0x5f5   :  { %5661 = vmatpush.msra.mxu2 %v5475_v39  ;;  %5775 = vmatpush.msra.mxu0 %v5736_v48  ;;  %v5752_v39 = vld [vmem:[%s10920_s7 + $0xb0] sm:$0xff] }
 0x5f6   :  { %v5322_v13 = vmul.f32 %v5981_v45, %v5321_v24  ;;  %v5293_v21 = vadd.f32 %v5979_v26, %v5292_v7  ;;  %v5732_v24 = vld [vmem:[%s10920_s7 + $0x10] sm:$0xff] }
 0x5f7   :  { %5662 = vmatpush.msra.mxu2 %v5473_v25  ;;  %5776 = vmatpush.msra.mxu0 %v5735_v18  ;;  %v5750_v25 = vld [vmem:[%s10920_s7 + $0xa0] sm:$0xff] }
 0x5f8   :  { %v5323_v20 = vadd.f32 %v5981_v45, %v5322_v13  ;;  %v5297_v4 = vsel %vm5296_vm4, %v5979_v26, %v5293_v21  ;;  %v5755_v26 = vld [vmem:[%s10920_s7 + $0xc8] sm:$0xff] }
 0x5f9   :  { %v5191_v6 = vpop.f32.mrf.mxu2  ;;  %v5302_v2 = vsel %vm5299_vm6, %v5301_v29, %v5297_v4  ;;  %5663 = vmatpush.msra.mxu2 %v5471_v30  ;;  %v5749_v4 = vld [vmem:[%s10920_s7 + $0x98] sm:$0xff] }
 0x5fa   :  { %v5327_v17 = vsel %vm5326_vm7, %v5981_v45, %v5323_v20  ;;  %v5212_v28 = vadd.f32 %v10732_v11, %v5191_v6  ;;  %5568 = vmatmul.f32.vlgmr.msrb.gmra.mxu1 %v5302_v2  ;;  %v5734_v45 = vld [vmem:[%s10920_s7 + $0x20] sm:$0xff]  ;;  %v5529_v20 = vperm.slane %v5526_v46, 1 }
 0x5fb   :  { %v5332_v43 = vsel %vm5329_vm8, %v5331_v34, %v5327_v17  ;;  %5664 = vmatpush.msra.mxu2 %v5469_v36  ;;  %5786 = vmatpush.msrb.mxu1 %v5761_v49  ;;  %v5748_v34 = vld [vmem:[%s10920_s7 + $0x90] sm:$0xff]  ;;  %v5747_v17 = vld [vmem:[%s10920_s7 + $0x88] sm:$0xff] }
 0x5fc   :  { %5608 = vmatmul.f32.vlgmr.msra.gmra.mxu3 %v5332_v43  ;;  %v5256_v33 = vadd.f32 %v5212_v28, %v4936_v9  ;;  %5777 = vmatpush.msra.mxu0 %v5734_v45 }
 0x5fd   :  { %5665 = vmatpush.msra.mxu2 %v5467_v19  ;;  %5787 = vmatpush.msrb.mxu1 %v5760_v57 }
 0x5fe   :  { %v5932_v56 = vmul.f32 -1.442695, %v5256_v33  ;;  %5778 = vmatpush.msra.mxu0 %v5733_v52 }
 0x5ff   :  { %5666 = vmatpush.msra.mxu2 %v5465_v14  ;;  %5788 = vmatpush.msrb.mxu1 %v5759_v58 }
 0x600   :  { %5982 = vpow2.f32 %v5932_v56  ;;  %5779 = vmatpush.msra.mxu0 %v5732_v24 }
 0x601   :  { %5667 = vmatpush.msra.mxu2 %v5463_v12  ;;  %5789 = vmatpush.msrb.mxu1 %v5758_v22 }
 0x602   :  { %5648 = vmatmul.f32.vlgmr.msra.gmra.mxu1 %v5302_v2  ;;  %5780 = vmatpush.msra.mxu0 %v5731_v37 }
 0x603   :  { %5790 = vmatpush.msrb.mxu1 %v5757_v51  ;;  %v5969_v51 = vld [vmem:[#allocation4] ss:$0 sm:$0xff] }
 0x604   :  { %5688 = vmatmul.f32.vlgmr.msrb.gmra.mxu3 %v5332_v43  ;;  %5781 = vmatpush.msra.mxu0 %v5730_v63  ;;  %v5746_v43 = vld [vmem:[%s10920_s7 + $0x80] sm:$0xff] }
 0x605   :  { %5791 = vmatpush.msrb.mxu1 %v5756_v41 }
 0x606   :  { %v5983_v53 = vpop.eup %5982 }
 0x607   :  { %v5272_v11 = vadd.f32 1.0, %v5983_v53  ;;  %5792 = vmatpush.msrb.mxu1 %v5755_v26 }
 0x609   :  { %5984 = vrcp.f32 %v5272_v11  ;;  %v5315_v42 = vand.u32 2147483648, %v5272_v11  ;;  %v5313_v1 = vand.u32 2147483647, %v5272_v11  ;;  %vm5309_vm10 = vweird.f32 %v5272_v11  ;;  %5793 = vmatpush.msrb.mxu1 %v5754_v15 }
 0x60b   :  { %v5316_v54 = vor.u32 1.1754944e-38, %v5315_v42  ;;  %vm5314_vm12 = vcmp.eq.f32.partialorder %v5313_v1, 8.507059e+37  ;;  %5794 = vmatpush.msrb.mxu1 %v5753_v27 }
 0x60d   :  { %5795 = vmatpush.msrb.mxu1 %v5752_v39 }
 0x60f   :  { %v5985_v40 = vpop.eup %5984  ;;  %5796 = vmatpush.msrb.mxu1 %v5751_v16 }
 0x610   :  { %v5305_v3 = vmul.f32 %v5985_v40, %v5272_v11  ;;  %vm5310_vm9 = vweird.f32 %v5985_v40 }
 0x611   :  { %vm5311_vm11 = vmor %vm5309_vm10, %vm5310_vm9  ;;  %5797 = vmatpush.msrb.mxu1 %v5750_v25 }
 0x612   :  { %v5306_v10 = vsub.f32 1.0, %v5305_v3 }
 0x613   :  { %5798 = vmatpush.msrb.mxu1 %v5749_v4 }
 0x614   :  { %v5307_v35 = vmul.f32 %v5985_v40, %v5306_v10 }
 0x615   :  { %5799 = vmatpush.msrb.mxu1 %v5748_v34 }
 0x616   :  { %v5308_v44 = vadd.f32 %v5985_v40, %v5307_v35 }
 0x617   :  { %5800 = vmatpush.msrb.mxu1 %v5747_v17 }
 0x618   :  { %v5312_v23 = vsel %vm5311_vm11, %v5985_v40, %v5308_v44 }
 0x619   :  { %v5317_v60 = vsel %vm5314_vm12, %v5316_v54, %v5312_v23  ;;  %5801 = vmatpush.msrb.mxu1 %v5746_v43 }
 0x61a   :  { %5588 = vmatmul.f32.vlgmr.msrb.gmra.mxu2 %v5317_v60 }
 0x622   :  { %5668 = vmatmul.f32.vlgmr.msra.gmra.mxu2 %v5317_v60 }
 0x637   :  { %v5549_v62 = vpop.f32.mrf.mxu0 }
 0x638   :  { %v5550_v13 = vadd.f32 %v5549_v62, %v5528_v61 }
 0x63f   :  { %v5629_v6 = vpop.f32.mrf.mxu0 }
 0x640   :  { %v5630_v9 = vadd.f32 %v5629_v6, %v5529_v20 }
 0x677   :  { %v5569_v7 = vpop.f32.mrf.mxu1 }
 0x678   :  { %v5570_v47 = vadd.f32 %v5569_v7, %v5550_v13 }
 0x67f   :  { %v5609_v21 = vpop.f32.mrf.mxu3  ;;  %v5649_v36 = vpop.f32.mrf.mxu1 }
 0x680   :  { %v5650_v19 = vadd.f32 %v5649_v36, %v5630_v9 }
 0x687   :  { %v5689_v56 = vpop.f32.mrf.mxu3 }
 0x69d   :  { %v5589_v29 = vpop.f32.mrf.mxu2 }
 0x69e   :  { %v5590_v30 = vadd.f32 %v5589_v29, %v5570_v47 }
 0x6a0   :  { %v5610_v2 = vadd.f32 %v5609_v21, %v5590_v30 }
 0x6a2   :  { %v5934_v28 = vmul.f32 -1.442695, %v5610_v2 }
 0x6a4   :  { %5986 = vpow2.f32 %v5934_v28 }
 0x6a5   :  { %v5669_v33 = vpop.f32.mrf.mxu2 }
 0x6a6   :  { %v5670_v14 = vadd.f32 %v5669_v33, %v5650_v19 }
 0x6a8   :  { %v5690_v12 = vadd.f32 %v5689_v56, %v5670_v14 }
 0x6aa   :  { %v5987_v53 = vpop.eup %5986  ;;  %v5935_v11 = vmul.f32 -1.442695, %v5690_v12 }
 0x6ab   :  { %v5698_v40 = vadd.f32 1.0, %v5987_v53 }
 0x6ac   :  { %5988 = vpow2.f32 %v5935_v11 }
 0x6ad   :  { %5990 = vrcp.f32 %v5698_v40  ;;  %v5711_v44 = vand.u32 2147483648, %v5698_v40  ;;  %v5709_v23 = vand.u32 2147483647, %v5698_v40  ;;  %vm5705_vm14 = vweird.f32 %v5698_v40 }
 0x6af   :  { %v5712_v38 = vor.u32 1.1754944e-38, %v5711_v44  ;;  %vm5710_vm0 = vcmp.eq.f32.partialorder %v5709_v23, 8.507059e+37 }
 0x6b2   :  { %v5989_v3 = vpop.eup %5988 }
 0x6b3   :  { %v5991_v10 = vpop.eup %5990  ;;  %v5699_v42 = vadd.f32 1.0, %v5989_v3 }
 0x6b4   :  { %v5701_v35 = vmul.f32 %v5991_v10, %v5698_v40  ;;  %vm5706_vm13 = vweird.f32 %v5991_v10 }
 0x6b5   :  { %5992 = vrcp.f32 %v5699_v42  ;;  %vm5707_vm15 = vmor %vm5705_vm14, %vm5706_vm13  ;;  %v5726_v59 = vand.u32 2147483648, %v5699_v42  ;;  %v5724_v5 = vand.u32 2147483647, %v5699_v42  ;;  %vm5720_vm2 = vweird.f32 %v5699_v42 }
 0x6b6   :  { %v5702_v1 = vsub.f32 1.0, %v5701_v35 }
 0x6b7   :  { %v5727_v8 = vor.u32 1.1754944e-38, %v5726_v59  ;;  %vm5725_vm4 = vcmp.eq.f32.partialorder %v5724_v5, 8.507059e+37 }
 0x6b8   :  { %v5703_v54 = vmul.f32 %v5991_v10, %v5702_v1 }
 0x6ba   :  { %v5704_v60 = vadd.f32 %v5991_v10, %v5703_v54 }
 0x6bb   :  { %v5993_v50 = vpop.eup %5992 }
 0x6bc   :  { %v5708_v32 = vsel %vm5707_vm15, %v5991_v10, %v5704_v60  ;;  %v5716_v31 = vmul.f32 %v5993_v50, %v5699_v42  ;;  %vm5721_vm1 = vweird.f32 %v5993_v50 }
 0x6bd   :  { %v5713_v55 = vsel %vm5710_vm0, %v5712_v38, %v5708_v32  ;;  %vm5722_vm3 = vmor %vm5720_vm2, %vm5721_vm1 }
 0x6be   :  { %5782 = vmatmul.f32.vlgmr.msra.gmra.mxu0 %v5713_v55  ;;  %v5717_v49 = vsub.f32 1.0, %v5716_v31 }
 0x6c0   :  { %v5718_v57 = vmul.f32 %v5993_v50, %v5717_v49 }
 0x6c2   :  { %v5719_v58 = vadd.f32 %v5993_v50, %v5718_v57 }
 0x6c4   :  { %v5723_v22 = vsel %vm5722_vm3, %v5993_v50, %v5719_v58 }
 0x6c5   :  { %v5728_v0 = vsel %vm5725_vm4, %v5727_v8, %v5723_v22 }
 0x6c6   :  { %5802 = vmatmul.f32.vlgmr.msrb.gmra.mxu1 %v5728_v0 }
 0x73b   :  { %v5783_v48 = vpop.f32.mrf.mxu0 }
 0x73c   :  { %v5784_v41 = vadd.f32 %v5969_v51, %v5783_v48 }
 0x743   :  { %v5803_v18 = vpop.f32.mrf.mxu1 }
 0x744   :  { %v5804_v26 = vadd.f32 %v5803_v18, %v5784_v41 }
 0x746   :  { %5807 = vst.msk [vmem:[%s10922_s9] sm:$0x3] %vm5806_vm5, %v5804_v26 }
 0x747   :  { %5812 = vsyncmov [#allocation3] }
 0x74a   :  { %s5813_s24 = vpop.sfrf %5812 }
 0x74b   :  { %p5936_p0 = scmp.ne.s32.totalorder %s5813_s24, 0 }
 0x74d   :  { %5817 = shalt.err (%p5936_p0)  }

</bundles_post_ra>
